<compile_context>
chip_gen: v7x
topology: tpu7x:2x2x1
jax: 0.10.0
libtpu: 0.0.40
codegen_flags: <defaults>
</compile_context>

<pallas_src>
import functools

import jax
import jax.numpy as jnp
from jax.experimental import pallas as pl
from jax.experimental.pallas import tpu as pltpu


def round_up(n, m):
    return ((n + m - 1) // m) * m


# --------------- fused conv3x3 + BN + ReLU + 2x2 maxpool kernel --------------


def conv_bn_relu_pool_kernel(x_ref, w_ref, scale_ref, shift_ref, o_ref, *,
                             H, W, Cin, Cout):
    # x_ref:  (TB, H+2, (W+2)//2, 2*Cin)  zero-padded NHWC input block; the
    #         padded width is pre-split into (half-width, parity) pairs folded
    #         onto the lane dim (done by a free reshape in the wrapper).
    # w_ref:  (2, 6, 2*Cin, Cout) fused conv weight:
    #         leading dims = (output-column parity p, dy*2 + g) where g is the
    #         half-width shift of the input slice; rows = (input parity r, ci).
    # o_ref:  (TB, H//2, W//2, Cout) pooled output block.
    TB = o_ref.shape[0]
    Hh, Wh = H // 2, W // 2
    M = TB * H * Wh

    acc0 = jnp.zeros((M, Cout), jnp.float32)   # conv output at even columns
    acc1 = jnp.zeros((M, Cout), jnp.float32)   # conv output at odd columns
    for dy in range(3):
        for g in range(2):
            xs = x_ref[:, dy:dy + H, g:g + Wh, :]           # (TB, H, Wh, 2*Cin)
            xs2 = xs.reshape(M, 2 * Cin)
            acc0 = acc0 + jnp.dot(xs2, w_ref[0, dy * 2 + g],
                                  preferred_element_type=jnp.float32)
            acc1 = acc1 + jnp.dot(xs2, w_ref[1, dy * 2 + g],
                                  preferred_element_type=jnp.float32)

    # Folded BatchNorm affine + ReLU (inference mode), then 2x2 max pool.
    scale = scale_ref[...]
    shift = shift_ref[...]
    y0 = jnp.maximum(acc0 * scale + shift, 0.0)
    y1 = jnp.maximum(acc1 * scale + shift, 0.0)
    hmax = jnp.maximum(y0, y1)                              # pool over w-pairs
    v = hmax.reshape(TB * Hh, 2, Wh, Cout)                  # split h into pairs
    pooled = jnp.maximum(v[:, 0, :, :], v[:, 1, :, :])      # pool over h-pairs
    o_ref[...] = pooled.reshape(TB, Hh, Wh, Cout)


def conv_bn_relu_pool(x_nhwc, w_fused, scale, shift):
    B, H, W, Cin = x_nhwc.shape
    Cout = w_fused.shape[-1]
    Hh, Wh = H // 2, W // 2
    Hp, Wq = H + 2, (W + 2) // 2

    xp = jnp.pad(x_nhwc, ((0, 0), (1, 1), (1, 1), (0, 0)))
    xr = xp.reshape(B, Hp, Wq, 2 * Cin)      # pure relabeling, no data movement

    TB = next(d for d in (4, 2, 1) if B % d == 0)
    kernel = functools.partial(conv_bn_relu_pool_kernel,
                               H=H, W=W, Cin=Cin, Cout=Cout)
    return pl.pallas_call(
        kernel,
        out_shape=jax.ShapeDtypeStruct((B, Hh, Wh, Cout), jnp.float32),
        grid=(B // TB,),
        in_specs=[
            pl.BlockSpec((TB, Hp, Wq, 2 * Cin), lambda i: (i, 0, 0, 0)),
            pl.BlockSpec((2, 6, 2 * Cin, Cout), lambda i: (0, 0, 0, 0)),
            pl.BlockSpec((1, Cout), lambda i: (0, 0)),
            pl.BlockSpec((1, Cout), lambda i: (0, 0)),
        ],
        out_specs=pl.BlockSpec((TB, Hh, Wh, Cout), lambda i: (i, 0, 0, 0)),
        compiler_params=pltpu.CompilerParams(
            dimension_semantics=("parallel",)),
    )(xr, w_fused, scale, shift)


# ------------------------------ linear layers --------------------------------


def linear_kernel(x_ref, w_ref, b_ref, o_ref, *, relu):
    y = jnp.dot(x_ref[...], w_ref[...], preferred_element_type=jnp.float32)
    y = y + b_ref[...]
    if relu:
        y = jnp.maximum(y, 0.0)
    o_ref[...] = y


def linear(x, w, b, *, relu=False, tm=512):
    M, K = x.shape
    N = w.shape[1]
    tm = min(tm, round_up(M, 8))
    Mp = round_up(M, tm)
    xp = x if Mp == M else jnp.pad(x, ((0, Mp - M), (0, 0)))
    out = pl.pallas_call(
        functools.partial(linear_kernel, relu=relu),
        out_shape=jax.ShapeDtypeStruct((Mp, N), jnp.float32),
        grid=(Mp // tm,),
        in_specs=[
            pl.BlockSpec((tm, K), lambda i: (i, 0)),
            pl.BlockSpec((K, N), lambda i: (0, 0)),
            pl.BlockSpec((1, N), lambda i: (0, 0)),
        ],
        out_specs=pl.BlockSpec((tm, N), lambda i: (i, 0)),
        compiler_params=pltpu.CompilerParams(
            dimension_semantics=("parallel",)),
    )(xp, w, b.reshape(1, N))
    return out if Mp == M else out[:M]


# -------------------------- parameter preparation ----------------------------


def fold_bn(conv_bias, gamma, beta, mean, var, eps=1e-5):
    scale = gamma / jnp.sqrt(var + eps)
    shift = beta + (conv_bias - mean) * scale
    return scale.reshape(1, -1), shift.reshape(1, -1)


def make_fused_conv_weight(w_torch_layout):
    """(Cout, Cin, 3, 3) torch weight -> (2, 6, 2*Cin, Cout) fused weight.

    Entry [p, dy*2+g, r*Cin+ci, co] = w[dy, dx, ci, co] with dx = 2*g + r - p
    when 0 <= dx <= 2, else 0.  p is the output-column parity handled by the
    fused pool epilogue.
    """
    cout, cin = w_torch_layout.shape[0], w_torch_layout.shape[1]
    w = jnp.transpose(w_torch_layout, (2, 3, 1, 0))   # (3, 3, Cin, Cout)
    zero = jnp.zeros((cin, cout), w.dtype)
    per_p = []
    for p in range(2):
        blocks = []
        for dy in range(3):
            for g in range(2):
                rows = []
                for r in range(2):
                    dx = 2 * g + r - p
                    rows.append(w[dy, dx] if 0 <= dx <= 2 else zero)
                blocks.append(jnp.concatenate(rows, axis=0))   # (2*Cin, Cout)
        per_p.append(jnp.stack(blocks, axis=0))                # (6, 2*Cin, Cout)
    return jnp.stack(per_p, axis=0)                            # (2, 6, 2*Cin, Cout)


def make_fc1_weight(fc1_w_torch, C, H, W):
    # torch (out, C*H*W) with NCHW flatten order -> (H*W*C, out) with NHWC
    # flatten order, so the runtime flatten is a free reshape (no transpose).
    out = fc1_w_torch.shape[0]
    w = fc1_w_torch.reshape(out, C, H, W)
    w = jnp.transpose(w, (2, 3, 1, 0))                 # (H, W, C, out)
    return w.reshape(H * W * C, out)


def init_params(key):
    ks = jax.random.split(key, 14)

    w1_t = 0.1 * jax.random.normal(ks[0], (16, 3, 3, 3), jnp.float32)
    b1 = 0.1 * jax.random.normal(ks[1], (16,), jnp.float32)
    g1 = 1.0 + 0.1 * jax.random.normal(ks[2], (16,), jnp.float32)
    be1 = 0.1 * jax.random.normal(ks[3], (16,), jnp.float32)
    m1 = 0.1 * jax.random.normal(ks[4], (16,), jnp.float32)
    v1 = jax.random.uniform(ks[5], (16,), jnp.float32, 0.5, 1.5)

    w2_t = 0.05 * jax.random.normal(ks[6], (32, 16, 3, 3), jnp.float32)
    b2 = 0.1 * jax.random.normal(ks[7], (32,), jnp.float32)
    g2 = 1.0 + 0.1 * jax.random.normal(ks[8], (32,), jnp.float32)
    be2 = 0.1 * jax.random.normal(ks[9], (32,), jnp.float32)
    m2 = 0.1 * jax.random.normal(ks[10], (32,), jnp.float32)
    v2 = jax.random.uniform(ks[11], (32,), jnp.float32, 0.5, 1.5)

    fc1_w_t = 0.02 * jax.random.normal(ks[12], (256, 32 * 8 * 8), jnp.float32)
    fc1_b = jnp.zeros((256,), jnp.float32)
    fc2_w_t = 0.05 * jax.random.normal(ks[13], (10, 256), jnp.float32)
    fc2_b = jnp.zeros((10,), jnp.float32)

    scale1, shift1 = fold_bn(b1, g1, be1, m1, v1)
    scale2, shift2 = fold_bn(b2, g2, be2, m2, v2)

    return {
        "w1": make_fused_conv_weight(w1_t),            # (2, 6, 6, 16)
        "scale1": scale1, "shift1": shift1,
        "w2": make_fused_conv_weight(w2_t),            # (2, 6, 32, 32)
        "scale2": scale2, "shift2": shift2,
        "fc1_w": make_fc1_weight(fc1_w_t, 32, 8, 8),   # (2048, 256), NHWC rows
        "fc1_b": fc1_b,
        "fc2_w": jnp.transpose(fc2_w_t),               # (256, 10)
        "fc2_b": fc2_b,
    }


# --------------------------------- forward -----------------------------------


def custom_cnn_forward(x_nchw, params):
    B = x_nchw.shape[0]
    x = jnp.transpose(x_nchw, (0, 2, 3, 1))            # NCHW -> NHWC (input only)
    y = conv_bn_relu_pool(x, params["w1"], params["scale1"], params["shift1"])
    y = conv_bn_relu_pool(y, params["w2"], params["scale2"], params["shift2"])
    flat = y.reshape(B, -1)                            # NHWC flatten, free reshape
    h = linear(flat, params["fc1_w"], params["fc1_b"], relu=True)
    # Dropout(0.5): identity in eval mode.
    return linear(h, params["fc2_w"], params["fc2_b"], relu=False)


if __name__ == "__main__":
    key = jax.random.PRNGKey(0)
    kx, kp = jax.random.split(key)
    B = 2
    # fc1 expects 32*8*8 features => spatial must be 32x32 (two 2x2 pools).
    x = jax.random.normal(kx, (B, 3, 32, 32), dtype=jnp.float32)   # NCHW like PyTorch
    params = init_params(kp)

    logits = jax.jit(custom_cnn_forward)(x, params)
    logits = jax.block_until_ready(logits)
    assert logits.shape == (B, 10) and logits.dtype == jnp.float32
    print("KERNEL_OK")
</pallas_src>

<mosaic_0001>
module attributes {stable_mosaic.version = 11 : i64} {
  func.func @conv_bn_relu_pool_kernel(%arg0: i32, %arg1: memref<2x34x17x6xf32, #tpu.memory_space<vmem>>, %arg2: memref<2x6x6x16xf32, #tpu.memory_space<vmem>>, %arg3: memref<1x16xf32, #tpu.memory_space<vmem>>, %arg4: memref<1x16xf32, #tpu.memory_space<vmem>>, %arg5: memref<2x16x16x16xf32, #tpu.memory_space<vmem>>) attributes {dimension_semantics = [#tpu.dimension_semantics<parallel>], iteration_bounds = array<i64: 1>, scalar_prefetch = 0 : i64, scratch_operands = 0 : i64, tpu.core_type = #tpu.core_type<tc>, window_params = [{transform_indices = @transform_0, window_bounds = array<i64: 2, 34, 17, 6>}, {pipeline_mode = #tpu.pipeline_mode<synchronous>, transform_indices = @transform_1, window_bounds = array<i64: 2, 6, 6, 16>}, {pipeline_mode = #tpu.pipeline_mode<synchronous>, transform_indices = @transform_2, window_bounds = array<i64: 1, 16>}, {pipeline_mode = #tpu.pipeline_mode<synchronous>, transform_indices = @transform_3, window_bounds = array<i64: 1, 16>}, {transform_indices = @transform_4, window_bounds = array<i64: 2, 16, 16, 16>}]} {
    %cst = arith.constant 0.000000e+00 : f32
    %0 = vector.broadcast %cst : f32 to vector<1024x16xf32>
    %cst_0 = arith.constant 0.000000e+00 : f32
    %1 = vector.broadcast %cst_0 : f32 to vector<1024x16xf32>
    %c0 = arith.constant 0 : index
    %c0_1 = arith.constant 0 : index
    %c0_2 = arith.constant 0 : index
    %c0_3 = arith.constant 0 : index
    %2 = vector.load %arg1[%c0, %c0_1, %c0_2, %c0_3] : memref<2x34x17x6xf32, #tpu.memory_space<vmem>>, vector<2x32x16x6xf32>
    %3 = vector.shape_cast %2 : vector<2x32x16x6xf32> to vector<1024x6xf32>
    %c0_4 = arith.constant 0 : index
    %c0_5 = arith.constant 0 : index
    %c0_6 = arith.constant 0 : index
    %c0_7 = arith.constant 0 : index
    %4 = vector.load %arg2[%c0_4, %c0_5, %c0_6, %c0_7] : memref<2x6x6x16xf32, #tpu.memory_space<vmem>>, vector<1x1x6x16xf32>
    %5 = vector.shape_cast %4 : vector<1x1x6x16xf32> to vector<6x16xf32>
    %cst_8 = arith.constant dense<0.000000e+00> : vector<1024x16xf32>
    %6 = tpu.matmul %3, %5, %cst_8 {dimension_numbers = #tpu.dot_dimension_numbers<[1], [0], [0], [1], [0, 0, 1, 1], [], []>} : vector<1024x6xf32>, vector<6x16xf32>, vector<1024x16xf32> -> vector<1024x16xf32>
    %7 = arith.addf %0, %6 : vector<1024x16xf32>
    %c1 = arith.constant 1 : index
    %c0_9 = arith.constant 0 : index
    %c0_10 = arith.constant 0 : index
    %c0_11 = arith.constant 0 : index
    %8 = vector.load %arg2[%c1, %c0_9, %c0_10, %c0_11] : memref<2x6x6x16xf32, #tpu.memory_space<vmem>>, vector<1x1x6x16xf32>
    %9 = vector.shape_cast %8 : vector<1x1x6x16xf32> to vector<6x16xf32>
    %cst_12 = arith.constant dense<0.000000e+00> : vector<1024x16xf32>
    %10 = tpu.matmul %3, %9, %cst_12 {dimension_numbers = #tpu.dot_dimension_numbers<[1], [0], [0], [1], [0, 0, 1, 1], [], []>} : vector<1024x6xf32>, vector<6x16xf32>, vector<1024x16xf32> -> vector<1024x16xf32>
    %11 = arith.addf %1, %10 : vector<1024x16xf32>
    %c0_13 = arith.constant 0 : index
    %c0_14 = arith.constant 0 : index
    %c1_15 = arith.constant 1 : index
    %c0_16 = arith.constant 0 : index
    %12 = vector.load %arg1[%c0_13, %c0_14, %c1_15, %c0_16] : memref<2x34x17x6xf32, #tpu.memory_space<vmem>>, vector<2x32x16x6xf32>
    %13 = vector.shape_cast %12 : vector<2x32x16x6xf32> to vector<1024x6xf32>
    %c0_17 = arith.constant 0 : index
    %c1_18 = arith.constant 1 : index
    %c0_19 = arith.constant 0 : index
    %c0_20 = arith.constant 0 : index
    %14 = vector.load %arg2[%c0_17, %c1_18, %c0_19, %c0_20] : memref<2x6x6x16xf32, #tpu.memory_space<vmem>>, vector<1x1x6x16xf32>
    %15 = vector.shape_cast %14 : vector<1x1x6x16xf32> to vector<6x16xf32>
    %cst_21 = arith.constant dense<0.000000e+00> : vector<1024x16xf32>
    %16 = tpu.matmul %13, %15, %cst_21 {dimension_numbers = #tpu.dot_dimension_numbers<[1], [0], [0], [1], [0, 0, 1, 1], [], []>} : vector<1024x6xf32>, vector<6x16xf32>, vector<1024x16xf32> -> vector<1024x16xf32>
    %17 = arith.addf %7, %16 : vector<1024x16xf32>
    %c1_22 = arith.constant 1 : index
    %c1_23 = arith.constant 1 : index
    %c0_24 = arith.constant 0 : index
    %c0_25 = arith.constant 0 : index
    %18 = vector.load %arg2[%c1_22, %c1_23, %c0_24, %c0_25] : memref<2x6x6x16xf32, #tpu.memory_space<vmem>>, vector<1x1x6x16xf32>
    %19 = vector.shape_cast %18 : vector<1x1x6x16xf32> to vector<6x16xf32>
    %cst_26 = arith.constant dense<0.000000e+00> : vector<1024x16xf32>
    %20 = tpu.matmul %13, %19, %cst_26 {dimension_numbers = #tpu.dot_dimension_numbers<[1], [0], [0], [1], [0, 0, 1, 1], [], []>} : vector<1024x6xf32>, vector<6x16xf32>, vector<1024x16xf32> -> vector<1024x16xf32>
    %21 = arith.addf %11, %20 : vector<1024x16xf32>
    %c0_27 = arith.constant 0 : index
    %c1_28 = arith.constant 1 : index
    %c0_29 = arith.constant 0 : index
    %c0_30 = arith.constant 0 : index
    %22 = vector.load %arg1[%c0_27, %c1_28, %c0_29, %c0_30] : memref<2x34x17x6xf32, #tpu.memory_space<vmem>>, vector<2x32x16x6xf32>
    %23 = vector.shape_cast %22 : vector<2x32x16x6xf32> to vector<1024x6xf32>
    %c0_31 = arith.constant 0 : index
    %c2 = arith.constant 2 : index
    %c0_32 = arith.constant 0 : index
    %c0_33 = arith.constant 0 : index
    %24 = vector.load %arg2[%c0_31, %c2, %c0_32, %c0_33] : memref<2x6x6x16xf32, #tpu.memory_space<vmem>>, vector<1x1x6x16xf32>
    %25 = vector.shape_cast %24 : vector<1x1x6x16xf32> to vector<6x16xf32>
    %cst_34 = arith.constant dense<0.000000e+00> : vector<1024x16xf32>
    %26 = tpu.matmul %23, %25, %cst_34 {dimension_numbers = #tpu.dot_dimension_numbers<[1], [0], [0], [1], [0, 0, 1, 1], [], []>} : vector<1024x6xf32>, vector<6x16xf32>, vector<1024x16xf32> -> vector<1024x16xf32>
    %27 = arith.addf %17, %26 : vector<1024x16xf32>
    %c1_35 = arith.constant 1 : index
    %c2_36 = arith.constant 2 : index
    %c0_37 = arith.constant 0 : index
    %c0_38 = arith.constant 0 : index
    %28 = vector.load %arg2[%c1_35, %c2_36, %c0_37, %c0_38] : memref<2x6x6x16xf32, #tpu.memory_space<vmem>>, vector<1x1x6x16xf32>
    %29 = vector.shape_cast %28 : vector<1x1x6x16xf32> to vector<6x16xf32>
    %cst_39 = arith.constant dense<0.000000e+00> : vector<1024x16xf32>
    %30 = tpu.matmul %23, %29, %cst_39 {dimension_numbers = #tpu.dot_dimension_numbers<[1], [0], [0], [1], [0, 0, 1, 1], [], []>} : vector<1024x6xf32>, vector<6x16xf32>, vector<1024x16xf32> -> vector<1024x16xf32>
    %31 = arith.addf %21, %30 : vector<1024x16xf32>
    %c0_40 = arith.constant 0 : index
    %c1_41 = arith.constant 1 : index
    %c1_42 = arith.constant 1 : index
    %c0_43 = arith.constant 0 : index
    %32 = vector.load %arg1[%c0_40, %c1_41, %c1_42, %c0_43] : memref<2x34x17x6xf32, #tpu.memory_space<vmem>>, vector<2x32x16x6xf32>
    %33 = vector.shape_cast %32 : vector<2x32x16x6xf32> to vector<1024x6xf32>
    %c0_44 = arith.constant 0 : index
    %c3 = arith.constant 3 : index
    %c0_45 = arith.constant 0 : index
    %c0_46 = arith.constant 0 : index
    %34 = vector.load %arg2[%c0_44, %c3, %c0_45, %c0_46] : memref<2x6x6x16xf32, #tpu.memory_space<vmem>>, vector<1x1x6x16xf32>
    %35 = vector.shape_cast %34 : vector<1x1x6x16xf32> to vector<6x16xf32>
    %cst_47 = arith.constant dense<0.000000e+00> : vector<1024x16xf32>
    %36 = tpu.matmul %33, %35, %cst_47 {dimension_numbers = #tpu.dot_dimension_numbers<[1], [0], [0], [1], [0, 0, 1, 1], [], []>} : vector<1024x6xf32>, vector<6x16xf32>, vector<1024x16xf32> -> vector<1024x16xf32>
    %37 = arith.addf %27, %36 : vector<1024x16xf32>
    %c1_48 = arith.constant 1 : index
    %c3_49 = arith.constant 3 : index
    %c0_50 = arith.constant 0 : index
    %c0_51 = arith.constant 0 : index
    %38 = vector.load %arg2[%c1_48, %c3_49, %c0_50, %c0_51] : memref<2x6x6x16xf32, #tpu.memory_space<vmem>>, vector<1x1x6x16xf32>
    %39 = vector.shape_cast %38 : vector<1x1x6x16xf32> to vector<6x16xf32>
    %cst_52 = arith.constant dense<0.000000e+00> : vector<1024x16xf32>
    %40 = tpu.matmul %33, %39, %cst_52 {dimension_numbers = #tpu.dot_dimension_numbers<[1], [0], [0], [1], [0, 0, 1, 1], [], []>} : vector<1024x6xf32>, vector<6x16xf32>, vector<1024x16xf32> -> vector<1024x16xf32>
    %41 = arith.addf %31, %40 : vector<1024x16xf32>
    %c0_53 = arith.constant 0 : index
    %c2_54 = arith.constant 2 : index
    %c0_55 = arith.constant 0 : index
    %c0_56 = arith.constant 0 : index
    %42 = vector.load %arg1[%c0_53, %c2_54, %c0_55, %c0_56] : memref<2x34x17x6xf32, #tpu.memory_space<vmem>>, vector<2x32x16x6xf32>
    %43 = vector.shape_cast %42 : vector<2x32x16x6xf32> to vector<1024x6xf32>
    %c0_57 = arith.constant 0 : index
    %c4 = arith.constant 4 : index
    %c0_58 = arith.constant 0 : index
    %c0_59 = arith.constant 0 : index
    %44 = vector.load %arg2[%c0_57, %c4, %c0_58, %c0_59] : memref<2x6x6x16xf32, #tpu.memory_space<vmem>>, vector<1x1x6x16xf32>
    %45 = vector.shape_cast %44 : vector<1x1x6x16xf32> to vector<6x16xf32>
    %cst_60 = arith.constant dense<0.000000e+00> : vector<1024x16xf32>
    %46 = tpu.matmul %43, %45, %cst_60 {dimension_numbers = #tpu.dot_dimension_numbers<[1], [0], [0], [1], [0, 0, 1, 1], [], []>} : vector<1024x6xf32>, vector<6x16xf32>, vector<1024x16xf32> -> vector<1024x16xf32>
    %47 = arith.addf %37, %46 : vector<1024x16xf32>
    %c1_61 = arith.constant 1 : index
    %c4_62 = arith.constant 4 : index
    %c0_63 = arith.constant 0 : index
    %c0_64 = arith.constant 0 : index
    %48 = vector.load %arg2[%c1_61, %c4_62, %c0_63, %c0_64] : memref<2x6x6x16xf32, #tpu.memory_space<vmem>>, vector<1x1x6x16xf32>
    %49 = vector.shape_cast %48 : vector<1x1x6x16xf32> to vector<6x16xf32>
    %cst_65 = arith.constant dense<0.000000e+00> : vector<1024x16xf32>
    %50 = tpu.matmul %43, %49, %cst_65 {dimension_numbers = #tpu.dot_dimension_numbers<[1], [0], [0], [1], [0, 0, 1, 1], [], []>} : vector<1024x6xf32>, vector<6x16xf32>, vector<1024x16xf32> -> vector<1024x16xf32>
    %51 = arith.addf %41, %50 : vector<1024x16xf32>
    %c0_66 = arith.constant 0 : index
    %c2_67 = arith.constant 2 : index
    %c1_68 = arith.constant 1 : index
    %c0_69 = arith.constant 0 : index
    %52 = vector.load %arg1[%c0_66, %c2_67, %c1_68, %c0_69] : memref<2x34x17x6xf32, #tpu.memory_space<vmem>>, vector<2x32x16x6xf32>
    %53 = vector.shape_cast %52 : vector<2x32x16x6xf32> to vector<1024x6xf32>
    %c0_70 = arith.constant 0 : index
    %c5 = arith.constant 5 : index
    %c0_71 = arith.constant 0 : index
    %c0_72 = arith.constant 0 : index
    %54 = vector.load %arg2[%c0_70, %c5, %c0_71, %c0_72] : memref<2x6x6x16xf32, #tpu.memory_space<vmem>>, vector<1x1x6x16xf32>
    %55 = vector.shape_cast %54 : vector<1x1x6x16xf32> to vector<6x16xf32>
    %cst_73 = arith.constant dense<0.000000e+00> : vector<1024x16xf32>
    %56 = tpu.matmul %53, %55, %cst_73 {dimension_numbers = #tpu.dot_dimension_numbers<[1], [0], [0], [1], [0, 0, 1, 1], [], []>} : vector<1024x6xf32>, vector<6x16xf32>, vector<1024x16xf32> -> vector<1024x16xf32>
    %57 = arith.addf %47, %56 : vector<1024x16xf32>
    %c1_74 = arith.constant 1 : index
    %c5_75 = arith.constant 5 : index
    %c0_76 = arith.constant 0 : index
    %c0_77 = arith.constant 0 : index
    %58 = vector.load %arg2[%c1_74, %c5_75, %c0_76, %c0_77] : memref<2x6x6x16xf32, #tpu.memory_space<vmem>>, vector<1x1x6x16xf32>
    %59 = vector.shape_cast %58 : vector<1x1x6x16xf32> to vector<6x16xf32>
    %cst_78 = arith.constant dense<0.000000e+00> : vector<1024x16xf32>
    %60 = tpu.matmul %53, %59, %cst_78 {dimension_numbers = #tpu.dot_dimension_numbers<[1], [0], [0], [1], [0, 0, 1, 1], [], []>} : vector<1024x6xf32>, vector<6x16xf32>, vector<1024x16xf32> -> vector<1024x16xf32>
    %61 = arith.addf %51, %60 : vector<1024x16xf32>
    %c0_79 = arith.constant 0 : index
    %c0_80 = arith.constant 0 : index
    %62 = vector.load %arg3[%c0_79, %c0_80] : memref<1x16xf32, #tpu.memory_space<vmem>>, vector<1x16xf32>
    %c0_81 = arith.constant 0 : index
    %c0_82 = arith.constant 0 : index
    %63 = vector.load %arg4[%c0_81, %c0_82] : memref<1x16xf32, #tpu.memory_space<vmem>>, vector<1x16xf32>
    %64 = vector.broadcast %62 : vector<1x16xf32> to vector<1024x16xf32>
    %65 = arith.mulf %57, %64 : vector<1024x16xf32>
    %66 = vector.broadcast %63 : vector<1x16xf32> to vector<1024x16xf32>
    %67 = arith.addf %65, %66 : vector<1024x16xf32>
    %cst_83 = arith.constant 0.000000e+00 : f32
    %68 = vector.broadcast %cst_83 : f32 to vector<1024x16xf32>
    %69 = arith.maximumf %67, %68 : vector<1024x16xf32>
    %70 = vector.broadcast %62 : vector<1x16xf32> to vector<1024x16xf32>
    %71 = arith.mulf %61, %70 : vector<1024x16xf32>
    %72 = vector.broadcast %63 : vector<1x16xf32> to vector<1024x16xf32>
    %73 = arith.addf %71, %72 : vector<1024x16xf32>
    %cst_84 = arith.constant 0.000000e+00 : f32
    %74 = vector.broadcast %cst_84 : f32 to vector<1024x16xf32>
    %75 = arith.maximumf %73, %74 : vector<1024x16xf32>
    %76 = arith.maximumf %69, %75 : vector<1024x16xf32>
    %77 = vector.shape_cast %76 : vector<1024x16xf32> to vector<32x2x16x16xf32>
    %78 = vector.extract_strided_slice %77 {offsets = [0, 0, 0, 0], sizes = [32, 1, 16, 16], strides = [1, 1, 1, 1]} : vector<32x2x16x16xf32> to vector<32x1x16x16xf32>
    %79 = vector.shape_cast %78 : vector<32x1x16x16xf32> to vector<32x16x16xf32>
    %80 = vector.extract_strided_slice %77 {offsets = [0, 1, 0, 0], sizes = [32, 1, 16, 16], strides = [1, 1, 1, 1]} : vector<32x2x16x16xf32> to vector<32x1x16x16xf32>
    %81 = vector.shape_cast %80 : vector<32x1x16x16xf32> to vector<32x16x16xf32>
    %82 = arith.maximumf %79, %81 : vector<32x16x16xf32>
    %83 = vector.shape_cast %82 : vector<32x16x16xf32> to vector<2x16x16x16xf32>
    %c0_85 = arith.constant 0 : index
    %c0_86 = arith.constant 0 : index
    %c0_87 = arith.constant 0 : index
    %c0_88 = arith.constant 0 : index
    %84 = vector.load %arg5[%c0_85, %c0_86, %c0_87, %c0_88] : memref<2x16x16x16xf32, #tpu.memory_space<vmem>>, vector<2x16x16x16xf32>
    tpu.vector_store %arg5[%c0_85, %c0_86, %c0_87, %c0_88], %83 {strides = array<i32>} : memref<2x16x16x16xf32, #tpu.memory_space<vmem>>, vector<2x16x16x16xf32>,
    return
  }
  func.func @transform_0(%arg0: i32) -> (i32, i32, i32, i32) {
    %c0_i32 = arith.constant 0 : i32
    %c0_i32_0 = arith.constant 0 : i32
    %c0_i32_1 = arith.constant 0 : i32
    %c0_i32_2 = arith.constant 0 : i32
    return %arg0, %c0_i32, %c0_i32_0, %c0_i32_1 : i32, i32, i32, i32
  }
  func.func @transform_1(%arg0: i32) -> (i32, i32, i32, i32) {
    %c0_i32 = arith.constant 0 : i32
    %c0_i32_0 = arith.constant 0 : i32
    %c0_i32_1 = arith.constant 0 : i32
    %c0_i32_2 = arith.constant 0 : i32
    %c0_i32_3 = arith.constant 0 : i32
    return %c0_i32, %c0_i32_0, %c0_i32_1, %c0_i32_2 : i32, i32, i32, i32
  }
  func.func @transform_2(%arg0: i32) -> (i32, i32) {
    %c0_i32 = arith.constant 0 : i32
    %c0_i32_0 = arith.constant 0 : i32
    %c0_i32_1 = arith.constant 0 : i32
    return %c0_i32, %c0_i32_0 : i32, i32
  }
  func.func @transform_3(%arg0: i32) -> (i32, i32) {
    %c0_i32 = arith.constant 0 : i32
    %c0_i32_0 = arith.constant 0 : i32
    %c0_i32_1 = arith.constant 0 : i32
    return %c0_i32, %c0_i32_0 : i32, i32
  }
  func.func @transform_4(%arg0: i32) -> (i32, i32, i32, i32) {
    %c0_i32 = arith.constant 0 : i32
    %c0_i32_0 = arith.constant 0 : i32
    %c0_i32_1 = arith.constant 0 : i32
    %c0_i32_2 = arith.constant 0 : i32
    return %arg0, %c0_i32, %c0_i32_0, %c0_i32_1 : i32, i32, i32, i32
  }
}

module attributes {stable_mosaic.version = 11 : i64} {
  func.func @conv_bn_relu_pool_kernel(%arg0: i32, %arg1: memref<2x18x9x32xf32, #tpu.memory_space<vmem>>, %arg2: memref<2x6x32x32xf32, #tpu.memory_space<vmem>>, %arg3: memref<1x32xf32, #tpu.memory_space<vmem>>, %arg4: memref<1x32xf32, #tpu.memory_space<vmem>>, %arg5: memref<2x8x8x32xf32, #tpu.memory_space<vmem>>) attributes {dimension_semantics = [#tpu.dimension_semantics<parallel>], iteration_bounds = array<i64: 1>, scalar_prefetch = 0 : i64, scratch_operands = 0 : i64, tpu.core_type = #tpu.core_type<tc>, window_params = [{transform_indices = @transform_0, window_bounds = array<i64: 2, 18, 9, 32>}, {pipeline_mode = #tpu.pipeline_mode<synchronous>, transform_indices = @transform_1, window_bounds = array<i64: 2, 6, 32, 32>}, {pipeline_mode = #tpu.pipeline_mode<synchronous>, transform_indices = @transform_2, window_bounds = array<i64: 1, 32>}, {pipeline_mode = #tpu.pipeline_mode<synchronous>, transform_indices = @transform_3, window_bounds = array<i64: 1, 32>}, {transform_indices = @transform_4, window_bounds = array<i64: 2, 8, 8, 32>}]} {
    %cst = arith.constant 0.000000e+00 : f32
    %0 = vector.broadcast %cst : f32 to vector<256x32xf32>
    %cst_0 = arith.constant 0.000000e+00 : f32
    %1 = vector.broadcast %cst_0 : f32 to vector<256x32xf32>
    %c0 = arith.constant 0 : index
    %c0_1 = arith.constant 0 : index
    %c0_2 = arith.constant 0 : index
    %c0_3 = arith.constant 0 : index
    %2 = vector.load %arg1[%c0, %c0_1, %c0_2, %c0_3] : memref<2x18x9x32xf32, #tpu.memory_space<vmem>>, vector<2x16x8x32xf32>
    %3 = vector.shape_cast %2 : vector<2x16x8x32xf32> to vector<256x32xf32>
    %c0_4 = arith.constant 0 : index
    %c0_5 = arith.constant 0 : index
    %c0_6 = arith.constant 0 : index
    %c0_7 = arith.constant 0 : index
    %4 = vector.load %arg2[%c0_4, %c0_5, %c0_6, %c0_7] : memref<2x6x32x32xf32, #tpu.memory_space<vmem>>, vector<1x1x32x32xf32>
    %5 = vector.shape_cast %4 : vector<1x1x32x32xf32> to vector<32x32xf32>
    %cst_8 = arith.constant dense<0.000000e+00> : vector<256x32xf32>
    %6 = tpu.matmul %3, %5, %cst_8 {dimension_numbers = #tpu.dot_dimension_numbers<[1], [0], [0], [1], [0, 0, 1, 1], [], []>} : vector<256x32xf32>, vector<32x32xf32>, vector<256x32xf32> -> vector<256x32xf32>
    %7 = arith.addf %0, %6 : vector<256x32xf32>
    %c1 = arith.constant 1 : index
    %c0_9 = arith.constant 0 : index
    %c0_10 = arith.constant 0 : index
    %c0_11 = arith.constant 0 : index
    %8 = vector.load %arg2[%c1, %c0_9, %c0_10, %c0_11] : memref<2x6x32x32xf32, #tpu.memory_space<vmem>>, vector<1x1x32x32xf32>
    %9 = vector.shape_cast %8 : vector<1x1x32x32xf32> to vector<32x32xf32>
    %cst_12 = arith.constant dense<0.000000e+00> : vector<256x32xf32>
    %10 = tpu.matmul %3, %9, %cst_12 {dimension_numbers = #tpu.dot_dimension_numbers<[1], [0], [0], [1], [0, 0, 1, 1], [], []>} : vector<256x32xf32>, vector<32x32xf32>, vector<256x32xf32> -> vector<256x32xf32>
    %11 = arith.addf %1, %10 : vector<256x32xf32>
    %c0_13 = arith.constant 0 : index
    %c0_14 = arith.constant 0 : index
    %c1_15 = arith.constant 1 : index
    %c0_16 = arith.constant 0 : index
    %12 = vector.load %arg1[%c0_13, %c0_14, %c1_15, %c0_16] : memref<2x18x9x32xf32, #tpu.memory_space<vmem>>, vector<2x16x8x32xf32>
    %13 = vector.shape_cast %12 : vector<2x16x8x32xf32> to vector<256x32xf32>
    %c0_17 = arith.constant 0 : index
    %c1_18 = arith.constant 1 : index
    %c0_19 = arith.constant 0 : index
    %c0_20 = arith.constant 0 : index
    %14 = vector.load %arg2[%c0_17, %c1_18, %c0_19, %c0_20] : memref<2x6x32x32xf32, #tpu.memory_space<vmem>>, vector<1x1x32x32xf32>
    %15 = vector.shape_cast %14 : vector<1x1x32x32xf32> to vector<32x32xf32>
    %cst_21 = arith.constant dense<0.000000e+00> : vector<256x32xf32>
    %16 = tpu.matmul %13, %15, %cst_21 {dimension_numbers = #tpu.dot_dimension_numbers<[1], [0], [0], [1], [0, 0, 1, 1], [], []>} : vector<256x32xf32>, vector<32x32xf32>, vector<256x32xf32> -> vector<256x32xf32>
    %17 = arith.addf %7, %16 : vector<256x32xf32>
    %c1_22 = arith.constant 1 : index
    %c1_23 = arith.constant 1 : index
    %c0_24 = arith.constant 0 : index
    %c0_25 = arith.constant 0 : index
    %18 = vector.load %arg2[%c1_22, %c1_23, %c0_24, %c0_25] : memref<2x6x32x32xf32, #tpu.memory_space<vmem>>, vector<1x1x32x32xf32>
    %19 = vector.shape_cast %18 : vector<1x1x32x32xf32> to vector<32x32xf32>
    %cst_26 = arith.constant dense<0.000000e+00> : vector<256x32xf32>
    %20 = tpu.matmul %13, %19, %cst_26 {dimension_numbers = #tpu.dot_dimension_numbers<[1], [0], [0], [1], [0, 0, 1, 1], [], []>} : vector<256x32xf32>, vector<32x32xf32>, vector<256x32xf32> -> vector<256x32xf32>
    %21 = arith.addf %11, %20 : vector<256x32xf32>
    %c0_27 = arith.constant 0 : index
    %c1_28 = arith.constant 1 : index
    %c0_29 = arith.constant 0 : index
    %c0_30 = arith.constant 0 : index
    %22 = vector.load %arg1[%c0_27, %c1_28, %c0_29, %c0_30] : memref<2x18x9x32xf32, #tpu.memory_space<vmem>>, vector<2x16x8x32xf32>
    %23 = vector.shape_cast %22 : vector<2x16x8x32xf32> to vector<256x32xf32>
    %c0_31 = arith.constant 0 : index
    %c2 = arith.constant 2 : index
    %c0_32 = arith.constant 0 : index
    %c0_33 = arith.constant 0 : index
    %24 = vector.load %arg2[%c0_31, %c2, %c0_32, %c0_33] : memref<2x6x32x32xf32, #tpu.memory_space<vmem>>, vector<1x1x32x32xf32>
    %25 = vector.shape_cast %24 : vector<1x1x32x32xf32> to vector<32x32xf32>
    %cst_34 = arith.constant dense<0.000000e+00> : vector<256x32xf32>
    %26 = tpu.matmul %23, %25, %cst_34 {dimension_numbers = #tpu.dot_dimension_numbers<[1], [0], [0], [1], [0, 0, 1, 1], [], []>} : vector<256x32xf32>, vector<32x32xf32>, vector<256x32xf32> -> vector<256x32xf32>
    %27 = arith.addf %17, %26 : vector<256x32xf32>
    %c1_35 = arith.constant 1 : index
    %c2_36 = arith.constant 2 : index
    %c0_37 = arith.constant 0 : index
    %c0_38 = arith.constant 0 : index
    %28 = vector.load %arg2[%c1_35, %c2_36, %c0_37, %c0_38] : memref<2x6x32x32xf32, #tpu.memory_space<vmem>>, vector<1x1x32x32xf32>
    %29 = vector.shape_cast %28 : vector<1x1x32x32xf32> to vector<32x32xf32>
    %cst_39 = arith.constant dense<0.000000e+00> : vector<256x32xf32>
    %30 = tpu.matmul %23, %29, %cst_39 {dimension_numbers = #tpu.dot_dimension_numbers<[1], [0], [0], [1], [0, 0, 1, 1], [], []>} : vector<256x32xf32>, vector<32x32xf32>, vector<256x32xf32> -> vector<256x32xf32>
    %31 = arith.addf %21, %30 : vector<256x32xf32>
    %c0_40 = arith.constant 0 : index
    %c1_41 = arith.constant 1 : index
    %c1_42 = arith.constant 1 : index
    %c0_43 = arith.constant 0 : index
    %32 = vector.load %arg1[%c0_40, %c1_41, %c1_42, %c0_43] : memref<2x18x9x32xf32, #tpu.memory_space<vmem>>, vector<2x16x8x32xf32>
    %33 = vector.shape_cast %32 : vector<2x16x8x32xf32> to vector<256x32xf32>
    %c0_44 = arith.constant 0 : index
    %c3 = arith.constant 3 : index
    %c0_45 = arith.constant 0 : index
    %c0_46 = arith.constant 0 : index
    %34 = vector.load %arg2[%c0_44, %c3, %c0_45, %c0_46] : memref<2x6x32x32xf32, #tpu.memory_space<vmem>>, vector<1x1x32x32xf32>
    %35 = vector.shape_cast %34 : vector<1x1x32x32xf32> to vector<32x32xf32>
    %cst_47 = arith.constant dense<0.000000e+00> : vector<256x32xf32>
    %36 = tpu.matmul %33, %35, %cst_47 {dimension_numbers = #tpu.dot_dimension_numbers<[1], [0], [0], [1], [0, 0, 1, 1], [], []>} : vector<256x32xf32>, vector<32x32xf32>, vector<256x32xf32> -> vector<256x32xf32>
    %37 = arith.addf %27, %36 : vector<256x32xf32>
    %c1_48 = arith.constant 1 : index
    %c3_49 = arith.constant 3 : index
    %c0_50 = arith.constant 0 : index
    %c0_51 = arith.constant 0 : index
    %38 = vector.load %arg2[%c1_48, %c3_49, %c0_50, %c0_51] : memref<2x6x32x32xf32, #tpu.memory_space<vmem>>, vector<1x1x32x32xf32>
    %39 = vector.shape_cast %38 : vector<1x1x32x32xf32> to vector<32x32xf32>
    %cst_52 = arith.constant dense<0.000000e+00> : vector<256x32xf32>
    %40 = tpu.matmul %33, %39, %cst_52 {dimension_numbers = #tpu.dot_dimension_numbers<[1], [0], [0], [1], [0, 0, 1, 1], [], []>} : vector<256x32xf32>, vector<32x32xf32>, vector<256x32xf32> -> vector<256x32xf32>
    %41 = arith.addf %31, %40 : vector<256x32xf32>
    %c0_53 = arith.constant 0 : index
    %c2_54 = arith.constant 2 : index
    %c0_55 = arith.constant 0 : index
    %c0_56 = arith.constant 0 : index
    %42 = vector.load %arg1[%c0_53, %c2_54, %c0_55, %c0_56] : memref<2x18x9x32xf32, #tpu.memory_space<vmem>>, vector<2x16x8x32xf32>
    %43 = vector.shape_cast %42 : vector<2x16x8x32xf32> to vector<256x32xf32>
    %c0_57 = arith.constant 0 : index
    %c4 = arith.constant 4 : index
    %c0_58 = arith.constant 0 : index
    %c0_59 = arith.constant 0 : index
    %44 = vector.load %arg2[%c0_57, %c4, %c0_58, %c0_59] : memref<2x6x32x32xf32, #tpu.memory_space<vmem>>, vector<1x1x32x32xf32>
    %45 = vector.shape_cast %44 : vector<1x1x32x32xf32> to vector<32x32xf32>
    %cst_60 = arith.constant dense<0.000000e+00> : vector<256x32xf32>
    %46 = tpu.matmul %43, %45, %cst_60 {dimension_numbers = #tpu.dot_dimension_numbers<[1], [0], [0], [1], [0, 0, 1, 1], [], []>} : vector<256x32xf32>, vector<32x32xf32>, vector<256x32xf32> -> vector<256x32xf32>
    %47 = arith.addf %37, %46 : vector<256x32xf32>
    %c1_61 = arith.constant 1 : index
    %c4_62 = arith.constant 4 : index
    %c0_63 = arith.constant 0 : index
    %c0_64 = arith.constant 0 : index
    %48 = vector.load %arg2[%c1_61, %c4_62, %c0_63, %c0_64] : memref<2x6x32x32xf32, #tpu.memory_space<vmem>>, vector<1x1x32x32xf32>
    %49 = vector.shape_cast %48 : vector<1x1x32x32xf32> to vector<32x32xf32>
    %cst_65 = arith.constant dense<0.000000e+00> : vector<256x32xf32>
    %50 = tpu.matmul %43, %49, %cst_65 {dimension_numbers = #tpu.dot_dimension_numbers<[1], [0], [0], [1], [0, 0, 1, 1], [], []>} : vector<256x32xf32>, vector<32x32xf32>, vector<256x32xf32> -> vector<256x32xf32>
    %51 = arith.addf %41, %50 : vector<256x32xf32>
    %c0_66 = arith.constant 0 : index
    %c2_67 = arith.constant 2 : index
    %c1_68 = arith.constant 1 : index
    %c0_69 = arith.constant 0 : index
    %52 = vector.load %arg1[%c0_66, %c2_67, %c1_68, %c0_69] : memref<2x18x9x32xf32, #tpu.memory_space<vmem>>, vector<2x16x8x32xf32>
    %53 = vector.shape_cast %52 : vector<2x16x8x32xf32> to vector<256x32xf32>
    %c0_70 = arith.constant 0 : index
    %c5 = arith.constant 5 : index
    %c0_71 = arith.constant 0 : index
    %c0_72 = arith.constant 0 : index
    %54 = vector.load %arg2[%c0_70, %c5, %c0_71, %c0_72] : memref<2x6x32x32xf32, #tpu.memory_space<vmem>>, vector<1x1x32x32xf32>
    %55 = vector.shape_cast %54 : vector<1x1x32x32xf32> to vector<32x32xf32>
    %cst_73 = arith.constant dense<0.000000e+00> : vector<256x32xf32>
    %56 = tpu.matmul %53, %55, %cst_73 {dimension_numbers = #tpu.dot_dimension_numbers<[1], [0], [0], [1], [0, 0, 1, 1], [], []>} : vector<256x32xf32>, vector<32x32xf32>, vector<256x32xf32> -> vector<256x32xf32>
    %57 = arith.addf %47, %56 : vector<256x32xf32>
    %c1_74 = arith.constant 1 : index
    %c5_75 = arith.constant 5 : index
    %c0_76 = arith.constant 0 : index
    %c0_77 = arith.constant 0 : index
    %58 = vector.load %arg2[%c1_74, %c5_75, %c0_76, %c0_77] : memref<2x6x32x32xf32, #tpu.memory_space<vmem>>, vector<1x1x32x32xf32>
    %59 = vector.shape_cast %58 : vector<1x1x32x32xf32> to vector<32x32xf32>
    %cst_78 = arith.constant dense<0.000000e+00> : vector<256x32xf32>
    %60 = tpu.matmul %53, %59, %cst_78 {dimension_numbers = #tpu.dot_dimension_numbers<[1], [0], [0], [1], [0, 0, 1, 1], [], []>} : vector<256x32xf32>, vector<32x32xf32>, vector<256x32xf32> -> vector<256x32xf32>
    %61 = arith.addf %51, %60 : vector<256x32xf32>
    %c0_79 = arith.constant 0 : index
    %c0_80 = arith.constant 0 : index
    %62 = vector.load %arg3[%c0_79, %c0_80] : memref<1x32xf32, #tpu.memory_space<vmem>>, vector<1x32xf32>
    %c0_81 = arith.constant 0 : index
    %c0_82 = arith.constant 0 : index
    %63 = vector.load %arg4[%c0_81, %c0_82] : memref<1x32xf32, #tpu.memory_space<vmem>>, vector<1x32xf32>
    %64 = vector.broadcast %62 : vector<1x32xf32> to vector<256x32xf32>
    %65 = arith.mulf %57, %64 : vector<256x32xf32>
    %66 = vector.broadcast %63 : vector<1x32xf32> to vector<256x32xf32>
    %67 = arith.addf %65, %66 : vector<256x32xf32>
    %cst_83 = arith.constant 0.000000e+00 : f32
    %68 = vector.broadcast %cst_83 : f32 to vector<256x32xf32>
    %69 = arith.maximumf %67, %68 : vector<256x32xf32>
    %70 = vector.broadcast %62 : vector<1x32xf32> to vector<256x32xf32>
    %71 = arith.mulf %61, %70 : vector<256x32xf32>
    %72 = vector.broadcast %63 : vector<1x32xf32> to vector<256x32xf32>
    %73 = arith.addf %71, %72 : vector<256x32xf32>
    %cst_84 = arith.constant 0.000000e+00 : f32
    %74 = vector.broadcast %cst_84 : f32 to vector<256x32xf32>
    %75 = arith.maximumf %73, %74 : vector<256x32xf32>
    %76 = arith.maximumf %69, %75 : vector<256x32xf32>
    %77 = vector.shape_cast %76 : vector<256x32xf32> to vector<16x2x8x32xf32>
    %78 = vector.extract_strided_slice %77 {offsets = [0, 0, 0, 0], sizes = [16, 1, 8, 32], strides = [1, 1, 1, 1]} : vector<16x2x8x32xf32> to vector<16x1x8x32xf32>
    %79 = vector.shape_cast %78 : vector<16x1x8x32xf32> to vector<16x8x32xf32>
    %80 = vector.extract_strided_slice %77 {offsets = [0, 1, 0, 0], sizes = [16, 1, 8, 32], strides = [1, 1, 1, 1]} : vector<16x2x8x32xf32> to vector<16x1x8x32xf32>
    %81 = vector.shape_cast %80 : vector<16x1x8x32xf32> to vector<16x8x32xf32>
    %82 = arith.maximumf %79, %81 : vector<16x8x32xf32>
    %83 = vector.shape_cast %82 : vector<16x8x32xf32> to vector<2x8x8x32xf32>
    %c0_85 = arith.constant 0 : index
    %c0_86 = arith.constant 0 : index
    %c0_87 = arith.constant 0 : index
    %c0_88 = arith.constant 0 : index
    %84 = vector.load %arg5[%c0_85, %c0_86, %c0_87, %c0_88] : memref<2x8x8x32xf32, #tpu.memory_space<vmem>>, vector<2x8x8x32xf32>
    tpu.vector_store %arg5[%c0_85, %c0_86, %c0_87, %c0_88], %83 {strides = array<i32>} : memref<2x8x8x32xf32, #tpu.memory_space<vmem>>, vector<2x8x8x32xf32>,
    return
  }
  func.func @transform_0(%arg0: i32) -> (i32, i32, i32, i32) {
    %c0_i32 = arith.constant 0 : i32
    %c0_i32_0 = arith.constant 0 : i32
    %c0_i32_1 = arith.constant 0 : i32
    %c0_i32_2 = arith.constant 0 : i32
    return %arg0, %c0_i32, %c0_i32_0, %c0_i32_1 : i32, i32, i32, i32
  }
  func.func @transform_1(%arg0: i32) -> (i32, i32, i32, i32) {
    %c0_i32 = arith.constant 0 : i32
    %c0_i32_0 = arith.constant 0 : i32
    %c0_i32_1 = arith.constant 0 : i32
    %c0_i32_2 = arith.constant 0 : i32
    %c0_i32_3 = arith.constant 0 : i32
    return %c0_i32, %c0_i32_0, %c0_i32_1, %c0_i32_2 : i32, i32, i32, i32
  }
  func.func @transform_2(%arg0: i32) -> (i32, i32) {
    %c0_i32 = arith.constant 0 : i32
    %c0_i32_0 = arith.constant 0 : i32
    %c0_i32_1 = arith.constant 0 : i32
    return %c0_i32, %c0_i32_0 : i32, i32
  }
  func.func @transform_3(%arg0: i32) -> (i32, i32) {
    %c0_i32 = arith.constant 0 : i32
    %c0_i32_0 = arith.constant 0 : i32
    %c0_i32_1 = arith.constant 0 : i32
    return %c0_i32, %c0_i32_0 : i32, i32
  }
  func.func @transform_4(%arg0: i32) -> (i32, i32, i32, i32) {
    %c0_i32 = arith.constant 0 : i32
    %c0_i32_0 = arith.constant 0 : i32
    %c0_i32_1 = arith.constant 0 : i32
    %c0_i32_2 = arith.constant 0 : i32
    return %arg0, %c0_i32, %c0_i32_0, %c0_i32_1 : i32, i32, i32, i32
  }
}

module attributes {stable_mosaic.version = 11 : i64} {
  func.func @linear_kernel(%arg0: i32, %arg1: memref<8x2048xf32, #tpu.memory_space<vmem>>, %arg2: memref<2048x256xf32, #tpu.memory_space<vmem>>, %arg3: memref<1x256xf32, #tpu.memory_space<vmem>>, %arg4: memref<8x256xf32, #tpu.memory_space<vmem>>) attributes {dimension_semantics = [#tpu.dimension_semantics<parallel>], iteration_bounds = array<i64: 1>, scalar_prefetch = 0 : i64, scratch_operands = 0 : i64, tpu.core_type = #tpu.core_type<tc>, window_params = [{transform_indices = @transform_0, window_bounds = array<i64: 8, 2048>}, {pipeline_mode = #tpu.pipeline_mode<synchronous>, transform_indices = @transform_1, window_bounds = array<i64: 2048, 256>}, {pipeline_mode = #tpu.pipeline_mode<synchronous>, transform_indices = @transform_2, window_bounds = array<i64: 1, 256>}, {transform_indices = @transform_3, window_bounds = array<i64: 8, 256>}]} {
    %c0 = arith.constant 0 : index
    %c0_0 = arith.constant 0 : index
    %0 = vector.load %arg1[%c0, %c0_0] : memref<8x2048xf32, #tpu.memory_space<vmem>>, vector<8x2048xf32>
    %c0_1 = arith.constant 0 : index
    %c0_2 = arith.constant 0 : index
    %1 = vector.load %arg2[%c0_1, %c0_2] : memref<2048x256xf32, #tpu.memory_space<vmem>>, vector<2048x256xf32>
    %cst = arith.constant dense<0.000000e+00> : vector<8x256xf32>
    %2 = tpu.matmul %0, %1, %cst {dimension_numbers = #tpu.dot_dimension_numbers<[1], [0], [0], [1], [0, 0, 1, 1], [], []>} : vector<8x2048xf32>, vector<2048x256xf32>, vector<8x256xf32> -> vector<8x256xf32>
    %c0_3 = arith.constant 0 : index
    %c0_4 = arith.constant 0 : index
    %3 = vector.load %arg3[%c0_3, %c0_4] : memref<1x256xf32, #tpu.memory_space<vmem>>, vector<1x256xf32>
    %4 = vector.broadcast %3 : vector<1x256xf32> to vector<8x256xf32>
    %5 = arith.addf %2, %4 : vector<8x256xf32>
    %cst_5 = arith.constant 0.000000e+00 : f32
    %6 = vector.broadcast %cst_5 : f32 to vector<8x256xf32>
    %7 = arith.maximumf %5, %6 : vector<8x256xf32>
    %c0_6 = arith.constant 0 : index
    %c0_7 = arith.constant 0 : index
    %8 = vector.load %arg4[%c0_6, %c0_7] : memref<8x256xf32, #tpu.memory_space<vmem>>, vector<8x256xf32>
    tpu.vector_store %arg4[%c0_6, %c0_7], %7 {strides = array<i32>} : memref<8x256xf32, #tpu.memory_space<vmem>>, vector<8x256xf32>,
    return
  }
  func.func @transform_0(%arg0: i32) -> (i32, i32) {
    %c0_i32 = arith.constant 0 : i32
    %c0_i32_0 = arith.constant 0 : i32
    return %arg0, %c0_i32 : i32, i32
  }
  func.func @transform_1(%arg0: i32) -> (i32, i32) {
    %c0_i32 = arith.constant 0 : i32
    %c0_i32_0 = arith.constant 0 : i32
    %c0_i32_1 = arith.constant 0 : i32
    return %c0_i32, %c0_i32_0 : i32, i32
  }
  func.func @transform_2(%arg0: i32) -> (i32, i32) {
    %c0_i32 = arith.constant 0 : i32
    %c0_i32_0 = arith.constant 0 : i32
    %c0_i32_1 = arith.constant 0 : i32
    return %c0_i32, %c0_i32_0 : i32, i32
  }
  func.func @transform_3(%arg0: i32) -> (i32, i32) {
    %c0_i32 = arith.constant 0 : i32
    %c0_i32_0 = arith.constant 0 : i32
    return %arg0, %c0_i32 : i32, i32
  }
}

module attributes {stable_mosaic.version = 11 : i64} {
  func.func @linear_kernel(%arg0: i32, %arg1: memref<8x256xf32, #tpu.memory_space<vmem>>, %arg2: memref<256x10xf32, #tpu.memory_space<vmem>>, %arg3: memref<1x10xf32, #tpu.memory_space<vmem>>, %arg4: memref<8x10xf32, #tpu.memory_space<vmem>>) attributes {dimension_semantics = [#tpu.dimension_semantics<parallel>], iteration_bounds = array<i64: 1>, scalar_prefetch = 0 : i64, scratch_operands = 0 : i64, tpu.core_type = #tpu.core_type<tc>, window_params = [{transform_indices = @transform_0, window_bounds = array<i64: 8, 256>}, {pipeline_mode = #tpu.pipeline_mode<synchronous>, transform_indices = @transform_1, window_bounds = array<i64: 256, 10>}, {pipeline_mode = #tpu.pipeline_mode<synchronous>, transform_indices = @transform_2, window_bounds = array<i64: 1, 10>}, {transform_indices = @transform_3, window_bounds = array<i64: 8, 10>}]} {
    %c0 = arith.constant 0 : index
    %c0_0 = arith.constant 0 : index
    %0 = vector.load %arg1[%c0, %c0_0] : memref<8x256xf32, #tpu.memory_space<vmem>>, vector<8x256xf32>
    %c0_1 = arith.constant 0 : index
    %c0_2 = arith.constant 0 : index
    %1 = vector.load %arg2[%c0_1, %c0_2] : memref<256x10xf32, #tpu.memory_space<vmem>>, vector<256x10xf32>
    %cst = arith.constant dense<0.000000e+00> : vector<8x10xf32>
    %2 = tpu.matmul %0, %1, %cst {dimension_numbers = #tpu.dot_dimension_numbers<[1], [0], [0], [1], [0, 0, 1, 1], [], []>} : vector<8x256xf32>, vector<256x10xf32>, vector<8x10xf32> -> vector<8x10xf32>
    %c0_3 = arith.constant 0 : index
    %c0_4 = arith.constant 0 : index
    %3 = vector.load %arg3[%c0_3, %c0_4] : memref<1x10xf32, #tpu.memory_space<vmem>>, vector<1x10xf32>
    %4 = vector.broadcast %3 : vector<1x10xf32> to vector<8x10xf32>
    %5 = arith.addf %2, %4 : vector<8x10xf32>
    %c0_5 = arith.constant 0 : index
    %c0_6 = arith.constant 0 : index
    %6 = vector.load %arg4[%c0_5, %c0_6] : memref<8x10xf32, #tpu.memory_space<vmem>>, vector<8x10xf32>
    tpu.vector_store %arg4[%c0_5, %c0_6], %5 {strides = array<i32>} : memref<8x10xf32, #tpu.memory_space<vmem>>, vector<8x10xf32>,
    return
  }
  func.func @transform_0(%arg0: i32) -> (i32, i32) {
    %c0_i32 = arith.constant 0 : i32
    %c0_i32_0 = arith.constant 0 : i32
    return %arg0, %c0_i32 : i32, i32
  }
  func.func @transform_1(%arg0: i32) -> (i32, i32) {
    %c0_i32 = arith.constant 0 : i32
    %c0_i32_0 = arith.constant 0 : i32
    %c0_i32_1 = arith.constant 0 : i32
    return %c0_i32, %c0_i32_0 : i32, i32
  }
  func.func @transform_2(%arg0: i32) -> (i32, i32) {
    %c0_i32 = arith.constant 0 : i32
    %c0_i32_0 = arith.constant 0 : i32
    %c0_i32_1 = arith.constant 0 : i32
    return %c0_i32, %c0_i32_0 : i32, i32
  }
  func.func @transform_3(%arg0: i32) -> (i32, i32) {
    %c0_i32 = arith.constant 0 : i32
    %c0_i32_0 = arith.constant 0 : i32
    return %arg0, %c0_i32 : i32, i32
  }
}

</mosaic_0001>

<bundles_post_ra>
// kernel: custom_cnn_forward.7
= control target key start
LH: loop header
LB: loop body
LE: loop exit
PB: predicated region body
PF: predicated region fallthrough
CT: control target
= control target key end

     0   :  { %vm125_vm0 = vcmask 80896   ;;  %s327_s1 = inlined_call_operand.vmem [shape: f32[256,10], index: 1, kind: input, shape index: {}]   ;;  %s328_s0 = inlined_call_operand.vmem [shape: f32[8,256], index: 0, kind: input, shape index: {}]   ;;  %s329_s2 = inlined_call_operand.vmem [shape: f32[1,10], index: 2, kind: input, shape index: {}]   ;;  %s330_s3 = inlined_call_operand.vmem [shape: f32[8,10], index: 3, kind: output, shape index: {}]  }
   0x1   :  { %v32_v0 = vld [vmem:[%s327_s1 + $0x80] sm:$0xff]  ;;  %v33_v1 = vld [vmem:[%s327_s1 + $0x88] sm:$0xff]  ;;  %v34_v5 = vld [vmem:[%s327_s1 + $0x90] sm:$0xff] }
   0x2   :  { %v16_v2 = vld [vmem:[%s327_s1] sm:$0xff]  ;;  %v167_v3 = vpack.c.bf16 %v33_v1, %v32_v0  ;;  %v17_v4 = vld [vmem:[%s327_s1 + $0x8] sm:$0xff]  ;;  %v35_v6 = vld [vmem:[%s327_s1 + $0x98] sm:$0xff] }
   0x3   :  { %v169_v7 = vpack.c.bf16 %v17_v4, %v16_v2  ;;  %v171_v8 = vpack.c.bf16 %v35_v6, %v34_v5  ;;  %v18_v9 = vld [vmem:[%s327_s1 + $0x10] sm:$0xff]  ;;  %v19_v10 = vld [vmem:[%s327_s1 + $0x18] sm:$0xff]  ;;  %v36_v11 = vld [vmem:[%s327_s1 + $0xa0] sm:$0xff] }
   0x4   :  { %168 = vmatprep.subr.bf16.mxu0 %v167_v3  ;;  %v37_v12 = vld [vmem:[%s327_s1 + $0xa8] sm:$0xff]  ;;  %v173_v13 = vpack.c.bf16 %v19_v10, %v18_v9  ;;  %v20_v15 = vld [vmem:[%s327_s1 + $0x20] sm:$0xff]  ;;  %v38_v17 = vld [vmem:[%s327_s1 + $0xb0] sm:$0xff] }
   0x5   :  { %170 = vmatpush3.bf16.msra.mxu0 %v169_v7  ;;  %v175_v14 = vpack.c.bf16 %v37_v12, %v36_v11  ;;  %v21_v16 = vld [vmem:[%s327_s1 + $0x28] sm:$0xff]  ;;  %v39_v18 = vld [vmem:[%s327_s1 + $0xb8] sm:$0xff]  ;;  %v22_v21 = vld [vmem:[%s327_s1 + $0x30] sm:$0xff] }
   0x6   :  { %172 = vmatprep.subr.bf16.mxu0 %v171_v8  ;;  %v177_v19 = vpack.c.bf16 %v21_v16, %v20_v15  ;;  %v179_v20 = vpack.c.bf16 %v39_v18, %v38_v17  ;;  %v23_v22 = vld [vmem:[%s327_s1 + $0x38] sm:$0xff]  ;;  %v40_v23 = vld [vmem:[%s327_s1 + $0xc0] sm:$0xff]  ;;  %v41_v24 = vld [vmem:[%s327_s1 + $0xc8] sm:$0xff] }
   0x7   :  { %v15_v25 = vld [vmem:[%s328_s0 + $0x8] sm:$0xff]  ;;  %v181_v26 = vpack.c.bf16 %v23_v22, %v22_v21  ;;  %v183_v27 = vpack.c.bf16 %v41_v24, %v40_v23  ;;  %v24_v28 = vld [vmem:[%s327_s1 + $0x40] sm:$0xff]  ;;  %v42_v30 = vld [vmem:[%s327_s1 + $0xd0] sm:$0xff] }
   0x8   :  { %119 = vmatprep.mubr.f32.mxu0 %v15_v25  ;;  %v25_v29 = vld [vmem:[%s327_s1 + $0x48] sm:$0xff]  ;;  %v43_v31 = vld [vmem:[%s327_s1 + $0xd8] sm:$0xff]  ;;  %v26_v34 = vld [vmem:[%s327_s1 + $0x50] sm:$0xff] }
   0x9   :  { %174 = vmatpush3.bf16.msra.mxu0 %v173_v13  ;;  %v185_v32 = vpack.c.bf16 %v25_v29, %v24_v28  ;;  %v187_v33 = vpack.c.bf16 %v43_v31, %v42_v30  ;;  %v27_v35 = vld [vmem:[%s327_s1 + $0x58] sm:$0xff]  ;;  %v44_v36 = vld [vmem:[%s327_s1 + $0xe0] sm:$0xff]  ;;  %v45_v37 = vld [vmem:[%s327_s1 + $0xe8] sm:$0xff] }
   0xa   :  { %176 = vmatprep.subr.bf16.mxu0 %v175_v14  ;;  %v189_v38 = vpack.c.bf16 %v27_v35, %v26_v34  ;;  %v191_v39 = vpack.c.bf16 %v45_v37, %v44_v36  ;;  %v28_v40 = vld [vmem:[%s327_s1 + $0x60] sm:$0xff]  ;;  %v29_v41 = vld [vmem:[%s327_s1 + $0x68] sm:$0xff]  ;;  %v46_v42 = vld [vmem:[%s327_s1 + $0xf0] sm:$0xff] }
   0xb   :  { %v47_v43 = vld [vmem:[%s327_s1 + $0xf8] sm:$0xff]  ;;  %v193_v44 = vpack.c.bf16 %v29_v41, %v28_v40  ;;  %v30_v46 = vld [vmem:[%s327_s1 + $0x70] sm:$0xff]  ;;  %v14_v49 = vld [vmem:[%s328_s0] sm:$0xff] }
   0xc   :  { %v195_v45 = vpack.c.bf16 %v47_v43, %v46_v42  ;;  %v31_v47 = vld [vmem:[%s327_s1 + $0x78] sm:$0xff]  ;;  %v131_v51 = vld [vmem:[%s329_s2] ss:$0 sm:$0xff] }
   0xd   :  { %178 = vmatpush3.bf16.msra.mxu0 %v177_v19  ;;  %v197_v48 = vpack.c.bf16 %v31_v47, %v30_v46 }
   0xe   :  { %180 = vmatprep.subr.bf16.mxu0 %v179_v20 }
  0x11   :  { %182 = vmatpush3.bf16.msra.mxu0 %v181_v26 }
  0x12   :  { %184 = vmatprep.subr.bf16.mxu0 %v183_v27 }
  0x15   :  { %186 = vmatpush3.bf16.msra.mxu0 %v185_v32 }
  0x16   :  { %188 = vmatprep.subr.bf16.mxu0 %v187_v33 }
  0x19   :  { %190 = vmatpush3.bf16.msra.mxu0 %v189_v38 }
  0x1a   :  { %192 = vmatprep.subr.bf16.mxu0 %v191_v39 }
  0x1d   :  { %194 = vmatpush3.bf16.msra.mxu0 %v193_v44 }
  0x1e   :  { %196 = vmatprep.subr.bf16.mxu0 %v195_v45 }
  0x21   :  { %198 = vmatpush3.bf16.msra.mxu0 %v197_v48 }
  0x24   :  { %120 = vmatmul.mubr.f32.vlgmr.msra.gmra.mrb[0].mxu0 %v14_v49 }
  0xf7   :  { %v164_v50 = vpop.f32.mrb[0].mxu0 }
  0xf8   :  { %v165_v52 = vpop.f32.mrb[1].mxu0 }
  0xf9   :  { %v166_v53 = vadd.f32 %v165_v52, %v164_v50 }
  0xfb   :  { %v122_v54 = vadd.f32 %v166_v53, %v131_v51 }
  0xfd   :  { %126 = vst.msk [vmem:[%s330_s3] sm:$0xff] %vm125_vm0, %v122_v54 }

// kernel: custom_cnn_forward.6
= control target key start
LH: loop header
LB: loop body
LE: loop exit
PB: predicated region body
PF: predicated region fallthrough
CT: control target
= control target key end

     0   :  { %s3271_s1 = inlined_call_operand.vmem [shape: f32[2048,256], index: 1, kind: input, shape index: {}]   ;;  %s3272_s0 = inlined_call_operand.vmem [shape: f32[8,2048], index: 0, kind: input, shape index: {}]   ;;  %s3273_s2 = inlined_call_operand.vmem [shape: f32[1,256], index: 2, kind: input, shape index: {}]   ;;  %s3274_s3 = inlined_call_operand.vmem [shape: f32[8,256], index: 3, kind: output, shape index: {}]  }
   0x1   :  { %v31_v0 = vld [vmem:[%s3271_s1 + $0x8] sm:$0xff]  ;;  %v33_v1 = vld [vmem:[%s3271_s1 + $0x18] sm:$0xff]  ;;  %v30_v5 = vld [vmem:[%s3271_s1] sm:$0xff] }
   0x2   :  { %v287_v2 = vld [vmem:[%s3271_s1 + $0x808] sm:$0xff]  ;;  %v1130_v3 = vpack.c.bf16 %v33_v1, %v31_v0  ;;  %v289_v4 = vld [vmem:[%s3271_s1 + $0x818] sm:$0xff]  ;;  %v32_v6 = vld [vmem:[%s3271_s1 + $0x10] sm:$0xff] }
   0x3   :  { %v1386_v7 = vpack.c.bf16 %v289_v4, %v287_v2  ;;  %v1132_v8 = vpack.c.bf16 %v32_v6, %v30_v5  ;;  %v286_v9 = vld [vmem:[%s3271_s1 + $0x800] sm:$0xff]  ;;  %v288_v10 = vld [vmem:[%s3271_s1 + $0x810] sm:$0xff]  ;;  %v35_v11 = vld [vmem:[%s3271_s1 + $0x28] sm:$0xff] }
   0x4   :  { %1131 = vmatprep.subr.bf16.mxu1 %v1130_v3  ;;  %v1388_v12 = vpack.c.bf16 %v288_v10, %v286_v9  ;;  %v37_v13 = vld [vmem:[%s3271_s1 + $0x38] sm:$0xff]  ;;  %v291_v14 = vld [vmem:[%s3271_s1 + $0x828] sm:$0xff]  ;;  %v34_v18 = vld [vmem:[%s3271_s1 + $0x20] sm:$0xff] }
   0x5   :  { %v293_v15 = vld [vmem:[%s3271_s1 + $0x838] sm:$0xff]  ;;  %1387 = vmatprep.subr.bf16.mxu0 %v1386_v7  ;;  %1133 = vmatpush1.bf16.msra.mxu1 %v1132_v8  ;;  %v1134_v16 = vpack.c.bf16 %v37_v13, %v35_v11  ;;  %v36_v19 = vld [vmem:[%s3271_s1 + $0x30] sm:$0xff]  ;;  %v290_v20 = vld [vmem:[%s3271_s1 + $0x820] sm:$0xff] }
   0x6   :  { %v1390_v17 = vpack.c.bf16 %v293_v15, %v291_v14  ;;  %1389 = vmatpush1.bf16.msra.mxu0 %v1388_v12  ;;  %v1136_v21 = vpack.c.bf16 %v36_v19, %v34_v18  ;;  %v292_v22 = vld [vmem:[%s3271_s1 + $0x830] sm:$0xff]  ;;  %v39_v23 = vld [vmem:[%s3271_s1 + $0x48] sm:$0xff]  ;;  %v41_v24 = vld [vmem:[%s3271_s1 + $0x58] sm:$0xff] }
   0x7   :  { %1135 = vmatprep.subr.bf16.mxu1 %v1134_v16  ;;  %v1392_v25 = vpack.c.bf16 %v292_v22, %v290_v20  ;;  %v1138_v26 = vpack.c.bf16 %v41_v24, %v39_v23  ;;  %v295_v27 = vld [vmem:[%s3271_s1 + $0x848] sm:$0xff]  ;;  %v297_v28 = vld [vmem:[%s3271_s1 + $0x858] sm:$0xff]  ;;  %v38_v29 = vld [vmem:[%s3271_s1 + $0x40] sm:$0xff] }
   0x8   :  { %1391 = vmatprep.subr.bf16.mxu0 %v1390_v17  ;;  %v1394_v30 = vpack.c.bf16 %v297_v28, %v295_v27  ;;  %v40_v31 = vld [vmem:[%s3271_s1 + $0x50] sm:$0xff]  ;;  %v294_v32 = vld [vmem:[%s3271_s1 + $0x840] sm:$0xff]  ;;  %v43_v35 = vld [vmem:[%s3271_s1 + $0x68] sm:$0xff] }
   0x9   :  { %v296_v33 = vld [vmem:[%s3271_s1 + $0x850] sm:$0xff]  ;;  %1137 = vmatpush1.bf16.msra.mxu1 %v1136_v21  ;;  %v1140_v34 = vpack.c.bf16 %v40_v31, %v38_v29  ;;  %v45_v36 = vld [vmem:[%s3271_s1 + $0x78] sm:$0xff]  ;;  %v299_v37 = vld [vmem:[%s3271_s1 + $0x868] sm:$0xff] }
   0xa   :  { %1393 = vmatpush1.bf16.msra.mxu0 %v1392_v25  ;;  %1139 = vmatprep.subr.bf16.mxu1 %v1138_v26  ;;  %v1396_v38 = vpack.c.bf16 %v296_v33, %v294_v32  ;;  %v1142_v39 = vpack.c.bf16 %v45_v36, %v43_v35  ;;  %v301_v40 = vld [vmem:[%s3271_s1 + $0x878] sm:$0xff]  ;;  %v42_v41 = vld [vmem:[%s3271_s1 + $0x60] sm:$0xff]  ;;  %v44_v42 = vld [vmem:[%s3271_s1 + $0x70] sm:$0xff] }
   0xb   :  { %1395 = vmatprep.subr.bf16.mxu0 %v1394_v30  ;;  %v1398_v43 = vpack.c.bf16 %v301_v40, %v299_v37  ;;  %v298_v44 = vld [vmem:[%s3271_s1 + $0x860] sm:$0xff]  ;;  %v300_v45 = vld [vmem:[%s3271_s1 + $0x870] sm:$0xff]  ;;  %v47_v46 = vld [vmem:[%s3271_s1 + $0x88] sm:$0xff]  ;;  %v1144_v50 = vpack.c.bf16 %v44_v42, %v42_v41 }
   0xc   :  { %v49_v47 = vld [vmem:[%s3271_s1 + $0x98] sm:$0xff]  ;;  %v303_v48 = vld [vmem:[%s3271_s1 + $0x888] sm:$0xff]  ;;  %v1400_v51 = vpack.c.bf16 %v300_v45, %v298_v44  ;;  %v46_v53 = vld [vmem:[%s3271_s1 + $0x80] sm:$0xff] }
   0xd   :  { %v305_v49 = vld [vmem:[%s3271_s1 + $0x898] sm:$0xff]  ;;  %1141 = vmatpush1.bf16.msra.mxu1 %v1140_v34  ;;  %v1146_v52 = vpack.c.bf16 %v49_v47, %v47_v46  ;;  %v48_v54 = vld [vmem:[%s3271_s1 + $0x90] sm:$0xff]  ;;  %v302_v55 = vld [vmem:[%s3271_s1 + $0x880] sm:$0xff] }
   0xe   :  { %1397 = vmatpush1.bf16.msra.mxu0 %v1396_v38  ;;  %1143 = vmatprep.subr.bf16.mxu1 %v1142_v39  ;;  %v1402_v56 = vpack.c.bf16 %v305_v49, %v303_v48  ;;  %v304_v57 = vld [vmem:[%s3271_s1 + $0x890] sm:$0xff]  ;;  %v51_v58 = vld [vmem:[%s3271_s1 + $0xa8] sm:$0xff]  ;;  %v53_v59 = vld [vmem:[%s3271_s1 + $0xb8] sm:$0xff]  ;;  %v1148_v62 = vpack.c.bf16 %v48_v54, %v46_v53 }
   0xf   :  { %1399 = vmatprep.subr.bf16.mxu0 %v1398_v43  ;;  %v307_v60 = vld [vmem:[%s3271_s1 + $0x8a8] sm:$0xff]  ;;  %v309_v61 = vld [vmem:[%s3271_s1 + $0x8b8] sm:$0xff]  ;;  %v1404_v63 = vpack.c.bf16 %v304_v57, %v302_v55  ;;  %v1150_v0 = vpack.c.bf16 %v53_v59, %v51_v58  ;;  %v50_v1 = vld [vmem:[%s3271_s1 + $0xa0] sm:$0xff] }
  0x10   :  { %v52_v2 = vld [vmem:[%s3271_s1 + $0xb0] sm:$0xff]  ;;  %v306_v3 = vld [vmem:[%s3271_s1 + $0x8a0] sm:$0xff]  ;;  %v1406_v4 = vpack.c.bf16 %v309_v61, %v307_v60  ;;  %v55_v6 = vld [vmem:[%s3271_s1 + $0xc8] sm:$0xff] }
  0x11   :  { %1145 = vmatpush1.bf16.msra.mxu1 %v1144_v50  ;;  %v308_v5 = vld [vmem:[%s3271_s1 + $0x8b0] sm:$0xff]  ;;  %v57_v7 = vld [vmem:[%s3271_s1 + $0xd8] sm:$0xff]  ;;  %v311_v8 = vld [vmem:[%s3271_s1 + $0x8c8] sm:$0xff]  ;;  %v1152_v10 = vpack.c.bf16 %v52_v2, %v50_v1 }
  0x12   :  { %1401 = vmatpush1.bf16.msra.mxu0 %v1400_v51  ;;  %1147 = vmatprep.subr.bf16.mxu1 %v1146_v52  ;;  %v313_v9 = vld [vmem:[%s3271_s1 + $0x8d8] sm:$0xff]  ;;  %v1408_v11 = vpack.c.bf16 %v308_v5, %v306_v3  ;;  %v1154_v12 = vpack.c.bf16 %v57_v7, %v55_v6  ;;  %v54_v13 = vld [vmem:[%s3271_s1 + $0xc0] sm:$0xff]  ;;  %v56_v14 = vld [vmem:[%s3271_s1 + $0xd0] sm:$0xff] }
  0x13   :  { %1403 = vmatprep.subr.bf16.mxu0 %v1402_v56  ;;  %v310_v15 = vld [vmem:[%s3271_s1 + $0x8c0] sm:$0xff]  ;;  %v1410_v16 = vpack.c.bf16 %v313_v9, %v311_v8  ;;  %v312_v17 = vld [vmem:[%s3271_s1 + $0x8d0] sm:$0xff]  ;;  %v59_v18 = vld [vmem:[%s3271_s1 + $0xe8] sm:$0xff]  ;;  %v1156_v22 = vpack.c.bf16 %v56_v14, %v54_v13 }
  0x14   :  { %v61_v19 = vld [vmem:[%s3271_s1 + $0xf8] sm:$0xff]  ;;  %v315_v20 = vld [vmem:[%s3271_s1 + $0x8e8] sm:$0xff]  ;;  %v1412_v23 = vpack.c.bf16 %v312_v17, %v310_v15  ;;  %v58_v25 = vld [vmem:[%s3271_s1 + $0xe0] sm:$0xff] }
  0x15   :  { %1149 = vmatpush1.bf16.msra.mxu1 %v1148_v62  ;;  %v317_v21 = vld [vmem:[%s3271_s1 + $0x8f8] sm:$0xff]  ;;  %v1158_v24 = vpack.c.bf16 %v61_v19, %v59_v18  ;;  %v60_v26 = vld [vmem:[%s3271_s1 + $0xf0] sm:$0xff]  ;;  %v314_v27 = vld [vmem:[%s3271_s1 + $0x8e0] sm:$0xff] }
  0x16   :  { %1405 = vmatpush1.bf16.msra.mxu0 %v1404_v63  ;;  %1151 = vmatprep.subr.bf16.mxu1 %v1150_v0  ;;  %v1414_v28 = vpack.c.bf16 %v317_v21, %v315_v20  ;;  %v316_v29 = vld [vmem:[%s3271_s1 + $0x8f0] sm:$0xff]  ;;  %v63_v30 = vld [vmem:[%s3271_s1 + $0x108] sm:$0xff]  ;;  %v65_v31 = vld [vmem:[%s3271_s1 + $0x118] sm:$0xff]  ;;  %v1160_v34 = vpack.c.bf16 %v60_v26, %v58_v25 }
  0x17   :  { %1407 = vmatprep.subr.bf16.mxu0 %v1406_v4  ;;  %v319_v32 = vld [vmem:[%s3271_s1 + $0x908] sm:$0xff]  ;;  %v321_v33 = vld [vmem:[%s3271_s1 + $0x918] sm:$0xff]  ;;  %v1416_v35 = vpack.c.bf16 %v316_v29, %v314_v27  ;;  %v1162_v36 = vpack.c.bf16 %v65_v31, %v63_v30  ;;  %v62_v37 = vld [vmem:[%s3271_s1 + $0x100] sm:$0xff] }
  0x18   :  { %v64_v38 = vld [vmem:[%s3271_s1 + $0x110] sm:$0xff]  ;;  %v318_v39 = vld [vmem:[%s3271_s1 + $0x900] sm:$0xff]  ;;  %v1418_v40 = vpack.c.bf16 %v321_v33, %v319_v32  ;;  %v67_v42 = vld [vmem:[%s3271_s1 + $0x128] sm:$0xff] }
  0x19   :  { %1153 = vmatpush1.bf16.msra.mxu1 %v1152_v10  ;;  %v320_v41 = vld [vmem:[%s3271_s1 + $0x910] sm:$0xff]  ;;  %v69_v43 = vld [vmem:[%s3271_s1 + $0x138] sm:$0xff]  ;;  %v323_v44 = vld [vmem:[%s3271_s1 + $0x928] sm:$0xff]  ;;  %v1164_v46 = vpack.c.bf16 %v64_v38, %v62_v37 }
  0x1a   :  { %1409 = vmatpush1.bf16.msra.mxu0 %v1408_v11  ;;  %1155 = vmatprep.subr.bf16.mxu1 %v1154_v12  ;;  %v325_v45 = vld [vmem:[%s3271_s1 + $0x938] sm:$0xff]  ;;  %v1420_v47 = vpack.c.bf16 %v320_v41, %v318_v39  ;;  %v1166_v48 = vpack.c.bf16 %v69_v43, %v67_v42  ;;  %v66_v49 = vld [vmem:[%s3271_s1 + $0x120] sm:$0xff]  ;;  %v68_v50 = vld [vmem:[%s3271_s1 + $0x130] sm:$0xff] }
  0x1b   :  { %1411 = vmatprep.subr.bf16.mxu0 %v1410_v16  ;;  %v322_v51 = vld [vmem:[%s3271_s1 + $0x920] sm:$0xff]  ;;  %v1422_v52 = vpack.c.bf16 %v325_v45, %v323_v44  ;;  %v324_v53 = vld [vmem:[%s3271_s1 + $0x930] sm:$0xff]  ;;  %v71_v54 = vld [vmem:[%s3271_s1 + $0x148] sm:$0xff]  ;;  %v1168_v58 = vpack.c.bf16 %v68_v50, %v66_v49 }
  0x1c   :  { %v73_v55 = vld [vmem:[%s3271_s1 + $0x158] sm:$0xff]  ;;  %v327_v56 = vld [vmem:[%s3271_s1 + $0x948] sm:$0xff]  ;;  %v1424_v59 = vpack.c.bf16 %v324_v53, %v322_v51  ;;  %v70_v61 = vld [vmem:[%s3271_s1 + $0x140] sm:$0xff] }
  0x1d   :  { %1157 = vmatpush1.bf16.msra.mxu1 %v1156_v22  ;;  %v329_v57 = vld [vmem:[%s3271_s1 + $0x958] sm:$0xff]  ;;  %v1170_v60 = vpack.c.bf16 %v73_v55, %v71_v54  ;;  %v72_v62 = vld [vmem:[%s3271_s1 + $0x150] sm:$0xff]  ;;  %v326_v63 = vld [vmem:[%s3271_s1 + $0x940] sm:$0xff] }
  0x1e   :  { %1413 = vmatpush1.bf16.msra.mxu0 %v1412_v23  ;;  %1159 = vmatprep.subr.bf16.mxu1 %v1158_v24  ;;  %v1426_v0 = vpack.c.bf16 %v329_v57, %v327_v56  ;;  %v328_v1 = vld [vmem:[%s3271_s1 + $0x950] sm:$0xff]  ;;  %v75_v2 = vld [vmem:[%s3271_s1 + $0x168] sm:$0xff]  ;;  %v77_v3 = vld [vmem:[%s3271_s1 + $0x178] sm:$0xff]  ;;  %v1172_v6 = vpack.c.bf16 %v72_v62, %v70_v61 }
  0x1f   :  { %1415 = vmatprep.subr.bf16.mxu0 %v1414_v28  ;;  %v331_v4 = vld [vmem:[%s3271_s1 + $0x968] sm:$0xff]  ;;  %v333_v5 = vld [vmem:[%s3271_s1 + $0x978] sm:$0xff]  ;;  %v74_v7 = vld [vmem:[%s3271_s1 + $0x160] sm:$0xff]  ;;  %v1428_v8 = vpack.c.bf16 %v328_v1, %v326_v63  ;;  %v1174_v9 = vpack.c.bf16 %v77_v3, %v75_v2 }
  0x20   :  { %v76_v10 = vld [vmem:[%s3271_s1 + $0x170] sm:$0xff]  ;;  %v330_v11 = vld [vmem:[%s3271_s1 + $0x960] sm:$0xff]  ;;  %v1430_v13 = vpack.c.bf16 %v333_v5, %v331_v4  ;;  %v79_v14 = vld [vmem:[%s3271_s1 + $0x188] sm:$0xff] }
  0x21   :  { %1161 = vmatpush1.bf16.msra.mxu1 %v1160_v34  ;;  %v332_v12 = vld [vmem:[%s3271_s1 + $0x970] sm:$0xff]  ;;  %v81_v15 = vld [vmem:[%s3271_s1 + $0x198] sm:$0xff]  ;;  %v15_v16 = vld [vmem:[%s3272_s0 + $0x8] sm:$0xff]  ;;  %v1176_v20 = vpack.c.bf16 %v76_v10, %v74_v7 }
  0x22   :  { %1417 = vmatpush1.bf16.msra.mxu0 %v1416_v35  ;;  %1163 = vmatprep.subr.bf16.mxu1 %v1162_v36  ;;  %v335_v17 = vld [vmem:[%s3271_s1 + $0x988] sm:$0xff]  ;;  %v337_v18 = vld [vmem:[%s3271_s1 + $0x998] sm:$0xff]  ;;  %v1432_v21 = vpack.c.bf16 %v332_v12, %v330_v11  ;;  %v1178_v22 = vpack.c.bf16 %v81_v15, %v79_v14  ;;  %v78_v23 = vld [vmem:[%s3271_s1 + $0x180] sm:$0xff] }
  0x23   :  { %1419 = vmatprep.subr.bf16.mxu0 %v1418_v40  ;;  %618 = vmatprep.mubr.f32.mxu1 %v15_v16  ;;  %v23_v19 = vld [vmem:[%s3272_s0 + $0x48] sm:$0xff]  ;;  %v80_v24 = vld [vmem:[%s3271_s1 + $0x190] sm:$0xff]  ;;  %v334_v25 = vld [vmem:[%s3271_s1 + $0x980] sm:$0xff]  ;;  %v1434_v26 = vpack.c.bf16 %v337_v18, %v335_v17 }
  0x24   :  { %902 = vmatprep.mubr.f32.mxu0 %v23_v19  ;;  %v336_v27 = vld [vmem:[%s3271_s1 + $0x990] sm:$0xff]  ;;  %v83_v28 = vld [vmem:[%s3271_s1 + $0x1a8] sm:$0xff]  ;;  %v85_v29 = vld [vmem:[%s3271_s1 + $0x1b8] sm:$0xff]  ;;  %v1180_v32 = vpack.c.bf16 %v80_v24, %v78_v23 }
  0x25   :  { %1165 = vmatpush1.bf16.msra.mxu1 %v1164_v46  ;;  %v339_v30 = vld [vmem:[%s3271_s1 + $0x9a8] sm:$0xff]  ;;  %v341_v31 = vld [vmem:[%s3271_s1 + $0x9b8] sm:$0xff]  ;;  %v1436_v33 = vpack.c.bf16 %v336_v27, %v334_v25  ;;  %v1182_v34 = vpack.c.bf16 %v85_v29, %v83_v28  ;;  %v82_v35 = vld [vmem:[%s3271_s1 + $0x1a0] sm:$0xff] }
  0x26   :  { %1421 = vmatpush1.bf16.msra.mxu0 %v1420_v47  ;;  %1167 = vmatprep.subr.bf16.mxu1 %v1166_v48  ;;  %v84_v36 = vld [vmem:[%s3271_s1 + $0x1b0] sm:$0xff]  ;;  %v338_v37 = vld [vmem:[%s3271_s1 + $0x9a0] sm:$0xff]  ;;  %v1438_v38 = vpack.c.bf16 %v341_v31, %v339_v30  ;;  %v87_v40 = vld [vmem:[%s3271_s1 + $0x1c8] sm:$0xff] }
  0x27   :  { %1423 = vmatprep.subr.bf16.mxu0 %v1422_v52  ;;  %v340_v39 = vld [vmem:[%s3271_s1 + $0x9b0] sm:$0xff]  ;;  %v89_v41 = vld [vmem:[%s3271_s1 + $0x1d8] sm:$0xff]  ;;  %v343_v42 = vld [vmem:[%s3271_s1 + $0x9c8] sm:$0xff]  ;;  %v1184_v44 = vpack.c.bf16 %v84_v36, %v82_v35 }
  0x28   :  { %v345_v43 = vld [vmem:[%s3271_s1 + $0x9d8] sm:$0xff]  ;;  %v1440_v45 = vpack.c.bf16 %v340_v39, %v338_v37  ;;  %v1186_v46 = vpack.c.bf16 %v89_v41, %v87_v40  ;;  %v86_v47 = vld [vmem:[%s3271_s1 + $0x1c0] sm:$0xff]  ;;  %v88_v48 = vld [vmem:[%s3271_s1 + $0x1d0] sm:$0xff] }
  0x29   :  { %1169 = vmatpush1.bf16.msra.mxu1 %v1168_v58  ;;  %v342_v49 = vld [vmem:[%s3271_s1 + $0x9c0] sm:$0xff]  ;;  %v1442_v50 = vpack.c.bf16 %v345_v43, %v343_v42  ;;  %v344_v51 = vld [vmem:[%s3271_s1 + $0x9d0] sm:$0xff]  ;;  %v91_v52 = vld [vmem:[%s3271_s1 + $0x1e8] sm:$0xff]  ;;  %v1188_v56 = vpack.c.bf16 %v88_v48, %v86_v47 }
  0x2a   :  { %1425 = vmatpush1.bf16.msra.mxu0 %v1424_v59  ;;  %1171 = vmatprep.subr.bf16.mxu1 %v1170_v60  ;;  %v93_v53 = vld [vmem:[%s3271_s1 + $0x1f8] sm:$0xff]  ;;  %v347_v54 = vld [vmem:[%s3271_s1 + $0x9e8] sm:$0xff]  ;;  %v1444_v57 = vpack.c.bf16 %v344_v51, %v342_v49  ;;  %v90_v59 = vld [vmem:[%s3271_s1 + $0x1e0] sm:$0xff] }
  0x2b   :  { %1427 = vmatprep.subr.bf16.mxu0 %v1426_v0  ;;  %v349_v55 = vld [vmem:[%s3271_s1 + $0x9f8] sm:$0xff]  ;;  %v1190_v58 = vpack.c.bf16 %v93_v53, %v91_v52  ;;  %v92_v60 = vld [vmem:[%s3271_s1 + $0x1f0] sm:$0xff]  ;;  %v346_v61 = vld [vmem:[%s3271_s1 + $0x9e0] sm:$0xff] }
  0x2c   :  { %v1446_v62 = vpack.c.bf16 %v349_v55, %v347_v54  ;;  %v348_v63 = vld [vmem:[%s3271_s1 + $0x9f0] sm:$0xff]  ;;  %v95_v0 = vld [vmem:[%s3271_s1 + $0x208] sm:$0xff]  ;;  %v97_v1 = vld [vmem:[%s3271_s1 + $0x218] sm:$0xff]  ;;  %v1192_v4 = vpack.c.bf16 %v92_v60, %v90_v59 }
  0x2d   :  { %1173 = vmatpush1.bf16.msra.mxu1 %v1172_v6  ;;  %v351_v2 = vld [vmem:[%s3271_s1 + $0xa08] sm:$0xff]  ;;  %v353_v3 = vld [vmem:[%s3271_s1 + $0xa18] sm:$0xff]  ;;  %v1448_v5 = vpack.c.bf16 %v348_v63, %v346_v61  ;;  %v1194_v6 = vpack.c.bf16 %v97_v1, %v95_v0  ;;  %v94_v7 = vld [vmem:[%s3271_s1 + $0x200] sm:$0xff] }
  0x2e   :  { %1429 = vmatpush1.bf16.msra.mxu0 %v1428_v8  ;;  %1175 = vmatprep.subr.bf16.mxu1 %v1174_v9  ;;  %v96_v8 = vld [vmem:[%s3271_s1 + $0x210] sm:$0xff]  ;;  %v350_v9 = vld [vmem:[%s3271_s1 + $0xa00] sm:$0xff]  ;;  %v1450_v10 = vpack.c.bf16 %v353_v3, %v351_v2  ;;  %v99_v12 = vld [vmem:[%s3271_s1 + $0x228] sm:$0xff] }
  0x2f   :  { %1431 = vmatprep.subr.bf16.mxu0 %v1430_v13  ;;  %v352_v11 = vld [vmem:[%s3271_s1 + $0xa10] sm:$0xff]  ;;  %v101_v13 = vld [vmem:[%s3271_s1 + $0x238] sm:$0xff]  ;;  %v355_v14 = vld [vmem:[%s3271_s1 + $0xa28] sm:$0xff]  ;;  %v1196_v17 = vpack.c.bf16 %v96_v8, %v94_v7 }
  0x30   :  { %v357_v15 = vld [vmem:[%s3271_s1 + $0xa38] sm:$0xff]  ;;  %v14_v16 = vld [vmem:[%s3272_s0] sm:$0xff]  ;;  %v1452_v19 = vpack.c.bf16 %v352_v11, %v350_v9  ;;  %v356_v25 = vld [vmem:[%s3271_s1 + $0xa30] sm:$0xff] }
  0x31   :  { %1177 = vmatpush1.bf16.msra.mxu1 %v1176_v20  ;;  %v22_v18 = vld [vmem:[%s3272_s0 + $0x40] sm:$0xff]  ;;  %v1198_v20 = vpack.c.bf16 %v101_v13, %v99_v12  ;;  %v1454_v24 = vpack.c.bf16 %v357_v15, %v355_v14  ;;  %v105_v27 = vld [vmem:[%s3271_s1 + $0x258] sm:$0xff]  ;;  %v359_v28 = vld [vmem:[%s3271_s1 + $0xa48] sm:$0xff] }
  0x32   :  { %1433 = vmatpush1.bf16.msra.mxu0 %v1432_v21  ;;  %1179 = vmatprep.subr.bf16.mxu1 %v1178_v22  ;;  %v98_v21 = vld [vmem:[%s3271_s1 + $0x220] sm:$0xff]  ;;  %v100_v22 = vld [vmem:[%s3271_s1 + $0x230] sm:$0xff]  ;;  %v361_v29 = vld [vmem:[%s3271_s1 + $0xa58] sm:$0xff] }
  0x33   :  { %1435 = vmatprep.subr.bf16.mxu0 %v1434_v26  ;;  %v354_v23 = vld [vmem:[%s3271_s1 + $0xa20] sm:$0xff]  ;;  %v103_v26 = vld [vmem:[%s3271_s1 + $0x248] sm:$0xff]  ;;  %v1200_v30 = vpack.c.bf16 %v100_v22, %v98_v21  ;;  %v1458_v36 = vpack.c.bf16 %v361_v29, %v359_v28  ;;  %v360_v37 = vld [vmem:[%s3271_s1 + $0xa50] sm:$0xff] }
  0x34   :  { %v1456_v31 = vpack.c.bf16 %v356_v25, %v354_v23  ;;  %v358_v35 = vld [vmem:[%s3271_s1 + $0xa40] sm:$0xff]  ;;  %v109_v39 = vld [vmem:[%s3271_s1 + $0x278] sm:$0xff]  ;;  %v363_v40 = vld [vmem:[%s3271_s1 + $0xa68] sm:$0xff] }
  0x35   :  { %1181 = vmatpush1.bf16.msra.mxu1 %v1180_v32  ;;  %v1202_v32 = vpack.c.bf16 %v105_v27, %v103_v26  ;;  %v365_v41 = vld [vmem:[%s3271_s1 + $0xa78] sm:$0xff]  ;;  %v1460_v43 = vpack.c.bf16 %v360_v37, %v358_v35  ;;  %v362_v47 = vld [vmem:[%s3271_s1 + $0xa60] sm:$0xff]  ;;  %v364_v49 = vld [vmem:[%s3271_s1 + $0xa70] sm:$0xff] }
  0x36   :  { %1437 = vmatpush1.bf16.msra.mxu0 %v1436_v33  ;;  %1183 = vmatprep.subr.bf16.mxu1 %v1182_v34  ;;  %v102_v33 = vld [vmem:[%s3271_s1 + $0x240] sm:$0xff]  ;;  %v104_v34 = vld [vmem:[%s3271_s1 + $0x250] sm:$0xff]  ;;  %v1462_v48 = vpack.c.bf16 %v365_v41, %v363_v40  ;;  %v113_v51 = vld [vmem:[%s3271_s1 + $0x298] sm:$0xff]  ;;  %v1464_v55 = vpack.c.bf16 %v364_v49, %v362_v47 }
  0x37   :  { %1439 = vmatprep.subr.bf16.mxu0 %v1438_v38  ;;  %v107_v38 = vld [vmem:[%s3271_s1 + $0x268] sm:$0xff]  ;;  %v1204_v42 = vpack.c.bf16 %v104_v34, %v102_v33  ;;  %v369_v53 = vld [vmem:[%s3271_s1 + $0xa98] sm:$0xff]  ;;  %v366_v59 = vld [vmem:[%s3271_s1 + $0xa80] sm:$0xff] }
  0x38   :  { %v367_v52 = vld [vmem:[%s3271_s1 + $0xa88] sm:$0xff]  ;;  %v368_v61 = vld [vmem:[%s3271_s1 + $0xa90] sm:$0xff]  ;;  %v117_v63 = vld [vmem:[%s3271_s1 + $0x2b8] sm:$0xff] }
  0x39   :  { %1185 = vmatpush1.bf16.msra.mxu1 %v1184_v44  ;;  %v1206_v44 = vpack.c.bf16 %v109_v39, %v107_v38  ;;  %v1466_v60 = vpack.c.bf16 %v369_v53, %v367_v52  ;;  %v371_v0 = vld [vmem:[%s3271_s1 + $0xaa8] sm:$0xff]  ;;  %v373_v1 = vld [vmem:[%s3271_s1 + $0xab8] sm:$0xff]  ;;  %v1468_v3 = vpack.c.bf16 %v368_v61, %v366_v59  ;;  %v370_v7 = vld [vmem:[%s3271_s1 + $0xaa0] sm:$0xff] }
  0x3a   :  { %1441 = vmatpush1.bf16.msra.mxu0 %v1440_v45  ;;  %1187 = vmatprep.subr.bf16.mxu1 %v1186_v46  ;;  %v106_v45 = vld [vmem:[%s3271_s1 + $0x260] sm:$0xff]  ;;  %v108_v46 = vld [vmem:[%s3271_s1 + $0x270] sm:$0xff]  ;;  %v1470_v8 = vpack.c.bf16 %v373_v1, %v371_v0  ;;  %v121_v11 = vld [vmem:[%s3271_s1 + $0x2d8] sm:$0xff] }
  0x3b   :  { %1443 = vmatprep.subr.bf16.mxu0 %v1442_v50  ;;  %v111_v50 = vld [vmem:[%s3271_s1 + $0x288] sm:$0xff]  ;;  %v1208_v54 = vpack.c.bf16 %v108_v46, %v106_v45  ;;  %v372_v9 = vld [vmem:[%s3271_s1 + $0xab0] sm:$0xff]  ;;  %v377_v13 = vld [vmem:[%s3271_s1 + $0xad8] sm:$0xff] }
  0x3c   :  { %v375_v12 = vld [vmem:[%s3271_s1 + $0xac8] sm:$0xff]  ;;  %v118_v15 = vld [vmem:[%s3271_s1 + $0x2c0] sm:$0xff]  ;;  %v125_v23 = vld [vmem:[%s3271_s1 + $0x2f8] sm:$0xff] }
  0x3d   :  { %1189 = vmatpush1.bf16.msra.mxu1 %v1188_v56  ;;  %v1210_v56 = vpack.c.bf16 %v113_v51, %v111_v50  ;;  %v1474_v21 = vpack.c.bf16 %v377_v13, %v375_v12  ;;  %v123_v22 = vld [vmem:[%s3271_s1 + $0x2e8] sm:$0xff]  ;;  %v381_v26 = vld [vmem:[%s3271_s1 + $0xaf8] sm:$0xff]  ;;  %v378_v33 = vld [vmem:[%s3271_s1 + $0xae0] sm:$0xff] }
  0x3e   :  { %1445 = vmatpush1.bf16.msra.mxu0 %v1444_v57  ;;  %1191 = vmatprep.subr.bf16.mxu1 %v1190_v58  ;;  %v110_v57 = vld [vmem:[%s3271_s1 + $0x280] sm:$0xff]  ;;  %v112_v58 = vld [vmem:[%s3271_s1 + $0x290] sm:$0xff]  ;;  %v379_v25 = vld [vmem:[%s3271_s1 + $0xae8] sm:$0xff] }
  0x3f   :  { %1447 = vmatprep.subr.bf16.mxu0 %v1446_v62  ;;  %v115_v62 = vld [vmem:[%s3271_s1 + $0x2a8] sm:$0xff]  ;;  %v1212_v2 = vpack.c.bf16 %v112_v58, %v110_v57  ;;  %v25_v27 = vld [vmem:[%s3272_s0 + $0x58] sm:$0xff]  ;;  %v1478_v34 = vpack.c.bf16 %v381_v26, %v379_v25  ;;  %v380_v35 = vld [vmem:[%s3271_s1 + $0xaf0] sm:$0xff] }
  0x40   :  { %v129_v37 = vld [vmem:[%s3271_s1 + $0x318] sm:$0xff]  ;;  %v383_v38 = vld [vmem:[%s3271_s1 + $0xb08] sm:$0xff]  ;;  %v1480_v41 = vpack.c.bf16 %v380_v35, %v378_v33  ;;  %v382_v45 = vld [vmem:[%s3271_s1 + $0xb00] sm:$0xff] }
  0x41   :  { %1193 = vmatpush1.bf16.msra.mxu1 %v1192_v4  ;;  %v1214_v4 = vpack.c.bf16 %v117_v63, %v115_v62  ;;  %v385_v39 = vld [vmem:[%s3271_s1 + $0xb18] sm:$0xff]  ;;  %v384_v47 = vld [vmem:[%s3271_s1 + $0xb10] sm:$0xff]  ;;  %v387_v50 = vld [vmem:[%s3271_s1 + $0xb28] sm:$0xff] }
  0x42   :  { %1449 = vmatpush1.bf16.msra.mxu0 %v1448_v5  ;;  %1195 = vmatprep.subr.bf16.mxu1 %v1194_v6  ;;  %v114_v5 = vld [vmem:[%s3271_s1 + $0x2a0] sm:$0xff]  ;;  %v116_v6 = vld [vmem:[%s3271_s1 + $0x2b0] sm:$0xff]  ;;  %v1482_v46 = vpack.c.bf16 %v385_v39, %v383_v38  ;;  %v133_v49 = vld [vmem:[%s3271_s1 + $0x338] sm:$0xff]  ;;  %v1484_v53 = vpack.c.bf16 %v384_v47, %v382_v45 }
  0x43   :  { %1451 = vmatprep.subr.bf16.mxu0 %v1450_v10  ;;  %v119_v10 = vld [vmem:[%s3271_s1 + $0x2c8] sm:$0xff]  ;;  %v1216_v14 = vpack.c.bf16 %v116_v6, %v114_v5  ;;  %v389_v51 = vld [vmem:[%s3271_s1 + $0xb38] sm:$0xff]  ;;  %v386_v57 = vld [vmem:[%s3271_s1 + $0xb20] sm:$0xff] }
  0x44   :  { %619 = vmatmul.mubr.f32.vlgmr.msra.gmra.mrb[0].mxu1 %v14_v16  ;;  %v1472_v16 = vpack.c.bf16 %v372_v9, %v370_v7  ;;  %v1486_v58 = vpack.c.bf16 %v389_v51, %v387_v50  ;;  %v388_v59 = vld [vmem:[%s3271_s1 + $0xb30] sm:$0xff]  ;;  %v137_v61 = vld [vmem:[%s3271_s1 + $0x358] sm:$0xff]  ;;  %v391_v62 = vld [vmem:[%s3271_s1 + $0xb48] sm:$0xff] }
  0x45   :  { %1197 = vmatpush1.bf16.msra.mxu1 %v1196_v17  ;;  %903 = vmatmul.mubr.f32.vlgmr.msra.gmra.mrb[0].mxu0 %v22_v18  ;;  %v1218_v17 = vpack.c.bf16 %v121_v11, %v119_v10  ;;  %v120_v18 = vld [vmem:[%s3271_s1 + $0x2d0] sm:$0xff]  ;;  %v393_v63 = vld [vmem:[%s3271_s1 + $0xb58] sm:$0xff]  ;;  %v1488_v1 = vpack.c.bf16 %v388_v59, %v386_v57  ;;  %v390_v5 = vld [vmem:[%s3271_s1 + $0xb40] sm:$0xff] }
  0x46   :  { %1453 = vmatpush1.bf16.msra.mxu0 %v1452_v19  ;;  %1199 = vmatprep.subr.bf16.mxu1 %v1198_v20  ;;  %v374_v19 = vld [vmem:[%s3271_s1 + $0xac0] sm:$0xff]  ;;  %v376_v20 = vld [vmem:[%s3271_s1 + $0xad0] sm:$0xff]  ;;  %v1220_v28 = vpack.c.bf16 %v120_v18, %v118_v15  ;;  %v1490_v6 = vpack.c.bf16 %v393_v63, %v391_v62  ;;  %v141_v9 = vld [vmem:[%s3271_s1 + $0x378] sm:$0xff] }
  0x47   :  { %1455 = vmatprep.subr.bf16.mxu0 %v1454_v24  ;;  %v17_v24 = vld [vmem:[%s3272_s0 + $0x18] sm:$0xff]  ;;  %973 = vmatprep.mubr.f32.mxu0 %v25_v27  ;;  %v1476_v29 = vpack.c.bf16 %v376_v20, %v374_v19  ;;  %v392_v7 = vld [vmem:[%s3271_s1 + $0xb50] sm:$0xff]  ;;  %v395_v10 = vld [vmem:[%s3271_s1 + $0xb68] sm:$0xff] }
  0x48   :  { %689 = vmatprep.mubr.f32.mxu1 %v17_v24  ;;  %v397_v11 = vld [vmem:[%s3271_s1 + $0xb78] sm:$0xff]  ;;  %v1492_v13 = vpack.c.bf16 %v392_v7, %v390_v5  ;;  %v138_v15 = vld [vmem:[%s3271_s1 + $0x360] sm:$0xff]  ;;  %v396_v19 = vld [vmem:[%s3271_s1 + $0xb70] sm:$0xff] }
  0x49   :  { %1201 = vmatpush1.bf16.msra.mxu1 %v1200_v30  ;;  %v1222_v30 = vpack.c.bf16 %v125_v23, %v123_v22  ;;  %v1494_v18 = vpack.c.bf16 %v397_v11, %v395_v10  ;;  %v143_v20 = vld [vmem:[%s3271_s1 + $0x388] sm:$0xff]  ;;  %v401_v23 = vld [vmem:[%s3271_s1 + $0xb98] sm:$0xff]  ;;  %v142_v27 = vld [vmem:[%s3271_s1 + $0x380] sm:$0xff] }
  0x4a   :  { %1457 = vmatpush1.bf16.msra.mxu0 %v1456_v31  ;;  %1203 = vmatprep.subr.bf16.mxu1 %v1202_v32  ;;  %v122_v31 = vld [vmem:[%s3271_s1 + $0x2e0] sm:$0xff]  ;;  %v124_v32 = vld [vmem:[%s3271_s1 + $0x2f0] sm:$0xff]  ;;  %v399_v22 = vld [vmem:[%s3271_s1 + $0xb88] sm:$0xff] }
  0x4b   :  { %1459 = vmatprep.subr.bf16.mxu0 %v1458_v36  ;;  %v127_v36 = vld [vmem:[%s3271_s1 + $0x308] sm:$0xff]  ;;  %v1224_v40 = vpack.c.bf16 %v124_v32, %v122_v31  ;;  %v400_v31 = vld [vmem:[%s3271_s1 + $0xb90] sm:$0xff]  ;;  %v149_v33 = vld [vmem:[%s3271_s1 + $0x3b8] sm:$0xff] }
  0x4c   :  { %v147_v32 = vld [vmem:[%s3271_s1 + $0x3a8] sm:$0xff]  ;;  %v405_v35 = vld [vmem:[%s3271_s1 + $0xbb8] sm:$0xff]  ;;  %v146_v39 = vld [vmem:[%s3271_s1 + $0x3a0] sm:$0xff] }
  0x4d   :  { %1205 = vmatpush1.bf16.msra.mxu1 %v1204_v42  ;;  %v1226_v42 = vpack.c.bf16 %v129_v37, %v127_v36  ;;  %v1246_v38 = vpack.c.bf16 %v149_v33, %v147_v32  ;;  %v153_v45 = vld [vmem:[%s3271_s1 + $0x3d8] sm:$0xff]  ;;  %v150_v51 = vld [vmem:[%s3271_s1 + $0x3c0] sm:$0xff]  ;;  %v423_v32 = vld [vmem:[%s3271_s1 + $0xc48] sm:$0xff] }
  0x4e   :  { %1461 = vmatpush1.bf16.msra.mxu0 %v1460_v43  ;;  %1207 = vmatprep.subr.bf16.mxu1 %v1206_v44  ;;  %v126_v43 = vld [vmem:[%s3271_s1 + $0x300] sm:$0xff]  ;;  %v128_v44 = vld [vmem:[%s3271_s1 + $0x310] sm:$0xff]  ;;  %v409_v47 = vld [vmem:[%s3271_s1 + $0xbd8] sm:$0xff] }
  0x4f   :  { %1463 = vmatprep.subr.bf16.mxu0 %v1462_v48  ;;  %v131_v48 = vld [vmem:[%s3271_s1 + $0x328] sm:$0xff]  ;;  %v1228_v52 = vpack.c.bf16 %v128_v44, %v126_v43  ;;  %v404_v43 = vld [vmem:[%s3271_s1 + $0xbb0] sm:$0xff]  ;;  %v157_v57 = vld [vmem:[%s3271_s1 + $0x3f8] sm:$0xff] }
  0x50   :  { %v151_v44 = vld [vmem:[%s3271_s1 + $0x3c8] sm:$0xff]  ;;  %v413_v59 = vld [vmem:[%s3271_s1 + $0xbf8] sm:$0xff]  ;;  %v154_v63 = vld [vmem:[%s3271_s1 + $0x3e0] sm:$0xff] }
  0x51   :  { %1209 = vmatpush1.bf16.msra.mxu1 %v1208_v54  ;;  %v1230_v54 = vpack.c.bf16 %v133_v49, %v131_v48  ;;  %v1250_v50 = vpack.c.bf16 %v153_v45, %v151_v44  ;;  %v161_v5 = vld [vmem:[%s3271_s1 + $0x418] sm:$0xff]  ;;  %v158_v11 = vld [vmem:[%s3271_s1 + $0x400] sm:$0xff]  ;;  %v171_v44 = vld [vmem:[%s3271_s1 + $0x468] sm:$0xff] }
  0x52   :  { %1465 = vmatpush1.bf16.msra.mxu0 %v1464_v55  ;;  %1211 = vmatprep.subr.bf16.mxu1 %v1210_v56  ;;  %v130_v55 = vld [vmem:[%s3271_s1 + $0x320] sm:$0xff]  ;;  %v132_v56 = vld [vmem:[%s3271_s1 + $0x330] sm:$0xff]  ;;  %v417_v7 = vld [vmem:[%s3271_s1 + $0xc18] sm:$0xff] }
  0x53   :  { %1467 = vmatprep.subr.bf16.mxu0 %v1466_v60  ;;  %v135_v60 = vld [vmem:[%s3271_s1 + $0x348] sm:$0xff]  ;;  %v1232_v0 = vpack.c.bf16 %v132_v56, %v130_v55  ;;  %v408_v55 = vld [vmem:[%s3271_s1 + $0xbd0] sm:$0xff]  ;;  %v425_v33 = vld [vmem:[%s3271_s1 + $0xc58] sm:$0xff] }
  0x54   :  { %v155_v56 = vld [vmem:[%s3271_s1 + $0x3e8] sm:$0xff]  ;;  %v173_v45 = vld [vmem:[%s3271_s1 + $0x478] sm:$0xff] }
  0x55   :  { %1213 = vmatpush1.bf16.msra.mxu1 %v1212_v2  ;;  %v1234_v2 = vpack.c.bf16 %v137_v61, %v135_v60  ;;  %v1254_v62 = vpack.c.bf16 %v157_v57, %v155_v56  ;;  %v175_v56 = vld [vmem:[%s3271_s1 + $0x488] sm:$0xff]  ;;  %v177_v57 = vld [vmem:[%s3271_s1 + $0x498] sm:$0xff] }
  0x56   :  { %1469 = vmatpush1.bf16.msra.mxu0 %v1468_v3  ;;  %1215 = vmatprep.subr.bf16.mxu1 %v1214_v4  ;;  %v134_v3 = vld [vmem:[%s3271_s1 + $0x340] sm:$0xff]  ;;  %v136_v4 = vld [vmem:[%s3271_s1 + $0x350] sm:$0xff] }
  0x57   :  { %1471 = vmatprep.subr.bf16.mxu0 %v1470_v8  ;;  %v139_v8 = vld [vmem:[%s3271_s1 + $0x368] sm:$0xff]  ;;  %v1236_v12 = vpack.c.bf16 %v136_v4, %v134_v3  ;;  %v412_v3 = vld [vmem:[%s3271_s1 + $0xbf0] sm:$0xff] }
  0x58   :  { %v159_v4 = vld [vmem:[%s3271_s1 + $0x408] sm:$0xff] }
  0x59   :  { %1217 = vmatpush1.bf16.msra.mxu1 %v1216_v14  ;;  %v1238_v14 = vpack.c.bf16 %v141_v9, %v139_v8  ;;  %v1258_v10 = vpack.c.bf16 %v161_v5, %v159_v4  ;;  %v179_v4 = vld [vmem:[%s3271_s1 + $0x4a8] sm:$0xff]  ;;  %v181_v5 = vld [vmem:[%s3271_s1 + $0x4b8] sm:$0xff] }
  0x5a   :  { %1473 = vmatpush1.bf16.msra.mxu0 %v1472_v16  ;;  %1219 = vmatprep.subr.bf16.mxu1 %v1218_v17  ;;  %v140_v16 = vld [vmem:[%s3271_s1 + $0x370] sm:$0xff]  ;;  %v394_v17 = vld [vmem:[%s3271_s1 + $0xb60] sm:$0xff] }
  0x5b   :  { %1475 = vmatprep.subr.bf16.mxu0 %v1474_v21  ;;  %v145_v21 = vld [vmem:[%s3271_s1 + $0x398] sm:$0xff]  ;;  %v1240_v24 = vpack.c.bf16 %v140_v16, %v138_v15  ;;  %v1496_v25 = vpack.c.bf16 %v396_v19, %v394_v17  ;;  %v416_v15 = vld [vmem:[%s3271_s1 + $0xc10] sm:$0xff]  ;;  %v163_v16 = vld [vmem:[%s3271_s1 + $0x428] sm:$0xff] }
  0x5c   :  { %v1242_v26 = vpack.c.bf16 %v145_v21, %v143_v20  ;;  %v165_v17 = vld [vmem:[%s3271_s1 + $0x438] sm:$0xff]  ;;  %v16_v20 = vld [vmem:[%s3272_s0 + $0x10] sm:$0xff] }
  0x5d   :  { %1221 = vmatpush1.bf16.msra.mxu1 %v1220_v28  ;;  %v144_v28 = vld [vmem:[%s3271_s1 + $0x390] sm:$0xff]  ;;  %v421_v19 = vld [vmem:[%s3271_s1 + $0xc38] sm:$0xff] }
  0x5e   :  { %1477 = vmatpush1.bf16.msra.mxu0 %v1476_v29  ;;  %1223 = vmatprep.subr.bf16.mxu1 %v1222_v30  ;;  %v398_v29 = vld [vmem:[%s3271_s1 + $0xb80] sm:$0xff]  ;;  %v1498_v30 = vpack.c.bf16 %v401_v23, %v399_v22  ;;  %v1244_v36 = vpack.c.bf16 %v144_v28, %v142_v27  ;;  %v24_v22 = vld [vmem:[%s3272_s0 + $0x50] sm:$0xff] }
  0x5f   :  { %1479 = vmatprep.subr.bf16.mxu0 %v1478_v34  ;;  %v403_v34 = vld [vmem:[%s3271_s1 + $0xba8] sm:$0xff]  ;;  %v1500_v37 = vpack.c.bf16 %v400_v31, %v398_v29  ;;  %v418_v27 = vld [vmem:[%s3271_s1 + $0xc20] sm:$0xff]  ;;  %v420_v29 = vld [vmem:[%s3271_s1 + $0xc30] sm:$0xff] }
  0x60   :  { %v169_v31 = vld [vmem:[%s3271_s1 + $0x458] sm:$0xff] }
  0x61   :  { %1225 = vmatpush1.bf16.msra.mxu1 %v1224_v40  ;;  %v148_v40 = vld [vmem:[%s3271_s1 + $0x3b0] sm:$0xff] }
  0x62   :  { %1481 = vmatpush1.bf16.msra.mxu0 %v1480_v41  ;;  %1227 = vmatprep.subr.bf16.mxu1 %v1226_v42  ;;  %v402_v41 = vld [vmem:[%s3271_s1 + $0xba0] sm:$0xff]  ;;  %v1502_v42 = vpack.c.bf16 %v405_v35, %v403_v34  ;;  %v1248_v48 = vpack.c.bf16 %v148_v40, %v146_v39  ;;  %v19_v34 = vld [vmem:[%s3272_s0 + $0x28] sm:$0xff]  ;;  %v168_v40 = vld [vmem:[%s3271_s1 + $0x450] sm:$0xff] }
  0x63   :  { %1483 = vmatprep.subr.bf16.mxu0 %v1482_v46  ;;  %v407_v46 = vld [vmem:[%s3271_s1 + $0xbc8] sm:$0xff]  ;;  %v1504_v49 = vpack.c.bf16 %v404_v43, %v402_v41  ;;  %v166_v39 = vld [vmem:[%s3271_s1 + $0x440] sm:$0xff]  ;;  %v424_v43 = vld [vmem:[%s3271_s1 + $0xc50] sm:$0xff] }
  0x64   :  { %v422_v41 = vld [vmem:[%s3271_s1 + $0xc40] sm:$0xff] }
  0x65   :  { %1229 = vmatpush1.bf16.msra.mxu1 %v1228_v52  ;;  %v152_v52 = vld [vmem:[%s3271_s1 + $0x3d0] sm:$0xff] }
  0x66   :  { %1485 = vmatpush1.bf16.msra.mxu0 %v1484_v53  ;;  %1231 = vmatprep.subr.bf16.mxu1 %v1230_v54  ;;  %v406_v53 = vld [vmem:[%s3271_s1 + $0xbc0] sm:$0xff]  ;;  %v1506_v54 = vpack.c.bf16 %v409_v47, %v407_v46  ;;  %v1252_v60 = vpack.c.bf16 %v152_v52, %v150_v51  ;;  %v427_v46 = vld [vmem:[%s3271_s1 + $0xc68] sm:$0xff]  ;;  %v429_v47 = vld [vmem:[%s3271_s1 + $0xc78] sm:$0xff] }
  0x67   :  { %1487 = vmatprep.subr.bf16.mxu0 %v1486_v58  ;;  %v411_v58 = vld [vmem:[%s3271_s1 + $0xbe8] sm:$0xff]  ;;  %v1508_v61 = vpack.c.bf16 %v408_v55, %v406_v53  ;;  %v170_v51 = vld [vmem:[%s3271_s1 + $0x460] sm:$0xff]  ;;  %v172_v52 = vld [vmem:[%s3271_s1 + $0x470] sm:$0xff] }
  0x68   :  { %v426_v53 = vld [vmem:[%s3271_s1 + $0xc60] sm:$0xff]  ;;  %v428_v55 = vld [vmem:[%s3271_s1 + $0xc70] sm:$0xff] }
  0x69   :  { %1233 = vmatpush1.bf16.msra.mxu1 %v1232_v0  ;;  %v156_v0 = vld [vmem:[%s3271_s1 + $0x3f0] sm:$0xff] }
  0x6a   :  { %1489 = vmatpush1.bf16.msra.mxu0 %v1488_v1  ;;  %1235 = vmatprep.subr.bf16.mxu1 %v1234_v2  ;;  %v410_v1 = vld [vmem:[%s3271_s1 + $0xbe0] sm:$0xff]  ;;  %v1510_v2 = vpack.c.bf16 %v413_v59, %v411_v58  ;;  %v1256_v8 = vpack.c.bf16 %v156_v0, %v154_v63  ;;  %v431_v58 = vld [vmem:[%s3271_s1 + $0xc88] sm:$0xff]  ;;  %v433_v59 = vld [vmem:[%s3271_s1 + $0xc98] sm:$0xff] }
  0x6b   :  { %1491 = vmatprep.subr.bf16.mxu0 %v1490_v6  ;;  %v415_v6 = vld [vmem:[%s3271_s1 + $0xc08] sm:$0xff]  ;;  %v1512_v9 = vpack.c.bf16 %v412_v3, %v410_v1  ;;  %v174_v63 = vld [vmem:[%s3271_s1 + $0x480] sm:$0xff]  ;;  %v176_v0 = vld [vmem:[%s3271_s1 + $0x490] sm:$0xff] }
  0x6c   :  { %v430_v1 = vld [vmem:[%s3271_s1 + $0xc80] sm:$0xff]  ;;  %v432_v3 = vld [vmem:[%s3271_s1 + $0xc90] sm:$0xff] }
  0x6d   :  { %1237 = vmatpush1.bf16.msra.mxu1 %v1236_v12  ;;  %v160_v12 = vld [vmem:[%s3271_s1 + $0x410] sm:$0xff] }
  0x6e   :  { %1493 = vmatpush1.bf16.msra.mxu0 %v1492_v13  ;;  %1239 = vmatprep.subr.bf16.mxu1 %v1238_v14  ;;  %v414_v13 = vld [vmem:[%s3271_s1 + $0xc00] sm:$0xff]  ;;  %v1514_v14 = vpack.c.bf16 %v417_v7, %v415_v6  ;;  %v1260_v21 = vpack.c.bf16 %v160_v12, %v158_v11  ;;  %v435_v6 = vld [vmem:[%s3271_s1 + $0xca8] sm:$0xff]  ;;  %v437_v7 = vld [vmem:[%s3271_s1 + $0xcb8] sm:$0xff] }
  0x6f   :  { %1495 = vmatprep.subr.bf16.mxu0 %v1494_v18  ;;  %v419_v18 = vld [vmem:[%s3271_s1 + $0xc28] sm:$0xff]  ;;  %v1516_v23 = vpack.c.bf16 %v416_v15, %v414_v13  ;;  %v178_v11 = vld [vmem:[%s3271_s1 + $0x4a0] sm:$0xff]  ;;  %v180_v12 = vld [vmem:[%s3271_s1 + $0x4b0] sm:$0xff] }
  0x70   :  { %v1518_v28 = vpack.c.bf16 %v421_v19, %v419_v18  ;;  %v434_v13 = vld [vmem:[%s3271_s1 + $0xca0] sm:$0xff]  ;;  %v436_v15 = vld [vmem:[%s3271_s1 + $0xcb0] sm:$0xff]  ;;  %v439_v18 = vld [vmem:[%s3271_s1 + $0xcc8] sm:$0xff] }
  0x71   :  { %1241 = vmatpush1.bf16.msra.mxu1 %v1240_v24  ;;  %v1262_v24 = vpack.c.bf16 %v165_v17, %v163_v16  ;;  %v183_v16 = vld [vmem:[%s3271_s1 + $0x4c8] sm:$0xff]  ;;  %v185_v17 = vld [vmem:[%s3271_s1 + $0x4d8] sm:$0xff] }
  0x72   :  { %1497 = vmatpush1.bf16.msra.mxu0 %v1496_v25  ;;  %1243 = vmatprep.subr.bf16.mxu1 %v1242_v26  ;;  %v162_v25 = vld [vmem:[%s3271_s1 + $0x420] sm:$0xff]  ;;  %v164_v26 = vld [vmem:[%s3271_s1 + $0x430] sm:$0xff]  ;;  %v441_v19 = vld [vmem:[%s3271_s1 + $0xcd8] sm:$0xff] }
  0x73   :  { %1499 = vmatprep.subr.bf16.mxu0 %v1498_v30  ;;  %v167_v30 = vld [vmem:[%s3271_s1 + $0x448] sm:$0xff]  ;;  %v1264_v35 = vpack.c.bf16 %v164_v26, %v162_v25  ;;  %v438_v25 = vld [vmem:[%s3271_s1 + $0xcc0] sm:$0xff]  ;;  %v1538_v26 = vpack.c.bf16 %v441_v19, %v439_v18 }
  0x74   :  { %v202_v19 = vld [vmem:[%s3271_s1 + $0x560] sm:$0xff] }
  0x75   :  { %1245 = vmatpush1.bf16.msra.mxu1 %v1244_v36  ;;  %v27_v36 = vld [vmem:[%s3272_s0 + $0x68] sm:$0xff] }
  0x76   :  { %1501 = vmatpush1.bf16.msra.mxu0 %v1500_v37  ;;  %1247 = vmatprep.subr.bf16.mxu1 %v1246_v38  ;;  %v1520_v37 = vpack.c.bf16 %v420_v29, %v418_v27  ;;  %v1266_v38 = vpack.c.bf16 %v169_v31, %v167_v30  ;;  %v440_v27 = vld [vmem:[%s3271_s1 + $0xcd0] sm:$0xff]  ;;  %v189_v29 = vld [vmem:[%s3271_s1 + $0x4f8] sm:$0xff]  ;;  %v443_v30 = vld [vmem:[%s3271_s1 + $0xce8] sm:$0xff] }
  0x77   :  { %1503 = vmatprep.subr.bf16.mxu0 %v1502_v42  ;;  %v1522_v42 = vpack.c.bf16 %v425_v33, %v423_v32  ;;  %v445_v31 = vld [vmem:[%s3271_s1 + $0xcf8] sm:$0xff]  ;;  %v1540_v33 = vpack.c.bf16 %v440_v27, %v438_v25 }
  0x78   :  { %v209_v25 = vld [vmem:[%s3271_s1 + $0x598] sm:$0xff] }
  0x79   :  { %1249 = vmatpush1.bf16.msra.mxu1 %v1248_v48  ;;  %v1268_v48 = vpack.c.bf16 %v168_v40, %v166_v39  ;;  %v444_v39 = vld [vmem:[%s3271_s1 + $0xcf0] sm:$0xff]  ;;  %v191_v40 = vld [vmem:[%s3271_s1 + $0x508] sm:$0xff]  ;;  %v465_v27 = vld [vmem:[%s3271_s1 + $0xd98] sm:$0xff] }
  0x7a   :  { %1505 = vmatpush1.bf16.msra.mxu0 %v1504_v49  ;;  %1251 = vmatprep.subr.bf16.mxu1 %v1250_v50  ;;  %v1524_v49 = vpack.c.bf16 %v424_v43, %v422_v41  ;;  %v1270_v50 = vpack.c.bf16 %v173_v45, %v171_v44  ;;  %v193_v41 = vld [vmem:[%s3271_s1 + $0x518] sm:$0xff] }
  0x7b   :  { %1507 = vmatprep.subr.bf16.mxu0 %v1506_v54  ;;  %v1526_v54 = vpack.c.bf16 %v429_v47, %v427_v46  ;;  %v449_v43 = vld [vmem:[%s3271_s1 + $0xd18] sm:$0xff]  ;;  %v1290_v46 = vpack.c.bf16 %v193_v41, %v191_v40  ;;  %v190_v47 = vld [vmem:[%s3271_s1 + $0x500] sm:$0xff] }
  0x7d   :  { %1253 = vmatpush1.bf16.msra.mxu1 %v1252_v60  ;;  %v1272_v60 = vpack.c.bf16 %v172_v52, %v170_v51  ;;  %v448_v51 = vld [vmem:[%s3271_s1 + $0xd10] sm:$0xff]  ;;  %v195_v52 = vld [vmem:[%s3271_s1 + $0x528] sm:$0xff] }
  0x7e   :  { %1509 = vmatpush1.bf16.msra.mxu0 %v1508_v61  ;;  %1255 = vmatprep.subr.bf16.mxu1 %v1254_v62  ;;  %v1528_v61 = vpack.c.bf16 %v428_v55, %v426_v53  ;;  %v1274_v62 = vpack.c.bf16 %v177_v57, %v175_v56  ;;  %v197_v53 = vld [vmem:[%s3271_s1 + $0x538] sm:$0xff] }
  0x7f   :  { %1511 = vmatprep.subr.bf16.mxu0 %v1510_v2  ;;  %v1530_v2 = vpack.c.bf16 %v433_v59, %v431_v58  ;;  %v453_v55 = vld [vmem:[%s3271_s1 + $0xd38] sm:$0xff]  ;;  %v1294_v58 = vpack.c.bf16 %v197_v53, %v195_v52  ;;  %v194_v59 = vld [vmem:[%s3271_s1 + $0x520] sm:$0xff] }
  0x81   :  { %1257 = vmatpush1.bf16.msra.mxu1 %v1256_v8  ;;  %v1276_v8 = vpack.c.bf16 %v176_v0, %v174_v63  ;;  %v452_v63 = vld [vmem:[%s3271_s1 + $0xd30] sm:$0xff]  ;;  %v199_v0 = vld [vmem:[%s3271_s1 + $0x548] sm:$0xff] }
  0x82   :  { %1513 = vmatpush1.bf16.msra.mxu0 %v1512_v9  ;;  %1259 = vmatprep.subr.bf16.mxu1 %v1258_v10  ;;  %v1532_v9 = vpack.c.bf16 %v432_v3, %v430_v1  ;;  %v1278_v10 = vpack.c.bf16 %v181_v5, %v179_v4  ;;  %v201_v1 = vld [vmem:[%s3271_s1 + $0x558] sm:$0xff] }
  0x83   :  { %1515 = vmatprep.subr.bf16.mxu0 %v1514_v14  ;;  %v1534_v14 = vpack.c.bf16 %v437_v7, %v435_v6  ;;  %v457_v3 = vld [vmem:[%s3271_s1 + $0xd58] sm:$0xff]  ;;  %v1298_v6 = vpack.c.bf16 %v201_v1, %v199_v0  ;;  %v198_v7 = vld [vmem:[%s3271_s1 + $0x540] sm:$0xff] }
  0x84   :  { %690 = vmatmul.mubr.f32.vlgmr.msra.gmra.mrb[0].mxu1 %v16_v20  ;;  %v1280_v20 = vpack.c.bf16 %v180_v12, %v178_v11  ;;  %v456_v11 = vld [vmem:[%s3271_s1 + $0xd50] sm:$0xff]  ;;  %v203_v12 = vld [vmem:[%s3271_s1 + $0x568] sm:$0xff] }
  0x85   :  { %1261 = vmatpush1.bf16.msra.mxu1 %v1260_v21  ;;  %974 = vmatmul.mubr.f32.vlgmr.msra.gmra.mrb[0].mxu0 %v24_v22  ;;  %v1536_v21 = vpack.c.bf16 %v436_v15, %v434_v13  ;;  %v1282_v22 = vpack.c.bf16 %v185_v17, %v183_v16  ;;  %v205_v13 = vld [vmem:[%s3271_s1 + $0x578] sm:$0xff] }
  0x86   :  { %1517 = vmatpush1.bf16.msra.mxu0 %v1516_v23  ;;  %1263 = vmatprep.subr.bf16.mxu1 %v1262_v24  ;;  %v182_v23 = vld [vmem:[%s3271_s1 + $0x4c0] sm:$0xff]  ;;  %v184_v24 = vld [vmem:[%s3271_s1 + $0x4d0] sm:$0xff]  ;;  %v461_v15 = vld [vmem:[%s3271_s1 + $0xd78] sm:$0xff]  ;;  %v1302_v18 = vpack.c.bf16 %v205_v13, %v203_v12 }
  0x87   :  { %1519 = vmatprep.subr.bf16.mxu0 %v1518_v28  ;;  %760 = vmatprep.mubr.f32.mxu1 %v19_v34  ;;  %v187_v28 = vld [vmem:[%s3271_s1 + $0x4e8] sm:$0xff]  ;;  %v1284_v32 = vpack.c.bf16 %v184_v24, %v182_v23  ;;  %v460_v23 = vld [vmem:[%s3271_s1 + $0xd70] sm:$0xff] }
  0x88   :  { %1044 = vmatprep.mubr.f32.mxu0 %v27_v36  ;;  %v1286_v34 = vpack.c.bf16 %v189_v29, %v187_v28  ;;  %v188_v36 = vld [vmem:[%s3271_s1 + $0x4f0] sm:$0xff]  ;;  %v207_v24 = vld [vmem:[%s3271_s1 + $0x588] sm:$0xff] }
  0x89   :  { %1265 = vmatpush1.bf16.msra.mxu1 %v1264_v35  ;;  %v186_v35 = vld [vmem:[%s3271_s1 + $0x4e0] sm:$0xff] }
  0x8a   :  { %1521 = vmatpush1.bf16.msra.mxu0 %v1520_v37  ;;  %1267 = vmatprep.subr.bf16.mxu1 %v1266_v38  ;;  %v442_v37 = vld [vmem:[%s3271_s1 + $0xce0] sm:$0xff]  ;;  %v1542_v38 = vpack.c.bf16 %v445_v31, %v443_v30  ;;  %v1288_v44 = vpack.c.bf16 %v188_v36, %v186_v35  ;;  %v1306_v30 = vpack.c.bf16 %v209_v25, %v207_v24  ;;  %v464_v35 = vld [vmem:[%s3271_s1 + $0xd90] sm:$0xff]  ;;  %v211_v36 = vld [vmem:[%s3271_s1 + $0x5a8] sm:$0xff] }
  0x8b   :  { %1523 = vmatprep.subr.bf16.mxu0 %v1522_v42  ;;  %v447_v42 = vld [vmem:[%s3271_s1 + $0xd08] sm:$0xff]  ;;  %v1544_v45 = vpack.c.bf16 %v444_v39, %v442_v37  ;;  %v206_v31 = vld [vmem:[%s3271_s1 + $0x580] sm:$0xff]  ;;  %v213_v37 = vld [vmem:[%s3271_s1 + $0x5b8] sm:$0xff] }
  0x8c   :  { %v469_v39 = vld [vmem:[%s3271_s1 + $0xdb8] sm:$0xff]  ;;  %v18_v24 = vld [vmem:[%s3272_s0 + $0x20] sm:$0xff] }
  0x8d   :  { %1269 = vmatpush1.bf16.msra.mxu1 %v1268_v48  ;;  %v192_v48 = vld [vmem:[%s3271_s1 + $0x510] sm:$0xff] }
  0x8e   :  { %1525 = vmatpush1.bf16.msra.mxu0 %v1524_v49  ;;  %1271 = vmatprep.subr.bf16.mxu1 %v1270_v50  ;;  %v446_v49 = vld [vmem:[%s3271_s1 + $0xd00] sm:$0xff]  ;;  %v1546_v50 = vpack.c.bf16 %v449_v43, %v447_v42  ;;  %v1292_v56 = vpack.c.bf16 %v192_v48, %v190_v47  ;;  %v1310_v42 = vpack.c.bf16 %v213_v37, %v211_v36  ;;  %v468_v47 = vld [vmem:[%s3271_s1 + $0xdb0] sm:$0xff]  ;;  %v215_v48 = vld [vmem:[%s3271_s1 + $0x5c8] sm:$0xff] }
  0x8f   :  { %1527 = vmatprep.subr.bf16.mxu0 %v1526_v54  ;;  %v451_v54 = vld [vmem:[%s3271_s1 + $0xd28] sm:$0xff]  ;;  %v1548_v57 = vpack.c.bf16 %v448_v51, %v446_v49  ;;  %v210_v43 = vld [vmem:[%s3271_s1 + $0x5a0] sm:$0xff]  ;;  %v217_v49 = vld [vmem:[%s3271_s1 + $0x5d8] sm:$0xff] }
  0x90   :  { %v473_v51 = vld [vmem:[%s3271_s1 + $0xdd8] sm:$0xff]  ;;  %v487_v36 = vld [vmem:[%s3271_s1 + $0xe48] sm:$0xff] }
  0x91   :  { %1273 = vmatpush1.bf16.msra.mxu1 %v1272_v60  ;;  %v196_v60 = vld [vmem:[%s3271_s1 + $0x530] sm:$0xff]  ;;  %v489_v37 = vld [vmem:[%s3271_s1 + $0xe58] sm:$0xff] }
  0x92   :  { %1529 = vmatpush1.bf16.msra.mxu0 %v1528_v61  ;;  %1275 = vmatprep.subr.bf16.mxu1 %v1274_v62  ;;  %v450_v61 = vld [vmem:[%s3271_s1 + $0xd20] sm:$0xff]  ;;  %v1550_v62 = vpack.c.bf16 %v453_v55, %v451_v54  ;;  %v1296_v4 = vpack.c.bf16 %v196_v60, %v194_v59  ;;  %v1314_v54 = vpack.c.bf16 %v217_v49, %v215_v48  ;;  %v472_v59 = vld [vmem:[%s3271_s1 + $0xdd0] sm:$0xff]  ;;  %v219_v60 = vld [vmem:[%s3271_s1 + $0x5e8] sm:$0xff] }
  0x93   :  { %1531 = vmatprep.subr.bf16.mxu0 %v1530_v2  ;;  %v455_v2 = vld [vmem:[%s3271_s1 + $0xd48] sm:$0xff]  ;;  %v1552_v5 = vpack.c.bf16 %v452_v63, %v450_v61  ;;  %v214_v55 = vld [vmem:[%s3271_s1 + $0x5c0] sm:$0xff]  ;;  %v221_v61 = vld [vmem:[%s3271_s1 + $0x5f8] sm:$0xff] }
  0x94   :  { %v477_v63 = vld [vmem:[%s3271_s1 + $0xdf8] sm:$0xff]  ;;  %v235_v48 = vld [vmem:[%s3271_s1 + $0x668] sm:$0xff] }
  0x95   :  { %1277 = vmatpush1.bf16.msra.mxu1 %v1276_v8  ;;  %v200_v8 = vld [vmem:[%s3271_s1 + $0x550] sm:$0xff]  ;;  %v237_v49 = vld [vmem:[%s3271_s1 + $0x678] sm:$0xff] }
  0x96   :  { %1533 = vmatpush1.bf16.msra.mxu0 %v1532_v9  ;;  %1279 = vmatprep.subr.bf16.mxu1 %v1278_v10  ;;  %v454_v9 = vld [vmem:[%s3271_s1 + $0xd40] sm:$0xff]  ;;  %v1554_v10 = vpack.c.bf16 %v457_v3, %v455_v2  ;;  %v1300_v16 = vpack.c.bf16 %v200_v8, %v198_v7  ;;  %v1318_v2 = vpack.c.bf16 %v221_v61, %v219_v60  ;;  %v476_v7 = vld [vmem:[%s3271_s1 + $0xdf0] sm:$0xff]  ;;  %v223_v8 = vld [vmem:[%s3271_s1 + $0x608] sm:$0xff] }
  0x97   :  { %1535 = vmatprep.subr.bf16.mxu0 %v1534_v14  ;;  %v459_v14 = vld [vmem:[%s3271_s1 + $0xd68] sm:$0xff]  ;;  %v1556_v17 = vpack.c.bf16 %v456_v11, %v454_v9  ;;  %v218_v3 = vld [vmem:[%s3271_s1 + $0x5e0] sm:$0xff]  ;;  %v225_v9 = vld [vmem:[%s3271_s1 + $0x618] sm:$0xff] }
  0x98   :  { %v481_v11 = vld [vmem:[%s3271_s1 + $0xe18] sm:$0xff]  ;;  %v239_v60 = vld [vmem:[%s3271_s1 + $0x688] sm:$0xff] }
  0x99   :  { %1281 = vmatpush1.bf16.msra.mxu1 %v1280_v20  ;;  %v204_v20 = vld [vmem:[%s3271_s1 + $0x570] sm:$0xff]  ;;  %v241_v61 = vld [vmem:[%s3271_s1 + $0x698] sm:$0xff] }
  0x9a   :  { %1537 = vmatpush1.bf16.msra.mxu0 %v1536_v21  ;;  %1283 = vmatprep.subr.bf16.mxu1 %v1282_v22  ;;  %v458_v21 = vld [vmem:[%s3271_s1 + $0xd60] sm:$0xff]  ;;  %v1558_v22 = vpack.c.bf16 %v461_v15, %v459_v14  ;;  %v1304_v28 = vpack.c.bf16 %v204_v20, %v202_v19  ;;  %v1322_v14 = vpack.c.bf16 %v225_v9, %v223_v8  ;;  %v480_v19 = vld [vmem:[%s3271_s1 + $0xe10] sm:$0xff]  ;;  %v227_v20 = vld [vmem:[%s3271_s1 + $0x628] sm:$0xff] }
  0x9b   :  { %1539 = vmatprep.subr.bf16.mxu0 %v1538_v26  ;;  %v463_v26 = vld [vmem:[%s3271_s1 + $0xd88] sm:$0xff]  ;;  %v1560_v29 = vpack.c.bf16 %v460_v23, %v458_v21  ;;  %v222_v15 = vld [vmem:[%s3271_s1 + $0x600] sm:$0xff]  ;;  %v229_v21 = vld [vmem:[%s3271_s1 + $0x638] sm:$0xff] }
  0x9c   :  { %v485_v23 = vld [vmem:[%s3271_s1 + $0xe38] sm:$0xff]  ;;  %v243_v8 = vld [vmem:[%s3271_s1 + $0x6a8] sm:$0xff] }
  0x9d   :  { %1285 = vmatpush1.bf16.msra.mxu1 %v1284_v32  ;;  %v208_v32 = vld [vmem:[%s3271_s1 + $0x590] sm:$0xff]  ;;  %v245_v9 = vld [vmem:[%s3271_s1 + $0x6b8] sm:$0xff] }
  0x9e   :  { %1541 = vmatpush1.bf16.msra.mxu0 %v1540_v33  ;;  %1287 = vmatprep.subr.bf16.mxu1 %v1286_v34  ;;  %v462_v33 = vld [vmem:[%s3271_s1 + $0xd80] sm:$0xff]  ;;  %v1562_v34 = vpack.c.bf16 %v465_v27, %v463_v26  ;;  %v1308_v40 = vpack.c.bf16 %v208_v32, %v206_v31 }
  0x9f   :  { %1543 = vmatprep.subr.bf16.mxu0 %v1542_v38  ;;  %v467_v38 = vld [vmem:[%s3271_s1 + $0xda8] sm:$0xff]  ;;  %v1564_v41 = vpack.c.bf16 %v464_v35, %v462_v33  ;;  %v26_v26 = vld [vmem:[%s3272_s0 + $0x60] sm:$0xff]  ;;  %v484_v33 = vld [vmem:[%s3271_s1 + $0xe30] sm:$0xff] }
  0xa0   :  { %v482_v31 = vld [vmem:[%s3271_s1 + $0xe20] sm:$0xff]  ;;  %v233_v35 = vld [vmem:[%s3271_s1 + $0x658] sm:$0xff] }
  0xa1   :  { %1289 = vmatpush1.bf16.msra.mxu1 %v1288_v44  ;;  %v212_v44 = vld [vmem:[%s3271_s1 + $0x5b0] sm:$0xff] }
  0xa2   :  { %1545 = vmatpush1.bf16.msra.mxu0 %v1544_v45  ;;  %1291 = vmatprep.subr.bf16.mxu1 %v1290_v46  ;;  %v466_v45 = vld [vmem:[%s3271_s1 + $0xda0] sm:$0xff]  ;;  %v1566_v46 = vpack.c.bf16 %v469_v39, %v467_v38  ;;  %v1312_v52 = vpack.c.bf16 %v212_v44, %v210_v43  ;;  %v21_v38 = vld [vmem:[%s3272_s0 + $0x38] sm:$0xff]  ;;  %v232_v44 = vld [vmem:[%s3271_s1 + $0x650] sm:$0xff] }
  0xa3   :  { %1547 = vmatprep.subr.bf16.mxu0 %v1546_v50  ;;  %v471_v50 = vld [vmem:[%s3271_s1 + $0xdc8] sm:$0xff]  ;;  %v1568_v53 = vpack.c.bf16 %v468_v47, %v466_v45  ;;  %v230_v43 = vld [vmem:[%s3271_s1 + $0x640] sm:$0xff]  ;;  %v488_v47 = vld [vmem:[%s3271_s1 + $0xe50] sm:$0xff] }
  0xa4   :  { %v486_v45 = vld [vmem:[%s3271_s1 + $0xe40] sm:$0xff] }
  0xa5   :  { %1293 = vmatpush1.bf16.msra.mxu1 %v1292_v56  ;;  %v216_v56 = vld [vmem:[%s3271_s1 + $0x5d0] sm:$0xff] }
  0xa6   :  { %1549 = vmatpush1.bf16.msra.mxu0 %v1548_v57  ;;  %1295 = vmatprep.subr.bf16.mxu1 %v1294_v58  ;;  %v470_v57 = vld [vmem:[%s3271_s1 + $0xdc0] sm:$0xff]  ;;  %v1570_v58 = vpack.c.bf16 %v473_v51, %v471_v50  ;;  %v1316_v0 = vpack.c.bf16 %v216_v56, %v214_v55  ;;  %v491_v50 = vld [vmem:[%s3271_s1 + $0xe68] sm:$0xff]  ;;  %v493_v51 = vld [vmem:[%s3271_s1 + $0xe78] sm:$0xff] }
  0xa7   :  { %1551 = vmatprep.subr.bf16.mxu0 %v1550_v62  ;;  %v475_v62 = vld [vmem:[%s3271_s1 + $0xde8] sm:$0xff]  ;;  %v1572_v1 = vpack.c.bf16 %v472_v59, %v470_v57  ;;  %v234_v55 = vld [vmem:[%s3271_s1 + $0x660] sm:$0xff]  ;;  %v236_v56 = vld [vmem:[%s3271_s1 + $0x670] sm:$0xff] }
  0xa8   :  { %v490_v57 = vld [vmem:[%s3271_s1 + $0xe60] sm:$0xff]  ;;  %v492_v59 = vld [vmem:[%s3271_s1 + $0xe70] sm:$0xff] }
  0xa9   :  { %1297 = vmatpush1.bf16.msra.mxu1 %v1296_v4  ;;  %v220_v4 = vld [vmem:[%s3271_s1 + $0x5f0] sm:$0xff] }
  0xaa   :  { %1553 = vmatpush1.bf16.msra.mxu0 %v1552_v5  ;;  %1299 = vmatprep.subr.bf16.mxu1 %v1298_v6  ;;  %v474_v5 = vld [vmem:[%s3271_s1 + $0xde0] sm:$0xff]  ;;  %v1574_v6 = vpack.c.bf16 %v477_v63, %v475_v62  ;;  %v1320_v12 = vpack.c.bf16 %v220_v4, %v218_v3  ;;  %v495_v62 = vld [vmem:[%s3271_s1 + $0xe88] sm:$0xff]  ;;  %v497_v63 = vld [vmem:[%s3271_s1 + $0xe98] sm:$0xff] }
  0xab   :  { %1555 = vmatprep.subr.bf16.mxu0 %v1554_v10  ;;  %v479_v10 = vld [vmem:[%s3271_s1 + $0xe08] sm:$0xff]  ;;  %v1576_v13 = vpack.c.bf16 %v476_v7, %v474_v5  ;;  %v238_v3 = vld [vmem:[%s3271_s1 + $0x680] sm:$0xff]  ;;  %v240_v4 = vld [vmem:[%s3271_s1 + $0x690] sm:$0xff] }
  0xac   :  { %v494_v5 = vld [vmem:[%s3271_s1 + $0xe80] sm:$0xff]  ;;  %v496_v7 = vld [vmem:[%s3271_s1 + $0xe90] sm:$0xff] }
  0xad   :  { %1301 = vmatpush1.bf16.msra.mxu1 %v1300_v16  ;;  %v224_v16 = vld [vmem:[%s3271_s1 + $0x610] sm:$0xff] }
  0xae   :  { %1557 = vmatpush1.bf16.msra.mxu0 %v1556_v17  ;;  %1303 = vmatprep.subr.bf16.mxu1 %v1302_v18  ;;  %v478_v17 = vld [vmem:[%s3271_s1 + $0xe00] sm:$0xff]  ;;  %v1578_v18 = vpack.c.bf16 %v481_v11, %v479_v10  ;;  %v1324_v25 = vpack.c.bf16 %v224_v16, %v222_v15  ;;  %v499_v10 = vld [vmem:[%s3271_s1 + $0xea8] sm:$0xff]  ;;  %v501_v11 = vld [vmem:[%s3271_s1 + $0xeb8] sm:$0xff] }
  0xaf   :  { %1559 = vmatprep.subr.bf16.mxu0 %v1558_v22  ;;  %v483_v22 = vld [vmem:[%s3271_s1 + $0xe28] sm:$0xff]  ;;  %v1580_v27 = vpack.c.bf16 %v480_v19, %v478_v17  ;;  %v242_v15 = vld [vmem:[%s3271_s1 + $0x6a0] sm:$0xff]  ;;  %v244_v16 = vld [vmem:[%s3271_s1 + $0x6b0] sm:$0xff] }
  0xb0   :  { %v1582_v32 = vpack.c.bf16 %v485_v23, %v483_v22  ;;  %v498_v17 = vld [vmem:[%s3271_s1 + $0xea0] sm:$0xff]  ;;  %v500_v19 = vld [vmem:[%s3271_s1 + $0xeb0] sm:$0xff]  ;;  %v503_v22 = vld [vmem:[%s3271_s1 + $0xec8] sm:$0xff] }
  0xb1   :  { %1305 = vmatpush1.bf16.msra.mxu1 %v1304_v28  ;;  %v1326_v28 = vpack.c.bf16 %v229_v21, %v227_v20  ;;  %v247_v20 = vld [vmem:[%s3271_s1 + $0x6c8] sm:$0xff]  ;;  %v249_v21 = vld [vmem:[%s3271_s1 + $0x6d8] sm:$0xff] }
  0xb2   :  { %1561 = vmatpush1.bf16.msra.mxu0 %v1560_v29  ;;  %1307 = vmatprep.subr.bf16.mxu1 %v1306_v30  ;;  %v226_v29 = vld [vmem:[%s3271_s1 + $0x620] sm:$0xff]  ;;  %v228_v30 = vld [vmem:[%s3271_s1 + $0x630] sm:$0xff]  ;;  %v505_v23 = vld [vmem:[%s3271_s1 + $0xed8] sm:$0xff] }
  0xb3   :  { %1563 = vmatprep.subr.bf16.mxu0 %v1562_v34  ;;  %v231_v34 = vld [vmem:[%s3271_s1 + $0x648] sm:$0xff]  ;;  %v1328_v39 = vpack.c.bf16 %v228_v30, %v226_v29  ;;  %v502_v29 = vld [vmem:[%s3271_s1 + $0xec0] sm:$0xff]  ;;  %v1602_v30 = vpack.c.bf16 %v505_v23, %v503_v22 }
  0xb4   :  { %v266_v23 = vld [vmem:[%s3271_s1 + $0x760] sm:$0xff] }
  0xb5   :  { %1309 = vmatpush1.bf16.msra.mxu1 %v1308_v40  ;;  %v29_v40 = vld [vmem:[%s3272_s0 + $0x78] sm:$0xff] }
  0xb6   :  { %1565 = vmatpush1.bf16.msra.mxu0 %v1564_v41  ;;  %1311 = vmatprep.subr.bf16.mxu1 %v1310_v42  ;;  %v1584_v41 = vpack.c.bf16 %v484_v33, %v482_v31  ;;  %v1330_v42 = vpack.c.bf16 %v233_v35, %v231_v34  ;;  %v504_v31 = vld [vmem:[%s3271_s1 + $0xed0] sm:$0xff]  ;;  %v253_v33 = vld [vmem:[%s3271_s1 + $0x6f8] sm:$0xff]  ;;  %v507_v34 = vld [vmem:[%s3271_s1 + $0xee8] sm:$0xff] }
  0xb7   :  { %1567 = vmatprep.subr.bf16.mxu0 %v1566_v46  ;;  %v1586_v46 = vpack.c.bf16 %v489_v37, %v487_v36  ;;  %v509_v35 = vld [vmem:[%s3271_s1 + $0xef8] sm:$0xff]  ;;  %v1604_v37 = vpack.c.bf16 %v504_v31, %v502_v29 }
  0xb8   :  { %v273_v29 = vld [vmem:[%s3271_s1 + $0x798] sm:$0xff] }
  0xb9   :  { %1313 = vmatpush1.bf16.msra.mxu1 %v1312_v52  ;;  %v1332_v52 = vpack.c.bf16 %v232_v44, %v230_v43  ;;  %v508_v43 = vld [vmem:[%s3271_s1 + $0xef0] sm:$0xff]  ;;  %v255_v44 = vld [vmem:[%s3271_s1 + $0x708] sm:$0xff]  ;;  %v529_v31 = vld [vmem:[%s3271_s1 + $0xf98] sm:$0xff] }
  0xba   :  { %1569 = vmatpush1.bf16.msra.mxu0 %v1568_v53  ;;  %1315 = vmatprep.subr.bf16.mxu1 %v1314_v54  ;;  %v1588_v53 = vpack.c.bf16 %v488_v47, %v486_v45  ;;  %v1334_v54 = vpack.c.bf16 %v237_v49, %v235_v48  ;;  %v257_v45 = vld [vmem:[%s3271_s1 + $0x718] sm:$0xff] }
  0xbb   :  { %1571 = vmatprep.subr.bf16.mxu0 %v1570_v58  ;;  %v1590_v58 = vpack.c.bf16 %v493_v51, %v491_v50  ;;  %v513_v47 = vld [vmem:[%s3271_s1 + $0xf18] sm:$0xff]  ;;  %v1354_v50 = vpack.c.bf16 %v257_v45, %v255_v44  ;;  %v254_v51 = vld [vmem:[%s3271_s1 + $0x700] sm:$0xff] }
  0xbd   :  { %1317 = vmatpush1.bf16.msra.mxu1 %v1316_v0  ;;  %v1336_v0 = vpack.c.bf16 %v236_v56, %v234_v55  ;;  %v512_v55 = vld [vmem:[%s3271_s1 + $0xf10] sm:$0xff]  ;;  %v259_v56 = vld [vmem:[%s3271_s1 + $0x728] sm:$0xff] }
  0xbe   :  { %1573 = vmatpush1.bf16.msra.mxu0 %v1572_v1  ;;  %1319 = vmatprep.subr.bf16.mxu1 %v1318_v2  ;;  %v1592_v1 = vpack.c.bf16 %v492_v59, %v490_v57  ;;  %v1338_v2 = vpack.c.bf16 %v241_v61, %v239_v60  ;;  %v261_v57 = vld [vmem:[%s3271_s1 + $0x738] sm:$0xff] }
  0xbf   :  { %1575 = vmatprep.subr.bf16.mxu0 %v1574_v6  ;;  %v1594_v6 = vpack.c.bf16 %v497_v63, %v495_v62  ;;  %v517_v59 = vld [vmem:[%s3271_s1 + $0xf38] sm:$0xff]  ;;  %v1358_v62 = vpack.c.bf16 %v261_v57, %v259_v56  ;;  %v258_v63 = vld [vmem:[%s3271_s1 + $0x720] sm:$0xff] }
  0xc1   :  { %1321 = vmatpush1.bf16.msra.mxu1 %v1320_v12  ;;  %v1340_v12 = vpack.c.bf16 %v240_v4, %v238_v3  ;;  %v516_v3 = vld [vmem:[%s3271_s1 + $0xf30] sm:$0xff]  ;;  %v263_v4 = vld [vmem:[%s3271_s1 + $0x748] sm:$0xff] }
  0xc2   :  { %1577 = vmatpush1.bf16.msra.mxu0 %v1576_v13  ;;  %1323 = vmatprep.subr.bf16.mxu1 %v1322_v14  ;;  %v1596_v13 = vpack.c.bf16 %v496_v7, %v494_v5  ;;  %v1342_v14 = vpack.c.bf16 %v245_v9, %v243_v8  ;;  %v265_v5 = vld [vmem:[%s3271_s1 + $0x758] sm:$0xff] }
  0xc3   :  { %1579 = vmatprep.subr.bf16.mxu0 %v1578_v18  ;;  %v1598_v18 = vpack.c.bf16 %v501_v11, %v499_v10  ;;  %v521_v7 = vld [vmem:[%s3271_s1 + $0xf58] sm:$0xff]  ;;  %v1362_v10 = vpack.c.bf16 %v265_v5, %v263_v4  ;;  %v262_v11 = vld [vmem:[%s3271_s1 + $0x740] sm:$0xff] }
  0xc4   :  { %761 = vmatmul.mubr.f32.vlgmr.msra.gmra.mrb[0].mxu1 %v18_v24  ;;  %v1344_v24 = vpack.c.bf16 %v244_v16, %v242_v15  ;;  %v520_v15 = vld [vmem:[%s3271_s1 + $0xf50] sm:$0xff]  ;;  %v267_v16 = vld [vmem:[%s3271_s1 + $0x768] sm:$0xff] }
  0xc5   :  { %1325 = vmatpush1.bf16.msra.mxu1 %v1324_v25  ;;  %1045 = vmatmul.mubr.f32.vlgmr.msra.gmra.mrb[0].mxu0 %v26_v26  ;;  %v1600_v25 = vpack.c.bf16 %v500_v19, %v498_v17  ;;  %v1346_v26 = vpack.c.bf16 %v249_v21, %v247_v20  ;;  %v269_v17 = vld [vmem:[%s3271_s1 + $0x778] sm:$0xff] }
  0xc6   :  { %1581 = vmatpush1.bf16.msra.mxu0 %v1580_v27  ;;  %1327 = vmatprep.subr.bf16.mxu1 %v1326_v28  ;;  %v246_v27 = vld [vmem:[%s3271_s1 + $0x6c0] sm:$0xff]  ;;  %v248_v28 = vld [vmem:[%s3271_s1 + $0x6d0] sm:$0xff]  ;;  %v525_v19 = vld [vmem:[%s3271_s1 + $0xf78] sm:$0xff]  ;;  %v1366_v22 = vpack.c.bf16 %v269_v17, %v267_v16  ;;  %v544_v16 = vlaneseq }
  0xc7   :  { %1583 = vmatprep.subr.bf16.mxu0 %v1582_v32  ;;  %831 = vmatprep.mubr.f32.mxu1 %v21_v38  ;;  %v251_v32 = vld [vmem:[%s3271_s1 + $0x6e8] sm:$0xff]  ;;  %v1348_v36 = vpack.c.bf16 %v248_v28, %v246_v27  ;;  %v524_v27 = vld [vmem:[%s3271_s1 + $0xf70] sm:$0xff] }
  0xc8   :  { %1115 = vmatprep.mubr.f32.mxu0 %v29_v40  ;;  %v1350_v38 = vpack.c.bf16 %v253_v33, %v251_v32  ;;  %v252_v40 = vld [vmem:[%s3271_s1 + $0x6f0] sm:$0xff]  ;;  %v271_v28 = vld [vmem:[%s3271_s1 + $0x788] sm:$0xff]  ;;  %v545_v17 = vshrl.u32 %v544_v16, 7 }
  0xc9   :  { %1329 = vmatpush1.bf16.msra.mxu1 %v1328_v39  ;;  %v250_v39 = vld [vmem:[%s3271_s1 + $0x6e0] sm:$0xff] }
  0xca   :  { %1585 = vmatpush1.bf16.msra.mxu0 %v1584_v41  ;;  %1331 = vmatprep.subr.bf16.mxu1 %v1330_v42  ;;  %v506_v41 = vld [vmem:[%s3271_s1 + $0xee0] sm:$0xff]  ;;  %v1606_v42 = vpack.c.bf16 %v509_v35, %v507_v34  ;;  %v1352_v48 = vpack.c.bf16 %v252_v40, %v250_v39  ;;  %v1370_v34 = vpack.c.bf16 %v273_v29, %v271_v28  ;;  %v528_v39 = vld [vmem:[%s3271_s1 + $0xf90] sm:$0xff]  ;;  %v275_v40 = vld [vmem:[%s3271_s1 + $0x7a8] sm:$0xff] }
  0xcb   :  { %1587 = vmatprep.subr.bf16.mxu0 %v1586_v46  ;;  %v511_v46 = vld [vmem:[%s3271_s1 + $0xf08] sm:$0xff]  ;;  %v1608_v49 = vpack.c.bf16 %v508_v43, %v506_v41  ;;  %v270_v35 = vld [vmem:[%s3271_s1 + $0x780] sm:$0xff]  ;;  %v277_v41 = vld [vmem:[%s3271_s1 + $0x7b8] sm:$0xff] }
  0xcc   :  { %v533_v43 = vld [vmem:[%s3271_s1 + $0xfb8] sm:$0xff] }
  0xcd   :  { %1333 = vmatpush1.bf16.msra.mxu1 %v1332_v52  ;;  %v256_v52 = vld [vmem:[%s3271_s1 + $0x710] sm:$0xff] }
  0xce   :  { %1589 = vmatpush1.bf16.msra.mxu0 %v1588_v53  ;;  %1335 = vmatprep.subr.bf16.mxu1 %v1334_v54  ;;  %v510_v53 = vld [vmem:[%s3271_s1 + $0xf00] sm:$0xff]  ;;  %v1610_v54 = vpack.c.bf16 %v513_v47, %v511_v46  ;;  %v1356_v60 = vpack.c.bf16 %v256_v52, %v254_v51  ;;  %v1374_v46 = vpack.c.bf16 %v277_v41, %v275_v40  ;;  %v532_v51 = vld [vmem:[%s3271_s1 + $0xfb0] sm:$0xff]  ;;  %v279_v52 = vld [vmem:[%s3271_s1 + $0x7c8] sm:$0xff] }
  0xcf   :  { %1591 = vmatprep.subr.bf16.mxu0 %v1590_v58  ;;  %v515_v58 = vld [vmem:[%s3271_s1 + $0xf28] sm:$0xff]  ;;  %v1612_v61 = vpack.c.bf16 %v512_v55, %v510_v53  ;;  %v274_v47 = vld [vmem:[%s3271_s1 + $0x7a0] sm:$0xff]  ;;  %v281_v53 = vld [vmem:[%s3271_s1 + $0x7d8] sm:$0xff] }
  0xd0   :  { %v537_v55 = vld [vmem:[%s3271_s1 + $0xfd8] sm:$0xff] }
  0xd1   :  { %1337 = vmatpush1.bf16.msra.mxu1 %v1336_v0  ;;  %v260_v0 = vld [vmem:[%s3271_s1 + $0x730] sm:$0xff] }
  0xd2   :  { %1593 = vmatpush1.bf16.msra.mxu0 %v1592_v1  ;;  %1339 = vmatprep.subr.bf16.mxu1 %v1338_v2  ;;  %v514_v1 = vld [vmem:[%s3271_s1 + $0xf20] sm:$0xff]  ;;  %v1614_v2 = vpack.c.bf16 %v517_v59, %v515_v58  ;;  %v1360_v8 = vpack.c.bf16 %v260_v0, %v258_v63  ;;  %v1378_v58 = vpack.c.bf16 %v281_v53, %v279_v52  ;;  %v536_v63 = vld [vmem:[%s3271_s1 + $0xfd0] sm:$0xff]  ;;  %v283_v0 = vld [vmem:[%s3271_s1 + $0x7e8] sm:$0xff] }
  0xd3   :  { %1595 = vmatprep.subr.bf16.mxu0 %v1594_v6  ;;  %v519_v6 = vld [vmem:[%s3271_s1 + $0xf48] sm:$0xff]  ;;  %v1616_v9 = vpack.c.bf16 %v516_v3, %v514_v1  ;;  %v278_v59 = vld [vmem:[%s3271_s1 + $0x7c0] sm:$0xff]  ;;  %v285_v1 = vld [vmem:[%s3271_s1 + $0x7f8] sm:$0xff] }
  0xd4   :  { %v541_v3 = vld [vmem:[%s3271_s1 + $0xff8] sm:$0xff] }
  0xd5   :  { %1341 = vmatpush1.bf16.msra.mxu1 %v1340_v12  ;;  %v264_v12 = vld [vmem:[%s3271_s1 + $0x750] sm:$0xff] }
  0xd6   :  { %1597 = vmatpush1.bf16.msra.mxu0 %v1596_v13  ;;  %1343 = vmatprep.subr.bf16.mxu1 %v1342_v14  ;;  %v518_v13 = vld [vmem:[%s3271_s1 + $0xf40] sm:$0xff]  ;;  %v1618_v14 = vpack.c.bf16 %v521_v7, %v519_v6  ;;  %v1364_v20 = vpack.c.bf16 %v264_v12, %v262_v11  ;;  %v1382_v6 = vpack.c.bf16 %v285_v1, %v283_v0  ;;  %v540_v11 = vld [vmem:[%s3271_s1 + $0xff0] sm:$0xff] }
  0xd7   :  { %1599 = vmatprep.subr.bf16.mxu0 %v1598_v18  ;;  %v523_v18 = vld [vmem:[%s3271_s1 + $0xf68] sm:$0xff]  ;;  %v1620_v21 = vpack.c.bf16 %v520_v15, %v518_v13  ;;  %v282_v7 = vld [vmem:[%s3271_s1 + $0x7e0] sm:$0xff]  ;;  %v28_v15 = vld [vmem:[%s3272_s0 + $0x70] sm:$0xff] }
  0xd9   :  { %1345 = vmatpush1.bf16.msra.mxu1 %v1344_v24  ;;  %v268_v24 = vld [vmem:[%s3271_s1 + $0x770] sm:$0xff] }
  0xda   :  { %1601 = vmatpush1.bf16.msra.mxu0 %v1600_v25  ;;  %1347 = vmatprep.subr.bf16.mxu1 %v1346_v26  ;;  %v522_v25 = vld [vmem:[%s3271_s1 + $0xf60] sm:$0xff]  ;;  %v1622_v26 = vpack.c.bf16 %v525_v19, %v523_v18  ;;  %v1368_v32 = vpack.c.bf16 %v268_v24, %v266_v23  ;;  %v546_v18 = vsub.s32 0, %v545_v17 }
  0xdb   :  { %1603 = vmatprep.subr.bf16.mxu0 %v1602_v30  ;;  %v527_v30 = vld [vmem:[%s3271_s1 + $0xf88] sm:$0xff]  ;;  %v1624_v33 = vpack.c.bf16 %v524_v27, %v522_v25  ;;  %v542_v19 = vld [vmem:[%s3273_s2] sm:$0x3] }
  0xdd   :  { %1349 = vmatpush1.bf16.msra.mxu1 %v1348_v36  ;;  %v272_v36 = vld [vmem:[%s3271_s1 + $0x790] sm:$0xff] }
  0xde   :  { %1605 = vmatpush1.bf16.msra.mxu0 %v1604_v37  ;;  %1351 = vmatprep.subr.bf16.mxu1 %v1350_v38  ;;  %v526_v37 = vld [vmem:[%s3271_s1 + $0xf80] sm:$0xff]  ;;  %v1626_v38 = vpack.c.bf16 %v529_v31, %v527_v30  ;;  %v1372_v44 = vpack.c.bf16 %v272_v36, %v270_v35 }
  0xdf   :  { %1607 = vmatprep.subr.bf16.mxu0 %v1606_v42  ;;  %v531_v42 = vld [vmem:[%s3271_s1 + $0xfa8] sm:$0xff]  ;;  %v1628_v45 = vpack.c.bf16 %v528_v39, %v526_v37 }
  0xe1   :  { %1353 = vmatpush1.bf16.msra.mxu1 %v1352_v48  ;;  %v276_v48 = vld [vmem:[%s3271_s1 + $0x7b0] sm:$0xff] }
  0xe2   :  { %1609 = vmatpush1.bf16.msra.mxu0 %v1608_v49  ;;  %1355 = vmatprep.subr.bf16.mxu1 %v1354_v50  ;;  %v530_v49 = vld [vmem:[%s3271_s1 + $0xfa0] sm:$0xff]  ;;  %v1630_v50 = vpack.c.bf16 %v533_v43, %v531_v42  ;;  %v1376_v56 = vpack.c.bf16 %v276_v48, %v274_v47 }
  0xe3   :  { %1611 = vmatprep.subr.bf16.mxu0 %v1610_v54  ;;  %v535_v54 = vld [vmem:[%s3271_s1 + $0xfc8] sm:$0xff]  ;;  %v1632_v57 = vpack.c.bf16 %v532_v51, %v530_v49 }
  0xe5   :  { %1357 = vmatpush1.bf16.msra.mxu1 %v1356_v60  ;;  %v280_v60 = vld [vmem:[%s3271_s1 + $0x7d0] sm:$0xff] }
  0xe6   :  { %1613 = vmatpush1.bf16.msra.mxu0 %v1612_v61  ;;  %1359 = vmatprep.subr.bf16.mxu1 %v1358_v62  ;;  %v534_v61 = vld [vmem:[%s3271_s1 + $0xfc0] sm:$0xff]  ;;  %v1634_v62 = vpack.c.bf16 %v537_v55, %v535_v54  ;;  %v1380_v4 = vpack.c.bf16 %v280_v60, %v278_v59 }
  0xe7   :  { %1615 = vmatprep.subr.bf16.mxu0 %v1614_v2  ;;  %v539_v2 = vld [vmem:[%s3271_s1 + $0xfe8] sm:$0xff]  ;;  %v1636_v5 = vpack.c.bf16 %v536_v63, %v534_v61 }
  0xe9   :  { %1361 = vmatpush1.bf16.msra.mxu1 %v1360_v8  ;;  %v284_v8 = vld [vmem:[%s3271_s1 + $0x7f0] sm:$0xff] }
  0xea   :  { %1617 = vmatpush1.bf16.msra.mxu0 %v1616_v9  ;;  %1363 = vmatprep.subr.bf16.mxu1 %v1362_v10  ;;  %v1638_v9 = vpack.c.bf16 %v541_v3, %v539_v2  ;;  %v538_v10 = vld [vmem:[%s3271_s1 + $0xfe0] sm:$0xff]  ;;  %v1384_v12 = vpack.c.bf16 %v284_v8, %v282_v7 }
  0xeb   :  { %1619 = vmatprep.subr.bf16.mxu0 %v1618_v14  ;;  %v1640_v13 = vpack.c.bf16 %v540_v11, %v538_v10  ;;  %v20_v14 = vld [vmem:[%s3272_s0 + $0x30] sm:$0xff] }
  0xed   :  { %1365 = vmatpush1.bf16.msra.mxu1 %v1364_v20  ;;  %v550_v20 = vsub.s32 1, %v545_v17 }
  0xee   :  { %1621 = vmatpush1.bf16.msra.mxu0 %v1620_v21  ;;  %1367 = vmatprep.subr.bf16.mxu1 %v1366_v22  ;;  %v547_v21 = vrot.slane %v542_v19, %v546_v18 }
  0xef   :  { %1623 = vmatprep.subr.bf16.mxu0 %v1622_v26  ;;  %v551_v22 = vrot.slane %v542_v19, %v550_v20 }
  0xf1   :  { %1369 = vmatpush1.bf16.msra.mxu1 %v1368_v32 }
  0xf2   :  { %1625 = vmatpush1.bf16.msra.mxu0 %v1624_v33  ;;  %1371 = vmatprep.subr.bf16.mxu1 %v1370_v34 }
  0xf3   :  { %1627 = vmatprep.subr.bf16.mxu0 %v1626_v38 }
  0xf5   :  { %1373 = vmatpush1.bf16.msra.mxu1 %v1372_v44 }
  0xf6   :  { %1629 = vmatpush1.bf16.msra.mxu0 %v1628_v45  ;;  %1375 = vmatprep.subr.bf16.mxu1 %v1374_v46 }
  0xf7   :  { %1631 = vmatprep.subr.bf16.mxu0 %v1630_v50 }
  0xf9   :  { %1377 = vmatpush1.bf16.msra.mxu1 %v1376_v56 }
  0xfa   :  { %1633 = vmatpush1.bf16.msra.mxu0 %v1632_v57  ;;  %1379 = vmatprep.subr.bf16.mxu1 %v1378_v58 }
  0xfb   :  { %1635 = vmatprep.subr.bf16.mxu0 %v1634_v62 }
  0xfd   :  { %1381 = vmatpush1.bf16.msra.mxu1 %v1380_v4 }
  0xfe   :  { %1637 = vmatpush1.bf16.msra.mxu0 %v1636_v5  ;;  %1383 = vmatprep.subr.bf16.mxu1 %v1382_v6 }
  0xff   :  { %1639 = vmatprep.subr.bf16.mxu0 %v1638_v9 }
 0x101   :  { %1385 = vmatpush1.bf16.msra.mxu1 %v1384_v12 }
 0x102   :  { %1641 = vmatpush1.bf16.msra.mxu0 %v1640_v13 }
 0x104   :  { %832 = vmatmul.mubr.f32.vlgmr.msra.gmra.mrb[0].mxu1 %v20_v14 }
 0x105   :  { %1116 = vmatmul.mubr.f32.vlgmr.msra.gmra.mrb[0].mxu0 %v28_v15 }
 0x1d7   :  { %v833_v23 = vpop.f32.mrb[0].mxu1 }
 0x1d8   :  { %v1642_v24 = vadd.f32 %v833_v23, %v547_v21  ;;  %v1117_v25 = vpop.f32.mrb[0].mxu0  ;;  %v835_v26 = vpop.f32.mrb[1].mxu1 }
 0x1d9   :  { %v1644_v27 = vadd.f32 %v835_v26, %v551_v22  ;;  %v1119_v28 = vpop.f32.mrb[1].mxu0 }
 0x1da   :  { %v1643_v29 = vadd.f32 %v1642_v24, %v1117_v25 }
 0x1db   :  { %v1645_v30 = vadd.f32 %v1644_v27, %v1119_v28 }
 0x1dc   :  { %v1122_v31 = vmax.f32 %v1643_v29, 0.0 }
 0x1dd   :  { %v1123_v32 = vmax.f32 %v1645_v30, 0.0 }
 0x1de   :  { %1124 = vst [vmem:[%s3274_s3] sm:$0xff] %v1122_v31 }
 0x1df   :  { %1125 = vst [vmem:[%s3274_s3 + $0x8] sm:$0xff] %v1123_v32 }

// kernel: custom_cnn_forward.5
= control target key start
LH: loop header
LB: loop body
LE: loop exit
PB: predicated region body
PF: predicated region fallthrough
CT: control target
= control target key end

     0   :  { %vm95_vm0 = vcmask 261120   ;;  %s7682_s1 = inlined_call_operand.vmem [shape: f32[2,6,32,32], index: 1, kind: input, shape index: {}]   ;;  %s7683_s0 = inlined_call_operand.vmem [shape: f32[2,18,9,32], index: 0, kind: input, shape index: {}]   ;;  %s7684_s2 = inlined_call_operand.vmem [shape: f32[1,32], index: 2, kind: input, shape index: {}]   ;;  %s7685_s3 = inlined_call_operand.vmem [shape: f32[1,32], index: 3, kind: input, shape index: {}]   ;;  %s7686_s4 = inlined_call_operand.vmem [shape: f32[2,8,8,32], index: 4, kind: output, shape index: {}]  }
   0x1   :  { %v4081_v0 = vld [vmem:[%s7682_s1 + $0x20] sm:$0xff]  ;;  %v4082_v1 = vld [vmem:[%s7682_s1 + $0x28] sm:$0xff]  ;;  %v4083_v5 = vld [vmem:[%s7682_s1 + $0x30] sm:$0xff] }
   0x2   :  { %v4149_v2 = vld [vmem:[%s7682_s1 + $0xe0] sm:$0xff]  ;;  %v5739_v3 = vpack.c.bf16 %v4082_v1, %v4081_v0  ;;  %v4150_v4 = vld [vmem:[%s7682_s1 + $0xe8] sm:$0xff]  ;;  %v4084_v6 = vld [vmem:[%s7682_s1 + $0x38] sm:$0xff] }
   0x3   :  { %v5755_v7 = vpack.c.bf16 %v4150_v4, %v4149_v2  ;;  %v5743_v8 = vpack.c.bf16 %v4084_v6, %v4083_v5  ;;  %v4151_v9 = vld [vmem:[%s7682_s1 + $0xf0] sm:$0xff]  ;;  %v4152_v10 = vld [vmem:[%s7682_s1 + $0xf8] sm:$0xff]  ;;  %v58_v11 = vld [vmem:[%s7683_s0 + $0x1] sm:$0xff] }
   0x4   :  { %5740 = vmatprep.subr.bf16.mxu0 %v5739_v3  ;;  %v5759_v12 = vpack.c.bf16 %v4152_v10, %v4151_v9  ;;  %5075 = vmatprep.mubr.msk.f32.mxu0 %vm95_vm0, %v58_v11  ;;  %v49_v13 = vld [vmem:[%s7682_s1] sm:$0xff]  ;;  %v50_v14 = vld [vmem:[%s7682_s1 + $0x8] sm:$0xff]  ;;  %v6224_v19 = vld [vmem:[%s7683_s0 + $0x11] sm:$0xff] }
   0x5   :  { %5756 = vmatprep.subr.bf16.mxu1 %v5755_v7  ;;  %5742 = vmatpush3.bf16.msra.mxu0 %v5739_v3  ;;  %v4077_v15 = vld [vmem:[%s7682_s1 + $0xc0] sm:$0xff]  ;;  %v4078_v16 = vld [vmem:[%s7682_s1 + $0xc8] sm:$0xff]  ;;  %v5747_v17 = vpack.c.bf16 %v50_v14, %v49_v13  ;;  %v51_v21 = vld [vmem:[%s7682_s1 + $0x10] sm:$0xff] }
   0x6   :  { %5758 = vmatpush3.bf16.msra.mxu1 %v5755_v7  ;;  %5744 = vmatprep.subr.bf16.mxu0 %v5743_v8  ;;  %v5763_v18 = vpack.c.bf16 %v4078_v16, %v4077_v15  ;;  %v6229_v20 = vld [vmem:[%s7683_s0 + $0x21] sm:$0xff]  ;;  %v52_v22 = vld [vmem:[%s7682_s1 + $0x18] sm:$0xff]  ;;  %v4079_v23 = vld [vmem:[%s7682_s1 + $0xd0] sm:$0xff] }
   0x7   :  { %5760 = vmatprep.subr.bf16.mxu1 %v5759_v12  ;;  %5187 = vmatprep.mubr.msk.f32.mxu1 %vm95_vm0, %v58_v11  ;;  %v5751_v24 = vpack.c.bf16 %v52_v22, %v51_v21  ;;  %v4080_v25 = vld [vmem:[%s7682_s1 + $0xd8] sm:$0xff]  ;;  %v6257_v28 = vld [vmem:[%s7683_s0 + $0x41] sm:$0xff]  ;;  %v4251_v63 = vld [vmem:[%s7682_s1 + $0x50] sm:$0xff] }
   0x8   :  { %v6250_v26 = vld [vmem:[%s7683_s0 + $0x31] sm:$0xff]  ;;  %v5767_v27 = vpack.c.bf16 %v4080_v25, %v4079_v23  ;;  %v6275_v30 = vld [vmem:[%s7683_s0 + $0x61] sm:$0xff] }
   0x9   :  { %5746 = vmatpush3.bf16.msra.mxu0 %v5743_v8  ;;  %v6270_v29 = vld [vmem:[%s7683_s0 + $0x51] sm:$0xff]  ;;  %v4249_v31 = vld [vmem:[%s7682_s1 + $0x40] sm:$0xff]  ;;  %v4250_v32 = vld [vmem:[%s7682_s1 + $0x48] sm:$0xff] }
   0xa   :  { %5762 = vmatpush3.bf16.msra.mxu1 %v5759_v12  ;;  %5748 = vmatprep.subr.bf16.mxu0 %v5747_v17  ;;  %v4285_v33 = vld [vmem:[%s7682_s1 + $0x100] sm:$0xff]  ;;  %v4286_v34 = vld [vmem:[%s7682_s1 + $0x108] sm:$0xff]  ;;  %v6291_v35 = vpack.c.bf16 %v4250_v32, %v4249_v31  ;;  %v6304_v37 = vld [vmem:[%s7683_s0 + $0x71] sm:$0xff] }
   0xb   :  { %5764 = vmatprep.subr.bf16.mxu1 %v5763_v18  ;;  %v6293_v36 = vpack.c.bf16 %v4286_v34, %v4285_v33  ;;  %v6311_v38 = vld [vmem:[%s7683_s0 + $0x81] sm:$0xff]  ;;  %v6324_v39 = vld [vmem:[%s7683_s0 + $0x91] sm:$0xff] }
   0xc   :  { %5076 = vmatmul.mubr.msk.f32.vlgmr.msra.gmra.mrb[0].mxu0 %vm95_vm0, %v6224_v19  ;;  %v6331_v40 = vld [vmem:[%s7683_s0 + $0xa1] sm:$0xff]  ;;  %v6342_v41 = vld [vmem:[%s7683_s0 + $0xb1] sm:$0xff] }
   0xd   :  { %5188 = vmatmul.mubr.msk.f32.vlgmr.msra.gmra.mrb[0].mxu1 %vm95_vm0, %v6224_v19  ;;  %5750 = vmatpush3.bf16.msra.mxu0 %v5747_v17  ;;  %v6349_v42 = vld [vmem:[%s7683_s0 + $0xc1] sm:$0xff]  ;;  %v6360_v43 = vld [vmem:[%s7683_s0 + $0xd1] sm:$0xff] }
   0xe   :  { %5766 = vmatpush3.bf16.msra.mxu1 %v5763_v18  ;;  %5078 = vmatprep.mubr.msk.f32.mxu0 %vm95_vm0, %v6229_v20  ;;  %v6367_v44 = vld [vmem:[%s7683_s0 + $0xe1] sm:$0xff]  ;;  %v6378_v45 = vld [vmem:[%s7683_s0 + $0xf1] sm:$0xff] }
   0xf   :  { %5190 = vmatprep.mubr.msk.f32.mxu1 %vm95_vm0, %v6229_v20  ;;  %5752 = vmatprep.subr.bf16.mxu0 %v5751_v24  ;;  %v74_v46 = vld [vmem:[%s7683_s0 + $0x121] sm:$0xff]  ;;  %v6393_v47 = vld [vmem:[%s7683_s0 + $0x131] sm:$0xff] }
  0x10   :  { %5079 = vmatmul.mubr.msk.f32.gmra.mrb[2].mxu0 %vm95_vm0, %v6250_v26  ;;  %5768 = vmatprep.subr.bf16.mxu1 %v5767_v27  ;;  %v6399_v48 = vld [vmem:[%s7683_s0 + $0x141] sm:$0xff]  ;;  %v6410_v49 = vld [vmem:[%s7683_s0 + $0x151] sm:$0xff] }
  0x11   :  { %5191 = vmatmul.mubr.msk.f32.gmra.mrb[2].mxu1 %vm95_vm0, %v6250_v26  ;;  %5081 = vmatprep.mubr.msk.f32.mxu0 %vm95_vm0, %v6257_v28  ;;  %v6417_v50 = vld [vmem:[%s7683_s0 + $0x161] sm:$0xff]  ;;  %v6428_v51 = vld [vmem:[%s7683_s0 + $0x171] sm:$0xff] }
  0x12   :  { %5193 = vmatprep.mubr.msk.f32.mxu1 %vm95_vm0, %v6257_v28  ;;  %5754 = vmatpush3.bf16.msra.mxu0 %v5751_v24  ;;  %v6435_v52 = vld [vmem:[%s7683_s0 + $0x181] sm:$0xff]  ;;  %v6446_v53 = vld [vmem:[%s7683_s0 + $0x191] sm:$0xff] }
  0x13   :  { %5770 = vmatpush3.bf16.msra.mxu1 %v5767_v27  ;;  %5772 = vmatprep.subr.bf16.mxu0 %v6291_v35  ;;  %v6453_v54 = vld [vmem:[%s7683_s0 + $0x1a1] sm:$0xff]  ;;  %v6464_v55 = vld [vmem:[%s7683_s0 + $0x1b1] sm:$0xff] }
  0x14   :  { %5082 = vmatmul.mubr.msk.f32.gmra.mrb[4].mxu0 %vm95_vm0, %v6270_v29  ;;  %5780 = vmatprep.subr.bf16.mxu1 %v6293_v36  ;;  %v6471_v56 = vld [vmem:[%s7683_s0 + $0x1c1] sm:$0xff]  ;;  %v6482_v57 = vld [vmem:[%s7683_s0 + $0x1d1] sm:$0xff] }
  0x15   :  { %5194 = vmatmul.mubr.msk.f32.gmra.mrb[4].mxu1 %vm95_vm0, %v6270_v29  ;;  %5084 = vmatprep.mubr.msk.f32.mxu0 %vm95_vm0, %v6275_v30  ;;  %7699 = vst [vmem:[#allocation2_spill] sm:$0xff] %v6471_v56  ;;  %7700 = vst [vmem:[#allocation3_spill] sm:$0xff] %v6482_v57  ;;  %v6489_v58 = vld [vmem:[%s7683_s0 + $0x1e1] sm:$0xff]  ;;  %v6500_v59 = vld [vmem:[%s7683_s0 + $0x1f1] sm:$0xff] }
  0x16   :  { %5196 = vmatprep.mubr.msk.f32.mxu1 %vm95_vm0, %v6275_v30  ;;  %7701 = vst [vmem:[#allocation4_spill] sm:$0xff] %v6489_v58  ;;  %7702 = vst [vmem:[#allocation5_spill] sm:$0xff] %v6500_v59  ;;  %v6507_v60 = vld [vmem:[%s7683_s0 + $0x201] sm:$0xff]  ;;  %v6518_v61 = vld [vmem:[%s7683_s0 + $0x211] sm:$0xff] }
  0x17   :  { %7703 = vst [vmem:[#allocation6_spill] sm:$0xff] %v6507_v60  ;;  %7704 = vst [vmem:[#allocation7_spill] sm:$0xff] %v6518_v61  ;;  %v17_v62 = vld [vmem:[%s7683_s0] sm:$0xff]  ;;  %v4252_v0 = vld [vmem:[%s7682_s1 + $0x58] sm:$0xff] }
  0x18   :  { %5085 = vmatmul.mubr.msk.f32.gmra.mrb[6].mxu0 %vm95_vm0, %v6304_v37  ;;  %v6539_v1 = vld [vmem:[%s7683_s0 + $0x10] sm:$0xff]  ;;  %v4288_v3 = vld [vmem:[%s7682_s1 + $0x118] sm:$0xff]  ;;  %v6551_v4 = vld [vmem:[%s7683_s0 + $0x20] sm:$0xff]  ;;  %v5775_v5 = vpack.c.bf16 %v4252_v0, %v4251_v63 }
  0x19   :  { %5197 = vmatmul.mubr.msk.f32.gmra.mrb[6].mxu1 %vm95_vm0, %v6304_v37  ;;  %5087 = vmatprep.mubr.msk.f32.mxu0 %vm95_vm0, %v6311_v38  ;;  %v4287_v2 = vld [vmem:[%s7682_s1 + $0x110] sm:$0xff]  ;;  %v4353_v7 = vld [vmem:[%s7682_s1 + $0x60] sm:$0xff]  ;;  %v4354_v8 = vld [vmem:[%s7682_s1 + $0x68] sm:$0xff] }
  0x1a   :  { %5199 = vmatprep.mubr.msk.f32.mxu1 %vm95_vm0, %v6311_v38  ;;  %v5783_v6 = vpack.c.bf16 %v4288_v3, %v4287_v2  ;;  %v6567_v9 = vld [vmem:[%s7683_s0 + $0x30] sm:$0xff]  ;;  %v4389_v10 = vld [vmem:[%s7682_s1 + $0x120] sm:$0xff]  ;;  %v4390_v11 = vld [vmem:[%s7682_s1 + $0x128] sm:$0xff]  ;;  %v6585_v13 = vpack.c.bf16 %v4354_v8, %v4353_v7 }
  0x1b   :  { %v6581_v12 = vld [vmem:[%s7683_s0 + $0x40] sm:$0xff]  ;;  %v6589_v14 = vpack.c.bf16 %v4390_v11, %v4389_v10  ;;  %v6598_v15 = vld [vmem:[%s7683_s0 + $0x50] sm:$0xff] }
  0x1c   :  { %5088 = vmatmul.mubr.msk.f32.gmra.mrb[8].mxu0 %vm95_vm0, %v6324_v39  ;;  %v6605_v16 = vld [vmem:[%s7683_s0 + $0x60] sm:$0xff]  ;;  %v6618_v17 = vld [vmem:[%s7683_s0 + $0x70] sm:$0xff] }
  0x1d   :  { %5200 = vmatmul.mubr.msk.f32.gmra.mrb[8].mxu1 %vm95_vm0, %v6324_v39  ;;  %5090 = vmatprep.mubr.msk.f32.mxu0 %vm95_vm0, %v6331_v40  ;;  %v6625_v18 = vld [vmem:[%s7683_s0 + $0x80] sm:$0xff]  ;;  %v6636_v21 = vld [vmem:[%s7683_s0 + $0x90] sm:$0xff] }
  0x1e   :  { %5202 = vmatprep.mubr.msk.f32.mxu1 %vm95_vm0, %v6331_v40  ;;  %v6643_v22 = vld [vmem:[%s7683_s0 + $0xa0] sm:$0xff]  ;;  %v6654_v23 = vld [vmem:[%s7683_s0 + $0xb0] sm:$0xff] }
  0x1f   :  { %v6661_v24 = vld [vmem:[%s7683_s0 + $0xc0] sm:$0xff]  ;;  %v6672_v25 = vld [vmem:[%s7683_s0 + $0xd0] sm:$0xff] }
  0x20   :  { %5091 = vmatmul.mubr.msk.f32.gmra.mrb[10].mxu0 %vm95_vm0, %v6342_v41  ;;  %v6679_v27 = vld [vmem:[%s7683_s0 + $0xe0] sm:$0xff]  ;;  %v6690_v31 = vld [vmem:[%s7683_s0 + $0xf0] sm:$0xff] }
  0x21   :  { %5203 = vmatmul.mubr.msk.f32.gmra.mrb[10].mxu1 %vm95_vm0, %v6342_v41  ;;  %5093 = vmatprep.mubr.msk.f32.mxu0 %vm95_vm0, %v6349_v42  ;;  %v33_v32 = vld [vmem:[%s7683_s0 + $0x120] sm:$0xff]  ;;  %v6705_v33 = vld [vmem:[%s7683_s0 + $0x130] sm:$0xff] }
  0x22   :  { %5205 = vmatprep.mubr.msk.f32.mxu1 %vm95_vm0, %v6349_v42  ;;  %v6711_v34 = vld [vmem:[%s7683_s0 + $0x140] sm:$0xff]  ;;  %v6758_v63 = vld [vmem:[%s7683_s0 + $0x190] sm:$0xff] }
  0x23   :  { %v6765_v0 = vld [vmem:[%s7683_s0 + $0x1a0] sm:$0xff]  ;;  %v6776_v2 = vld [vmem:[%s7683_s0 + $0x1b0] sm:$0xff] }
  0x24   :  { %5094 = vmatmul.mubr.msk.f32.gmra.mrb[12].mxu0 %vm95_vm0, %v6360_v43  ;;  %v6783_v3 = vld [vmem:[%s7683_s0 + $0x1c0] sm:$0xff]  ;;  %v6812_v7 = vld [vmem:[%s7683_s0 + $0x1f0] sm:$0xff] }
  0x25   :  { %5206 = vmatmul.mubr.msk.f32.gmra.mrb[12].mxu1 %vm95_vm0, %v6360_v43  ;;  %5096 = vmatprep.mubr.msk.f32.mxu0 %vm95_vm0, %v6367_v44  ;;  %v6819_v8 = vld [vmem:[%s7683_s0 + $0x200] sm:$0xff]  ;;  %v6830_v10 = vld [vmem:[%s7683_s0 + $0x210] sm:$0xff] }
  0x26   :  { %5208 = vmatprep.mubr.msk.f32.mxu1 %vm95_vm0, %v6367_v44  ;;  %v4355_v11 = vld [vmem:[%s7682_s1 + $0x70] sm:$0xff] }
  0x28   :  { %5097 = vmatmul.mubr.msk.f32.gmra.mrb[14].mxu0 %vm95_vm0, %v6378_v45 }
  0x29   :  { %5209 = vmatmul.mubr.msk.f32.gmra.mrb[14].mxu1 %vm95_vm0, %v6378_v45  ;;  %5099 = vmatprep.mubr.msk.f32.mxu0 %vm95_vm0, %v74_v46 }
  0x2a   :  { %5211 = vmatprep.mubr.msk.f32.mxu1 %vm95_vm0, %v74_v46  ;;  %v6740_v46 = vld [vmem:[%s7683_s0 + $0x170] sm:$0xff] }
  0x2c   :  { %5100 = vmatmul.mubr.msk.f32.gmra.mrb[16].mxu0 %vm95_vm0, %v6393_v47 }
  0x2d   :  { %5212 = vmatmul.mubr.msk.f32.gmra.mrb[16].mxu1 %vm95_vm0, %v6393_v47  ;;  %5102 = vmatprep.mubr.msk.f32.mxu0 %vm95_vm0, %v6399_v48 }
  0x2e   :  { %5214 = vmatprep.mubr.msk.f32.mxu1 %vm95_vm0, %v6399_v48 }
  0x30   :  { %5103 = vmatmul.mubr.msk.f32.gmra.mrb[18].mxu0 %vm95_vm0, %v6410_v49 }
  0x31   :  { %5215 = vmatmul.mubr.msk.f32.gmra.mrb[18].mxu1 %vm95_vm0, %v6410_v49  ;;  %5105 = vmatprep.mubr.msk.f32.mxu0 %vm95_vm0, %v6417_v50 }
  0x32   :  { %5217 = vmatprep.mubr.msk.f32.mxu1 %vm95_vm0, %v6417_v50 }
  0x34   :  { %5106 = vmatmul.mubr.msk.f32.gmra.mrb[20].mxu0 %vm95_vm0, %v6428_v51 }
  0x35   :  { %5218 = vmatmul.mubr.msk.f32.gmra.mrb[20].mxu1 %vm95_vm0, %v6428_v51  ;;  %5108 = vmatprep.mubr.msk.f32.mxu0 %vm95_vm0, %v6435_v52 }
  0x36   :  { %5220 = vmatprep.mubr.msk.f32.mxu1 %vm95_vm0, %v6435_v52 }
  0x38   :  { %5109 = vmatmul.mubr.msk.f32.gmra.mrb[22].mxu0 %vm95_vm0, %v6446_v53 }
  0x39   :  { %5221 = vmatmul.mubr.msk.f32.gmra.mrb[22].mxu1 %vm95_vm0, %v6446_v53  ;;  %5111 = vmatprep.mubr.msk.f32.mxu0 %vm95_vm0, %v6453_v54 }
  0x3a   :  { %5223 = vmatprep.mubr.msk.f32.mxu1 %vm95_vm0, %v6453_v54 }
  0x3c   :  { %5112 = vmatmul.mubr.msk.f32.gmra.mrb[24].mxu0 %vm95_vm0, %v6464_v55 }
  0x3d   :  { %5224 = vmatmul.mubr.msk.f32.gmra.mrb[24].mxu1 %vm95_vm0, %v6464_v55  ;;  %5114 = vmatprep.mubr.msk.f32.mxu0 %vm95_vm0, %v6471_v56 }
  0x3e   :  { %5226 = vmatprep.mubr.msk.f32.mxu1 %vm95_vm0, %v6471_v56  ;;  %v4458_v56 = vld [vmem:[%s7682_s1 + $0x88] sm:$0xff] }
  0x40   :  { %5115 = vmatmul.mubr.msk.f32.gmra.mrb[26].mxu0 %vm95_vm0, %v6482_v57 }
  0x41   :  { %5227 = vmatmul.mubr.msk.f32.gmra.mrb[26].mxu1 %vm95_vm0, %v6482_v57  ;;  %5117 = vmatprep.mubr.msk.f32.mxu0 %vm95_vm0, %v6489_v58  ;;  %v4457_v57 = vld [vmem:[%s7682_s1 + $0x80] sm:$0xff] }
  0x42   :  { %5229 = vmatprep.mubr.msk.f32.mxu1 %vm95_vm0, %v6489_v58 }
  0x44   :  { %5118 = vmatmul.mubr.msk.f32.gmra.mrb[28].mxu0 %vm95_vm0, %v6500_v59 }
  0x45   :  { %5230 = vmatmul.mubr.msk.f32.gmra.mrb[28].mxu1 %vm95_vm0, %v6500_v59  ;;  %5120 = vmatprep.mubr.msk.f32.mxu0 %vm95_vm0, %v6507_v60 }
  0x46   :  { %5232 = vmatprep.mubr.msk.f32.mxu1 %vm95_vm0, %v6507_v60  ;;  %v4392_v60 = vld [vmem:[%s7682_s1 + $0x138] sm:$0xff] }
  0x48   :  { %5121 = vmatmul.mubr.msk.f32.gmra.mrb[30].mxu0 %vm95_vm0, %v6518_v61 }
  0x49   :  { %5233 = vmatmul.mubr.msk.f32.gmra.mrb[30].mxu1 %vm95_vm0, %v6518_v61  ;;  %5131 = vmatprep.mubr.msk.f32.mxu0 %vm95_vm0, %v17_v62  ;;  %v4391_v61 = vld [vmem:[%s7682_s1 + $0x130] sm:$0xff] }
  0x4a   :  { %5243 = vmatprep.mubr.msk.f32.mxu1 %vm95_vm0, %v17_v62  ;;  %v6747_v62 = vld [vmem:[%s7683_s0 + $0x180] sm:$0xff]  ;;  %v5799_v58 = vpack.c.bf16 %v4392_v60, %v4391_v61  ;;  %v4494_v60 = vld [vmem:[%s7682_s1 + $0x148] sm:$0xff]  ;;  %v6876_v61 = vpack.c.bf16 %v4458_v56, %v4457_v57 }
  0x4b   :  { %v6931_v56 = vld [vmem:[%s7683_s0 + $0x100] sm:$0xff] }
  0x4c   :  { %5132 = vmatmul.mubr.msk.f32.vlgmr.msra.gmra.mrb[0].mxu0 %vm95_vm0, %v6539_v1  ;;  %v7000_v57 = vld [vmem:[%s7683_s0 + $0x220] sm:$0xff] }
  0x4d   :  { %5244 = vmatmul.mubr.msk.f32.vlgmr.msra.gmra.mrb[0].mxu1 %vm95_vm0, %v6539_v1  ;;  %5774 = vmatpush3.bf16.msra.mxu0 %v6291_v35  ;;  %v6722_v35 = vld [vmem:[%s7683_s0 + $0x150] sm:$0xff] }
  0x4e   :  { %5782 = vmatpush3.bf16.msra.mxu1 %v6293_v36  ;;  %5134 = vmatprep.mubr.msk.f32.mxu0 %vm95_vm0, %v6551_v4  ;;  %v6729_v36 = vld [vmem:[%s7683_s0 + $0x160] sm:$0xff] }
  0x4f   :  { %5246 = vmatprep.mubr.msk.f32.mxu1 %vm95_vm0, %v6551_v4  ;;  %5776 = vmatprep.subr.bf16.mxu0 %v5775_v5 }
  0x50   :  { %5135 = vmatmul.mubr.msk.f32.gmra.mrb[2].mxu0 %vm95_vm0, %v6567_v9  ;;  %5784 = vmatprep.subr.bf16.mxu1 %v5783_v6 }
  0x51   :  { %5247 = vmatmul.mubr.msk.f32.gmra.mrb[2].mxu1 %vm95_vm0, %v6567_v9  ;;  %5137 = vmatprep.mubr.msk.f32.mxu0 %vm95_vm0, %v6581_v12 }
  0x52   :  { %5249 = vmatprep.mubr.msk.f32.mxu1 %vm95_vm0, %v6581_v12  ;;  %5778 = vmatpush3.bf16.msra.mxu0 %v5775_v5  ;;  %v6794_v5 = vld [vmem:[%s7683_s0 + $0x1d0] sm:$0xff] }
  0x53   :  { %5786 = vmatpush3.bf16.msra.mxu1 %v5783_v6  ;;  %5788 = vmatprep.subr.bf16.mxu0 %v6585_v13  ;;  %v6801_v6 = vld [vmem:[%s7683_s0 + $0x1e0] sm:$0xff] }
  0x54   :  { %5138 = vmatmul.mubr.msk.f32.gmra.mrb[4].mxu0 %vm95_vm0, %v6598_v15  ;;  %5796 = vmatprep.subr.bf16.mxu1 %v6589_v14 }
  0x55   :  { %5250 = vmatmul.mubr.msk.f32.gmra.mrb[4].mxu1 %vm95_vm0, %v6598_v15  ;;  %5140 = vmatprep.mubr.msk.f32.mxu0 %vm95_vm0, %v6605_v16 }
  0x56   :  { %5252 = vmatprep.mubr.msk.f32.mxu1 %vm95_vm0, %v6605_v16 }
  0x58   :  { %5141 = vmatmul.mubr.msk.f32.gmra.mrb[6].mxu0 %vm95_vm0, %v6618_v17 }
  0x59   :  { %5253 = vmatmul.mubr.msk.f32.gmra.mrb[6].mxu1 %vm95_vm0, %v6618_v17  ;;  %5143 = vmatprep.mubr.msk.f32.mxu0 %vm95_vm0, %v6625_v18 }
  0x5a   :  { %5255 = vmatprep.mubr.msk.f32.mxu1 %vm95_vm0, %v6625_v18 }
  0x5c   :  { %5144 = vmatmul.mubr.msk.f32.gmra.mrb[8].mxu0 %vm95_vm0, %v6636_v21 }
  0x5d   :  { %5256 = vmatmul.mubr.msk.f32.gmra.mrb[8].mxu1 %vm95_vm0, %v6636_v21  ;;  %5146 = vmatprep.mubr.msk.f32.mxu0 %vm95_vm0, %v6643_v22 }
  0x5e   :  { %5258 = vmatprep.mubr.msk.f32.mxu1 %vm95_vm0, %v6643_v22 }
  0x60   :  { %5147 = vmatmul.mubr.msk.f32.gmra.mrb[10].mxu0 %vm95_vm0, %v6654_v23 }
  0x61   :  { %5259 = vmatmul.mubr.msk.f32.gmra.mrb[10].mxu1 %vm95_vm0, %v6654_v23  ;;  %5149 = vmatprep.mubr.msk.f32.mxu0 %vm95_vm0, %v6661_v24 }
  0x62   :  { %5261 = vmatprep.mubr.msk.f32.mxu1 %vm95_vm0, %v6661_v24 }
  0x64   :  { %5150 = vmatmul.mubr.msk.f32.gmra.mrb[12].mxu0 %vm95_vm0, %v6672_v25 }
  0x65   :  { %5262 = vmatmul.mubr.msk.f32.gmra.mrb[12].mxu1 %vm95_vm0, %v6672_v25  ;;  %5152 = vmatprep.mubr.msk.f32.mxu0 %vm95_vm0, %v6679_v27 }
  0x66   :  { %5264 = vmatprep.mubr.msk.f32.mxu1 %vm95_vm0, %v6679_v27 }
  0x68   :  { %5153 = vmatmul.mubr.msk.f32.gmra.mrb[14].mxu0 %vm95_vm0, %v6690_v31 }
  0x69   :  { %5265 = vmatmul.mubr.msk.f32.gmra.mrb[14].mxu1 %vm95_vm0, %v6690_v31  ;;  %5155 = vmatprep.mubr.msk.f32.mxu0 %vm95_vm0, %v33_v32 }
  0x6a   :  { %5267 = vmatprep.mubr.msk.f32.mxu1 %vm95_vm0, %v33_v32  ;;  %v4356_v32 = vld [vmem:[%s7682_s1 + $0x78] sm:$0xff] }
  0x6b   :  { %v5791_v59 = vpack.c.bf16 %v4356_v32, %v4355_v11 }
  0x6c   :  { %5156 = vmatmul.mubr.msk.f32.gmra.mrb[16].mxu0 %vm95_vm0, %v6705_v33 }
  0x6d   :  { %5268 = vmatmul.mubr.msk.f32.gmra.mrb[16].mxu1 %vm95_vm0, %v6705_v33  ;;  %5158 = vmatprep.mubr.msk.f32.mxu0 %vm95_vm0, %v6711_v34 }
  0x6e   :  { %5270 = vmatprep.mubr.msk.f32.mxu1 %vm95_vm0, %v6711_v34 }
  0x70   :  { %5159 = vmatmul.mubr.msk.f32.gmra.mrb[18].mxu0 %vm95_vm0, %v6722_v35 }
  0x71   :  { %5271 = vmatmul.mubr.msk.f32.gmra.mrb[18].mxu1 %vm95_vm0, %v6722_v35  ;;  %5161 = vmatprep.mubr.msk.f32.mxu0 %vm95_vm0, %v6729_v36 }
  0x72   :  { %5273 = vmatprep.mubr.msk.f32.mxu1 %vm95_vm0, %v6729_v36 }
  0x74   :  { %5162 = vmatmul.mubr.msk.f32.gmra.mrb[20].mxu0 %vm95_vm0, %v6740_v46 }
  0x75   :  { %5274 = vmatmul.mubr.msk.f32.gmra.mrb[20].mxu1 %vm95_vm0, %v6740_v46  ;;  %5164 = vmatprep.mubr.msk.f32.mxu0 %vm95_vm0, %v6747_v62 }
  0x76   :  { %5276 = vmatprep.mubr.msk.f32.mxu1 %vm95_vm0, %v6747_v62 }
  0x78   :  { %5165 = vmatmul.mubr.msk.f32.gmra.mrb[22].mxu0 %vm95_vm0, %v6758_v63 }
  0x79   :  { %5277 = vmatmul.mubr.msk.f32.gmra.mrb[22].mxu1 %vm95_vm0, %v6758_v63  ;;  %5167 = vmatprep.mubr.msk.f32.mxu0 %vm95_vm0, %v6765_v0 }
  0x7a   :  { %5279 = vmatprep.mubr.msk.f32.mxu1 %vm95_vm0, %v6765_v0 }
  0x7c   :  { %5168 = vmatmul.mubr.msk.f32.gmra.mrb[24].mxu0 %vm95_vm0, %v6776_v2 }
  0x7d   :  { %5280 = vmatmul.mubr.msk.f32.gmra.mrb[24].mxu1 %vm95_vm0, %v6776_v2  ;;  %5170 = vmatprep.mubr.msk.f32.mxu0 %vm95_vm0, %v6783_v3 }
  0x7e   :  { %5282 = vmatprep.mubr.msk.f32.mxu1 %vm95_vm0, %v6783_v3 }
  0x80   :  { %5171 = vmatmul.mubr.msk.f32.gmra.mrb[26].mxu0 %vm95_vm0, %v6794_v5 }
  0x81   :  { %5283 = vmatmul.mubr.msk.f32.gmra.mrb[26].mxu1 %vm95_vm0, %v6794_v5  ;;  %5173 = vmatprep.mubr.msk.f32.mxu0 %vm95_vm0, %v6801_v6 }
  0x82   :  { %5285 = vmatprep.mubr.msk.f32.mxu1 %vm95_vm0, %v6801_v6 }
  0x84   :  { %5174 = vmatmul.mubr.msk.f32.gmra.mrb[28].mxu0 %vm95_vm0, %v6812_v7 }
  0x85   :  { %5286 = vmatmul.mubr.msk.f32.gmra.mrb[28].mxu1 %vm95_vm0, %v6812_v7  ;;  %5176 = vmatprep.mubr.msk.f32.mxu0 %vm95_vm0, %v6819_v8 }
  0x86   :  { %5288 = vmatprep.mubr.msk.f32.mxu1 %vm95_vm0, %v6819_v8 }
  0x88   :  { %5177 = vmatmul.mubr.msk.f32.gmra.mrb[30].mxu0 %vm95_vm0, %v6830_v10 }
  0x89   :  { %5289 = vmatmul.mubr.msk.f32.gmra.mrb[30].mxu1 %vm95_vm0, %v6830_v10  ;;  %5299 = vmatprep.mubr.msk.f32.mxu0 %vm95_vm0, %v6539_v1 }
  0x8a   :  { %5355 = vmatprep.mubr.msk.f32.mxu1 %vm95_vm0, %v6539_v1  ;;  %v4493_v1 = vld [vmem:[%s7682_s1 + $0x140] sm:$0xff] }
  0x8c   :  { %5300 = vmatmul.mubr.msk.f32.vlgmr.msra.gmra.mrb[0].mxu0 %vm95_vm0, %v6551_v4 }
  0x8d   :  { %5356 = vmatmul.mubr.msk.f32.vlgmr.msra.gmra.mrb[0].mxu1 %vm95_vm0, %v6551_v4  ;;  %5790 = vmatpush3.bf16.msra.mxu0 %v6585_v13  ;;  %v6880_v13 = vpack.c.bf16 %v4494_v60, %v4493_v1  ;;  %v4561_v1 = vld [vmem:[%s7682_s1 + $0xa0] sm:$0xff]  ;;  %v4562_v60 = vld [vmem:[%s7682_s1 + $0xa8] sm:$0xff] }
  0x8e   :  { %5798 = vmatpush3.bf16.msra.mxu1 %v6589_v14  ;;  %5302 = vmatprep.mubr.msk.f32.mxu0 %vm95_vm0, %v6567_v9  ;;  %v4495_v14 = vld [vmem:[%s7682_s1 + $0x150] sm:$0xff] }
  0x8f   :  { %5358 = vmatprep.mubr.msk.f32.mxu1 %vm95_vm0, %v6567_v9  ;;  %5792 = vmatprep.subr.bf16.mxu0 %v5791_v59 }
  0x90   :  { %5303 = vmatmul.mubr.msk.f32.gmra.mrb[2].mxu0 %vm95_vm0, %v6581_v12  ;;  %5800 = vmatprep.subr.bf16.mxu1 %v5799_v58 }
  0x91   :  { %5359 = vmatmul.mubr.msk.f32.gmra.mrb[2].mxu1 %vm95_vm0, %v6581_v12  ;;  %5305 = vmatprep.mubr.msk.f32.mxu0 %vm95_vm0, %v6598_v15 }
  0x92   :  { %5361 = vmatprep.mubr.msk.f32.mxu1 %vm95_vm0, %v6598_v15  ;;  %5794 = vmatpush3.bf16.msra.mxu0 %v5791_v59  ;;  %v4460_v59 = vld [vmem:[%s7682_s1 + $0x98] sm:$0xff] }
  0x93   :  { %5802 = vmatpush3.bf16.msra.mxu1 %v5799_v58  ;;  %5804 = vmatprep.subr.bf16.mxu0 %v6876_v61  ;;  %v4459_v58 = vld [vmem:[%s7682_s1 + $0x90] sm:$0xff] }
  0x94   :  { %5306 = vmatmul.mubr.msk.f32.gmra.mrb[4].mxu0 %vm95_vm0, %v6605_v16  ;;  %5812 = vmatprep.subr.bf16.mxu1 %v6880_v13  ;;  %v5807_v11 = vpack.c.bf16 %v4460_v59, %v4459_v58  ;;  %v4598_v58 = vld [vmem:[%s7682_s1 + $0x168] sm:$0xff] }
  0x95   :  { %5362 = vmatmul.mubr.msk.f32.gmra.mrb[4].mxu1 %vm95_vm0, %v6605_v16  ;;  %5308 = vmatprep.mubr.msk.f32.mxu0 %vm95_vm0, %v6618_v17 }
  0x96   :  { %5364 = vmatprep.mubr.msk.f32.mxu1 %vm95_vm0, %v6618_v17 }
  0x98   :  { %5309 = vmatmul.mubr.msk.f32.gmra.mrb[6].mxu0 %vm95_vm0, %v6625_v18 }
  0x99   :  { %5365 = vmatmul.mubr.msk.f32.gmra.mrb[6].mxu1 %vm95_vm0, %v6625_v18  ;;  %5311 = vmatprep.mubr.msk.f32.mxu0 %vm95_vm0, %v6636_v21 }
  0x9a   :  { %5367 = vmatprep.mubr.msk.f32.mxu1 %vm95_vm0, %v6636_v21 }
  0x9c   :  { %5312 = vmatmul.mubr.msk.f32.gmra.mrb[8].mxu0 %vm95_vm0, %v6643_v22 }
  0x9d   :  { %5368 = vmatmul.mubr.msk.f32.gmra.mrb[8].mxu1 %vm95_vm0, %v6643_v22  ;;  %5314 = vmatprep.mubr.msk.f32.mxu0 %vm95_vm0, %v6654_v23 }
  0x9e   :  { %5370 = vmatprep.mubr.msk.f32.mxu1 %vm95_vm0, %v6654_v23 }
  0xa0   :  { %5315 = vmatmul.mubr.msk.f32.gmra.mrb[10].mxu0 %vm95_vm0, %v6661_v24 }
  0xa1   :  { %5371 = vmatmul.mubr.msk.f32.gmra.mrb[10].mxu1 %vm95_vm0, %v6661_v24  ;;  %5317 = vmatprep.mubr.msk.f32.mxu0 %vm95_vm0, %v6672_v25 }
  0xa2   :  { %5373 = vmatprep.mubr.msk.f32.mxu1 %vm95_vm0, %v6672_v25 }
  0xa4   :  { %5318 = vmatmul.mubr.msk.f32.gmra.mrb[12].mxu0 %vm95_vm0, %v6679_v27 }
  0xa5   :  { %5374 = vmatmul.mubr.msk.f32.gmra.mrb[12].mxu1 %vm95_vm0, %v6679_v27  ;;  %5320 = vmatprep.mubr.msk.f32.mxu0 %vm95_vm0, %v6690_v31 }
  0xa6   :  { %5376 = vmatprep.mubr.msk.f32.mxu1 %vm95_vm0, %v6690_v31 }
  0xa8   :  { %5321 = vmatmul.mubr.msk.f32.gmra.mrb[14].mxu0 %vm95_vm0, %v6931_v56 }
  0xa9   :  { %5377 = vmatmul.mubr.msk.f32.gmra.mrb[14].mxu1 %vm95_vm0, %v6931_v56  ;;  %5323 = vmatprep.mubr.msk.f32.mxu0 %vm95_vm0, %v6705_v33 }
  0xaa   :  { %5379 = vmatprep.mubr.msk.f32.mxu1 %vm95_vm0, %v6705_v33  ;;  %v4496_v33 = vld [vmem:[%s7682_s1 + $0x158] sm:$0xff] }
  0xab   :  { %v5815_v32 = vpack.c.bf16 %v4496_v33, %v4495_v14 }
  0xac   :  { %5324 = vmatmul.mubr.msk.f32.gmra.mrb[16].mxu0 %vm95_vm0, %v6711_v34 }
  0xad   :  { %5380 = vmatmul.mubr.msk.f32.gmra.mrb[16].mxu1 %vm95_vm0, %v6711_v34  ;;  %5326 = vmatprep.mubr.msk.f32.mxu0 %vm95_vm0, %v6722_v35 }
  0xae   :  { %5382 = vmatprep.mubr.msk.f32.mxu1 %vm95_vm0, %v6722_v35 }
  0xb0   :  { %5327 = vmatmul.mubr.msk.f32.gmra.mrb[18].mxu0 %vm95_vm0, %v6729_v36 }
  0xb1   :  { %5383 = vmatmul.mubr.msk.f32.gmra.mrb[18].mxu1 %vm95_vm0, %v6729_v36  ;;  %5329 = vmatprep.mubr.msk.f32.mxu0 %vm95_vm0, %v6740_v46 }
  0xb2   :  { %5385 = vmatprep.mubr.msk.f32.mxu1 %vm95_vm0, %v6740_v46 }
  0xb4   :  { %5330 = vmatmul.mubr.msk.f32.gmra.mrb[20].mxu0 %vm95_vm0, %v6747_v62 }
  0xb5   :  { %5386 = vmatmul.mubr.msk.f32.gmra.mrb[20].mxu1 %vm95_vm0, %v6747_v62  ;;  %5332 = vmatprep.mubr.msk.f32.mxu0 %vm95_vm0, %v6758_v63 }
  0xb6   :  { %5388 = vmatprep.mubr.msk.f32.mxu1 %vm95_vm0, %v6758_v63 }
  0xb8   :  { %5333 = vmatmul.mubr.msk.f32.gmra.mrb[22].mxu0 %vm95_vm0, %v6765_v0 }
  0xb9   :  { %5389 = vmatmul.mubr.msk.f32.gmra.mrb[22].mxu1 %vm95_vm0, %v6765_v0  ;;  %5335 = vmatprep.mubr.msk.f32.mxu0 %vm95_vm0, %v6776_v2 }
  0xba   :  { %5391 = vmatprep.mubr.msk.f32.mxu1 %vm95_vm0, %v6776_v2 }
  0xbc   :  { %5336 = vmatmul.mubr.msk.f32.gmra.mrb[24].mxu0 %vm95_vm0, %v6783_v3 }
  0xbd   :  { %5392 = vmatmul.mubr.msk.f32.gmra.mrb[24].mxu1 %vm95_vm0, %v6783_v3  ;;  %5338 = vmatprep.mubr.msk.f32.mxu0 %vm95_vm0, %v6794_v5 }
  0xbe   :  { %5394 = vmatprep.mubr.msk.f32.mxu1 %vm95_vm0, %v6794_v5 }
  0xc0   :  { %5339 = vmatmul.mubr.msk.f32.gmra.mrb[26].mxu0 %vm95_vm0, %v6801_v6 }
  0xc1   :  { %5395 = vmatmul.mubr.msk.f32.gmra.mrb[26].mxu1 %vm95_vm0, %v6801_v6  ;;  %5341 = vmatprep.mubr.msk.f32.mxu0 %vm95_vm0, %v6812_v7 }
  0xc2   :  { %5397 = vmatprep.mubr.msk.f32.mxu1 %vm95_vm0, %v6812_v7 }
  0xc4   :  { %5342 = vmatmul.mubr.msk.f32.gmra.mrb[28].mxu0 %vm95_vm0, %v6819_v8 }
  0xc5   :  { %5398 = vmatmul.mubr.msk.f32.gmra.mrb[28].mxu1 %vm95_vm0, %v6819_v8  ;;  %5344 = vmatprep.mubr.msk.f32.mxu0 %vm95_vm0, %v6830_v10 }
  0xc6   :  { %5400 = vmatprep.mubr.msk.f32.mxu1 %vm95_vm0, %v6830_v10 }
  0xc8   :  { %5345 = vmatmul.mubr.msk.f32.gmra.mrb[30].mxu0 %vm95_vm0, %v7000_v57 }
  0xc9   :  { %5401 = vmatmul.mubr.msk.f32.gmra.mrb[30].mxu1 %vm95_vm0, %v7000_v57  ;;  %5411 = vmatprep.mubr.msk.f32.mxu0 %vm95_vm0, %v6224_v19 }
  0xca   :  { %5467 = vmatprep.mubr.msk.f32.mxu1 %vm95_vm0, %v6224_v19  ;;  %v4597_v19 = vld [vmem:[%s7682_s1 + $0x160] sm:$0xff] }
  0xcc   :  { %5412 = vmatmul.mubr.msk.f32.vlgmr.msra.gmra.mrb[0].mxu0 %vm95_vm0, %v6229_v20 }
  0xcd   :  { %5468 = vmatmul.mubr.msk.f32.vlgmr.msra.gmra.mrb[0].mxu1 %vm95_vm0, %v6229_v20  ;;  %5806 = vmatpush3.bf16.msra.mxu0 %v6876_v61  ;;  %v7046_v20 = vpack.c.bf16 %v4562_v60, %v4561_v1  ;;  %v7050_v61 = vpack.c.bf16 %v4598_v58, %v4597_v19 }
  0xce   :  { %5814 = vmatpush3.bf16.msra.mxu1 %v6880_v13  ;;  %5414 = vmatprep.mubr.msk.f32.mxu0 %vm95_vm0, %v6250_v26 }
  0xcf   :  { %5470 = vmatprep.mubr.msk.f32.mxu1 %vm95_vm0, %v6250_v26  ;;  %5808 = vmatprep.subr.bf16.mxu0 %v5807_v11  ;;  %v7101_v26 = vld [vmem:[%s7683_s0 + $0x101] sm:$0xff] }
  0xd0   :  { %5415 = vmatmul.mubr.msk.f32.gmra.mrb[2].mxu0 %vm95_vm0, %v6257_v28  ;;  %5816 = vmatprep.subr.bf16.mxu1 %v5815_v32 }
  0xd1   :  { %5471 = vmatmul.mubr.msk.f32.gmra.mrb[2].mxu1 %vm95_vm0, %v6257_v28  ;;  %5417 = vmatprep.mubr.msk.f32.mxu0 %vm95_vm0, %v6270_v29  ;;  %v7705_v28 = vld [vmem:[#allocation2_spill] sm:$0xff] }
  0xd2   :  { %5473 = vmatprep.mubr.msk.f32.mxu1 %vm95_vm0, %v6270_v29  ;;  %5810 = vmatpush3.bf16.msra.mxu0 %v5807_v11  ;;  %v7706_v29 = vld [vmem:[#allocation3_spill] sm:$0xff] }
  0xd3   :  { %5818 = vmatpush3.bf16.msra.mxu1 %v5815_v32  ;;  %5820 = vmatprep.subr.bf16.mxu0 %v7046_v20 }
  0xd4   :  { %5418 = vmatmul.mubr.msk.f32.gmra.mrb[4].mxu0 %vm95_vm0, %v6275_v30  ;;  %5828 = vmatprep.subr.bf16.mxu1 %v7050_v61 }
  0xd5   :  { %5474 = vmatmul.mubr.msk.f32.gmra.mrb[4].mxu1 %vm95_vm0, %v6275_v30  ;;  %5420 = vmatprep.mubr.msk.f32.mxu0 %vm95_vm0, %v6304_v37  ;;  %v7707_v30 = vld [vmem:[#allocation4_spill] sm:$0xff] }
  0xd6   :  { %5476 = vmatprep.mubr.msk.f32.mxu1 %vm95_vm0, %v6304_v37  ;;  %v7708_v37 = vld [vmem:[#allocation5_spill] sm:$0xff] }
  0xd8   :  { %5421 = vmatmul.mubr.msk.f32.gmra.mrb[6].mxu0 %vm95_vm0, %v6311_v38 }
  0xd9   :  { %5477 = vmatmul.mubr.msk.f32.gmra.mrb[6].mxu1 %vm95_vm0, %v6311_v38  ;;  %5423 = vmatprep.mubr.msk.f32.mxu0 %vm95_vm0, %v6324_v39  ;;  %v7709_v38 = vld [vmem:[#allocation6_spill] sm:$0xff] }
  0xda   :  { %5479 = vmatprep.mubr.msk.f32.mxu1 %vm95_vm0, %v6324_v39  ;;  %v7710_v39 = vld [vmem:[#allocation7_spill] sm:$0xff] }
  0xdc   :  { %5424 = vmatmul.mubr.msk.f32.gmra.mrb[8].mxu0 %vm95_vm0, %v6331_v40 }
  0xdd   :  { %5480 = vmatmul.mubr.msk.f32.gmra.mrb[8].mxu1 %vm95_vm0, %v6331_v40  ;;  %5426 = vmatprep.mubr.msk.f32.mxu0 %vm95_vm0, %v6342_v41  ;;  %v7170_v40 = vld [vmem:[%s7683_s0 + $0x221] sm:$0xff] }
  0xde   :  { %5482 = vmatprep.mubr.msk.f32.mxu1 %vm95_vm0, %v6342_v41  ;;  %v4563_v41 = vld [vmem:[%s7682_s1 + $0xb0] sm:$0xff] }
  0xe0   :  { %5427 = vmatmul.mubr.msk.f32.gmra.mrb[10].mxu0 %vm95_vm0, %v6349_v42 }
  0xe1   :  { %5483 = vmatmul.mubr.msk.f32.gmra.mrb[10].mxu1 %vm95_vm0, %v6349_v42  ;;  %5429 = vmatprep.mubr.msk.f32.mxu0 %vm95_vm0, %v6360_v43  ;;  %v4564_v42 = vld [vmem:[%s7682_s1 + $0xb8] sm:$0xff] }
  0xe2   :  { %5485 = vmatprep.mubr.msk.f32.mxu1 %vm95_vm0, %v6360_v43  ;;  %v4599_v43 = vld [vmem:[%s7682_s1 + $0x170] sm:$0xff] }
  0xe4   :  { %5430 = vmatmul.mubr.msk.f32.gmra.mrb[12].mxu0 %vm95_vm0, %v6367_v44 }
  0xe5   :  { %5486 = vmatmul.mubr.msk.f32.gmra.mrb[12].mxu1 %vm95_vm0, %v6367_v44  ;;  %5432 = vmatprep.mubr.msk.f32.mxu0 %vm95_vm0, %v6378_v45  ;;  %v4600_v44 = vld [vmem:[%s7682_s1 + $0x178] sm:$0xff] }
  0xe6   :  { %5488 = vmatprep.mubr.msk.f32.mxu1 %vm95_vm0, %v6378_v45  ;;  %v5823_v45 = vpack.c.bf16 %v4564_v42, %v4563_v41 }
  0xe8   :  { %5433 = vmatmul.mubr.msk.f32.gmra.mrb[14].mxu0 %vm95_vm0, %v7101_v26 }
  0xe9   :  { %5489 = vmatmul.mubr.msk.f32.gmra.mrb[14].mxu1 %vm95_vm0, %v7101_v26  ;;  %5435 = vmatprep.mubr.msk.f32.mxu0 %vm95_vm0, %v6393_v47 }
  0xea   :  { %5491 = vmatprep.mubr.msk.f32.mxu1 %vm95_vm0, %v6393_v47  ;;  %v5831_v47 = vpack.c.bf16 %v4600_v44, %v4599_v43 }
  0xec   :  { %5436 = vmatmul.mubr.msk.f32.gmra.mrb[16].mxu0 %vm95_vm0, %v6399_v48 }
  0xed   :  { %5492 = vmatmul.mubr.msk.f32.gmra.mrb[16].mxu1 %vm95_vm0, %v6399_v48  ;;  %5438 = vmatprep.mubr.msk.f32.mxu0 %vm95_vm0, %v6410_v49  ;;  %v4440_v48 = vld [vmem:[%s7683_s0 + $0x110] sm:$0xff] }
  0xee   :  { %5494 = vmatprep.mubr.msk.f32.mxu1 %vm95_vm0, %v6410_v49  ;;  %v4456_v49 = vld [vmem:[%s7683_s0 + $0x230] sm:$0xff] }
  0xf0   :  { %5439 = vmatmul.mubr.msk.f32.gmra.mrb[18].mxu0 %vm95_vm0, %v6417_v50 }
  0xf1   :  { %5495 = vmatmul.mubr.msk.f32.gmra.mrb[18].mxu1 %vm95_vm0, %v6417_v50  ;;  %5441 = vmatprep.mubr.msk.f32.mxu0 %vm95_vm0, %v6428_v51  ;;  %v4529_v50 = vld [vmem:[%s7683_s0 + $0x21] sm:$0xff] }
  0xf2   :  { %5497 = vmatprep.mubr.msk.f32.mxu1 %vm95_vm0, %v6428_v51  ;;  %v4530_v51 = vld [vmem:[%s7683_s0 + $0x31] sm:$0xff] }
  0xf4   :  { %5442 = vmatmul.mubr.msk.f32.gmra.mrb[20].mxu0 %vm95_vm0, %v6435_v52 }
  0xf5   :  { %5498 = vmatmul.mubr.msk.f32.gmra.mrb[20].mxu1 %vm95_vm0, %v6435_v52  ;;  %5444 = vmatprep.mubr.msk.f32.mxu0 %vm95_vm0, %v6446_v53  ;;  %v4531_v52 = vld [vmem:[%s7683_s0 + $0x41] sm:$0xff] }
  0xf6   :  { %5500 = vmatprep.mubr.msk.f32.mxu1 %vm95_vm0, %v6446_v53  ;;  %v4532_v53 = vld [vmem:[%s7683_s0 + $0x51] sm:$0xff] }
  0xf8   :  { %5445 = vmatmul.mubr.msk.f32.gmra.mrb[22].mxu0 %vm95_vm0, %v6453_v54 }
  0xf9   :  { %5501 = vmatmul.mubr.msk.f32.gmra.mrb[22].mxu1 %vm95_vm0, %v6453_v54  ;;  %5447 = vmatprep.mubr.msk.f32.mxu0 %vm95_vm0, %v6464_v55  ;;  %v4533_v54 = vld [vmem:[%s7683_s0 + $0x61] sm:$0xff] }
  0xfa   :  { %5503 = vmatprep.mubr.msk.f32.mxu1 %vm95_vm0, %v6464_v55  ;;  %v4534_v55 = vld [vmem:[%s7683_s0 + $0x71] sm:$0xff] }
  0xfc   :  { %5448 = vmatmul.mubr.msk.f32.gmra.mrb[24].mxu0 %vm95_vm0, %v7705_v28 }
  0xfd   :  { %5504 = vmatmul.mubr.msk.f32.gmra.mrb[24].mxu1 %vm95_vm0, %v7705_v28  ;;  %5450 = vmatprep.mubr.msk.f32.mxu0 %vm95_vm0, %v7706_v29 }
  0xfe   :  { %5506 = vmatprep.mubr.msk.f32.mxu1 %vm95_vm0, %v7706_v29 }
 0x100   :  { %5451 = vmatmul.mubr.msk.f32.gmra.mrb[26].mxu0 %vm95_vm0, %v7707_v30 }
 0x101   :  { %5507 = vmatmul.mubr.msk.f32.gmra.mrb[26].mxu1 %vm95_vm0, %v7707_v30  ;;  %5453 = vmatprep.mubr.msk.f32.mxu0 %vm95_vm0, %v7708_v37 }
 0x102   :  { %5509 = vmatprep.mubr.msk.f32.mxu1 %vm95_vm0, %v7708_v37 }
 0x104   :  { %5454 = vmatmul.mubr.msk.f32.gmra.mrb[28].mxu0 %vm95_vm0, %v7709_v38 }
 0x105   :  { %5510 = vmatmul.mubr.msk.f32.gmra.mrb[28].mxu1 %vm95_vm0, %v7709_v38  ;;  %5456 = vmatprep.mubr.msk.f32.mxu0 %vm95_vm0, %v7710_v39 }
 0x106   :  { %5512 = vmatprep.mubr.msk.f32.mxu1 %vm95_vm0, %v7710_v39 }
 0x108   :  { %5457 = vmatmul.mubr.msk.f32.gmra.mrb[30].mxu0 %vm95_vm0, %v7170_v40 }
 0x109   :  { %5513 = vmatmul.mubr.msk.f32.gmra.mrb[30].mxu1 %vm95_vm0, %v7170_v40  ;;  %5523 = vmatprep.mubr.msk.f32.mxu0 %vm95_vm0, %v6551_v4 }
 0x10a   :  { %5579 = vmatprep.mubr.msk.f32.mxu1 %vm95_vm0, %v6551_v4  ;;  %v4535_v4 = vld [vmem:[%s7683_s0 + $0x81] sm:$0xff] }
 0x10c   :  { %5524 = vmatmul.mubr.msk.f32.vlgmr.msra.gmra.mrb[0].mxu0 %vm95_vm0, %v6567_v9 }
 0x10d   :  { %5580 = vmatmul.mubr.msk.f32.vlgmr.msra.gmra.mrb[0].mxu1 %vm95_vm0, %v6567_v9  ;;  %5822 = vmatpush3.bf16.msra.mxu0 %v7046_v20  ;;  %v4536_v9 = vld [vmem:[%s7683_s0 + $0x91] sm:$0xff] }
 0x10e   :  { %5830 = vmatpush3.bf16.msra.mxu1 %v7050_v61  ;;  %5526 = vmatprep.mubr.msk.f32.mxu0 %vm95_vm0, %v6581_v12 }
 0x10f   :  { %5582 = vmatprep.mubr.msk.f32.mxu1 %vm95_vm0, %v6581_v12  ;;  %5824 = vmatprep.subr.bf16.mxu0 %v5823_v45  ;;  %v4537_v12 = vld [vmem:[%s7683_s0 + $0xa1] sm:$0xff] }
 0x110   :  { %5527 = vmatmul.mubr.msk.f32.gmra.mrb[2].mxu0 %vm95_vm0, %v6598_v15  ;;  %5832 = vmatprep.subr.bf16.mxu1 %v5831_v47 }
 0x111   :  { %5583 = vmatmul.mubr.msk.f32.gmra.mrb[2].mxu1 %vm95_vm0, %v6598_v15  ;;  %5529 = vmatprep.mubr.msk.f32.mxu0 %vm95_vm0, %v6605_v16  ;;  %v4538_v15 = vld [vmem:[%s7683_s0 + $0xb1] sm:$0xff] }
 0x112   :  { %5585 = vmatprep.mubr.msk.f32.mxu1 %vm95_vm0, %v6605_v16  ;;  %5826 = vmatpush3.bf16.msra.mxu0 %v5823_v45  ;;  %v4539_v16 = vld [vmem:[%s7683_s0 + $0xc1] sm:$0xff] }
 0x113   :  { %5834 = vmatpush3.bf16.msra.mxu1 %v5831_v47 }
 0x114   :  { %5530 = vmatmul.mubr.msk.f32.gmra.mrb[4].mxu0 %vm95_vm0, %v6618_v17 }
 0x115   :  { %5586 = vmatmul.mubr.msk.f32.gmra.mrb[4].mxu1 %vm95_vm0, %v6618_v17  ;;  %5532 = vmatprep.mubr.msk.f32.mxu0 %vm95_vm0, %v6625_v18  ;;  %v4540_v17 = vld [vmem:[%s7683_s0 + $0xd1] sm:$0xff] }
 0x116   :  { %5588 = vmatprep.mubr.msk.f32.mxu1 %vm95_vm0, %v6625_v18  ;;  %v4541_v18 = vld [vmem:[%s7683_s0 + $0xe1] sm:$0xff] }
 0x118   :  { %5533 = vmatmul.mubr.msk.f32.gmra.mrb[6].mxu0 %vm95_vm0, %v6636_v21 }
 0x119   :  { %5589 = vmatmul.mubr.msk.f32.gmra.mrb[6].mxu1 %vm95_vm0, %v6636_v21  ;;  %5535 = vmatprep.mubr.msk.f32.mxu0 %vm95_vm0, %v6643_v22  ;;  %v4542_v21 = vld [vmem:[%s7683_s0 + $0xf1] sm:$0xff] }
 0x11a   :  { %5591 = vmatprep.mubr.msk.f32.mxu1 %vm95_vm0, %v6643_v22  ;;  %v4544_v22 = vld [vmem:[%s7683_s0 + $0x111] sm:$0xff] }
 0x11c   :  { %5536 = vmatmul.mubr.msk.f32.gmra.mrb[8].mxu0 %vm95_vm0, %v6654_v23 }
 0x11d   :  { %5592 = vmatmul.mubr.msk.f32.gmra.mrb[8].mxu1 %vm95_vm0, %v6654_v23  ;;  %5538 = vmatprep.mubr.msk.f32.mxu0 %vm95_vm0, %v6661_v24  ;;  %v4545_v23 = vld [vmem:[%s7683_s0 + $0x141] sm:$0xff] }
 0x11e   :  { %5594 = vmatprep.mubr.msk.f32.mxu1 %vm95_vm0, %v6661_v24  ;;  %v4546_v24 = vld [vmem:[%s7683_s0 + $0x151] sm:$0xff] }
 0x120   :  { %5539 = vmatmul.mubr.msk.f32.gmra.mrb[10].mxu0 %vm95_vm0, %v6672_v25 }
 0x121   :  { %5595 = vmatmul.mubr.msk.f32.gmra.mrb[10].mxu1 %vm95_vm0, %v6672_v25  ;;  %5541 = vmatprep.mubr.msk.f32.mxu0 %vm95_vm0, %v6679_v27  ;;  %v4547_v25 = vld [vmem:[%s7683_s0 + $0x161] sm:$0xff] }
 0x122   :  { %5597 = vmatprep.mubr.msk.f32.mxu1 %vm95_vm0, %v6679_v27  ;;  %v4548_v27 = vld [vmem:[%s7683_s0 + $0x171] sm:$0xff] }
 0x124   :  { %5542 = vmatmul.mubr.msk.f32.gmra.mrb[12].mxu0 %vm95_vm0, %v6690_v31 }
 0x125   :  { %5598 = vmatmul.mubr.msk.f32.gmra.mrb[12].mxu1 %vm95_vm0, %v6690_v31  ;;  %5544 = vmatprep.mubr.msk.f32.mxu0 %vm95_vm0, %v6931_v56  ;;  %v4549_v31 = vld [vmem:[%s7683_s0 + $0x181] sm:$0xff] }
 0x126   :  { %5600 = vmatprep.mubr.msk.f32.mxu1 %vm95_vm0, %v6931_v56 }
 0x128   :  { %5545 = vmatmul.mubr.msk.f32.gmra.mrb[14].mxu0 %vm95_vm0, %v4440_v48 }
 0x129   :  { %5601 = vmatmul.mubr.msk.f32.gmra.mrb[14].mxu1 %vm95_vm0, %v4440_v48  ;;  %5547 = vmatprep.mubr.msk.f32.mxu0 %vm95_vm0, %v6711_v34 }
 0x12a   :  { %5603 = vmatprep.mubr.msk.f32.mxu1 %vm95_vm0, %v6711_v34  ;;  %v4550_v34 = vld [vmem:[%s7683_s0 + $0x191] sm:$0xff] }
 0x12c   :  { %5548 = vmatmul.mubr.msk.f32.gmra.mrb[16].mxu0 %vm95_vm0, %v6722_v35 }
 0x12d   :  { %5604 = vmatmul.mubr.msk.f32.gmra.mrb[16].mxu1 %vm95_vm0, %v6722_v35  ;;  %5550 = vmatprep.mubr.msk.f32.mxu0 %vm95_vm0, %v6729_v36  ;;  %v4551_v35 = vld [vmem:[%s7683_s0 + $0x1a1] sm:$0xff] }
 0x12e   :  { %5606 = vmatprep.mubr.msk.f32.mxu1 %vm95_vm0, %v6729_v36  ;;  %v4552_v36 = vld [vmem:[%s7683_s0 + $0x1b1] sm:$0xff] }
 0x130   :  { %5551 = vmatmul.mubr.msk.f32.gmra.mrb[18].mxu0 %vm95_vm0, %v6740_v46 }
 0x131   :  { %5607 = vmatmul.mubr.msk.f32.gmra.mrb[18].mxu1 %vm95_vm0, %v6740_v46  ;;  %5553 = vmatprep.mubr.msk.f32.mxu0 %vm95_vm0, %v6747_v62  ;;  %v4553_v46 = vld [vmem:[%s7683_s0 + $0x1c1] sm:$0xff] }
 0x132   :  { %5609 = vmatprep.mubr.msk.f32.mxu1 %vm95_vm0, %v6747_v62  ;;  %v4554_v62 = vld [vmem:[%s7683_s0 + $0x1d1] sm:$0xff] }
 0x134   :  { %5554 = vmatmul.mubr.msk.f32.gmra.mrb[20].mxu0 %vm95_vm0, %v6758_v63 }
 0x135   :  { %5610 = vmatmul.mubr.msk.f32.gmra.mrb[20].mxu1 %vm95_vm0, %v6758_v63  ;;  %5556 = vmatprep.mubr.msk.f32.mxu0 %vm95_vm0, %v6765_v0  ;;  %v4555_v63 = vld [vmem:[%s7683_s0 + $0x1e1] sm:$0xff] }
 0x136   :  { %5612 = vmatprep.mubr.msk.f32.mxu1 %vm95_vm0, %v6765_v0  ;;  %v4556_v0 = vld [vmem:[%s7683_s0 + $0x1f1] sm:$0xff] }
 0x138   :  { %5557 = vmatmul.mubr.msk.f32.gmra.mrb[22].mxu0 %vm95_vm0, %v6776_v2 }
 0x139   :  { %5613 = vmatmul.mubr.msk.f32.gmra.mrb[22].mxu1 %vm95_vm0, %v6776_v2  ;;  %5559 = vmatprep.mubr.msk.f32.mxu0 %vm95_vm0, %v6783_v3  ;;  %v4557_v2 = vld [vmem:[%s7683_s0 + $0x201] sm:$0xff] }
 0x13a   :  { %5615 = vmatprep.mubr.msk.f32.mxu1 %vm95_vm0, %v6783_v3  ;;  %v4558_v3 = vld [vmem:[%s7683_s0 + $0x211] sm:$0xff] }
 0x13c   :  { %5560 = vmatmul.mubr.msk.f32.gmra.mrb[24].mxu0 %vm95_vm0, %v6794_v5 }
 0x13d   :  { %5616 = vmatmul.mubr.msk.f32.gmra.mrb[24].mxu1 %vm95_vm0, %v6794_v5  ;;  %5562 = vmatprep.mubr.msk.f32.mxu0 %vm95_vm0, %v6801_v6  ;;  %v4560_v5 = vld [vmem:[%s7683_s0 + $0x231] sm:$0xff] }
 0x13e   :  { %5618 = vmatprep.mubr.msk.f32.mxu1 %vm95_vm0, %v6801_v6  ;;  %v7483_v6 = vld [vmem:[%s7684_s2] ss:$0 sm:$0xff] }
 0x140   :  { %5563 = vmatmul.mubr.msk.f32.gmra.mrb[26].mxu0 %vm95_vm0, %v6812_v7 }
 0x141   :  { %5619 = vmatmul.mubr.msk.f32.gmra.mrb[26].mxu1 %vm95_vm0, %v6812_v7  ;;  %5565 = vmatprep.mubr.msk.f32.mxu0 %vm95_vm0, %v6819_v8 }
 0x142   :  { %5621 = vmatprep.mubr.msk.f32.mxu1 %vm95_vm0, %v6819_v8  ;;  %v7488_v8 = vld [vmem:[%s7685_s3] ss:$0 sm:$0xff] }
 0x144   :  { %5566 = vmatmul.mubr.msk.f32.gmra.mrb[28].mxu0 %vm95_vm0, %v6830_v10 }
 0x145   :  { %5622 = vmatmul.mubr.msk.f32.gmra.mrb[28].mxu1 %vm95_vm0, %v6830_v10  ;;  %5568 = vmatprep.mubr.msk.f32.mxu0 %vm95_vm0, %v7000_v57 }
 0x146   :  { %5624 = vmatprep.mubr.msk.f32.mxu1 %vm95_vm0, %v7000_v57 }
 0x148   :  { %5569 = vmatmul.mubr.msk.f32.gmra.mrb[30].mxu0 %vm95_vm0, %v4456_v49 }
 0x149   :  { %5625 = vmatmul.mubr.msk.f32.gmra.mrb[30].mxu1 %vm95_vm0, %v4456_v49  ;;  %5635 = vmatprep.mubr.msk.f32.mxu0 %vm95_vm0, %v4529_v50 }
 0x14a   :  { %5691 = vmatprep.mubr.msk.f32.mxu1 %vm95_vm0, %v4529_v50 }
 0x14c   :  { %5636 = vmatmul.mubr.msk.f32.vlgmr.msra.gmra.mrb[0].mxu0 %vm95_vm0, %v4530_v51 }
 0x14d   :  { %5692 = vmatmul.mubr.msk.f32.vlgmr.msra.gmra.mrb[0].mxu1 %vm95_vm0, %v4530_v51  ;;  %5638 = vmatprep.mubr.msk.f32.mxu0 %vm95_vm0, %v4531_v52 }
 0x14e   :  { %5694 = vmatprep.mubr.msk.f32.mxu1 %vm95_vm0, %v4531_v52 }
 0x150   :  { %5639 = vmatmul.mubr.msk.f32.gmra.mrb[2].mxu0 %vm95_vm0, %v4532_v53 }
 0x151   :  { %5695 = vmatmul.mubr.msk.f32.gmra.mrb[2].mxu1 %vm95_vm0, %v4532_v53  ;;  %5641 = vmatprep.mubr.msk.f32.mxu0 %vm95_vm0, %v4533_v54 }
 0x152   :  { %5697 = vmatprep.mubr.msk.f32.mxu1 %vm95_vm0, %v4533_v54 }
 0x154   :  { %5642 = vmatmul.mubr.msk.f32.gmra.mrb[4].mxu0 %vm95_vm0, %v4534_v55 }
 0x155   :  { %5698 = vmatmul.mubr.msk.f32.gmra.mrb[4].mxu1 %vm95_vm0, %v4534_v55  ;;  %5644 = vmatprep.mubr.msk.f32.mxu0 %vm95_vm0, %v4535_v4 }
 0x156   :  { %5700 = vmatprep.mubr.msk.f32.mxu1 %vm95_vm0, %v4535_v4 }
 0x158   :  { %5645 = vmatmul.mubr.msk.f32.gmra.mrb[6].mxu0 %vm95_vm0, %v4536_v9 }
 0x159   :  { %5701 = vmatmul.mubr.msk.f32.gmra.mrb[6].mxu1 %vm95_vm0, %v4536_v9  ;;  %5647 = vmatprep.mubr.msk.f32.mxu0 %vm95_vm0, %v4537_v12 }
 0x15a   :  { %5703 = vmatprep.mubr.msk.f32.mxu1 %vm95_vm0, %v4537_v12 }
 0x15c   :  { %5648 = vmatmul.mubr.msk.f32.gmra.mrb[8].mxu0 %vm95_vm0, %v4538_v15 }
 0x15d   :  { %5704 = vmatmul.mubr.msk.f32.gmra.mrb[8].mxu1 %vm95_vm0, %v4538_v15  ;;  %5650 = vmatprep.mubr.msk.f32.mxu0 %vm95_vm0, %v4539_v16 }
 0x15e   :  { %5706 = vmatprep.mubr.msk.f32.mxu1 %vm95_vm0, %v4539_v16 }
 0x160   :  { %5651 = vmatmul.mubr.msk.f32.gmra.mrb[10].mxu0 %vm95_vm0, %v4540_v17 }
 0x161   :  { %5707 = vmatmul.mubr.msk.f32.gmra.mrb[10].mxu1 %vm95_vm0, %v4540_v17  ;;  %5653 = vmatprep.mubr.msk.f32.mxu0 %vm95_vm0, %v4541_v18 }
 0x162   :  { %5709 = vmatprep.mubr.msk.f32.mxu1 %vm95_vm0, %v4541_v18 }
 0x164   :  { %5654 = vmatmul.mubr.msk.f32.gmra.mrb[12].mxu0 %vm95_vm0, %v4542_v21 }
 0x165   :  { %5710 = vmatmul.mubr.msk.f32.gmra.mrb[12].mxu1 %vm95_vm0, %v4542_v21  ;;  %5656 = vmatprep.mubr.msk.f32.mxu0 %vm95_vm0, %v7101_v26 }
 0x166   :  { %5712 = vmatprep.mubr.msk.f32.mxu1 %vm95_vm0, %v7101_v26 }
 0x168   :  { %5657 = vmatmul.mubr.msk.f32.gmra.mrb[14].mxu0 %vm95_vm0, %v4544_v22 }
 0x169   :  { %5713 = vmatmul.mubr.msk.f32.gmra.mrb[14].mxu1 %vm95_vm0, %v4544_v22  ;;  %5659 = vmatprep.mubr.msk.f32.mxu0 %vm95_vm0, %v4545_v23 }
 0x16a   :  { %5715 = vmatprep.mubr.msk.f32.mxu1 %vm95_vm0, %v4545_v23 }
 0x16c   :  { %5660 = vmatmul.mubr.msk.f32.gmra.mrb[16].mxu0 %vm95_vm0, %v4546_v24 }
 0x16d   :  { %5716 = vmatmul.mubr.msk.f32.gmra.mrb[16].mxu1 %vm95_vm0, %v4546_v24  ;;  %5662 = vmatprep.mubr.msk.f32.mxu0 %vm95_vm0, %v4547_v25 }
 0x16e   :  { %5718 = vmatprep.mubr.msk.f32.mxu1 %vm95_vm0, %v4547_v25 }
 0x170   :  { %5663 = vmatmul.mubr.msk.f32.gmra.mrb[18].mxu0 %vm95_vm0, %v4548_v27 }
 0x171   :  { %5719 = vmatmul.mubr.msk.f32.gmra.mrb[18].mxu1 %vm95_vm0, %v4548_v27  ;;  %5665 = vmatprep.mubr.msk.f32.mxu0 %vm95_vm0, %v4549_v31 }
 0x172   :  { %5721 = vmatprep.mubr.msk.f32.mxu1 %vm95_vm0, %v4549_v31 }
 0x174   :  { %5666 = vmatmul.mubr.msk.f32.gmra.mrb[20].mxu0 %vm95_vm0, %v4550_v34 }
 0x175   :  { %5722 = vmatmul.mubr.msk.f32.gmra.mrb[20].mxu1 %vm95_vm0, %v4550_v34  ;;  %5668 = vmatprep.mubr.msk.f32.mxu0 %vm95_vm0, %v4551_v35 }
 0x176   :  { %5724 = vmatprep.mubr.msk.f32.mxu1 %vm95_vm0, %v4551_v35 }
 0x178   :  { %5669 = vmatmul.mubr.msk.f32.gmra.mrb[22].mxu0 %vm95_vm0, %v4552_v36 }
 0x179   :  { %5725 = vmatmul.mubr.msk.f32.gmra.mrb[22].mxu1 %vm95_vm0, %v4552_v36  ;;  %5671 = vmatprep.mubr.msk.f32.mxu0 %vm95_vm0, %v4553_v46 }
 0x17a   :  { %5727 = vmatprep.mubr.msk.f32.mxu1 %vm95_vm0, %v4553_v46 }
 0x17c   :  { %5672 = vmatmul.mubr.msk.f32.gmra.mrb[24].mxu0 %vm95_vm0, %v4554_v62 }
 0x17d   :  { %5728 = vmatmul.mubr.msk.f32.gmra.mrb[24].mxu1 %vm95_vm0, %v4554_v62  ;;  %5674 = vmatprep.mubr.msk.f32.mxu0 %vm95_vm0, %v4555_v63 }
 0x17e   :  { %5730 = vmatprep.mubr.msk.f32.mxu1 %vm95_vm0, %v4555_v63 }
 0x180   :  { %5675 = vmatmul.mubr.msk.f32.gmra.mrb[26].mxu0 %vm95_vm0, %v4556_v0 }
 0x181   :  { %5731 = vmatmul.mubr.msk.f32.gmra.mrb[26].mxu1 %vm95_vm0, %v4556_v0  ;;  %5677 = vmatprep.mubr.msk.f32.mxu0 %vm95_vm0, %v4557_v2 }
 0x182   :  { %5733 = vmatprep.mubr.msk.f32.mxu1 %vm95_vm0, %v4557_v2 }
 0x184   :  { %5678 = vmatmul.mubr.msk.f32.gmra.mrb[28].mxu0 %vm95_vm0, %v4558_v3 }
 0x185   :  { %5734 = vmatmul.mubr.msk.f32.gmra.mrb[28].mxu1 %vm95_vm0, %v4558_v3  ;;  %5680 = vmatprep.mubr.msk.f32.mxu0 %vm95_vm0, %v7170_v40 }
 0x186   :  { %5736 = vmatprep.mubr.msk.f32.mxu1 %vm95_vm0, %v7170_v40 }
 0x188   :  { %5681 = vmatmul.mubr.msk.f32.gmra.mrb[30].mxu0 %vm95_vm0, %v4560_v5 }
 0x189   :  { %5737 = vmatmul.mubr.msk.f32.gmra.mrb[30].mxu1 %vm95_vm0, %v4560_v5 }
 0x21f   :  { %v5637_v7 = vpop.f32.mrb[0].mxu0 }
 0x220   :  { %v3812_v10 = vmul.f32 %v5637_v7, %v7483_v6  ;;  %v5693_v13 = vpop.f32.mrb[0].mxu1  ;;  %v3350_v56 = vpop.f32.mrb[1].mxu0 }
 0x221   :  { %v3914_v57 = vmul.f32 %v5693_v13, %v7483_v6  ;;  %v3811_v59 = vmul.f32 %v7483_v6, %v3350_v56  ;;  %v3612_v14 = vpop.f32.mrb[1].mxu1 }
 0x222   :  { %v3850_v33 = vadd.f32 %v7488_v8, %v3812_v10  ;;  %v3913_v11 = vmul.f32 %v7483_v6, %v3612_v14 }
 0x223   :  { %v3946_v32 = vadd.f32 %v7488_v8, %v3914_v57  ;;  %v3849_v1 = vadd.f32 %v7488_v8, %v3811_v59  ;;  %v5640_v60 = vpop.f32.mrb[2].mxu0 }
 0x224   :  { %v3882_v19 = vmax.f32 %v3850_v33, 0.0  ;;  %v3945_v58 = vadd.f32 %v7488_v8, %v3913_v11  ;;  %v3814_v20 = vmul.f32 %v5640_v60, %v7483_v6  ;;  %v5696_v61 = vpop.f32.mrb[2].mxu1  ;;  %v3360_v26 = vpop.f32.mrb[3].mxu0 }
 0x225   :  { %v3978_v28 = vmax.f32 %v3946_v32, 0.0  ;;  %v3881_v29 = vmax.f32 %v3849_v1, 0.0  ;;  %v3916_v30 = vmul.f32 %v5696_v61, %v7483_v6  ;;  %v3813_v37 = vmul.f32 %v7483_v6, %v3360_v26  ;;  %v3622_v38 = vpop.f32.mrb[3].mxu1 }
 0x226   :  { %v3977_v39 = vmax.f32 %v3945_v58, 0.0  ;;  %v3852_v40 = vadd.f32 %v7488_v8, %v3814_v20  ;;  %v3915_v41 = vmul.f32 %v7483_v6, %v3622_v38 }
 0x227   :  { %v4010_v42 = vmax.f32 %v3882_v19, %v3978_v28  ;;  %v3948_v43 = vadd.f32 %v7488_v8, %v3916_v30  ;;  %v3851_v44 = vadd.f32 %v7488_v8, %v3813_v37  ;;  %v5643_v45 = vpop.f32.mrb[4].mxu0 }
 0x228   :  { %v4009_v47 = vmax.f32 %v3881_v29, %v3977_v39  ;;  %v3884_v48 = vmax.f32 %v3852_v40, 0.0  ;;  %v3947_v49 = vadd.f32 %v7488_v8, %v3915_v41  ;;  %v3816_v50 = vmul.f32 %v5643_v45, %v7483_v6  ;;  %v5699_v51 = vpop.f32.mrb[4].mxu1  ;;  %v3370_v52 = vpop.f32.mrb[5].mxu0 }
 0x229   :  { %v3980_v53 = vmax.f32 %v3948_v43, 0.0  ;;  %v3883_v54 = vmax.f32 %v3851_v44, 0.0  ;;  %v3918_v55 = vmul.f32 %v5699_v51, %v7483_v6  ;;  %v3815_v4 = vmul.f32 %v7483_v6, %v3370_v52  ;;  %v3632_v9 = vpop.f32.mrb[5].mxu1 }
 0x22a   :  { %v4041_v12 = vmax.f32 %v4009_v47, %v4010_v42  ;;  %v3979_v15 = vmax.f32 %v3947_v49, 0.0  ;;  %v3854_v16 = vadd.f32 %v7488_v8, %v3816_v50  ;;  %v3917_v17 = vmul.f32 %v7483_v6, %v3632_v9 }
 0x22b   :  { %v4012_v18 = vmax.f32 %v3884_v48, %v3980_v53  ;;  %v3950_v21 = vadd.f32 %v7488_v8, %v3918_v55  ;;  %v3853_v22 = vadd.f32 %v7488_v8, %v3815_v4  ;;  %v5646_v23 = vpop.f32.mrb[6].mxu0 }
 0x22c   :  { %4057 = vst.msk [vmem:[%s7686_s4] sm:$0xff] %vm95_vm0, %v4041_v12  ;;  %v4011_v24 = vmax.f32 %v3883_v54, %v3979_v15  ;;  %v3886_v25 = vmax.f32 %v3854_v16, 0.0  ;;  %v3949_v27 = vadd.f32 %v7488_v8, %v3917_v17  ;;  %v3818_v31 = vmul.f32 %v5646_v23, %v7483_v6  ;;  %v5702_v34 = vpop.f32.mrb[6].mxu1  ;;  %v3380_v35 = vpop.f32.mrb[7].mxu0 }
 0x22d   :  { %v3982_v36 = vmax.f32 %v3950_v21, 0.0  ;;  %v3885_v46 = vmax.f32 %v3853_v22, 0.0  ;;  %v3920_v62 = vmul.f32 %v5702_v34, %v7483_v6  ;;  %v3817_v63 = vmul.f32 %v7483_v6, %v3380_v35  ;;  %v3642_v0 = vpop.f32.mrb[7].mxu1 }
 0x22e   :  { %v4042_v2 = vmax.f32 %v4011_v24, %v4012_v18  ;;  %v3981_v3 = vmax.f32 %v3949_v27, 0.0  ;;  %v3856_v5 = vadd.f32 %v7488_v8, %v3818_v31  ;;  %v3919_v7 = vmul.f32 %v7483_v6, %v3642_v0 }
 0x22f   :  { %v4014_v10 = vmax.f32 %v3886_v25, %v3982_v36  ;;  %v3952_v13 = vadd.f32 %v7488_v8, %v3920_v62  ;;  %v3855_v56 = vadd.f32 %v7488_v8, %v3817_v63  ;;  %v5649_v57 = vpop.f32.mrb[8].mxu0 }
 0x230   :  { %4058 = vst.msk [vmem:[%s7686_s4 + $0x8] sm:$0xff] %vm95_vm0, %v4042_v2  ;;  %v4013_v59 = vmax.f32 %v3885_v46, %v3981_v3  ;;  %v3888_v14 = vmax.f32 %v3856_v5, 0.0  ;;  %v3951_v33 = vadd.f32 %v7488_v8, %v3919_v7  ;;  %v3820_v11 = vmul.f32 %v5649_v57, %v7483_v6  ;;  %v5705_v32 = vpop.f32.mrb[8].mxu1  ;;  %v3390_v1 = vpop.f32.mrb[9].mxu0 }
 0x231   :  { %v3984_v60 = vmax.f32 %v3952_v13, 0.0  ;;  %v3887_v19 = vmax.f32 %v3855_v56, 0.0  ;;  %v3922_v58 = vmul.f32 %v5705_v32, %v7483_v6  ;;  %v3819_v20 = vmul.f32 %v7483_v6, %v3390_v1  ;;  %v3652_v61 = vpop.f32.mrb[9].mxu1 }
 0x232   :  { %v4043_v26 = vmax.f32 %v4013_v59, %v4014_v10  ;;  %v3983_v28 = vmax.f32 %v3951_v33, 0.0  ;;  %v3858_v29 = vadd.f32 %v7488_v8, %v3820_v11  ;;  %v3921_v30 = vmul.f32 %v7483_v6, %v3652_v61 }
 0x233   :  { %v4016_v37 = vmax.f32 %v3888_v14, %v3984_v60  ;;  %v3954_v38 = vadd.f32 %v7488_v8, %v3922_v58  ;;  %v3857_v39 = vadd.f32 %v7488_v8, %v3819_v20  ;;  %v5652_v40 = vpop.f32.mrb[10].mxu0 }
 0x234   :  { %4059 = vst.msk [vmem:[%s7686_s4 + $0x10] sm:$0xff] %vm95_vm0, %v4043_v26  ;;  %v4015_v41 = vmax.f32 %v3887_v19, %v3983_v28  ;;  %v3890_v42 = vmax.f32 %v3858_v29, 0.0  ;;  %v3953_v43 = vadd.f32 %v7488_v8, %v3921_v30  ;;  %v3822_v44 = vmul.f32 %v5652_v40, %v7483_v6  ;;  %v5708_v45 = vpop.f32.mrb[10].mxu1  ;;  %v3400_v47 = vpop.f32.mrb[11].mxu0 }
 0x235   :  { %v3986_v48 = vmax.f32 %v3954_v38, 0.0  ;;  %v3889_v49 = vmax.f32 %v3857_v39, 0.0  ;;  %v3924_v50 = vmul.f32 %v5708_v45, %v7483_v6  ;;  %v3821_v51 = vmul.f32 %v7483_v6, %v3400_v47  ;;  %v3662_v52 = vpop.f32.mrb[11].mxu1 }
 0x236   :  { %v4044_v53 = vmax.f32 %v4015_v41, %v4016_v37  ;;  %v3985_v54 = vmax.f32 %v3953_v43, 0.0  ;;  %v3860_v55 = vadd.f32 %v7488_v8, %v3822_v44  ;;  %v3923_v4 = vmul.f32 %v7483_v6, %v3662_v52 }
 0x237   :  { %v4018_v9 = vmax.f32 %v3890_v42, %v3986_v48  ;;  %v3956_v12 = vadd.f32 %v7488_v8, %v3924_v50  ;;  %v3859_v15 = vadd.f32 %v7488_v8, %v3821_v51  ;;  %v5655_v16 = vpop.f32.mrb[12].mxu0 }
 0x238   :  { %4060 = vst.msk [vmem:[%s7686_s4 + $0x18] sm:$0xff] %vm95_vm0, %v4044_v53  ;;  %v4017_v17 = vmax.f32 %v3889_v49, %v3985_v54  ;;  %v3892_v18 = vmax.f32 %v3860_v55, 0.0  ;;  %v3955_v21 = vadd.f32 %v7488_v8, %v3923_v4  ;;  %v3824_v22 = vmul.f32 %v5655_v16, %v7483_v6  ;;  %v5711_v23 = vpop.f32.mrb[12].mxu1  ;;  %v3410_v24 = vpop.f32.mrb[13].mxu0 }
 0x239   :  { %v3988_v25 = vmax.f32 %v3956_v12, 0.0  ;;  %v3891_v27 = vmax.f32 %v3859_v15, 0.0  ;;  %v3926_v31 = vmul.f32 %v5711_v23, %v7483_v6  ;;  %v3823_v34 = vmul.f32 %v7483_v6, %v3410_v24  ;;  %v3672_v35 = vpop.f32.mrb[13].mxu1 }
 0x23a   :  { %v4045_v36 = vmax.f32 %v4017_v17, %v4018_v9  ;;  %v3987_v46 = vmax.f32 %v3955_v21, 0.0  ;;  %v3862_v62 = vadd.f32 %v7488_v8, %v3824_v22  ;;  %v3925_v63 = vmul.f32 %v7483_v6, %v3672_v35 }
 0x23b   :  { %v4020_v0 = vmax.f32 %v3892_v18, %v3988_v25  ;;  %v3958_v2 = vadd.f32 %v7488_v8, %v3926_v31  ;;  %v3861_v3 = vadd.f32 %v7488_v8, %v3823_v34  ;;  %v5658_v5 = vpop.f32.mrb[14].mxu0 }
 0x23c   :  { %4061 = vst.msk [vmem:[%s7686_s4 + $0x20] sm:$0xff] %vm95_vm0, %v4045_v36  ;;  %v4019_v7 = vmax.f32 %v3891_v27, %v3987_v46  ;;  %v3894_v10 = vmax.f32 %v3862_v62, 0.0  ;;  %v3957_v13 = vadd.f32 %v7488_v8, %v3925_v63  ;;  %v3826_v56 = vmul.f32 %v5658_v5, %v7483_v6  ;;  %v5714_v57 = vpop.f32.mrb[14].mxu1  ;;  %v3420_v59 = vpop.f32.mrb[15].mxu0 }
 0x23d   :  { %v3990_v14 = vmax.f32 %v3958_v2, 0.0  ;;  %v3893_v33 = vmax.f32 %v3861_v3, 0.0  ;;  %v3928_v11 = vmul.f32 %v5714_v57, %v7483_v6  ;;  %v3825_v32 = vmul.f32 %v7483_v6, %v3420_v59  ;;  %v3682_v1 = vpop.f32.mrb[15].mxu1 }
 0x23e   :  { %v4046_v60 = vmax.f32 %v4019_v7, %v4020_v0  ;;  %v3989_v19 = vmax.f32 %v3957_v13, 0.0  ;;  %v3864_v58 = vadd.f32 %v7488_v8, %v3826_v56  ;;  %v3927_v20 = vmul.f32 %v7483_v6, %v3682_v1 }
 0x23f   :  { %v4022_v61 = vmax.f32 %v3894_v10, %v3990_v14  ;;  %v3960_v26 = vadd.f32 %v7488_v8, %v3928_v11  ;;  %v3863_v28 = vadd.f32 %v7488_v8, %v3825_v32  ;;  %v5661_v29 = vpop.f32.mrb[16].mxu0 }
 0x240   :  { %4062 = vst.msk [vmem:[%s7686_s4 + $0x28] sm:$0xff] %vm95_vm0, %v4046_v60  ;;  %v4021_v30 = vmax.f32 %v3893_v33, %v3989_v19  ;;  %v3896_v37 = vmax.f32 %v3864_v58, 0.0  ;;  %v3959_v38 = vadd.f32 %v7488_v8, %v3927_v20  ;;  %v3828_v39 = vmul.f32 %v5661_v29, %v7483_v6  ;;  %v5717_v40 = vpop.f32.mrb[16].mxu1  ;;  %v3430_v41 = vpop.f32.mrb[17].mxu0 }
 0x241   :  { %v3992_v42 = vmax.f32 %v3960_v26, 0.0  ;;  %v3895_v43 = vmax.f32 %v3863_v28, 0.0  ;;  %v3930_v44 = vmul.f32 %v5717_v40, %v7483_v6  ;;  %v3827_v45 = vmul.f32 %v7483_v6, %v3430_v41  ;;  %v3692_v47 = vpop.f32.mrb[17].mxu1 }
 0x242   :  { %v4047_v48 = vmax.f32 %v4021_v30, %v4022_v61  ;;  %v3991_v49 = vmax.f32 %v3959_v38, 0.0  ;;  %v3866_v50 = vadd.f32 %v7488_v8, %v3828_v39  ;;  %v3929_v51 = vmul.f32 %v7483_v6, %v3692_v47 }
 0x243   :  { %v4024_v52 = vmax.f32 %v3896_v37, %v3992_v42  ;;  %v3962_v53 = vadd.f32 %v7488_v8, %v3930_v44  ;;  %v3865_v54 = vadd.f32 %v7488_v8, %v3827_v45  ;;  %v5664_v55 = vpop.f32.mrb[18].mxu0 }
 0x244   :  { %4063 = vst.msk [vmem:[%s7686_s4 + $0x30] sm:$0xff] %vm95_vm0, %v4047_v48  ;;  %v4023_v4 = vmax.f32 %v3895_v43, %v3991_v49  ;;  %v3898_v9 = vmax.f32 %v3866_v50, 0.0  ;;  %v3961_v12 = vadd.f32 %v7488_v8, %v3929_v51  ;;  %v3830_v15 = vmul.f32 %v5664_v55, %v7483_v6  ;;  %v5720_v16 = vpop.f32.mrb[18].mxu1  ;;  %v3440_v17 = vpop.f32.mrb[19].mxu0 }
 0x245   :  { %v3994_v18 = vmax.f32 %v3962_v53, 0.0  ;;  %v3897_v21 = vmax.f32 %v3865_v54, 0.0  ;;  %v3932_v22 = vmul.f32 %v5720_v16, %v7483_v6  ;;  %v3829_v23 = vmul.f32 %v7483_v6, %v3440_v17  ;;  %v3702_v24 = vpop.f32.mrb[19].mxu1 }
 0x246   :  { %v4048_v25 = vmax.f32 %v4023_v4, %v4024_v52  ;;  %v3993_v27 = vmax.f32 %v3961_v12, 0.0  ;;  %v3868_v31 = vadd.f32 %v7488_v8, %v3830_v15  ;;  %v3931_v34 = vmul.f32 %v7483_v6, %v3702_v24 }
 0x247   :  { %v4026_v35 = vmax.f32 %v3898_v9, %v3994_v18  ;;  %v3964_v36 = vadd.f32 %v7488_v8, %v3932_v22  ;;  %v3867_v46 = vadd.f32 %v7488_v8, %v3829_v23  ;;  %v5667_v62 = vpop.f32.mrb[20].mxu0 }
 0x248   :  { %4064 = vst.msk [vmem:[%s7686_s4 + $0x38] sm:$0xff] %vm95_vm0, %v4048_v25  ;;  %v4025_v63 = vmax.f32 %v3897_v21, %v3993_v27  ;;  %v3900_v0 = vmax.f32 %v3868_v31, 0.0  ;;  %v3963_v2 = vadd.f32 %v7488_v8, %v3931_v34  ;;  %v3832_v3 = vmul.f32 %v5667_v62, %v7483_v6  ;;  %v5723_v5 = vpop.f32.mrb[20].mxu1  ;;  %v3450_v7 = vpop.f32.mrb[21].mxu0 }
 0x249   :  { %v3996_v10 = vmax.f32 %v3964_v36, 0.0  ;;  %v3899_v13 = vmax.f32 %v3867_v46, 0.0  ;;  %v3934_v56 = vmul.f32 %v5723_v5, %v7483_v6  ;;  %v3831_v57 = vmul.f32 %v7483_v6, %v3450_v7  ;;  %v3712_v59 = vpop.f32.mrb[21].mxu1 }
 0x24a   :  { %v4049_v14 = vmax.f32 %v4025_v63, %v4026_v35  ;;  %v3995_v33 = vmax.f32 %v3963_v2, 0.0  ;;  %v3870_v11 = vadd.f32 %v7488_v8, %v3832_v3  ;;  %v3933_v32 = vmul.f32 %v7483_v6, %v3712_v59 }
 0x24b   :  { %v4028_v1 = vmax.f32 %v3900_v0, %v3996_v10  ;;  %v3966_v60 = vadd.f32 %v7488_v8, %v3934_v56  ;;  %v3869_v19 = vadd.f32 %v7488_v8, %v3831_v57  ;;  %v5670_v58 = vpop.f32.mrb[22].mxu0 }
 0x24c   :  { %4065 = vst.msk [vmem:[%s7686_s4 + $0x40] sm:$0xff] %vm95_vm0, %v4049_v14  ;;  %v4027_v20 = vmax.f32 %v3899_v13, %v3995_v33  ;;  %v3902_v61 = vmax.f32 %v3870_v11, 0.0  ;;  %v3965_v26 = vadd.f32 %v7488_v8, %v3933_v32  ;;  %v3834_v28 = vmul.f32 %v5670_v58, %v7483_v6  ;;  %v5726_v29 = vpop.f32.mrb[22].mxu1  ;;  %v3460_v30 = vpop.f32.mrb[23].mxu0 }
 0x24d   :  { %v3998_v37 = vmax.f32 %v3966_v60, 0.0  ;;  %v3901_v38 = vmax.f32 %v3869_v19, 0.0  ;;  %v3936_v39 = vmul.f32 %v5726_v29, %v7483_v6  ;;  %v3833_v40 = vmul.f32 %v7483_v6, %v3460_v30  ;;  %v3722_v41 = vpop.f32.mrb[23].mxu1 }
 0x24e   :  { %v4050_v42 = vmax.f32 %v4027_v20, %v4028_v1  ;;  %v3997_v43 = vmax.f32 %v3965_v26, 0.0  ;;  %v3872_v44 = vadd.f32 %v7488_v8, %v3834_v28  ;;  %v3935_v45 = vmul.f32 %v7483_v6, %v3722_v41 }
 0x24f   :  { %v4030_v47 = vmax.f32 %v3902_v61, %v3998_v37  ;;  %v3968_v48 = vadd.f32 %v7488_v8, %v3936_v39  ;;  %v3871_v49 = vadd.f32 %v7488_v8, %v3833_v40  ;;  %v5673_v50 = vpop.f32.mrb[24].mxu0 }
 0x250   :  { %4066 = vst.msk [vmem:[%s7686_s4 + $0x48] sm:$0xff] %vm95_vm0, %v4050_v42  ;;  %v4029_v51 = vmax.f32 %v3901_v38, %v3997_v43  ;;  %v3904_v52 = vmax.f32 %v3872_v44, 0.0  ;;  %v3967_v53 = vadd.f32 %v7488_v8, %v3935_v45  ;;  %v3836_v54 = vmul.f32 %v5673_v50, %v7483_v6  ;;  %v5729_v55 = vpop.f32.mrb[24].mxu1  ;;  %v3470_v4 = vpop.f32.mrb[25].mxu0 }
 0x251   :  { %v4000_v9 = vmax.f32 %v3968_v48, 0.0  ;;  %v3903_v12 = vmax.f32 %v3871_v49, 0.0  ;;  %v3938_v15 = vmul.f32 %v5729_v55, %v7483_v6  ;;  %v3835_v16 = vmul.f32 %v7483_v6, %v3470_v4  ;;  %v3732_v17 = vpop.f32.mrb[25].mxu1 }
 0x252   :  { %v4051_v18 = vmax.f32 %v4029_v51, %v4030_v47  ;;  %v3999_v21 = vmax.f32 %v3967_v53, 0.0  ;;  %v3874_v22 = vadd.f32 %v7488_v8, %v3836_v54  ;;  %v3937_v23 = vmul.f32 %v7483_v6, %v3732_v17 }
 0x253   :  { %v4032_v24 = vmax.f32 %v3904_v52, %v4000_v9  ;;  %v3970_v25 = vadd.f32 %v7488_v8, %v3938_v15  ;;  %v3873_v27 = vadd.f32 %v7488_v8, %v3835_v16  ;;  %v5676_v31 = vpop.f32.mrb[26].mxu0 }
 0x254   :  { %4067 = vst.msk [vmem:[%s7686_s4 + $0x50] sm:$0xff] %vm95_vm0, %v4051_v18  ;;  %v4031_v34 = vmax.f32 %v3903_v12, %v3999_v21  ;;  %v3906_v35 = vmax.f32 %v3874_v22, 0.0  ;;  %v3969_v36 = vadd.f32 %v7488_v8, %v3937_v23  ;;  %v3838_v46 = vmul.f32 %v5676_v31, %v7483_v6  ;;  %v5732_v62 = vpop.f32.mrb[26].mxu1  ;;  %v3480_v63 = vpop.f32.mrb[27].mxu0 }
 0x255   :  { %v4002_v0 = vmax.f32 %v3970_v25, 0.0  ;;  %v3905_v2 = vmax.f32 %v3873_v27, 0.0  ;;  %v3940_v3 = vmul.f32 %v5732_v62, %v7483_v6  ;;  %v3837_v5 = vmul.f32 %v7483_v6, %v3480_v63  ;;  %v3742_v7 = vpop.f32.mrb[27].mxu1 }
 0x256   :  { %v4052_v10 = vmax.f32 %v4031_v34, %v4032_v24  ;;  %v4001_v13 = vmax.f32 %v3969_v36, 0.0  ;;  %v3876_v56 = vadd.f32 %v7488_v8, %v3838_v46  ;;  %v3939_v57 = vmul.f32 %v7483_v6, %v3742_v7 }
 0x257   :  { %v4034_v59 = vmax.f32 %v3906_v35, %v4002_v0  ;;  %v3972_v14 = vadd.f32 %v7488_v8, %v3940_v3  ;;  %v3875_v33 = vadd.f32 %v7488_v8, %v3837_v5  ;;  %v5679_v11 = vpop.f32.mrb[28].mxu0 }
 0x258   :  { %4068 = vst.msk [vmem:[%s7686_s4 + $0x58] sm:$0xff] %vm95_vm0, %v4052_v10  ;;  %v4033_v32 = vmax.f32 %v3905_v2, %v4001_v13  ;;  %v3908_v1 = vmax.f32 %v3876_v56, 0.0  ;;  %v3971_v60 = vadd.f32 %v7488_v8, %v3939_v57  ;;  %v3840_v19 = vmul.f32 %v5679_v11, %v7483_v6  ;;  %v5735_v58 = vpop.f32.mrb[28].mxu1  ;;  %v3490_v20 = vpop.f32.mrb[29].mxu0 }
 0x259   :  { %v4004_v61 = vmax.f32 %v3972_v14, 0.0  ;;  %v3907_v26 = vmax.f32 %v3875_v33, 0.0  ;;  %v3942_v28 = vmul.f32 %v5735_v58, %v7483_v6  ;;  %v3839_v29 = vmul.f32 %v7483_v6, %v3490_v20  ;;  %v3752_v30 = vpop.f32.mrb[29].mxu1 }
 0x25a   :  { %v4053_v37 = vmax.f32 %v4033_v32, %v4034_v59  ;;  %v4003_v38 = vmax.f32 %v3971_v60, 0.0  ;;  %v3878_v39 = vadd.f32 %v7488_v8, %v3840_v19  ;;  %v3941_v40 = vmul.f32 %v7483_v6, %v3752_v30 }
 0x25b   :  { %v4036_v41 = vmax.f32 %v3908_v1, %v4004_v61  ;;  %v3974_v42 = vadd.f32 %v7488_v8, %v3942_v28  ;;  %v3877_v43 = vadd.f32 %v7488_v8, %v3839_v29  ;;  %v5682_v44 = vpop.f32.mrb[30].mxu0 }
 0x25c   :  { %4069 = vst.msk [vmem:[%s7686_s4 + $0x60] sm:$0xff] %vm95_vm0, %v4053_v37  ;;  %v4035_v45 = vmax.f32 %v3907_v26, %v4003_v38  ;;  %v3910_v47 = vmax.f32 %v3878_v39, 0.0  ;;  %v3973_v48 = vadd.f32 %v7488_v8, %v3941_v40  ;;  %v3842_v49 = vmul.f32 %v5682_v44, %v7483_v6  ;;  %v5738_v50 = vpop.f32.mrb[30].mxu1  ;;  %v3500_v51 = vpop.f32.mrb[31].mxu0 }
 0x25d   :  { %v4006_v52 = vmax.f32 %v3974_v42, 0.0  ;;  %v3909_v53 = vmax.f32 %v3877_v43, 0.0  ;;  %v3944_v54 = vmul.f32 %v5738_v50, %v7483_v6  ;;  %v3841_v55 = vmul.f32 %v7483_v6, %v3500_v51  ;;  %v3762_v4 = vpop.f32.mrb[31].mxu1 }
 0x25e   :  { %v4054_v9 = vmax.f32 %v4035_v45, %v4036_v41  ;;  %v4005_v12 = vmax.f32 %v3973_v48, 0.0  ;;  %v3880_v15 = vadd.f32 %v7488_v8, %v3842_v49  ;;  %v3943_v16 = vmul.f32 %v7483_v6, %v3762_v4 }
 0x25f   :  { %v4038_v17 = vmax.f32 %v3910_v47, %v4006_v52  ;;  %v3976_v18 = vadd.f32 %v7488_v8, %v3944_v54  ;;  %v3879_v21 = vadd.f32 %v7488_v8, %v3841_v55 }
 0x260   :  { %4070 = vst.msk [vmem:[%s7686_s4 + $0x68] sm:$0xff] %vm95_vm0, %v4054_v9  ;;  %v4037_v22 = vmax.f32 %v3909_v53, %v4005_v12  ;;  %v3912_v23 = vmax.f32 %v3880_v15, 0.0  ;;  %v3975_v24 = vadd.f32 %v7488_v8, %v3943_v16 }
 0x261   :  { %v4008_v25 = vmax.f32 %v3976_v18, 0.0  ;;  %v3911_v27 = vmax.f32 %v3879_v21, 0.0 }
 0x262   :  { %v4055_v31 = vmax.f32 %v4037_v22, %v4038_v17  ;;  %v4007_v34 = vmax.f32 %v3975_v24, 0.0 }
 0x263   :  { %v4040_v35 = vmax.f32 %v3912_v23, %v4008_v25 }
 0x264   :  { %4071 = vst.msk [vmem:[%s7686_s4 + $0x70] sm:$0xff] %vm95_vm0, %v4055_v31  ;;  %v4039_v6 = vmax.f32 %v3911_v27, %v4007_v34 }
 0x266   :  { %v4056_v36 = vmax.f32 %v4039_v6, %v4040_v35 }
 0x268   :  { %4072 = vst.msk [vmem:[%s7686_s4 + $0x78] sm:$0xff] %vm95_vm0, %v4056_v36 }

// kernel: custom_cnn_forward.4
= control target key start
LH: loop header
LB: loop body
LE: loop exit
PB: predicated region body
PF: predicated region fallthrough
CT: control target
= control target key end

     0   :  { %9 = vsyncpa [#allocation3], 0  ;;  %s26123_s0 = inlined_call_operand.vmem [shape: f32[2,34,17,6], index: 0, kind: input, shape index: {}]   ;;  %s26124_s1 = inlined_call_operand.vmem [shape: f32[2,6,6,16], index: 1, kind: input, shape index: {}]   ;;  %s26125_s2 = inlined_call_operand.hbm [shape: f32[1,16], index: 2, kind: input, shape index: {}]   ;;  %s26126_s3 = inlined_call_operand.hbm [shape: f32[1,16], index: 3, kind: input, shape index: {}]   ;;  %s26127_s4 = inlined_call_operand.vmem [shape: f32[2,16,16,16], index: 4, kind: output, shape index: {}]  }
   0x1   :  { %10 = vsyncpa [#allocation5], 0  ;;  %s20988_s15 = smov [#allocation2]   ;;  %s20989_s17 = smov [#allocation4]  }
   0x2   :  { %s21_s16 = sshll.u32 %s20988_s15, 4  ;;  %s31_s18 = sshll.u32 %s20989_s17, 4  ;;  %s22_s16 = int_to_ptr.vmem [resolvable:$true] %s21_s16  ;;  %s32_s18 = int_to_ptr.vmem [resolvable:$true] %s31_s18 }
   0x3   :  { %s20940_s21 = scalar_lea.hbm %s26125_s2, 16 }
   0x4   :  { %p20941_p0 = scmp.ne.s32.totalorder %s26125_s2, %s20940_s21  ;;  %p20944_p1 = scmp.lt.u32.totalorder %s20940_s21, %s26125_s2 }
   0x6   :  { %p20946_p2 = pnand %p20944_p1, %p20941_p0 }
   0x8   :  { %20949 = shalt.err (!%p20946_p2)
}
   0x9   :  { %s20950_s26 = scalar_lea.vmem %s22_s16, 16  ;;  %s20954_s27 = scalar_lea.vmem %s22_s16, 32 }
   0xa   :  { %p20951_p3 = scmp.ne.s32.totalorder %s22_s16, %s20950_s26  ;;  %p20955_p4 = scmp.lt.s32.totalorder %s22_s16, %s22_s16 }
   0xb   :  { %p20956_p5 = scmp.lt.s32.totalorder %s20954_s27, %s20950_s26 }
   0xd   :  { %p20957_p6 = por %p20956_p5, %p20955_p4 }
   0xf   :  { %p20958_p7 = pnand %p20957_p6, %p20951_p3 }
  0x11   :  { %20961 = shalt.err (!%p20958_p7)
}
  0x12   :  { %24 = dma.hbm_to_vmem [thread:$0]  %s26125_s2, 16, %s22_s16, [#allocation3]  }
  0x13   :  { %s20962_s6 = scalar_lea.hbm %s26126_s3, 16 }
  0x14   :  { %p20963_p8 = scmp.ne.s32.totalorder %s26126_s3, %s20962_s6  ;;  %p20966_p9 = scmp.lt.u32.totalorder %s20962_s6, %s26126_s3 }
  0x16   :  { %p20968_p10 = pnand %p20966_p9, %p20963_p8 }
  0x18   :  { %20971 = shalt.err (!%p20968_p10)
}
  0x19   :  { %s20972_s11 = scalar_lea.vmem %s32_s18, 16  ;;  %s20976_s12 = scalar_lea.vmem %s32_s18, 32 }
  0x1a   :  { %p20973_p11 = scmp.ne.s32.totalorder %s32_s18, %s20972_s11  ;;  %p20977_p12 = scmp.lt.s32.totalorder %s32_s18, %s32_s18 }
  0x1b   :  { %p20978_p13 = scmp.lt.s32.totalorder %s20976_s12, %s20972_s11 }
  0x1d   :  { %p20979_p0 = por %p20978_p13, %p20977_p12 }
  0x1f   :  { %p20980_p1 = pnand %p20979_p0, %p20973_p11 }
  0x21   :  { %20983 = shalt.err (!%p20980_p1)
}
  0x22   :  { %34 = dma.hbm_to_vmem [thread:$0]  %s26126_s3, 16, %s32_s18, [#allocation5]  }
  0x23   :  { %20984 = dma.done.wait [#allocation3], 16  }
  0x24   :  { %20985 = vsyncadd [#allocation3], 4294967280 }
  0x25   :  { %20986 = dma.done.wait [#allocation5], 16  }
  0x26   :  { %20987 = vsyncadd [#allocation5], 4294967280  ;;  %vm687_vm0 = vcmask 1045504   ;;  %vm302_vm1 = vcmask 48128   ;;  %v13706_v0 = vld [vmem:[%s26124_s1 + $0x8] sm:$0x3f] }
  0x27   :  { %v13965_v1 = vld [vmem:[%s26124_s1 + $0x38] sm:$0x3f]  ;;  %v172_v2 = vld [vmem:[%s26123_s0 + $0x1] sm:$0xff]  ;;  %17326 = vmatprep.subr.msk.mxu0 %vm687_vm0, %v13706_v0  ;;  %v173_v3 = vld [vmem:[%s26123_s0 + $0x9] sm:$0xff]  ;;  %vm13634_vm2 = vcmask 130048  }
  0x28   :  { %17714 = vmatprep.subr.msk.mxu1 %vm687_vm0, %v13965_v1  ;;  %v169_v4 = vld [vmem:[%s26124_s1] sm:$0x3f]  ;;  %17327 = vmatpush3.msk.msra.mxu0 %vm687_vm0, %v13706_v0  ;;  %v13705_v5 = vld [vmem:[%s26124_s1 + $0x30] sm:$0x3f] }
  0x29   :  { %17328 = vmatprep.mubr.msk.f32.mxu0 %vm302_vm1, %v172_v2  ;;  %17715 = vmatpush3.msk.msra.mxu1 %vm687_vm0, %v13965_v1  ;;  %v174_v6 = vld [vmem:[%s26123_s0 + $0x19] sm:$0xff]  ;;  %v175_v7 = vld [vmem:[%s26123_s0 + $0x21] sm:$0xff]  ;;  %v176_v8 = vld [vmem:[%s26123_s0 + $0x31] sm:$0xff] }
  0x2a   :  { %17716 = vmatprep.mubr.msk.f32.mxu1 %vm302_vm1, %v172_v2  ;;  %17329 = vmatmul.mubr.msk.f32.vlgmr.msra.gmra.mrb[0].mxu0 %vm302_vm1, %v173_v3  ;;  %v177_v9 = vld [vmem:[%s26123_s0 + $0x39] sm:$0xff]  ;;  %v178_v10 = vld [vmem:[%s26123_s0 + $0x49] sm:$0xff]  ;;  %v179_v11 = vld [vmem:[%s26123_s0 + $0x51] sm:$0xff] }
  0x2b   :  { %17520 = vmatprep.subr.msk.mxu0 %vm687_vm0, %v169_v4  ;;  %17717 = vmatmul.mubr.msk.f32.vlgmr.msra.gmra.mrb[0].mxu1 %vm302_vm1, %v173_v3  ;;  %v180_v12 = vld [vmem:[%s26123_s0 + $0x61] sm:$0xff]  ;;  %v181_v13 = vld [vmem:[%s26123_s0 + $0x69] sm:$0xff]  ;;  %v182_v14 = vld [vmem:[%s26123_s0 + $0x79] sm:$0xff] }
  0x2c   :  { %17908 = vmatprep.subr.msk.mxu1 %vm687_vm0, %v13705_v5  ;;  %17521 = vmatpush3.msk.msra.mxu0 %vm687_vm0, %v169_v4  ;;  %v183_v15 = vld [vmem:[%s26123_s0 + $0x81] sm:$0xff]  ;;  %v184_v16 = vld [vmem:[%s26123_s0 + $0x91] sm:$0xff]  ;;  %v185_v17 = vld [vmem:[%s26123_s0 + $0x99] sm:$0xff] }
  0x2d   :  { %17909 = vmatpush3.msk.msra.mxu1 %vm687_vm0, %v13705_v5  ;;  %17331 = vmatprep.mubr.msk.f32.mxu0 %vm302_vm1, %v174_v6  ;;  %v186_v18 = vld [vmem:[%s26123_s0 + $0xa9] sm:$0xff]  ;;  %v187_v19 = vld [vmem:[%s26123_s0 + $0xb1] sm:$0xff]  ;;  %v188_v20 = vld [vmem:[%s26123_s0 + $0xc1] sm:$0xff] }
  0x2e   :  { %17719 = vmatprep.mubr.msk.f32.mxu1 %vm302_vm1, %v174_v6  ;;  %17332 = vmatmul.mubr.msk.f32.gmra.mrb[2].mxu0 %vm302_vm1, %v175_v7  ;;  %v189_v21 = vld [vmem:[%s26123_s0 + $0xc9] sm:$0xff]  ;;  %v190_v22 = vld [vmem:[%s26123_s0 + $0xd9] sm:$0xff]  ;;  %v191_v23 = vld [vmem:[%s26123_s0 + $0xe1] sm:$0xff] }
  0x2f   :  { %17720 = vmatmul.mubr.msk.f32.gmra.mrb[2].mxu1 %vm302_vm1, %v175_v7  ;;  %17334 = vmatprep.mubr.msk.f32.mxu0 %vm302_vm1, %v176_v8  ;;  %v192_v24 = vld [vmem:[%s26123_s0 + $0xf1] sm:$0xff]  ;;  %v193_v25 = vld [vmem:[%s26123_s0 + $0xf9] sm:$0xff]  ;;  %v194_v26 = vld [vmem:[%s26123_s0 + $0x109] sm:$0xff] }
  0x30   :  { %17722 = vmatprep.mubr.msk.f32.mxu1 %vm302_vm1, %v176_v8  ;;  %v195_v27 = vld [vmem:[%s26123_s0 + $0x111] sm:$0xff]  ;;  %v196_v28 = vld [vmem:[%s26123_s0 + $0x121] sm:$0xff]  ;;  %v197_v29 = vld [vmem:[%s26123_s0 + $0x129] sm:$0xff] }
  0x31   :  { %v198_v30 = vld [vmem:[%s26123_s0 + $0x139] sm:$0xff]  ;;  %v199_v31 = vld [vmem:[%s26123_s0 + $0x141] sm:$0xff]  ;;  %v200_v32 = vld [vmem:[%s26123_s0 + $0x151] sm:$0xff] }
  0x32   :  { %17335 = vmatmul.mubr.msk.f32.gmra.mrb[4].mxu0 %vm302_vm1, %v177_v9  ;;  %v201_v33 = vld [vmem:[%s26123_s0 + $0x159] sm:$0xff]  ;;  %v202_v34 = vld [vmem:[%s26123_s0 + $0x169] sm:$0xff]  ;;  %v203_v35 = vld [vmem:[%s26123_s0 + $0x171] sm:$0xff] }
  0x33   :  { %17723 = vmatmul.mubr.msk.f32.gmra.mrb[4].mxu1 %vm302_vm1, %v177_v9  ;;  %17337 = vmatprep.mubr.msk.f32.mxu0 %vm302_vm1, %v178_v10  ;;  %v204_v36 = vld [vmem:[%s26123_s0 + $0x181] sm:$0xff]  ;;  %v205_v37 = vld [vmem:[%s26123_s0 + $0x189] sm:$0xff]  ;;  %v206_v38 = vld [vmem:[%s26123_s0 + $0x199] sm:$0xff] }
  0x34   :  { %17725 = vmatprep.mubr.msk.f32.mxu1 %vm302_vm1, %v178_v10  ;;  %v207_v39 = vld [vmem:[%s26123_s0 + $0x1a1] sm:$0xff]  ;;  %v208_v40 = vld [vmem:[%s26123_s0 + $0x1b1] sm:$0xff]  ;;  %v209_v41 = vld [vmem:[%s26123_s0 + $0x1b9] sm:$0xff] }
  0x35   :  { %v210_v42 = vld [vmem:[%s26123_s0 + $0x1c9] sm:$0xff]  ;;  %v211_v43 = vld [vmem:[%s26123_s0 + $0x1d1] sm:$0xff]  ;;  %v212_v44 = vld [vmem:[%s26123_s0 + $0x1e1] sm:$0xff] }
  0x36   :  { %17338 = vmatmul.mubr.msk.f32.gmra.mrb[6].mxu0 %vm302_vm1, %v179_v11  ;;  %v213_v45 = vld [vmem:[%s26123_s0 + $0x1e9] sm:$0xff]  ;;  %v214_v46 = vld [vmem:[%s26123_s0 + $0x1f9] sm:$0xff]  ;;  %v215_v47 = vld [vmem:[%s26123_s0 + $0x201] sm:$0xff] }
  0x37   :  { %17726 = vmatmul.mubr.msk.f32.gmra.mrb[6].mxu1 %vm302_vm1, %v179_v11  ;;  %17340 = vmatprep.mubr.msk.f32.mxu0 %vm302_vm1, %v180_v12  ;;  %v216_v48 = vld [vmem:[%s26123_s0 + $0x211] sm:$0xff]  ;;  %v217_v49 = vld [vmem:[%s26123_s0 + $0x219] sm:$0xff]  ;;  %v218_v50 = vld [vmem:[%s26123_s0 + $0x229] sm:$0xff] }
  0x38   :  { %17728 = vmatprep.mubr.msk.f32.mxu1 %vm302_vm1, %v180_v12  ;;  %v219_v51 = vld [vmem:[%s26123_s0 + $0x231] sm:$0xff]  ;;  %v220_v52 = vld [vmem:[%s26123_s0 + $0x241] sm:$0xff]  ;;  %v221_v53 = vld [vmem:[%s26123_s0 + $0x249] sm:$0xff] }
  0x39   :  { %v222_v54 = vld [vmem:[%s26123_s0 + $0x259] sm:$0xff]  ;;  %v223_v55 = vld [vmem:[%s26123_s0 + $0x261] sm:$0xff]  ;;  %v224_v56 = vld [vmem:[%s26123_s0 + $0x271] sm:$0xff] }
  0x3a   :  { %17341 = vmatmul.mubr.msk.f32.gmra.mrb[8].mxu0 %vm302_vm1, %v181_v13  ;;  %v225_v57 = vld [vmem:[%s26123_s0 + $0x279] sm:$0xff]  ;;  %v226_v58 = vld [vmem:[%s26123_s0 + $0x289] sm:$0xff]  ;;  %v227_v59 = vld [vmem:[%s26123_s0 + $0x291] sm:$0xff] }
  0x3b   :  { %17729 = vmatmul.mubr.msk.f32.gmra.mrb[8].mxu1 %vm302_vm1, %v181_v13  ;;  %17343 = vmatprep.mubr.msk.f32.mxu0 %vm302_vm1, %v182_v14  ;;  %v228_v60 = vld [vmem:[%s26123_s0 + $0x2a1] sm:$0xff]  ;;  %v229_v61 = vld [vmem:[%s26123_s0 + $0x2a9] sm:$0xff]  ;;  %v230_v62 = vld [vmem:[%s26123_s0 + $0x2b9] sm:$0xff] }
  0x3c   :  { %17731 = vmatprep.mubr.msk.f32.mxu1 %vm302_vm1, %v182_v14  ;;  %v231_v63 = vld [vmem:[%s26123_s0 + $0x2c1] sm:$0xff]  ;;  %v232_v0 = vld [vmem:[%s26123_s0 + $0x2d1] sm:$0xff]  ;;  %v233_v1 = vld [vmem:[%s26123_s0 + $0x2d9] sm:$0xff] }
  0x3d   :  { %v234_v2 = vld [vmem:[%s26123_s0 + $0x2e9] sm:$0xff]  ;;  %v235_v3 = vld [vmem:[%s26123_s0 + $0x2f1] sm:$0xff]  ;;  %v237_v5 = vld [vmem:[%s26123_s0 + $0x339] sm:$0xff] }
  0x3e   :  { %17344 = vmatmul.mubr.msk.f32.gmra.mrb[10].mxu0 %vm302_vm1, %v183_v15  ;;  %v236_v4 = vld [vmem:[%s26123_s0 + $0x331] sm:$0xff]  ;;  %v238_v6 = vld [vmem:[%s26123_s0 + $0x349] sm:$0xff]  ;;  %v21404_v9 = vld [vmem:[%s26124_s1 + $0x40] sm:$0x3f] }
  0x3f   :  { %17732 = vmatmul.mubr.msk.f32.gmra.mrb[10].mxu1 %vm302_vm1, %v183_v15  ;;  %17346 = vmatprep.mubr.msk.f32.mxu0 %vm302_vm1, %v184_v16  ;;  %v239_v7 = vld [vmem:[%s26123_s0 + $0x351] sm:$0xff]  ;;  %v240_v10 = vld [vmem:[%s26123_s0 + $0x361] sm:$0xff]  ;;  %v241_v11 = vld [vmem:[%s26123_s0 + $0x369] sm:$0xff] }
  0x40   :  { %17734 = vmatprep.mubr.msk.f32.mxu1 %vm302_vm1, %v184_v16  ;;  %v21399_v8 = vld [vmem:[%s26124_s1 + $0x10] sm:$0x3f]  ;;  %18296 = vmatprep.subr.msk.mxu1 %vm687_vm0, %v21404_v9  ;;  %v242_v12 = vld [vmem:[%s26123_s0 + $0x379] sm:$0xff]  ;;  %v243_v13 = vld [vmem:[%s26123_s0 + $0x381] sm:$0xff] }
  0x41   :  { %18102 = vmatprep.subr.msk.mxu0 %vm687_vm0, %v21399_v8  ;;  %v244_v14 = vld [vmem:[%s26123_s0 + $0x391] sm:$0xff]  ;;  %v245_v15 = vld [vmem:[%s26123_s0 + $0x399] sm:$0xff]  ;;  %v246_v16 = vld [vmem:[%s26123_s0 + $0x3a9] sm:$0xff] }
  0x42   :  { %17347 = vmatmul.mubr.msk.f32.gmra.mrb[12].mxu0 %vm302_vm1, %v185_v17 }
  0x43   :  { %17735 = vmatmul.mubr.msk.f32.gmra.mrb[12].mxu1 %vm302_vm1, %v185_v17  ;;  %17349 = vmatprep.mubr.msk.f32.mxu0 %vm302_vm1, %v186_v18  ;;  %v247_v17 = vld [vmem:[%s26123_s0 + $0x3b1] sm:$0xff] }
  0x44   :  { %17737 = vmatprep.mubr.msk.f32.mxu1 %vm302_vm1, %v186_v18  ;;  %v248_v18 = vld [vmem:[%s26123_s0 + $0x3c1] sm:$0xff] }
  0x46   :  { %17350 = vmatmul.mubr.msk.f32.gmra.mrb[14].mxu0 %vm302_vm1, %v187_v19 }
  0x47   :  { %17738 = vmatmul.mubr.msk.f32.gmra.mrb[14].mxu1 %vm302_vm1, %v187_v19  ;;  %17352 = vmatprep.mubr.msk.f32.mxu0 %vm302_vm1, %v188_v20  ;;  %v249_v19 = vld [vmem:[%s26123_s0 + $0x3c9] sm:$0xff] }
  0x48   :  { %17740 = vmatprep.mubr.msk.f32.mxu1 %vm302_vm1, %v188_v20  ;;  %v250_v20 = vld [vmem:[%s26123_s0 + $0x3d9] sm:$0xff] }
  0x4a   :  { %17353 = vmatmul.mubr.msk.f32.gmra.mrb[16].mxu0 %vm302_vm1, %v189_v21 }
  0x4b   :  { %17741 = vmatmul.mubr.msk.f32.gmra.mrb[16].mxu1 %vm302_vm1, %v189_v21  ;;  %17355 = vmatprep.mubr.msk.f32.mxu0 %vm302_vm1, %v190_v22  ;;  %v251_v21 = vld [vmem:[%s26123_s0 + $0x3e1] sm:$0xff] }
  0x4c   :  { %17743 = vmatprep.mubr.msk.f32.mxu1 %vm302_vm1, %v190_v22  ;;  %v252_v22 = vld [vmem:[%s26123_s0 + $0x3f1] sm:$0xff] }
  0x4e   :  { %17356 = vmatmul.mubr.msk.f32.gmra.mrb[18].mxu0 %vm302_vm1, %v191_v23 }
  0x4f   :  { %17744 = vmatmul.mubr.msk.f32.gmra.mrb[18].mxu1 %vm302_vm1, %v191_v23  ;;  %17358 = vmatprep.mubr.msk.f32.mxu0 %vm302_vm1, %v192_v24  ;;  %v253_v23 = vld [vmem:[%s26123_s0 + $0x3f9] sm:$0xff] }
  0x50   :  { %17746 = vmatprep.mubr.msk.f32.mxu1 %vm302_vm1, %v192_v24  ;;  %v254_v24 = vld [vmem:[%s26123_s0 + $0x409] sm:$0xff] }
  0x52   :  { %17359 = vmatmul.mubr.msk.f32.gmra.mrb[20].mxu0 %vm302_vm1, %v193_v25 }
  0x53   :  { %17747 = vmatmul.mubr.msk.f32.gmra.mrb[20].mxu1 %vm302_vm1, %v193_v25  ;;  %17361 = vmatprep.mubr.msk.f32.mxu0 %vm302_vm1, %v194_v26  ;;  %v255_v25 = vld [vmem:[%s26123_s0 + $0x411] sm:$0xff] }
  0x54   :  { %17749 = vmatprep.mubr.msk.f32.mxu1 %vm302_vm1, %v194_v26  ;;  %v256_v26 = vld [vmem:[%s26123_s0 + $0x421] sm:$0xff] }
  0x56   :  { %17362 = vmatmul.mubr.msk.f32.gmra.mrb[22].mxu0 %vm302_vm1, %v195_v27 }
  0x57   :  { %17750 = vmatmul.mubr.msk.f32.gmra.mrb[22].mxu1 %vm302_vm1, %v195_v27  ;;  %17364 = vmatprep.mubr.msk.f32.mxu0 %vm302_vm1, %v196_v28  ;;  %v257_v27 = vld [vmem:[%s26123_s0 + $0x429] sm:$0xff] }
  0x58   :  { %17752 = vmatprep.mubr.msk.f32.mxu1 %vm302_vm1, %v196_v28  ;;  %v258_v28 = vld [vmem:[%s26123_s0 + $0x439] sm:$0xff] }
  0x5a   :  { %17365 = vmatmul.mubr.msk.f32.gmra.mrb[24].mxu0 %vm302_vm1, %v197_v29 }
  0x5b   :  { %17753 = vmatmul.mubr.msk.f32.gmra.mrb[24].mxu1 %vm302_vm1, %v197_v29  ;;  %17367 = vmatprep.mubr.msk.f32.mxu0 %vm302_vm1, %v198_v30  ;;  %v259_v29 = vld [vmem:[%s26123_s0 + $0x441] sm:$0xff] }
  0x5c   :  { %17755 = vmatprep.mubr.msk.f32.mxu1 %vm302_vm1, %v198_v30  ;;  %v260_v30 = vld [vmem:[%s26123_s0 + $0x451] sm:$0xff] }
  0x5e   :  { %17368 = vmatmul.mubr.msk.f32.gmra.mrb[26].mxu0 %vm302_vm1, %v199_v31 }
  0x5f   :  { %17756 = vmatmul.mubr.msk.f32.gmra.mrb[26].mxu1 %vm302_vm1, %v199_v31  ;;  %17370 = vmatprep.mubr.msk.f32.mxu0 %vm302_vm1, %v200_v32  ;;  %v261_v31 = vld [vmem:[%s26123_s0 + $0x459] sm:$0xff] }
  0x60   :  { %17758 = vmatprep.mubr.msk.f32.mxu1 %vm302_vm1, %v200_v32  ;;  %v262_v32 = vld [vmem:[%s26123_s0 + $0x469] sm:$0xff] }
  0x62   :  { %17371 = vmatmul.mubr.msk.f32.gmra.mrb[28].mxu0 %vm302_vm1, %v201_v33 }
  0x63   :  { %17759 = vmatmul.mubr.msk.f32.gmra.mrb[28].mxu1 %vm302_vm1, %v201_v33  ;;  %17373 = vmatprep.mubr.msk.f32.mxu0 %vm302_vm1, %v202_v34  ;;  %v263_v33 = vld [vmem:[%s26123_s0 + $0x471] sm:$0xff] }
  0x64   :  { %17761 = vmatprep.mubr.msk.f32.mxu1 %vm302_vm1, %v202_v34  ;;  %v264_v34 = vld [vmem:[%s26123_s0 + $0x481] sm:$0xff] }
  0x66   :  { %17374 = vmatmul.mubr.msk.f32.gmra.mrb[30].mxu0 %vm302_vm1, %v203_v35 }
  0x67   :  { %17762 = vmatmul.mubr.msk.f32.gmra.mrb[30].mxu1 %vm302_vm1, %v203_v35  ;;  %17376 = vmatprep.mubr.msk.f32.mxu0 %vm302_vm1, %v204_v36  ;;  %v265_v35 = vld [vmem:[%s26123_s0 + $0x489] sm:$0xff] }
  0x68   :  { %17764 = vmatprep.mubr.msk.f32.mxu1 %vm302_vm1, %v204_v36  ;;  %v266_v36 = vld [vmem:[%s26123_s0 + $0x499] sm:$0xff] }
  0x6a   :  { %17377 = vmatmul.mubr.msk.f32.gmra.mrb[32].mxu0 %vm302_vm1, %v205_v37 }
  0x6b   :  { %17765 = vmatmul.mubr.msk.f32.gmra.mrb[32].mxu1 %vm302_vm1, %v205_v37  ;;  %17379 = vmatprep.mubr.msk.f32.mxu0 %vm302_vm1, %v206_v38  ;;  %v267_v37 = vld [vmem:[%s26123_s0 + $0x4a1] sm:$0xff] }
  0x6c   :  { %17767 = vmatprep.mubr.msk.f32.mxu1 %vm302_vm1, %v206_v38  ;;  %v268_v38 = vld [vmem:[%s26123_s0 + $0x4b1] sm:$0xff] }
  0x6e   :  { %17380 = vmatmul.mubr.msk.f32.gmra.mrb[34].mxu0 %vm302_vm1, %v207_v39 }
  0x6f   :  { %17768 = vmatmul.mubr.msk.f32.gmra.mrb[34].mxu1 %vm302_vm1, %v207_v39  ;;  %17382 = vmatprep.mubr.msk.f32.mxu0 %vm302_vm1, %v208_v40  ;;  %v269_v39 = vld [vmem:[%s26123_s0 + $0x4b9] sm:$0xff] }
  0x70   :  { %17770 = vmatprep.mubr.msk.f32.mxu1 %vm302_vm1, %v208_v40  ;;  %v270_v40 = vld [vmem:[%s26123_s0 + $0x4c9] sm:$0xff] }
  0x72   :  { %17383 = vmatmul.mubr.msk.f32.gmra.mrb[36].mxu0 %vm302_vm1, %v209_v41 }
  0x73   :  { %17771 = vmatmul.mubr.msk.f32.gmra.mrb[36].mxu1 %vm302_vm1, %v209_v41  ;;  %17385 = vmatprep.mubr.msk.f32.mxu0 %vm302_vm1, %v210_v42  ;;  %v271_v41 = vld [vmem:[%s26123_s0 + $0x4d1] sm:$0xff] }
  0x74   :  { %17773 = vmatprep.mubr.msk.f32.mxu1 %vm302_vm1, %v210_v42  ;;  %v272_v42 = vld [vmem:[%s26123_s0 + $0x4e1] sm:$0xff] }
  0x76   :  { %17386 = vmatmul.mubr.msk.f32.gmra.mrb[38].mxu0 %vm302_vm1, %v211_v43 }
  0x77   :  { %17774 = vmatmul.mubr.msk.f32.gmra.mrb[38].mxu1 %vm302_vm1, %v211_v43  ;;  %17388 = vmatprep.mubr.msk.f32.mxu0 %vm302_vm1, %v212_v44  ;;  %v273_v43 = vld [vmem:[%s26123_s0 + $0x4e9] sm:$0xff] }
  0x78   :  { %17776 = vmatprep.mubr.msk.f32.mxu1 %vm302_vm1, %v212_v44  ;;  %v274_v44 = vld [vmem:[%s26123_s0 + $0x4f9] sm:$0xff] }
  0x7a   :  { %17389 = vmatmul.mubr.msk.f32.gmra.mrb[40].mxu0 %vm302_vm1, %v213_v45 }
  0x7b   :  { %17777 = vmatmul.mubr.msk.f32.gmra.mrb[40].mxu1 %vm302_vm1, %v213_v45  ;;  %17391 = vmatprep.mubr.msk.f32.mxu0 %vm302_vm1, %v214_v46  ;;  %v275_v45 = vld [vmem:[%s26123_s0 + $0x501] sm:$0xff] }
  0x7c   :  { %17779 = vmatprep.mubr.msk.f32.mxu1 %vm302_vm1, %v214_v46  ;;  %v276_v46 = vld [vmem:[%s26123_s0 + $0x511] sm:$0xff] }
  0x7e   :  { %17392 = vmatmul.mubr.msk.f32.gmra.mrb[42].mxu0 %vm302_vm1, %v215_v47 }
  0x7f   :  { %17780 = vmatmul.mubr.msk.f32.gmra.mrb[42].mxu1 %vm302_vm1, %v215_v47  ;;  %17394 = vmatprep.mubr.msk.f32.mxu0 %vm302_vm1, %v216_v48  ;;  %v277_v47 = vld [vmem:[%s26123_s0 + $0x519] sm:$0xff] }
  0x80   :  { %17782 = vmatprep.mubr.msk.f32.mxu1 %vm302_vm1, %v216_v48  ;;  %v278_v48 = vld [vmem:[%s26123_s0 + $0x529] sm:$0xff] }
  0x82   :  { %17395 = vmatmul.mubr.msk.f32.gmra.mrb[44].mxu0 %vm302_vm1, %v217_v49 }
  0x83   :  { %17783 = vmatmul.mubr.msk.f32.gmra.mrb[44].mxu1 %vm302_vm1, %v217_v49  ;;  %17397 = vmatprep.mubr.msk.f32.mxu0 %vm302_vm1, %v218_v50  ;;  %v279_v49 = vld [vmem:[%s26123_s0 + $0x531] sm:$0xff] }
  0x84   :  { %17785 = vmatprep.mubr.msk.f32.mxu1 %vm302_vm1, %v218_v50  ;;  %v280_v50 = vld [vmem:[%s26123_s0 + $0x541] sm:$0xff] }
  0x86   :  { %17398 = vmatmul.mubr.msk.f32.gmra.mrb[46].mxu0 %vm302_vm1, %v219_v51 }
  0x87   :  { %17786 = vmatmul.mubr.msk.f32.gmra.mrb[46].mxu1 %vm302_vm1, %v219_v51  ;;  %17400 = vmatprep.mubr.msk.f32.mxu0 %vm302_vm1, %v220_v52  ;;  %v281_v51 = vld [vmem:[%s26123_s0 + $0x549] sm:$0xff] }
  0x88   :  { %17788 = vmatprep.mubr.msk.f32.mxu1 %vm302_vm1, %v220_v52  ;;  %v282_v52 = vld [vmem:[%s26123_s0 + $0x559] sm:$0xff] }
  0x8a   :  { %17401 = vmatmul.mubr.msk.f32.gmra.mrb[48].mxu0 %vm302_vm1, %v221_v53 }
  0x8b   :  { %17789 = vmatmul.mubr.msk.f32.gmra.mrb[48].mxu1 %vm302_vm1, %v221_v53  ;;  %17403 = vmatprep.mubr.msk.f32.mxu0 %vm302_vm1, %v222_v54  ;;  %v283_v53 = vld [vmem:[%s26123_s0 + $0x561] sm:$0xff] }
  0x8c   :  { %17791 = vmatprep.mubr.msk.f32.mxu1 %vm302_vm1, %v222_v54  ;;  %v284_v54 = vld [vmem:[%s26123_s0 + $0x571] sm:$0xff] }
  0x8e   :  { %17404 = vmatmul.mubr.msk.f32.gmra.mrb[50].mxu0 %vm302_vm1, %v223_v55 }
  0x8f   :  { %17792 = vmatmul.mubr.msk.f32.gmra.mrb[50].mxu1 %vm302_vm1, %v223_v55  ;;  %17406 = vmatprep.mubr.msk.f32.mxu0 %vm302_vm1, %v224_v56  ;;  %v285_v55 = vld [vmem:[%s26123_s0 + $0x579] sm:$0xff] }
  0x90   :  { %17794 = vmatprep.mubr.msk.f32.mxu1 %vm302_vm1, %v224_v56  ;;  %v286_v56 = vld [vmem:[%s26123_s0 + $0x589] sm:$0xff] }
  0x92   :  { %17407 = vmatmul.mubr.msk.f32.gmra.mrb[52].mxu0 %vm302_vm1, %v225_v57 }
  0x93   :  { %17795 = vmatmul.mubr.msk.f32.gmra.mrb[52].mxu1 %vm302_vm1, %v225_v57  ;;  %17409 = vmatprep.mubr.msk.f32.mxu0 %vm302_vm1, %v226_v58  ;;  %v287_v57 = vld [vmem:[%s26123_s0 + $0x591] sm:$0xff] }
  0x94   :  { %17797 = vmatprep.mubr.msk.f32.mxu1 %vm302_vm1, %v226_v58  ;;  %v288_v58 = vld [vmem:[%s26123_s0 + $0x5a1] sm:$0xff] }
  0x96   :  { %17410 = vmatmul.mubr.msk.f32.gmra.mrb[54].mxu0 %vm302_vm1, %v227_v59 }
  0x97   :  { %17798 = vmatmul.mubr.msk.f32.gmra.mrb[54].mxu1 %vm302_vm1, %v227_v59  ;;  %17412 = vmatprep.mubr.msk.f32.mxu0 %vm302_vm1, %v228_v60  ;;  %v289_v59 = vld [vmem:[%s26123_s0 + $0x5a9] sm:$0xff] }
  0x98   :  { %17800 = vmatprep.mubr.msk.f32.mxu1 %vm302_vm1, %v228_v60  ;;  %v290_v60 = vld [vmem:[%s26123_s0 + $0x5b9] sm:$0xff] }
  0x9a   :  { %17413 = vmatmul.mubr.msk.f32.gmra.mrb[56].mxu0 %vm302_vm1, %v229_v61 }
  0x9b   :  { %17801 = vmatmul.mubr.msk.f32.gmra.mrb[56].mxu1 %vm302_vm1, %v229_v61  ;;  %17415 = vmatprep.mubr.msk.f32.mxu0 %vm302_vm1, %v230_v62  ;;  %v291_v61 = vld [vmem:[%s26123_s0 + $0x5c1] sm:$0xff] }
  0x9c   :  { %17803 = vmatprep.mubr.msk.f32.mxu1 %vm302_vm1, %v230_v62  ;;  %v292_v62 = vld [vmem:[%s26123_s0 + $0x5d1] sm:$0xff] }
  0x9e   :  { %17416 = vmatmul.mubr.msk.f32.gmra.mrb[58].mxu0 %vm302_vm1, %v231_v63 }
  0x9f   :  { %17804 = vmatmul.mubr.msk.f32.gmra.mrb[58].mxu1 %vm302_vm1, %v231_v63  ;;  %17418 = vmatprep.mubr.msk.f32.mxu0 %vm302_vm1, %v232_v0  ;;  %v293_v63 = vld [vmem:[%s26123_s0 + $0x5d9] sm:$0xff] }
  0xa0   :  { %17806 = vmatprep.mubr.msk.f32.mxu1 %vm302_vm1, %v232_v0  ;;  %v294_v0 = vld [vmem:[%s26123_s0 + $0x5e9] sm:$0xff] }
  0xa2   :  { %17419 = vmatmul.mubr.msk.f32.gmra.mrb[60].mxu0 %vm302_vm1, %v233_v1 }
  0xa3   :  { %17807 = vmatmul.mubr.msk.f32.gmra.mrb[60].mxu1 %vm302_vm1, %v233_v1  ;;  %17421 = vmatprep.mubr.msk.f32.mxu0 %vm302_vm1, %v234_v2  ;;  %v295_v1 = vld [vmem:[%s26123_s0 + $0x5f1] sm:$0xff] }
  0xa4   :  { %17809 = vmatprep.mubr.msk.f32.mxu1 %vm302_vm1, %v234_v2  ;;  %v296_v2 = vld [vmem:[%s26123_s0 + $0x601] sm:$0xff] }
  0xa6   :  { %17422 = vmatmul.mubr.msk.f32.gmra.mrb[62].mxu0 %vm302_vm1, %v235_v3 }
  0xa7   :  { %17810 = vmatmul.mubr.msk.f32.gmra.mrb[62].mxu1 %vm302_vm1, %v235_v3  ;;  %17424 = vmatprep.mubr.msk.f32.mxu0 %vm302_vm1, %v236_v4  ;;  %v297_v3 = vld [vmem:[%s26123_s0 + $0x609] sm:$0xff] }
  0xa8   :  { %17812 = vmatprep.mubr.msk.f32.mxu1 %vm302_vm1, %v236_v4  ;;  %v298_v4 = vld [vmem:[%s26123_s0 + $0x619] sm:$0xff] }
  0xaa   :  { %17425 = vmatmul.mubr.msk.f32.gmra.mrb[64].mxu0 %vm302_vm1, %v237_v5 }
  0xab   :  { %17813 = vmatmul.mubr.msk.f32.gmra.mrb[64].mxu1 %vm302_vm1, %v237_v5  ;;  %17427 = vmatprep.mubr.msk.f32.mxu0 %vm302_vm1, %v238_v6  ;;  %v299_v5 = vld [vmem:[%s26123_s0 + $0x621] sm:$0xff] }
  0xac   :  { %17815 = vmatprep.mubr.msk.f32.mxu1 %vm302_vm1, %v238_v6  ;;  %v41_v6 = vld [vmem:[%s26123_s0] sm:$0xff] }
  0xae   :  { %17428 = vmatmul.mubr.msk.f32.gmra.mrb[66].mxu0 %vm302_vm1, %v239_v7 }
  0xaf   :  { %17816 = vmatmul.mubr.msk.f32.gmra.mrb[66].mxu1 %vm302_vm1, %v239_v7  ;;  %17430 = vmatprep.mubr.msk.f32.mxu0 %vm302_vm1, %v240_v10  ;;  %v42_v7 = vld [vmem:[%s26123_s0 + $0x8] sm:$0xff] }
  0xb0   :  { %17818 = vmatprep.mubr.msk.f32.mxu1 %vm302_vm1, %v240_v10  ;;  %v21724_v10 = vld [vmem:[%s26123_s0 + $0x18] sm:$0xff] }
  0xb2   :  { %17431 = vmatmul.mubr.msk.f32.gmra.mrb[68].mxu0 %vm302_vm1, %v241_v11 }
  0xb3   :  { %17819 = vmatmul.mubr.msk.f32.gmra.mrb[68].mxu1 %vm302_vm1, %v241_v11  ;;  %17433 = vmatprep.mubr.msk.f32.mxu0 %vm302_vm1, %v242_v12  ;;  %v21733_v11 = vld [vmem:[%s26123_s0 + $0x20] sm:$0xff] }
  0xb4   :  { %17821 = vmatprep.mubr.msk.f32.mxu1 %vm302_vm1, %v242_v12  ;;  %v21742_v12 = vld [vmem:[%s26123_s0 + $0x30] sm:$0xff] }
  0xb6   :  { %17434 = vmatmul.mubr.msk.f32.gmra.mrb[70].mxu0 %vm302_vm1, %v243_v13 }
  0xb7   :  { %17822 = vmatmul.mubr.msk.f32.gmra.mrb[70].mxu1 %vm302_vm1, %v243_v13  ;;  %17436 = vmatprep.mubr.msk.f32.mxu0 %vm302_vm1, %v244_v14  ;;  %v21773_v13 = vld [vmem:[%s26123_s0 + $0x50] sm:$0xff] }
  0xb8   :  { %17824 = vmatprep.mubr.msk.f32.mxu1 %vm302_vm1, %v244_v14  ;;  %v21780_v14 = vld [vmem:[%s26123_s0 + $0x60] sm:$0xff] }
  0xba   :  { %17437 = vmatmul.mubr.msk.f32.gmra.mrb[72].mxu0 %vm302_vm1, %v245_v15 }
  0xbb   :  { %17825 = vmatmul.mubr.msk.f32.gmra.mrb[72].mxu1 %vm302_vm1, %v245_v15  ;;  %17439 = vmatprep.mubr.msk.f32.mxu0 %vm302_vm1, %v246_v16  ;;  %v21791_v15 = vld [vmem:[%s26123_s0 + $0x68] sm:$0xff] }
  0xbc   :  { %17827 = vmatprep.mubr.msk.f32.mxu1 %vm302_vm1, %v246_v16  ;;  %v21798_v16 = vld [vmem:[%s26123_s0 + $0x78] sm:$0xff] }
  0xbe   :  { %17440 = vmatmul.mubr.msk.f32.gmra.mrb[74].mxu0 %vm302_vm1, %v247_v17 }
  0xbf   :  { %17828 = vmatmul.mubr.msk.f32.gmra.mrb[74].mxu1 %vm302_vm1, %v247_v17  ;;  %17442 = vmatprep.mubr.msk.f32.mxu0 %vm302_vm1, %v248_v18  ;;  %v21809_v17 = vld [vmem:[%s26123_s0 + $0x80] sm:$0xff] }
  0xc0   :  { %17830 = vmatprep.mubr.msk.f32.mxu1 %vm302_vm1, %v248_v18  ;;  %v21816_v18 = vld [vmem:[%s26123_s0 + $0x90] sm:$0xff] }
  0xc2   :  { %17443 = vmatmul.mubr.msk.f32.gmra.mrb[76].mxu0 %vm302_vm1, %v249_v19 }
  0xc3   :  { %17831 = vmatmul.mubr.msk.f32.gmra.mrb[76].mxu1 %vm302_vm1, %v249_v19  ;;  %17445 = vmatprep.mubr.msk.f32.mxu0 %vm302_vm1, %v250_v20  ;;  %v21827_v19 = vld [vmem:[%s26123_s0 + $0x98] sm:$0xff] }
  0xc4   :  { %17833 = vmatprep.mubr.msk.f32.mxu1 %vm302_vm1, %v250_v20  ;;  %v21834_v20 = vld [vmem:[%s26123_s0 + $0xa8] sm:$0xff] }
  0xc6   :  { %17446 = vmatmul.mubr.msk.f32.gmra.mrb[78].mxu0 %vm302_vm1, %v251_v21 }
  0xc7   :  { %17834 = vmatmul.mubr.msk.f32.gmra.mrb[78].mxu1 %vm302_vm1, %v251_v21  ;;  %17448 = vmatprep.mubr.msk.f32.mxu0 %vm302_vm1, %v252_v22  ;;  %v21845_v21 = vld [vmem:[%s26123_s0 + $0xb0] sm:$0xff] }
  0xc8   :  { %17836 = vmatprep.mubr.msk.f32.mxu1 %vm302_vm1, %v252_v22  ;;  %v21852_v22 = vld [vmem:[%s26123_s0 + $0xc0] sm:$0xff] }
  0xca   :  { %17449 = vmatmul.mubr.msk.f32.gmra.mrb[80].mxu0 %vm302_vm1, %v253_v23 }
  0xcb   :  { %17837 = vmatmul.mubr.msk.f32.gmra.mrb[80].mxu1 %vm302_vm1, %v253_v23  ;;  %17451 = vmatprep.mubr.msk.f32.mxu0 %vm302_vm1, %v254_v24  ;;  %v21863_v23 = vld [vmem:[%s26123_s0 + $0xc8] sm:$0xff] }
  0xcc   :  { %17839 = vmatprep.mubr.msk.f32.mxu1 %vm302_vm1, %v254_v24  ;;  %v21870_v24 = vld [vmem:[%s26123_s0 + $0xd8] sm:$0xff] }
  0xce   :  { %17452 = vmatmul.mubr.msk.f32.gmra.mrb[82].mxu0 %vm302_vm1, %v255_v25 }
  0xcf   :  { %17840 = vmatmul.mubr.msk.f32.gmra.mrb[82].mxu1 %vm302_vm1, %v255_v25  ;;  %17454 = vmatprep.mubr.msk.f32.mxu0 %vm302_vm1, %v256_v26  ;;  %v21881_v25 = vld [vmem:[%s26123_s0 + $0xe0] sm:$0xff] }
  0xd0   :  { %17842 = vmatprep.mubr.msk.f32.mxu1 %vm302_vm1, %v256_v26  ;;  %v21888_v26 = vld [vmem:[%s26123_s0 + $0xf0] sm:$0xff] }
  0xd2   :  { %17455 = vmatmul.mubr.msk.f32.gmra.mrb[84].mxu0 %vm302_vm1, %v257_v27 }
  0xd3   :  { %17843 = vmatmul.mubr.msk.f32.gmra.mrb[84].mxu1 %vm302_vm1, %v257_v27  ;;  %17457 = vmatprep.mubr.msk.f32.mxu0 %vm302_vm1, %v258_v28  ;;  %v21899_v27 = vld [vmem:[%s26123_s0 + $0xf8] sm:$0xff] }
  0xd4   :  { %17845 = vmatprep.mubr.msk.f32.mxu1 %vm302_vm1, %v258_v28  ;;  %v21906_v28 = vld [vmem:[%s26123_s0 + $0x108] sm:$0xff] }
  0xd6   :  { %17458 = vmatmul.mubr.msk.f32.gmra.mrb[86].mxu0 %vm302_vm1, %v259_v29 }
  0xd7   :  { %17846 = vmatmul.mubr.msk.f32.gmra.mrb[86].mxu1 %vm302_vm1, %v259_v29  ;;  %17460 = vmatprep.mubr.msk.f32.mxu0 %vm302_vm1, %v260_v30  ;;  %v21917_v29 = vld [vmem:[%s26123_s0 + $0x110] sm:$0xff] }
  0xd8   :  { %17848 = vmatprep.mubr.msk.f32.mxu1 %vm302_vm1, %v260_v30  ;;  %v21924_v30 = vld [vmem:[%s26123_s0 + $0x120] sm:$0xff] }
  0xda   :  { %17461 = vmatmul.mubr.msk.f32.gmra.mrb[88].mxu0 %vm302_vm1, %v261_v31 }
  0xdb   :  { %17849 = vmatmul.mubr.msk.f32.gmra.mrb[88].mxu1 %vm302_vm1, %v261_v31  ;;  %17463 = vmatprep.mubr.msk.f32.mxu0 %vm302_vm1, %v262_v32  ;;  %v21935_v31 = vld [vmem:[%s26123_s0 + $0x128] sm:$0xff] }
  0xdc   :  { %17851 = vmatprep.mubr.msk.f32.mxu1 %vm302_vm1, %v262_v32  ;;  %v21942_v32 = vld [vmem:[%s26123_s0 + $0x138] sm:$0xff] }
  0xde   :  { %17464 = vmatmul.mubr.msk.f32.gmra.mrb[90].mxu0 %vm302_vm1, %v263_v33 }
  0xdf   :  { %17852 = vmatmul.mubr.msk.f32.gmra.mrb[90].mxu1 %vm302_vm1, %v263_v33  ;;  %17466 = vmatprep.mubr.msk.f32.mxu0 %vm302_vm1, %v264_v34  ;;  %v21953_v33 = vld [vmem:[%s26123_s0 + $0x140] sm:$0xff] }
  0xe0   :  { %17854 = vmatprep.mubr.msk.f32.mxu1 %vm302_vm1, %v264_v34  ;;  %v21960_v34 = vld [vmem:[%s26123_s0 + $0x150] sm:$0xff] }
  0xe2   :  { %17467 = vmatmul.mubr.msk.f32.gmra.mrb[92].mxu0 %vm302_vm1, %v265_v35 }
  0xe3   :  { %17855 = vmatmul.mubr.msk.f32.gmra.mrb[92].mxu1 %vm302_vm1, %v265_v35  ;;  %17469 = vmatprep.mubr.msk.f32.mxu0 %vm302_vm1, %v266_v36  ;;  %v21971_v35 = vld [vmem:[%s26123_s0 + $0x158] sm:$0xff] }
  0xe4   :  { %17857 = vmatprep.mubr.msk.f32.mxu1 %vm302_vm1, %v266_v36  ;;  %v21978_v36 = vld [vmem:[%s26123_s0 + $0x168] sm:$0xff] }
  0xe6   :  { %17470 = vmatmul.mubr.msk.f32.gmra.mrb[94].mxu0 %vm302_vm1, %v267_v37 }
  0xe7   :  { %17858 = vmatmul.mubr.msk.f32.gmra.mrb[94].mxu1 %vm302_vm1, %v267_v37  ;;  %17472 = vmatprep.mubr.msk.f32.mxu0 %vm302_vm1, %v268_v38  ;;  %v21989_v37 = vld [vmem:[%s26123_s0 + $0x170] sm:$0xff] }
  0xe8   :  { %17860 = vmatprep.mubr.msk.f32.mxu1 %vm302_vm1, %v268_v38  ;;  %v21996_v38 = vld [vmem:[%s26123_s0 + $0x180] sm:$0xff] }
  0xea   :  { %17473 = vmatmul.mubr.msk.f32.gmra.mrb[96].mxu0 %vm302_vm1, %v269_v39 }
  0xeb   :  { %17861 = vmatmul.mubr.msk.f32.gmra.mrb[96].mxu1 %vm302_vm1, %v269_v39  ;;  %17475 = vmatprep.mubr.msk.f32.mxu0 %vm302_vm1, %v270_v40  ;;  %v22007_v39 = vld [vmem:[%s26123_s0 + $0x188] sm:$0xff] }
  0xec   :  { %17863 = vmatprep.mubr.msk.f32.mxu1 %vm302_vm1, %v270_v40  ;;  %v22014_v40 = vld [vmem:[%s26123_s0 + $0x198] sm:$0xff] }
  0xee   :  { %17476 = vmatmul.mubr.msk.f32.gmra.mrb[98].mxu0 %vm302_vm1, %v271_v41 }
  0xef   :  { %17864 = vmatmul.mubr.msk.f32.gmra.mrb[98].mxu1 %vm302_vm1, %v271_v41  ;;  %17478 = vmatprep.mubr.msk.f32.mxu0 %vm302_vm1, %v272_v42  ;;  %v22025_v41 = vld [vmem:[%s26123_s0 + $0x1a0] sm:$0xff] }
  0xf0   :  { %17866 = vmatprep.mubr.msk.f32.mxu1 %vm302_vm1, %v272_v42  ;;  %v22032_v42 = vld [vmem:[%s26123_s0 + $0x1b0] sm:$0xff] }
  0xf2   :  { %17479 = vmatmul.mubr.msk.f32.gmra.mrb[100].mxu0 %vm302_vm1, %v273_v43 }
  0xf3   :  { %17867 = vmatmul.mubr.msk.f32.gmra.mrb[100].mxu1 %vm302_vm1, %v273_v43  ;;  %17481 = vmatprep.mubr.msk.f32.mxu0 %vm302_vm1, %v274_v44  ;;  %v22043_v43 = vld [vmem:[%s26123_s0 + $0x1b8] sm:$0xff] }
  0xf4   :  { %17869 = vmatprep.mubr.msk.f32.mxu1 %vm302_vm1, %v274_v44  ;;  %v22050_v44 = vld [vmem:[%s26123_s0 + $0x1c8] sm:$0xff] }
  0xf6   :  { %17482 = vmatmul.mubr.msk.f32.gmra.mrb[102].mxu0 %vm302_vm1, %v275_v45 }
  0xf7   :  { %17870 = vmatmul.mubr.msk.f32.gmra.mrb[102].mxu1 %vm302_vm1, %v275_v45  ;;  %17484 = vmatprep.mubr.msk.f32.mxu0 %vm302_vm1, %v276_v46  ;;  %v22061_v45 = vld [vmem:[%s26123_s0 + $0x1d0] sm:$0xff] }
  0xf8   :  { %17872 = vmatprep.mubr.msk.f32.mxu1 %vm302_vm1, %v276_v46  ;;  %v22068_v46 = vld [vmem:[%s26123_s0 + $0x1e0] sm:$0xff] }
  0xfa   :  { %17485 = vmatmul.mubr.msk.f32.gmra.mrb[104].mxu0 %vm302_vm1, %v277_v47 }
  0xfb   :  { %17873 = vmatmul.mubr.msk.f32.gmra.mrb[104].mxu1 %vm302_vm1, %v277_v47  ;;  %17487 = vmatprep.mubr.msk.f32.mxu0 %vm302_vm1, %v278_v48  ;;  %v22079_v47 = vld [vmem:[%s26123_s0 + $0x1e8] sm:$0xff] }
  0xfc   :  { %17875 = vmatprep.mubr.msk.f32.mxu1 %vm302_vm1, %v278_v48  ;;  %v22086_v48 = vld [vmem:[%s26123_s0 + $0x1f8] sm:$0xff] }
  0xfe   :  { %17488 = vmatmul.mubr.msk.f32.gmra.mrb[106].mxu0 %vm302_vm1, %v279_v49 }
  0xff   :  { %17876 = vmatmul.mubr.msk.f32.gmra.mrb[106].mxu1 %vm302_vm1, %v279_v49  ;;  %17490 = vmatprep.mubr.msk.f32.mxu0 %vm302_vm1, %v280_v50  ;;  %v22097_v49 = vld [vmem:[%s26123_s0 + $0x200] sm:$0xff] }
 0x100   :  { %17878 = vmatprep.mubr.msk.f32.mxu1 %vm302_vm1, %v280_v50  ;;  %v22104_v50 = vld [vmem:[%s26123_s0 + $0x210] sm:$0xff] }
 0x102   :  { %17491 = vmatmul.mubr.msk.f32.gmra.mrb[108].mxu0 %vm302_vm1, %v281_v51 }
 0x103   :  { %17879 = vmatmul.mubr.msk.f32.gmra.mrb[108].mxu1 %vm302_vm1, %v281_v51  ;;  %17493 = vmatprep.mubr.msk.f32.mxu0 %vm302_vm1, %v282_v52  ;;  %v22115_v51 = vld [vmem:[%s26123_s0 + $0x218] sm:$0xff] }
 0x104   :  { %17881 = vmatprep.mubr.msk.f32.mxu1 %vm302_vm1, %v282_v52  ;;  %v22122_v52 = vld [vmem:[%s26123_s0 + $0x228] sm:$0xff] }
 0x106   :  { %17494 = vmatmul.mubr.msk.f32.gmra.mrb[110].mxu0 %vm302_vm1, %v283_v53 }
 0x107   :  { %17882 = vmatmul.mubr.msk.f32.gmra.mrb[110].mxu1 %vm302_vm1, %v283_v53  ;;  %17496 = vmatprep.mubr.msk.f32.mxu0 %vm302_vm1, %v284_v54  ;;  %v22133_v53 = vld [vmem:[%s26123_s0 + $0x230] sm:$0xff] }
 0x108   :  { %17884 = vmatprep.mubr.msk.f32.mxu1 %vm302_vm1, %v284_v54  ;;  %v22140_v54 = vld [vmem:[%s26123_s0 + $0x240] sm:$0xff] }
 0x10a   :  { %17497 = vmatmul.mubr.msk.f32.gmra.mrb[112].mxu0 %vm302_vm1, %v285_v55 }
 0x10b   :  { %17885 = vmatmul.mubr.msk.f32.gmra.mrb[112].mxu1 %vm302_vm1, %v285_v55  ;;  %17499 = vmatprep.mubr.msk.f32.mxu0 %vm302_vm1, %v286_v56  ;;  %v22151_v55 = vld [vmem:[%s26123_s0 + $0x248] sm:$0xff] }
 0x10c   :  { %17887 = vmatprep.mubr.msk.f32.mxu1 %vm302_vm1, %v286_v56  ;;  %v22158_v56 = vld [vmem:[%s26123_s0 + $0x258] sm:$0xff] }
 0x10e   :  { %17500 = vmatmul.mubr.msk.f32.gmra.mrb[114].mxu0 %vm302_vm1, %v287_v57 }
 0x10f   :  { %17888 = vmatmul.mubr.msk.f32.gmra.mrb[114].mxu1 %vm302_vm1, %v287_v57  ;;  %17502 = vmatprep.mubr.msk.f32.mxu0 %vm302_vm1, %v288_v58  ;;  %v22169_v57 = vld [vmem:[%s26123_s0 + $0x260] sm:$0xff] }
 0x110   :  { %17890 = vmatprep.mubr.msk.f32.mxu1 %vm302_vm1, %v288_v58  ;;  %v22176_v58 = vld [vmem:[%s26123_s0 + $0x270] sm:$0xff] }
 0x112   :  { %17503 = vmatmul.mubr.msk.f32.gmra.mrb[116].mxu0 %vm302_vm1, %v289_v59 }
 0x113   :  { %17891 = vmatmul.mubr.msk.f32.gmra.mrb[116].mxu1 %vm302_vm1, %v289_v59  ;;  %17505 = vmatprep.mubr.msk.f32.mxu0 %vm302_vm1, %v290_v60  ;;  %v22187_v59 = vld [vmem:[%s26123_s0 + $0x278] sm:$0xff] }
 0x114   :  { %17893 = vmatprep.mubr.msk.f32.mxu1 %vm302_vm1, %v290_v60  ;;  %v22194_v60 = vld [vmem:[%s26123_s0 + $0x288] sm:$0xff] }
 0x116   :  { %17506 = vmatmul.mubr.msk.f32.gmra.mrb[118].mxu0 %vm302_vm1, %v291_v61 }
 0x117   :  { %17894 = vmatmul.mubr.msk.f32.gmra.mrb[118].mxu1 %vm302_vm1, %v291_v61  ;;  %17508 = vmatprep.mubr.msk.f32.mxu0 %vm302_vm1, %v292_v62  ;;  %v22205_v61 = vld [vmem:[%s26123_s0 + $0x290] sm:$0xff] }
 0x118   :  { %17896 = vmatprep.mubr.msk.f32.mxu1 %vm302_vm1, %v292_v62  ;;  %v22212_v62 = vld [vmem:[%s26123_s0 + $0x2a0] sm:$0xff] }
 0x11a   :  { %17509 = vmatmul.mubr.msk.f32.gmra.mrb[120].mxu0 %vm302_vm1, %v293_v63 }
 0x11b   :  { %17897 = vmatmul.mubr.msk.f32.gmra.mrb[120].mxu1 %vm302_vm1, %v293_v63  ;;  %17511 = vmatprep.mubr.msk.f32.mxu0 %vm302_vm1, %v294_v0  ;;  %v22223_v63 = vld [vmem:[%s26123_s0 + $0x2a8] sm:$0xff] }
 0x11c   :  { %17899 = vmatprep.mubr.msk.f32.mxu1 %vm302_vm1, %v294_v0  ;;  %v22230_v0 = vld [vmem:[%s26123_s0 + $0x2b8] sm:$0xff] }
 0x11e   :  { %17512 = vmatmul.mubr.msk.f32.gmra.mrb[122].mxu0 %vm302_vm1, %v295_v1 }
 0x11f   :  { %17900 = vmatmul.mubr.msk.f32.gmra.mrb[122].mxu1 %vm302_vm1, %v295_v1  ;;  %17514 = vmatprep.mubr.msk.f32.mxu0 %vm302_vm1, %v296_v2  ;;  %v22241_v1 = vld [vmem:[%s26123_s0 + $0x2c0] sm:$0xff] }
 0x120   :  { %17902 = vmatprep.mubr.msk.f32.mxu1 %vm302_vm1, %v296_v2  ;;  %v22248_v2 = vld [vmem:[%s26123_s0 + $0x2d0] sm:$0xff] }
 0x121   :  { %26252 = vst [vmem:[#allocation8_spill] sm:$0xff] %v22248_v2 }
 0x122   :  { %17515 = vmatmul.mubr.msk.f32.gmra.mrb[124].mxu0 %vm302_vm1, %v297_v3 }
 0x123   :  { %17903 = vmatmul.mubr.msk.f32.gmra.mrb[124].mxu1 %vm302_vm1, %v297_v3  ;;  %17517 = vmatprep.mubr.msk.f32.mxu0 %vm302_vm1, %v298_v4  ;;  %v22259_v3 = vld [vmem:[%s26123_s0 + $0x2d8] sm:$0xff] }
 0x124   :  { %17905 = vmatprep.mubr.msk.f32.mxu1 %vm302_vm1, %v298_v4  ;;  %26253 = vst [vmem:[#allocation9_spill] sm:$0xff] %v22259_v3  ;;  %v22266_v4 = vld [vmem:[%s26123_s0 + $0x2e8] sm:$0xff] }
 0x125   :  { %26254 = vst [vmem:[#allocation10_spill] sm:$0xff] %v22266_v4 }
 0x126   :  { %17518 = vmatmul.mubr.msk.f32.gmra.mrb[126].mxu0 %vm302_vm1, %v299_v5 }
 0x127   :  { %17906 = vmatmul.mubr.msk.f32.gmra.mrb[126].mxu1 %vm302_vm1, %v299_v5  ;;  %17522 = vmatprep.mubr.msk.f32.mxu0 %vm302_vm1, %v41_v6  ;;  %v22277_v5 = vld [vmem:[%s26123_s0 + $0x2f0] sm:$0xff] }
 0x128   :  { %17910 = vmatprep.mubr.msk.f32.mxu1 %vm302_vm1, %v41_v6  ;;  %26255 = vst [vmem:[#allocation11_spill] sm:$0xff] %v22277_v5  ;;  %v105_v6 = vld [vmem:[%s26123_s0 + $0x330] sm:$0xff] }
 0x12a   :  { %17523 = vmatmul.mubr.msk.f32.vlgmr.msra.gmra.mrb[0].mxu0 %vm302_vm1, %v42_v7 }
 0x12b   :  { %17911 = vmatmul.mubr.msk.f32.vlgmr.msra.gmra.mrb[0].mxu1 %vm302_vm1, %v42_v7  ;;  %18103 = vmatpush3.msk.msra.mxu0 %vm687_vm0, %v21399_v8  ;;  %v21755_v8 = vld [vmem:[%s26123_s0 + $0x38] sm:$0xff] }
 0x12c   :  { %18297 = vmatpush3.msk.msra.mxu1 %vm687_vm0, %v21404_v9  ;;  %17525 = vmatprep.mubr.msk.f32.mxu0 %vm302_vm1, %v21724_v10  ;;  %v21762_v9 = vld [vmem:[%s26123_s0 + $0x48] sm:$0xff]  ;;  %v106_v7 = vld [vmem:[%s26123_s0 + $0x338] sm:$0xff] }
 0x12d   :  { %17913 = vmatprep.mubr.msk.f32.mxu1 %vm302_vm1, %v21724_v10 }
 0x12e   :  { %17526 = vmatmul.mubr.msk.f32.gmra.mrb[2].mxu0 %vm302_vm1, %v21733_v11 }
 0x12f   :  { %17914 = vmatmul.mubr.msk.f32.gmra.mrb[2].mxu1 %vm302_vm1, %v21733_v11  ;;  %17528 = vmatprep.mubr.msk.f32.mxu0 %vm302_vm1, %v21742_v12 }
 0x130   :  { %17916 = vmatprep.mubr.msk.f32.mxu1 %vm302_vm1, %v21742_v12 }
 0x132   :  { %17529 = vmatmul.mubr.msk.f32.gmra.mrb[4].mxu0 %vm302_vm1, %v21755_v8 }
 0x133   :  { %17917 = vmatmul.mubr.msk.f32.gmra.mrb[4].mxu1 %vm302_vm1, %v21755_v8  ;;  %17531 = vmatprep.mubr.msk.f32.mxu0 %vm302_vm1, %v21762_v9 }
 0x134   :  { %17919 = vmatprep.mubr.msk.f32.mxu1 %vm302_vm1, %v21762_v9 }
 0x136   :  { %17532 = vmatmul.mubr.msk.f32.gmra.mrb[6].mxu0 %vm302_vm1, %v21773_v13 }
 0x137   :  { %17920 = vmatmul.mubr.msk.f32.gmra.mrb[6].mxu1 %vm302_vm1, %v21773_v13  ;;  %17534 = vmatprep.mubr.msk.f32.mxu0 %vm302_vm1, %v21780_v14 }
 0x138   :  { %17922 = vmatprep.mubr.msk.f32.mxu1 %vm302_vm1, %v21780_v14 }
 0x13a   :  { %17535 = vmatmul.mubr.msk.f32.gmra.mrb[8].mxu0 %vm302_vm1, %v21791_v15 }
 0x13b   :  { %17923 = vmatmul.mubr.msk.f32.gmra.mrb[8].mxu1 %vm302_vm1, %v21791_v15  ;;  %17537 = vmatprep.mubr.msk.f32.mxu0 %vm302_vm1, %v21798_v16 }
 0x13c   :  { %17925 = vmatprep.mubr.msk.f32.mxu1 %vm302_vm1, %v21798_v16 }
 0x13e   :  { %17538 = vmatmul.mubr.msk.f32.gmra.mrb[10].mxu0 %vm302_vm1, %v21809_v17 }
 0x13f   :  { %17926 = vmatmul.mubr.msk.f32.gmra.mrb[10].mxu1 %vm302_vm1, %v21809_v17  ;;  %17540 = vmatprep.mubr.msk.f32.mxu0 %vm302_vm1, %v21816_v18 }
 0x140   :  { %17928 = vmatprep.mubr.msk.f32.mxu1 %vm302_vm1, %v21816_v18 }
 0x142   :  { %17541 = vmatmul.mubr.msk.f32.gmra.mrb[12].mxu0 %vm302_vm1, %v21827_v19 }
 0x143   :  { %17929 = vmatmul.mubr.msk.f32.gmra.mrb[12].mxu1 %vm302_vm1, %v21827_v19  ;;  %17543 = vmatprep.mubr.msk.f32.mxu0 %vm302_vm1, %v21834_v20 }
 0x144   :  { %17931 = vmatprep.mubr.msk.f32.mxu1 %vm302_vm1, %v21834_v20 }
 0x146   :  { %17544 = vmatmul.mubr.msk.f32.gmra.mrb[14].mxu0 %vm302_vm1, %v21845_v21 }
 0x147   :  { %17932 = vmatmul.mubr.msk.f32.gmra.mrb[14].mxu1 %vm302_vm1, %v21845_v21  ;;  %17546 = vmatprep.mubr.msk.f32.mxu0 %vm302_vm1, %v21852_v22 }
 0x148   :  { %17934 = vmatprep.mubr.msk.f32.mxu1 %vm302_vm1, %v21852_v22 }
 0x14a   :  { %17547 = vmatmul.mubr.msk.f32.gmra.mrb[16].mxu0 %vm302_vm1, %v21863_v23 }
 0x14b   :  { %17935 = vmatmul.mubr.msk.f32.gmra.mrb[16].mxu1 %vm302_vm1, %v21863_v23  ;;  %17549 = vmatprep.mubr.msk.f32.mxu0 %vm302_vm1, %v21870_v24 }
 0x14c   :  { %17937 = vmatprep.mubr.msk.f32.mxu1 %vm302_vm1, %v21870_v24 }
 0x14e   :  { %17550 = vmatmul.mubr.msk.f32.gmra.mrb[18].mxu0 %vm302_vm1, %v21881_v25 }
 0x14f   :  { %17938 = vmatmul.mubr.msk.f32.gmra.mrb[18].mxu1 %vm302_vm1, %v21881_v25  ;;  %17552 = vmatprep.mubr.msk.f32.mxu0 %vm302_vm1, %v21888_v26 }
 0x150   :  { %17940 = vmatprep.mubr.msk.f32.mxu1 %vm302_vm1, %v21888_v26 }
 0x152   :  { %17553 = vmatmul.mubr.msk.f32.gmra.mrb[20].mxu0 %vm302_vm1, %v21899_v27 }
 0x153   :  { %17941 = vmatmul.mubr.msk.f32.gmra.mrb[20].mxu1 %vm302_vm1, %v21899_v27  ;;  %17555 = vmatprep.mubr.msk.f32.mxu0 %vm302_vm1, %v21906_v28 }
 0x154   :  { %17943 = vmatprep.mubr.msk.f32.mxu1 %vm302_vm1, %v21906_v28 }
 0x156   :  { %17556 = vmatmul.mubr.msk.f32.gmra.mrb[22].mxu0 %vm302_vm1, %v21917_v29 }
 0x157   :  { %17944 = vmatmul.mubr.msk.f32.gmra.mrb[22].mxu1 %vm302_vm1, %v21917_v29  ;;  %17558 = vmatprep.mubr.msk.f32.mxu0 %vm302_vm1, %v21924_v30 }
 0x158   :  { %17946 = vmatprep.mubr.msk.f32.mxu1 %vm302_vm1, %v21924_v30 }
 0x15a   :  { %17559 = vmatmul.mubr.msk.f32.gmra.mrb[24].mxu0 %vm302_vm1, %v21935_v31 }
 0x15b   :  { %17947 = vmatmul.mubr.msk.f32.gmra.mrb[24].mxu1 %vm302_vm1, %v21935_v31  ;;  %17561 = vmatprep.mubr.msk.f32.mxu0 %vm302_vm1, %v21942_v32 }
 0x15c   :  { %17949 = vmatprep.mubr.msk.f32.mxu1 %vm302_vm1, %v21942_v32 }
 0x15e   :  { %17562 = vmatmul.mubr.msk.f32.gmra.mrb[26].mxu0 %vm302_vm1, %v21953_v33 }
 0x15f   :  { %17950 = vmatmul.mubr.msk.f32.gmra.mrb[26].mxu1 %vm302_vm1, %v21953_v33  ;;  %17564 = vmatprep.mubr.msk.f32.mxu0 %vm302_vm1, %v21960_v34 }
 0x160   :  { %17952 = vmatprep.mubr.msk.f32.mxu1 %vm302_vm1, %v21960_v34 }
 0x162   :  { %17565 = vmatmul.mubr.msk.f32.gmra.mrb[28].mxu0 %vm302_vm1, %v21971_v35 }
 0x163   :  { %17953 = vmatmul.mubr.msk.f32.gmra.mrb[28].mxu1 %vm302_vm1, %v21971_v35  ;;  %17567 = vmatprep.mubr.msk.f32.mxu0 %vm302_vm1, %v21978_v36 }
 0x164   :  { %17955 = vmatprep.mubr.msk.f32.mxu1 %vm302_vm1, %v21978_v36 }
 0x166   :  { %17568 = vmatmul.mubr.msk.f32.gmra.mrb[30].mxu0 %vm302_vm1, %v21989_v37 }
 0x167   :  { %17956 = vmatmul.mubr.msk.f32.gmra.mrb[30].mxu1 %vm302_vm1, %v21989_v37  ;;  %17570 = vmatprep.mubr.msk.f32.mxu0 %vm302_vm1, %v21996_v38 }
 0x168   :  { %17958 = vmatprep.mubr.msk.f32.mxu1 %vm302_vm1, %v21996_v38 }
 0x16a   :  { %17571 = vmatmul.mubr.msk.f32.gmra.mrb[32].mxu0 %vm302_vm1, %v22007_v39 }
 0x16b   :  { %17959 = vmatmul.mubr.msk.f32.gmra.mrb[32].mxu1 %vm302_vm1, %v22007_v39  ;;  %17573 = vmatprep.mubr.msk.f32.mxu0 %vm302_vm1, %v22014_v40 }
 0x16c   :  { %17961 = vmatprep.mubr.msk.f32.mxu1 %vm302_vm1, %v22014_v40 }
 0x16e   :  { %17574 = vmatmul.mubr.msk.f32.gmra.mrb[34].mxu0 %vm302_vm1, %v22025_v41 }
 0x16f   :  { %17962 = vmatmul.mubr.msk.f32.gmra.mrb[34].mxu1 %vm302_vm1, %v22025_v41  ;;  %17576 = vmatprep.mubr.msk.f32.mxu0 %vm302_vm1, %v22032_v42 }
 0x170   :  { %17964 = vmatprep.mubr.msk.f32.mxu1 %vm302_vm1, %v22032_v42 }
 0x172   :  { %17577 = vmatmul.mubr.msk.f32.gmra.mrb[36].mxu0 %vm302_vm1, %v22043_v43 }
 0x173   :  { %17965 = vmatmul.mubr.msk.f32.gmra.mrb[36].mxu1 %vm302_vm1, %v22043_v43  ;;  %17579 = vmatprep.mubr.msk.f32.mxu0 %vm302_vm1, %v22050_v44 }
 0x174   :  { %17967 = vmatprep.mubr.msk.f32.mxu1 %vm302_vm1, %v22050_v44 }
 0x176   :  { %17580 = vmatmul.mubr.msk.f32.gmra.mrb[38].mxu0 %vm302_vm1, %v22061_v45 }
 0x177   :  { %17968 = vmatmul.mubr.msk.f32.gmra.mrb[38].mxu1 %vm302_vm1, %v22061_v45  ;;  %17582 = vmatprep.mubr.msk.f32.mxu0 %vm302_vm1, %v22068_v46 }
 0x178   :  { %17970 = vmatprep.mubr.msk.f32.mxu1 %vm302_vm1, %v22068_v46 }
 0x17a   :  { %17583 = vmatmul.mubr.msk.f32.gmra.mrb[40].mxu0 %vm302_vm1, %v22079_v47 }
 0x17b   :  { %17971 = vmatmul.mubr.msk.f32.gmra.mrb[40].mxu1 %vm302_vm1, %v22079_v47  ;;  %17585 = vmatprep.mubr.msk.f32.mxu0 %vm302_vm1, %v22086_v48 }
 0x17c   :  { %17973 = vmatprep.mubr.msk.f32.mxu1 %vm302_vm1, %v22086_v48 }
 0x17e   :  { %17586 = vmatmul.mubr.msk.f32.gmra.mrb[42].mxu0 %vm302_vm1, %v22097_v49 }
 0x17f   :  { %17974 = vmatmul.mubr.msk.f32.gmra.mrb[42].mxu1 %vm302_vm1, %v22097_v49  ;;  %17588 = vmatprep.mubr.msk.f32.mxu0 %vm302_vm1, %v22104_v50 }
 0x180   :  { %17976 = vmatprep.mubr.msk.f32.mxu1 %vm302_vm1, %v22104_v50 }
 0x182   :  { %17589 = vmatmul.mubr.msk.f32.gmra.mrb[44].mxu0 %vm302_vm1, %v22115_v51 }
 0x183   :  { %17977 = vmatmul.mubr.msk.f32.gmra.mrb[44].mxu1 %vm302_vm1, %v22115_v51  ;;  %17591 = vmatprep.mubr.msk.f32.mxu0 %vm302_vm1, %v22122_v52 }
 0x184   :  { %17979 = vmatprep.mubr.msk.f32.mxu1 %vm302_vm1, %v22122_v52 }
 0x186   :  { %17592 = vmatmul.mubr.msk.f32.gmra.mrb[46].mxu0 %vm302_vm1, %v22133_v53 }
 0x187   :  { %17980 = vmatmul.mubr.msk.f32.gmra.mrb[46].mxu1 %vm302_vm1, %v22133_v53  ;;  %17594 = vmatprep.mubr.msk.f32.mxu0 %vm302_vm1, %v22140_v54 }
 0x188   :  { %17982 = vmatprep.mubr.msk.f32.mxu1 %vm302_vm1, %v22140_v54 }
 0x18a   :  { %17595 = vmatmul.mubr.msk.f32.gmra.mrb[48].mxu0 %vm302_vm1, %v22151_v55 }
 0x18b   :  { %17983 = vmatmul.mubr.msk.f32.gmra.mrb[48].mxu1 %vm302_vm1, %v22151_v55  ;;  %17597 = vmatprep.mubr.msk.f32.mxu0 %vm302_vm1, %v22158_v56 }
 0x18c   :  { %17985 = vmatprep.mubr.msk.f32.mxu1 %vm302_vm1, %v22158_v56 }
 0x18e   :  { %17598 = vmatmul.mubr.msk.f32.gmra.mrb[50].mxu0 %vm302_vm1, %v22169_v57 }
 0x18f   :  { %17986 = vmatmul.mubr.msk.f32.gmra.mrb[50].mxu1 %vm302_vm1, %v22169_v57  ;;  %17600 = vmatprep.mubr.msk.f32.mxu0 %vm302_vm1, %v22176_v58 }
 0x190   :  { %17988 = vmatprep.mubr.msk.f32.mxu1 %vm302_vm1, %v22176_v58 }
 0x192   :  { %17601 = vmatmul.mubr.msk.f32.gmra.mrb[52].mxu0 %vm302_vm1, %v22187_v59 }
 0x193   :  { %17989 = vmatmul.mubr.msk.f32.gmra.mrb[52].mxu1 %vm302_vm1, %v22187_v59  ;;  %17603 = vmatprep.mubr.msk.f32.mxu0 %vm302_vm1, %v22194_v60 }
 0x194   :  { %17991 = vmatprep.mubr.msk.f32.mxu1 %vm302_vm1, %v22194_v60 }
 0x196   :  { %17604 = vmatmul.mubr.msk.f32.gmra.mrb[54].mxu0 %vm302_vm1, %v22205_v61 }
 0x197   :  { %17992 = vmatmul.mubr.msk.f32.gmra.mrb[54].mxu1 %vm302_vm1, %v22205_v61  ;;  %17606 = vmatprep.mubr.msk.f32.mxu0 %vm302_vm1, %v22212_v62 }
 0x198   :  { %17994 = vmatprep.mubr.msk.f32.mxu1 %vm302_vm1, %v22212_v62 }
 0x19a   :  { %17607 = vmatmul.mubr.msk.f32.gmra.mrb[56].mxu0 %vm302_vm1, %v22223_v63 }
 0x19b   :  { %17995 = vmatmul.mubr.msk.f32.gmra.mrb[56].mxu1 %vm302_vm1, %v22223_v63  ;;  %17609 = vmatprep.mubr.msk.f32.mxu0 %vm302_vm1, %v22230_v0 }
 0x19c   :  { %17997 = vmatprep.mubr.msk.f32.mxu1 %vm302_vm1, %v22230_v0 }
 0x19e   :  { %17610 = vmatmul.mubr.msk.f32.gmra.mrb[58].mxu0 %vm302_vm1, %v22241_v1 }
 0x19f   :  { %17998 = vmatmul.mubr.msk.f32.gmra.mrb[58].mxu1 %vm302_vm1, %v22241_v1  ;;  %17612 = vmatprep.mubr.msk.f32.mxu0 %vm302_vm1, %v22248_v2 }
 0x1a0   :  { %18000 = vmatprep.mubr.msk.f32.mxu1 %vm302_vm1, %v22248_v2  ;;  %v22344_v2 = vld [vmem:[%s26123_s0 + $0x378] sm:$0xff] }
 0x1a1   :  { %26260 = vst [vmem:[#allocation16_spill] sm:$0xff] %v22344_v2 }
 0x1a2   :  { %17613 = vmatmul.mubr.msk.f32.gmra.mrb[60].mxu0 %vm302_vm1, %v22259_v3 }
 0x1a3   :  { %18001 = vmatmul.mubr.msk.f32.gmra.mrb[60].mxu1 %vm302_vm1, %v22259_v3  ;;  %17615 = vmatprep.mubr.msk.f32.mxu0 %vm302_vm1, %v22266_v4  ;;  %v22315_v3 = vld [vmem:[%s26124_s1 + $0x48] sm:$0x3f] }
 0x1a4   :  { %18003 = vmatprep.mubr.msk.f32.mxu1 %vm302_vm1, %v22266_v4  ;;  %v22296_v4 = vld [vmem:[%s26123_s0 + $0x348] sm:$0xff]  ;;  %18684 = vmatprep.subr.msk.mxu1 %vm687_vm0, %v22315_v3 }
 0x1a5   :  { %26256 = vst [vmem:[#allocation12_spill] sm:$0xff] %v22296_v4 }
 0x1a6   :  { %17616 = vmatmul.mubr.msk.f32.gmra.mrb[62].mxu0 %vm302_vm1, %v22277_v5 }
 0x1a7   :  { %18004 = vmatmul.mubr.msk.f32.gmra.mrb[62].mxu1 %vm302_vm1, %v22277_v5  ;;  %17618 = vmatprep.mubr.msk.f32.mxu0 %vm302_vm1, %v105_v6  ;;  %v22305_v5 = vld [vmem:[%s26123_s0 + $0x350] sm:$0xff] }
 0x1a8   :  { %18006 = vmatprep.mubr.msk.f32.mxu1 %vm302_vm1, %v105_v6  ;;  %26257 = vst [vmem:[#allocation13_spill] sm:$0xff] %v22305_v5  ;;  %v22310_v6 = vld [vmem:[%s26124_s1 + $0x18] sm:$0x3f] }
 0x1a9   :  { %18490 = vmatprep.subr.msk.mxu0 %vm687_vm0, %v22310_v6 }
 0x1aa   :  { %17619 = vmatmul.mubr.msk.f32.gmra.mrb[64].mxu0 %vm302_vm1, %v106_v7 }
 0x1ab   :  { %18007 = vmatmul.mubr.msk.f32.gmra.mrb[64].mxu1 %vm302_vm1, %v106_v7  ;;  %17621 = vmatprep.mubr.msk.f32.mxu0 %vm302_vm1, %v22296_v4  ;;  %v22322_v7 = vld [vmem:[%s26123_s0 + $0x360] sm:$0xff] }
 0x1ac   :  { %18009 = vmatprep.mubr.msk.f32.mxu1 %vm302_vm1, %v22296_v4  ;;  %26258 = vst [vmem:[#allocation14_spill] sm:$0xff] %v22322_v7  ;;  %v22337_v4 = vld [vmem:[%s26123_s0 + $0x368] sm:$0xff] }
 0x1ad   :  { %26259 = vst [vmem:[#allocation15_spill] sm:$0xff] %v22337_v4 }
 0x1ae   :  { %17622 = vmatmul.mubr.msk.f32.gmra.mrb[66].mxu0 %vm302_vm1, %v22305_v5 }
 0x1af   :  { %18010 = vmatmul.mubr.msk.f32.gmra.mrb[66].mxu1 %vm302_vm1, %v22305_v5  ;;  %17624 = vmatprep.mubr.msk.f32.mxu0 %vm302_vm1, %v22322_v7  ;;  %v22355_v5 = vld [vmem:[%s26123_s0 + $0x380] sm:$0xff] }
 0x1b0   :  { %18012 = vmatprep.mubr.msk.f32.mxu1 %vm302_vm1, %v22322_v7  ;;  %26261 = vst [vmem:[#allocation17_spill] sm:$0xff] %v22355_v5  ;;  %v22362_v7 = vld [vmem:[%s26123_s0 + $0x390] sm:$0xff] }
 0x1b1   :  { %26262 = vst [vmem:[#allocation18_spill] sm:$0xff] %v22362_v7 }
 0x1b2   :  { %17625 = vmatmul.mubr.msk.f32.gmra.mrb[68].mxu0 %vm302_vm1, %v22337_v4 }
 0x1b3   :  { %18013 = vmatmul.mubr.msk.f32.gmra.mrb[68].mxu1 %vm302_vm1, %v22337_v4  ;;  %17627 = vmatprep.mubr.msk.f32.mxu0 %vm302_vm1, %v22344_v2  ;;  %v22373_v4 = vld [vmem:[%s26123_s0 + $0x398] sm:$0xff] }
 0x1b4   :  { %18015 = vmatprep.mubr.msk.f32.mxu1 %vm302_vm1, %v22344_v2  ;;  %26263 = vst [vmem:[#allocation19_spill] sm:$0xff] %v22373_v4  ;;  %v22380_v2 = vld [vmem:[%s26123_s0 + $0x3a8] sm:$0xff] }
 0x1b5   :  { %26264 = vst [vmem:[#allocation20_spill] sm:$0xff] %v22380_v2 }
 0x1b6   :  { %17628 = vmatmul.mubr.msk.f32.gmra.mrb[70].mxu0 %vm302_vm1, %v22355_v5 }
 0x1b7   :  { %18016 = vmatmul.mubr.msk.f32.gmra.mrb[70].mxu1 %vm302_vm1, %v22355_v5  ;;  %17630 = vmatprep.mubr.msk.f32.mxu0 %vm302_vm1, %v22362_v7  ;;  %v22391_v5 = vld [vmem:[%s26123_s0 + $0x3b0] sm:$0xff] }
 0x1b8   :  { %18018 = vmatprep.mubr.msk.f32.mxu1 %vm302_vm1, %v22362_v7  ;;  %26265 = vst [vmem:[#allocation21_spill] sm:$0xff] %v22391_v5  ;;  %v22398_v7 = vld [vmem:[%s26123_s0 + $0x3c0] sm:$0xff] }
 0x1b9   :  { %26266 = vst [vmem:[#allocation22_spill] sm:$0xff] %v22398_v7 }
 0x1ba   :  { %17631 = vmatmul.mubr.msk.f32.gmra.mrb[72].mxu0 %vm302_vm1, %v22373_v4 }
 0x1bb   :  { %18019 = vmatmul.mubr.msk.f32.gmra.mrb[72].mxu1 %vm302_vm1, %v22373_v4  ;;  %17633 = vmatprep.mubr.msk.f32.mxu0 %vm302_vm1, %v22380_v2  ;;  %v22409_v4 = vld [vmem:[%s26123_s0 + $0x3c8] sm:$0xff] }
 0x1bc   :  { %18021 = vmatprep.mubr.msk.f32.mxu1 %vm302_vm1, %v22380_v2  ;;  %26267 = vst [vmem:[#allocation23_spill] sm:$0xff] %v22409_v4  ;;  %v22416_v2 = vld [vmem:[%s26123_s0 + $0x3d8] sm:$0xff] }
 0x1bd   :  { %26268 = vst [vmem:[#allocation24_spill] sm:$0xff] %v22416_v2 }
 0x1be   :  { %17634 = vmatmul.mubr.msk.f32.gmra.mrb[74].mxu0 %vm302_vm1, %v22391_v5 }
 0x1bf   :  { %18022 = vmatmul.mubr.msk.f32.gmra.mrb[74].mxu1 %vm302_vm1, %v22391_v5  ;;  %17636 = vmatprep.mubr.msk.f32.mxu0 %vm302_vm1, %v22398_v7  ;;  %v22427_v5 = vld [vmem:[%s26123_s0 + $0x3e0] sm:$0xff] }
 0x1c0   :  { %18024 = vmatprep.mubr.msk.f32.mxu1 %vm302_vm1, %v22398_v7  ;;  %26269 = vst [vmem:[#allocation25_spill] sm:$0xff] %v22427_v5  ;;  %v22434_v7 = vld [vmem:[%s26123_s0 + $0x3f0] sm:$0xff] }
 0x1c1   :  { %26270 = vst [vmem:[#allocation26_spill] sm:$0xff] %v22434_v7 }
 0x1c2   :  { %17637 = vmatmul.mubr.msk.f32.gmra.mrb[76].mxu0 %vm302_vm1, %v22409_v4 }
 0x1c3   :  { %18025 = vmatmul.mubr.msk.f32.gmra.mrb[76].mxu1 %vm302_vm1, %v22409_v4  ;;  %17639 = vmatprep.mubr.msk.f32.mxu0 %vm302_vm1, %v22416_v2  ;;  %v22445_v4 = vld [vmem:[%s26123_s0 + $0x3f8] sm:$0xff] }
 0x1c4   :  { %18027 = vmatprep.mubr.msk.f32.mxu1 %vm302_vm1, %v22416_v2  ;;  %26271 = vst [vmem:[#allocation27_spill] sm:$0xff] %v22445_v4  ;;  %v22452_v2 = vld [vmem:[%s26123_s0 + $0x408] sm:$0xff] }
 0x1c5   :  { %26272 = vst [vmem:[#allocation28_spill] sm:$0xff] %v22452_v2 }
 0x1c6   :  { %17640 = vmatmul.mubr.msk.f32.gmra.mrb[78].mxu0 %vm302_vm1, %v22427_v5 }
 0x1c7   :  { %18028 = vmatmul.mubr.msk.f32.gmra.mrb[78].mxu1 %vm302_vm1, %v22427_v5  ;;  %17642 = vmatprep.mubr.msk.f32.mxu0 %vm302_vm1, %v22434_v7  ;;  %v22463_v5 = vld [vmem:[%s26123_s0 + $0x410] sm:$0xff] }
 0x1c8   :  { %18030 = vmatprep.mubr.msk.f32.mxu1 %vm302_vm1, %v22434_v7  ;;  %26273 = vst [vmem:[#allocation29_spill] sm:$0xff] %v22463_v5  ;;  %v22470_v7 = vld [vmem:[%s26123_s0 + $0x420] sm:$0xff] }
 0x1c9   :  { %26274 = vst [vmem:[#allocation30_spill] sm:$0xff] %v22470_v7 }
 0x1ca   :  { %17643 = vmatmul.mubr.msk.f32.gmra.mrb[80].mxu0 %vm302_vm1, %v22445_v4 }
 0x1cb   :  { %18031 = vmatmul.mubr.msk.f32.gmra.mrb[80].mxu1 %vm302_vm1, %v22445_v4  ;;  %17645 = vmatprep.mubr.msk.f32.mxu0 %vm302_vm1, %v22452_v2  ;;  %v22481_v4 = vld [vmem:[%s26123_s0 + $0x428] sm:$0xff] }
 0x1cc   :  { %18033 = vmatprep.mubr.msk.f32.mxu1 %vm302_vm1, %v22452_v2  ;;  %26275 = vst [vmem:[#allocation31_spill] sm:$0xff] %v22481_v4  ;;  %v22488_v2 = vld [vmem:[%s26123_s0 + $0x438] sm:$0xff] }
 0x1cd   :  { %26276 = vst [vmem:[#allocation32_spill] sm:$0xff] %v22488_v2 }
 0x1ce   :  { %17646 = vmatmul.mubr.msk.f32.gmra.mrb[82].mxu0 %vm302_vm1, %v22463_v5 }
 0x1cf   :  { %18034 = vmatmul.mubr.msk.f32.gmra.mrb[82].mxu1 %vm302_vm1, %v22463_v5  ;;  %17648 = vmatprep.mubr.msk.f32.mxu0 %vm302_vm1, %v22470_v7  ;;  %v22499_v5 = vld [vmem:[%s26123_s0 + $0x440] sm:$0xff] }
 0x1d0   :  { %18036 = vmatprep.mubr.msk.f32.mxu1 %vm302_vm1, %v22470_v7  ;;  %26277 = vst [vmem:[#allocation33_spill] sm:$0xff] %v22499_v5  ;;  %v22506_v7 = vld [vmem:[%s26123_s0 + $0x450] sm:$0xff] }
 0x1d1   :  { %26278 = vst [vmem:[#allocation34_spill] sm:$0xff] %v22506_v7 }
 0x1d2   :  { %17649 = vmatmul.mubr.msk.f32.gmra.mrb[84].mxu0 %vm302_vm1, %v22481_v4 }
 0x1d3   :  { %18037 = vmatmul.mubr.msk.f32.gmra.mrb[84].mxu1 %vm302_vm1, %v22481_v4  ;;  %17651 = vmatprep.mubr.msk.f32.mxu0 %vm302_vm1, %v22488_v2  ;;  %v22517_v4 = vld [vmem:[%s26123_s0 + $0x458] sm:$0xff] }
 0x1d4   :  { %18039 = vmatprep.mubr.msk.f32.mxu1 %vm302_vm1, %v22488_v2  ;;  %26279 = vst [vmem:[#allocation35_spill] sm:$0xff] %v22517_v4  ;;  %v22524_v2 = vld [vmem:[%s26123_s0 + $0x468] sm:$0xff] }
 0x1d5   :  { %26280 = vst [vmem:[#allocation36_spill] sm:$0xff] %v22524_v2 }
 0x1d6   :  { %17652 = vmatmul.mubr.msk.f32.gmra.mrb[86].mxu0 %vm302_vm1, %v22499_v5 }
 0x1d7   :  { %18040 = vmatmul.mubr.msk.f32.gmra.mrb[86].mxu1 %vm302_vm1, %v22499_v5  ;;  %17654 = vmatprep.mubr.msk.f32.mxu0 %vm302_vm1, %v22506_v7  ;;  %v22535_v5 = vld [vmem:[%s26123_s0 + $0x470] sm:$0xff] }
 0x1d8   :  { %18042 = vmatprep.mubr.msk.f32.mxu1 %vm302_vm1, %v22506_v7  ;;  %26281 = vst [vmem:[#allocation37_spill] sm:$0xff] %v22535_v5  ;;  %v22542_v7 = vld [vmem:[%s26123_s0 + $0x480] sm:$0xff] }
 0x1d9   :  { %26282 = vst [vmem:[#allocation38_spill] sm:$0xff] %v22542_v7 }
 0x1da   :  { %17655 = vmatmul.mubr.msk.f32.gmra.mrb[88].mxu0 %vm302_vm1, %v22517_v4 }
 0x1db   :  { %18043 = vmatmul.mubr.msk.f32.gmra.mrb[88].mxu1 %vm302_vm1, %v22517_v4  ;;  %17657 = vmatprep.mubr.msk.f32.mxu0 %vm302_vm1, %v22524_v2  ;;  %v22553_v4 = vld [vmem:[%s26123_s0 + $0x488] sm:$0xff] }
 0x1dc   :  { %18045 = vmatprep.mubr.msk.f32.mxu1 %vm302_vm1, %v22524_v2  ;;  %26283 = vst [vmem:[#allocation39_spill] sm:$0xff] %v22553_v4  ;;  %v22560_v2 = vld [vmem:[%s26123_s0 + $0x498] sm:$0xff] }
 0x1dd   :  { %26284 = vst [vmem:[#allocation40_spill] sm:$0xff] %v22560_v2 }
 0x1de   :  { %17658 = vmatmul.mubr.msk.f32.gmra.mrb[90].mxu0 %vm302_vm1, %v22535_v5 }
 0x1df   :  { %18046 = vmatmul.mubr.msk.f32.gmra.mrb[90].mxu1 %vm302_vm1, %v22535_v5  ;;  %17660 = vmatprep.mubr.msk.f32.mxu0 %vm302_vm1, %v22542_v7  ;;  %v22571_v5 = vld [vmem:[%s26123_s0 + $0x4a0] sm:$0xff] }
 0x1e0   :  { %18048 = vmatprep.mubr.msk.f32.mxu1 %vm302_vm1, %v22542_v7  ;;  %26285 = vst [vmem:[#allocation41_spill] sm:$0xff] %v22571_v5  ;;  %v22578_v7 = vld [vmem:[%s26123_s0 + $0x4b0] sm:$0xff] }
 0x1e1   :  { %26286 = vst [vmem:[#allocation42_spill] sm:$0xff] %v22578_v7 }
 0x1e2   :  { %17661 = vmatmul.mubr.msk.f32.gmra.mrb[92].mxu0 %vm302_vm1, %v22553_v4 }
 0x1e3   :  { %18049 = vmatmul.mubr.msk.f32.gmra.mrb[92].mxu1 %vm302_vm1, %v22553_v4  ;;  %17663 = vmatprep.mubr.msk.f32.mxu0 %vm302_vm1, %v22560_v2  ;;  %v22589_v4 = vld [vmem:[%s26123_s0 + $0x4b8] sm:$0xff] }
 0x1e4   :  { %18051 = vmatprep.mubr.msk.f32.mxu1 %vm302_vm1, %v22560_v2  ;;  %26287 = vst [vmem:[#allocation43_spill] sm:$0xff] %v22589_v4  ;;  %v22596_v2 = vld [vmem:[%s26123_s0 + $0x4c8] sm:$0xff] }
 0x1e5   :  { %26288 = vst [vmem:[#allocation44_spill] sm:$0xff] %v22596_v2 }
 0x1e6   :  { %17664 = vmatmul.mubr.msk.f32.gmra.mrb[94].mxu0 %vm302_vm1, %v22571_v5 }
 0x1e7   :  { %18052 = vmatmul.mubr.msk.f32.gmra.mrb[94].mxu1 %vm302_vm1, %v22571_v5  ;;  %17666 = vmatprep.mubr.msk.f32.mxu0 %vm302_vm1, %v22578_v7  ;;  %v22607_v5 = vld [vmem:[%s26123_s0 + $0x4d0] sm:$0xff] }
 0x1e8   :  { %18054 = vmatprep.mubr.msk.f32.mxu1 %vm302_vm1, %v22578_v7  ;;  %26289 = vst [vmem:[#allocation45_spill] sm:$0xff] %v22607_v5  ;;  %v22614_v7 = vld [vmem:[%s26123_s0 + $0x4e0] sm:$0xff] }
 0x1e9   :  { %26290 = vst [vmem:[#allocation46_spill] sm:$0xff] %v22614_v7 }
 0x1ea   :  { %17667 = vmatmul.mubr.msk.f32.gmra.mrb[96].mxu0 %vm302_vm1, %v22589_v4 }
 0x1eb   :  { %18055 = vmatmul.mubr.msk.f32.gmra.mrb[96].mxu1 %vm302_vm1, %v22589_v4  ;;  %17669 = vmatprep.mubr.msk.f32.mxu0 %vm302_vm1, %v22596_v2  ;;  %v22625_v4 = vld [vmem:[%s26123_s0 + $0x4e8] sm:$0xff] }
 0x1ec   :  { %18057 = vmatprep.mubr.msk.f32.mxu1 %vm302_vm1, %v22596_v2  ;;  %26291 = vst [vmem:[#allocation47_spill] sm:$0xff] %v22625_v4  ;;  %v22632_v2 = vld [vmem:[%s26123_s0 + $0x4f8] sm:$0xff] }
 0x1ed   :  { %26292 = vst [vmem:[#allocation48_spill] sm:$0xff] %v22632_v2 }
 0x1ee   :  { %17670 = vmatmul.mubr.msk.f32.gmra.mrb[98].mxu0 %vm302_vm1, %v22607_v5 }
 0x1ef   :  { %18058 = vmatmul.mubr.msk.f32.gmra.mrb[98].mxu1 %vm302_vm1, %v22607_v5  ;;  %17672 = vmatprep.mubr.msk.f32.mxu0 %vm302_vm1, %v22614_v7  ;;  %v22643_v5 = vld [vmem:[%s26123_s0 + $0x500] sm:$0xff] }
 0x1f0   :  { %18060 = vmatprep.mubr.msk.f32.mxu1 %vm302_vm1, %v22614_v7  ;;  %26293 = vst [vmem:[#allocation49_spill] sm:$0xff] %v22643_v5  ;;  %v22650_v7 = vld [vmem:[%s26123_s0 + $0x510] sm:$0xff] }
 0x1f1   :  { %26294 = vst [vmem:[#allocation50_spill] sm:$0xff] %v22650_v7 }
 0x1f2   :  { %17673 = vmatmul.mubr.msk.f32.gmra.mrb[100].mxu0 %vm302_vm1, %v22625_v4 }
 0x1f3   :  { %18061 = vmatmul.mubr.msk.f32.gmra.mrb[100].mxu1 %vm302_vm1, %v22625_v4  ;;  %17675 = vmatprep.mubr.msk.f32.mxu0 %vm302_vm1, %v22632_v2  ;;  %v22661_v4 = vld [vmem:[%s26123_s0 + $0x518] sm:$0xff] }
 0x1f4   :  { %18063 = vmatprep.mubr.msk.f32.mxu1 %vm302_vm1, %v22632_v2  ;;  %26295 = vst [vmem:[#allocation51_spill] sm:$0xff] %v22661_v4  ;;  %v22668_v2 = vld [vmem:[%s26123_s0 + $0x528] sm:$0xff] }
 0x1f5   :  { %26296 = vst [vmem:[#allocation52_spill] sm:$0xff] %v22668_v2 }
 0x1f6   :  { %17676 = vmatmul.mubr.msk.f32.gmra.mrb[102].mxu0 %vm302_vm1, %v22643_v5 }
 0x1f7   :  { %18064 = vmatmul.mubr.msk.f32.gmra.mrb[102].mxu1 %vm302_vm1, %v22643_v5  ;;  %17678 = vmatprep.mubr.msk.f32.mxu0 %vm302_vm1, %v22650_v7  ;;  %v22679_v5 = vld [vmem:[%s26123_s0 + $0x530] sm:$0xff] }
 0x1f8   :  { %18066 = vmatprep.mubr.msk.f32.mxu1 %vm302_vm1, %v22650_v7  ;;  %26297 = vst [vmem:[#allocation53_spill] sm:$0xff] %v22679_v5  ;;  %v22686_v7 = vld [vmem:[%s26123_s0 + $0x540] sm:$0xff] }
 0x1f9   :  { %26298 = vst [vmem:[#allocation54_spill] sm:$0xff] %v22686_v7 }
 0x1fa   :  { %17679 = vmatmul.mubr.msk.f32.gmra.mrb[104].mxu0 %vm302_vm1, %v22661_v4 }
 0x1fb   :  { %18067 = vmatmul.mubr.msk.f32.gmra.mrb[104].mxu1 %vm302_vm1, %v22661_v4  ;;  %17681 = vmatprep.mubr.msk.f32.mxu0 %vm302_vm1, %v22668_v2  ;;  %v22697_v4 = vld [vmem:[%s26123_s0 + $0x548] sm:$0xff] }
 0x1fc   :  { %18069 = vmatprep.mubr.msk.f32.mxu1 %vm302_vm1, %v22668_v2  ;;  %26299 = vst [vmem:[#allocation55_spill] sm:$0xff] %v22697_v4  ;;  %v22704_v2 = vld [vmem:[%s26123_s0 + $0x558] sm:$0xff] }
 0x1fd   :  { %26300 = vst [vmem:[#allocation56_spill] sm:$0xff] %v22704_v2 }
 0x1fe   :  { %17682 = vmatmul.mubr.msk.f32.gmra.mrb[106].mxu0 %vm302_vm1, %v22679_v5 }
 0x1ff   :  { %18070 = vmatmul.mubr.msk.f32.gmra.mrb[106].mxu1 %vm302_vm1, %v22679_v5  ;;  %17684 = vmatprep.mubr.msk.f32.mxu0 %vm302_vm1, %v22686_v7  ;;  %v22715_v5 = vld [vmem:[%s26123_s0 + $0x560] sm:$0xff] }
 0x200   :  { %18072 = vmatprep.mubr.msk.f32.mxu1 %vm302_vm1, %v22686_v7  ;;  %26301 = vst [vmem:[#allocation57_spill] sm:$0xff] %v22715_v5  ;;  %v22722_v7 = vld [vmem:[%s26123_s0 + $0x570] sm:$0xff] }
 0x201   :  { %26302 = vst [vmem:[#allocation58_spill] sm:$0xff] %v22722_v7 }
 0x202   :  { %17685 = vmatmul.mubr.msk.f32.gmra.mrb[108].mxu0 %vm302_vm1, %v22697_v4 }
 0x203   :  { %18073 = vmatmul.mubr.msk.f32.gmra.mrb[108].mxu1 %vm302_vm1, %v22697_v4  ;;  %17687 = vmatprep.mubr.msk.f32.mxu0 %vm302_vm1, %v22704_v2  ;;  %v22733_v4 = vld [vmem:[%s26123_s0 + $0x578] sm:$0xff] }
 0x204   :  { %18075 = vmatprep.mubr.msk.f32.mxu1 %vm302_vm1, %v22704_v2  ;;  %26303 = vst [vmem:[#allocation59_spill] sm:$0xff] %v22733_v4  ;;  %v22740_v2 = vld [vmem:[%s26123_s0 + $0x588] sm:$0xff] }
 0x205   :  { %26304 = vst [vmem:[#allocation60_spill] sm:$0xff] %v22740_v2 }
 0x206   :  { %17688 = vmatmul.mubr.msk.f32.gmra.mrb[110].mxu0 %vm302_vm1, %v22715_v5 }
 0x207   :  { %18076 = vmatmul.mubr.msk.f32.gmra.mrb[110].mxu1 %vm302_vm1, %v22715_v5  ;;  %17690 = vmatprep.mubr.msk.f32.mxu0 %vm302_vm1, %v22722_v7  ;;  %v22751_v5 = vld [vmem:[%s26123_s0 + $0x590] sm:$0xff] }
 0x208   :  { %18078 = vmatprep.mubr.msk.f32.mxu1 %vm302_vm1, %v22722_v7  ;;  %26305 = vst [vmem:[#allocation61_spill] sm:$0xff] %v22751_v5  ;;  %v22758_v7 = vld [vmem:[%s26123_s0 + $0x5a0] sm:$0xff] }
 0x209   :  { %26306 = vst [vmem:[#allocation62_spill] sm:$0xff] %v22758_v7 }
 0x20a   :  { %17691 = vmatmul.mubr.msk.f32.gmra.mrb[112].mxu0 %vm302_vm1, %v22733_v4 }
 0x20b   :  { %18079 = vmatmul.mubr.msk.f32.gmra.mrb[112].mxu1 %vm302_vm1, %v22733_v4  ;;  %17693 = vmatprep.mubr.msk.f32.mxu0 %vm302_vm1, %v22740_v2  ;;  %v22769_v4 = vld [vmem:[%s26123_s0 + $0x5a8] sm:$0xff] }
 0x20c   :  { %18081 = vmatprep.mubr.msk.f32.mxu1 %vm302_vm1, %v22740_v2  ;;  %26307 = vst [vmem:[#allocation63_spill] sm:$0xff] %v22769_v4  ;;  %v22776_v2 = vld [vmem:[%s26123_s0 + $0x5b8] sm:$0xff] }
 0x20d   :  { %26308 = vst [vmem:[#allocation64_spill] sm:$0xff] %v22776_v2 }
 0x20e   :  { %17694 = vmatmul.mubr.msk.f32.gmra.mrb[114].mxu0 %vm302_vm1, %v22751_v5 }
 0x20f   :  { %18082 = vmatmul.mubr.msk.f32.gmra.mrb[114].mxu1 %vm302_vm1, %v22751_v5  ;;  %17696 = vmatprep.mubr.msk.f32.mxu0 %vm302_vm1, %v22758_v7  ;;  %v22787_v5 = vld [vmem:[%s26123_s0 + $0x5c0] sm:$0xff] }
 0x210   :  { %18084 = vmatprep.mubr.msk.f32.mxu1 %vm302_vm1, %v22758_v7  ;;  %26309 = vst [vmem:[#allocation65_spill] sm:$0xff] %v22787_v5  ;;  %v22794_v7 = vld [vmem:[%s26123_s0 + $0x5d0] sm:$0xff] }
 0x211   :  { %26310 = vst [vmem:[#allocation66_spill] sm:$0xff] %v22794_v7 }
 0x212   :  { %17697 = vmatmul.mubr.msk.f32.gmra.mrb[116].mxu0 %vm302_vm1, %v22769_v4 }
 0x213   :  { %18085 = vmatmul.mubr.msk.f32.gmra.mrb[116].mxu1 %vm302_vm1, %v22769_v4  ;;  %17699 = vmatprep.mubr.msk.f32.mxu0 %vm302_vm1, %v22776_v2  ;;  %v22805_v4 = vld [vmem:[%s26123_s0 + $0x5d8] sm:$0xff] }
 0x214   :  { %18087 = vmatprep.mubr.msk.f32.mxu1 %vm302_vm1, %v22776_v2  ;;  %26311 = vst [vmem:[#allocation67_spill] sm:$0xff] %v22805_v4  ;;  %v22812_v2 = vld [vmem:[%s26123_s0 + $0x5e8] sm:$0xff] }
 0x215   :  { %26312 = vst [vmem:[#allocation68_spill] sm:$0xff] %v22812_v2 }
 0x216   :  { %17700 = vmatmul.mubr.msk.f32.gmra.mrb[118].mxu0 %vm302_vm1, %v22787_v5 }
 0x217   :  { %18088 = vmatmul.mubr.msk.f32.gmra.mrb[118].mxu1 %vm302_vm1, %v22787_v5  ;;  %17702 = vmatprep.mubr.msk.f32.mxu0 %vm302_vm1, %v22794_v7  ;;  %v22823_v5 = vld [vmem:[%s26123_s0 + $0x5f0] sm:$0xff] }
 0x218   :  { %18090 = vmatprep.mubr.msk.f32.mxu1 %vm302_vm1, %v22794_v7  ;;  %26313 = vst [vmem:[#allocation69_spill] sm:$0xff] %v22823_v5  ;;  %v22830_v7 = vld [vmem:[%s26123_s0 + $0x600] sm:$0xff] }
 0x21a   :  { %17703 = vmatmul.mubr.msk.f32.gmra.mrb[120].mxu0 %vm302_vm1, %v22805_v4 }
 0x21b   :  { %18091 = vmatmul.mubr.msk.f32.gmra.mrb[120].mxu1 %vm302_vm1, %v22805_v4  ;;  %17705 = vmatprep.mubr.msk.f32.mxu0 %vm302_vm1, %v22812_v2  ;;  %v22841_v4 = vld [vmem:[%s26123_s0 + $0x608] sm:$0xff] }
 0x21c   :  { %18093 = vmatprep.mubr.msk.f32.mxu1 %vm302_vm1, %v22812_v2  ;;  %v22848_v2 = vld [vmem:[%s26123_s0 + $0x618] sm:$0xff] }
 0x21e   :  { %17706 = vmatmul.mubr.msk.f32.gmra.mrb[122].mxu0 %vm302_vm1, %v22823_v5 }
 0x21f   :  { %18094 = vmatmul.mubr.msk.f32.gmra.mrb[122].mxu1 %vm302_vm1, %v22823_v5  ;;  %17708 = vmatprep.mubr.msk.f32.mxu0 %vm302_vm1, %v22830_v7  ;;  %v22859_v5 = vld [vmem:[%s26123_s0 + $0x620] sm:$0xff] }
 0x220   :  { %18096 = vmatprep.mubr.msk.f32.mxu1 %vm302_vm1, %v22830_v7 }
 0x222   :  { %17709 = vmatmul.mubr.msk.f32.gmra.mrb[124].mxu0 %vm302_vm1, %v22841_v4 }
 0x223   :  { %18097 = vmatmul.mubr.msk.f32.gmra.mrb[124].mxu1 %vm302_vm1, %v22841_v4  ;;  %17711 = vmatprep.mubr.msk.f32.mxu0 %vm302_vm1, %v22848_v2 }
 0x224   :  { %18099 = vmatprep.mubr.msk.f32.mxu1 %vm302_vm1, %v22848_v2 }
 0x226   :  { %17712 = vmatmul.mubr.msk.f32.gmra.mrb[126].mxu0 %vm302_vm1, %v22859_v5 }
 0x227   :  { %18100 = vmatmul.mubr.msk.f32.gmra.mrb[126].mxu1 %vm302_vm1, %v22859_v5  ;;  %18104 = vmatprep.mubr.msk.f32.mxu0 %vm302_vm1, %v21724_v10 }
 0x228   :  { %18298 = vmatprep.mubr.msk.f32.mxu1 %vm302_vm1, %v21724_v10  ;;  %v26314_v10 = vld [vmem:[#allocation8_spill] sm:$0xff] }
 0x22a   :  { %18105 = vmatmul.mubr.msk.f32.vlgmr.msra.gmra.mrb[0].mxu0 %vm302_vm1, %v21733_v11 }
 0x22b   :  { %18299 = vmatmul.mubr.msk.f32.vlgmr.msra.gmra.mrb[0].mxu1 %vm302_vm1, %v21733_v11  ;;  %18491 = vmatpush3.msk.msra.mxu0 %vm687_vm0, %v22310_v6  ;;  %v26315_v11 = vld [vmem:[#allocation9_spill] sm:$0xff]  ;;  %v26369_v6 = vld [vmem:[#allocation63_spill] sm:$0xff] }
 0x22c   :  { %18685 = vmatpush3.msk.msra.mxu1 %vm687_vm0, %v22315_v3  ;;  %18107 = vmatprep.mubr.msk.f32.mxu0 %vm302_vm1, %v21742_v12  ;;  %v26368_v3 = vld [vmem:[#allocation62_spill] sm:$0xff] }
 0x22d   :  { %18301 = vmatprep.mubr.msk.f32.mxu1 %vm302_vm1, %v21742_v12  ;;  %v26316_v12 = vld [vmem:[#allocation10_spill] sm:$0xff] }
 0x22e   :  { %18108 = vmatmul.mubr.msk.f32.gmra.mrb[2].mxu0 %vm302_vm1, %v21755_v8 }
 0x22f   :  { %18302 = vmatmul.mubr.msk.f32.gmra.mrb[2].mxu1 %vm302_vm1, %v21755_v8  ;;  %18110 = vmatprep.mubr.msk.f32.mxu0 %vm302_vm1, %v21762_v9  ;;  %v14286_v8 = vld [vmem:[%s26123_s0 + $0x300] sm:$0xff] }
 0x230   :  { %18304 = vmatprep.mubr.msk.f32.mxu1 %vm302_vm1, %v21762_v9  ;;  %v26317_v9 = vld [vmem:[#allocation11_spill] sm:$0xff] }
 0x232   :  { %18111 = vmatmul.mubr.msk.f32.gmra.mrb[4].mxu0 %vm302_vm1, %v21773_v13 }
 0x233   :  { %18305 = vmatmul.mubr.msk.f32.gmra.mrb[4].mxu1 %vm302_vm1, %v21773_v13  ;;  %18113 = vmatprep.mubr.msk.f32.mxu0 %vm302_vm1, %v21780_v14  ;;  %v14287_v13 = vld [vmem:[%s26123_s0 + $0x308] sm:$0xff] }
 0x234   :  { %18307 = vmatprep.mubr.msk.f32.mxu1 %vm302_vm1, %v21780_v14  ;;  %v26318_v14 = vld [vmem:[#allocation12_spill] sm:$0xff] }
 0x236   :  { %18114 = vmatmul.mubr.msk.f32.gmra.mrb[6].mxu0 %vm302_vm1, %v21791_v15 }
 0x237   :  { %18308 = vmatmul.mubr.msk.f32.gmra.mrb[6].mxu1 %vm302_vm1, %v21791_v15  ;;  %18116 = vmatprep.mubr.msk.f32.mxu0 %vm302_vm1, %v21798_v16  ;;  %v26319_v15 = vld [vmem:[#allocation13_spill] sm:$0xff] }
 0x238   :  { %18310 = vmatprep.mubr.msk.f32.mxu1 %vm302_vm1, %v21798_v16  ;;  %v26320_v16 = vld [vmem:[#allocation14_spill] sm:$0xff] }
 0x23a   :  { %18117 = vmatmul.mubr.msk.f32.gmra.mrb[8].mxu0 %vm302_vm1, %v21809_v17 }
 0x23b   :  { %18311 = vmatmul.mubr.msk.f32.gmra.mrb[8].mxu1 %vm302_vm1, %v21809_v17  ;;  %18119 = vmatprep.mubr.msk.f32.mxu0 %vm302_vm1, %v21816_v18  ;;  %v23142_v17 = vld [vmem:[%s26124_s1 + $0x20] sm:$0x3f] }
 0x23c   :  { %18313 = vmatprep.mubr.msk.f32.mxu1 %vm302_vm1, %v21816_v18  ;;  %v23147_v18 = vld [vmem:[%s26124_s1 + $0x50] sm:$0x3f]  ;;  %18878 = vmatprep.subr.msk.mxu0 %vm687_vm0, %v23142_v17 }
 0x23d   :  { %19072 = vmatprep.subr.msk.mxu1 %vm687_vm0, %v23147_v18 }
 0x23e   :  { %18120 = vmatmul.mubr.msk.f32.gmra.mrb[10].mxu0 %vm302_vm1, %v21827_v19 }
 0x23f   :  { %18314 = vmatmul.mubr.msk.f32.gmra.mrb[10].mxu1 %vm302_vm1, %v21827_v19  ;;  %18122 = vmatprep.mubr.msk.f32.mxu0 %vm302_vm1, %v21834_v20  ;;  %v26321_v19 = vld [vmem:[#allocation15_spill] sm:$0xff] }
 0x240   :  { %18316 = vmatprep.mubr.msk.f32.mxu1 %vm302_vm1, %v21834_v20  ;;  %v26322_v20 = vld [vmem:[#allocation16_spill] sm:$0xff] }
 0x242   :  { %18123 = vmatmul.mubr.msk.f32.gmra.mrb[12].mxu0 %vm302_vm1, %v21845_v21 }
 0x243   :  { %18317 = vmatmul.mubr.msk.f32.gmra.mrb[12].mxu1 %vm302_vm1, %v21845_v21  ;;  %18125 = vmatprep.mubr.msk.f32.mxu0 %vm302_vm1, %v21852_v22  ;;  %v26323_v21 = vld [vmem:[#allocation17_spill] sm:$0xff] }
 0x244   :  { %18319 = vmatprep.mubr.msk.f32.mxu1 %vm302_vm1, %v21852_v22  ;;  %v26324_v22 = vld [vmem:[#allocation18_spill] sm:$0xff] }
 0x246   :  { %18126 = vmatmul.mubr.msk.f32.gmra.mrb[14].mxu0 %vm302_vm1, %v21863_v23 }
 0x247   :  { %18320 = vmatmul.mubr.msk.f32.gmra.mrb[14].mxu1 %vm302_vm1, %v21863_v23  ;;  %18128 = vmatprep.mubr.msk.f32.mxu0 %vm302_vm1, %v21870_v24  ;;  %v26325_v23 = vld [vmem:[#allocation19_spill] sm:$0xff] }
 0x248   :  { %18322 = vmatprep.mubr.msk.f32.mxu1 %vm302_vm1, %v21870_v24  ;;  %v26326_v24 = vld [vmem:[#allocation20_spill] sm:$0xff] }
 0x24a   :  { %18129 = vmatmul.mubr.msk.f32.gmra.mrb[16].mxu0 %vm302_vm1, %v21881_v25 }
 0x24b   :  { %18323 = vmatmul.mubr.msk.f32.gmra.mrb[16].mxu1 %vm302_vm1, %v21881_v25  ;;  %18131 = vmatprep.mubr.msk.f32.mxu0 %vm302_vm1, %v21888_v26  ;;  %v26327_v25 = vld [vmem:[#allocation21_spill] sm:$0xff] }
 0x24c   :  { %18325 = vmatprep.mubr.msk.f32.mxu1 %vm302_vm1, %v21888_v26  ;;  %v26328_v26 = vld [vmem:[#allocation22_spill] sm:$0xff] }
 0x24e   :  { %18132 = vmatmul.mubr.msk.f32.gmra.mrb[18].mxu0 %vm302_vm1, %v21899_v27 }
 0x24f   :  { %18326 = vmatmul.mubr.msk.f32.gmra.mrb[18].mxu1 %vm302_vm1, %v21899_v27  ;;  %18134 = vmatprep.mubr.msk.f32.mxu0 %vm302_vm1, %v21906_v28  ;;  %v26329_v27 = vld [vmem:[#allocation23_spill] sm:$0xff] }
 0x250   :  { %18328 = vmatprep.mubr.msk.f32.mxu1 %vm302_vm1, %v21906_v28  ;;  %v26330_v28 = vld [vmem:[#allocation24_spill] sm:$0xff] }
 0x252   :  { %18135 = vmatmul.mubr.msk.f32.gmra.mrb[20].mxu0 %vm302_vm1, %v21917_v29 }
 0x253   :  { %18329 = vmatmul.mubr.msk.f32.gmra.mrb[20].mxu1 %vm302_vm1, %v21917_v29  ;;  %18137 = vmatprep.mubr.msk.f32.mxu0 %vm302_vm1, %v21924_v30  ;;  %v26331_v29 = vld [vmem:[#allocation25_spill] sm:$0xff] }
 0x254   :  { %18331 = vmatprep.mubr.msk.f32.mxu1 %vm302_vm1, %v21924_v30  ;;  %v26332_v30 = vld [vmem:[#allocation26_spill] sm:$0xff] }
 0x256   :  { %18138 = vmatmul.mubr.msk.f32.gmra.mrb[22].mxu0 %vm302_vm1, %v21935_v31 }
 0x257   :  { %18332 = vmatmul.mubr.msk.f32.gmra.mrb[22].mxu1 %vm302_vm1, %v21935_v31  ;;  %18140 = vmatprep.mubr.msk.f32.mxu0 %vm302_vm1, %v21942_v32  ;;  %v26333_v31 = vld [vmem:[#allocation27_spill] sm:$0xff] }
 0x258   :  { %18334 = vmatprep.mubr.msk.f32.mxu1 %vm302_vm1, %v21942_v32  ;;  %v26334_v32 = vld [vmem:[#allocation28_spill] sm:$0xff] }
 0x25a   :  { %18141 = vmatmul.mubr.msk.f32.gmra.mrb[24].mxu0 %vm302_vm1, %v21953_v33 }
 0x25b   :  { %18335 = vmatmul.mubr.msk.f32.gmra.mrb[24].mxu1 %vm302_vm1, %v21953_v33  ;;  %18143 = vmatprep.mubr.msk.f32.mxu0 %vm302_vm1, %v21960_v34  ;;  %v26335_v33 = vld [vmem:[#allocation29_spill] sm:$0xff] }
 0x25c   :  { %18337 = vmatprep.mubr.msk.f32.mxu1 %vm302_vm1, %v21960_v34  ;;  %v26336_v34 = vld [vmem:[#allocation30_spill] sm:$0xff] }
 0x25e   :  { %18144 = vmatmul.mubr.msk.f32.gmra.mrb[26].mxu0 %vm302_vm1, %v21971_v35 }
 0x25f   :  { %18338 = vmatmul.mubr.msk.f32.gmra.mrb[26].mxu1 %vm302_vm1, %v21971_v35  ;;  %18146 = vmatprep.mubr.msk.f32.mxu0 %vm302_vm1, %v21978_v36  ;;  %v26337_v35 = vld [vmem:[#allocation31_spill] sm:$0xff] }
 0x260   :  { %18340 = vmatprep.mubr.msk.f32.mxu1 %vm302_vm1, %v21978_v36  ;;  %v26338_v36 = vld [vmem:[#allocation32_spill] sm:$0xff] }
 0x262   :  { %18147 = vmatmul.mubr.msk.f32.gmra.mrb[28].mxu0 %vm302_vm1, %v21989_v37 }
 0x263   :  { %18341 = vmatmul.mubr.msk.f32.gmra.mrb[28].mxu1 %vm302_vm1, %v21989_v37  ;;  %18149 = vmatprep.mubr.msk.f32.mxu0 %vm302_vm1, %v21996_v38  ;;  %v26339_v37 = vld [vmem:[#allocation33_spill] sm:$0xff] }
 0x264   :  { %18343 = vmatprep.mubr.msk.f32.mxu1 %vm302_vm1, %v21996_v38  ;;  %v26340_v38 = vld [vmem:[#allocation34_spill] sm:$0xff] }
 0x266   :  { %18150 = vmatmul.mubr.msk.f32.gmra.mrb[30].mxu0 %vm302_vm1, %v22007_v39 }
 0x267   :  { %18344 = vmatmul.mubr.msk.f32.gmra.mrb[30].mxu1 %vm302_vm1, %v22007_v39  ;;  %18152 = vmatprep.mubr.msk.f32.mxu0 %vm302_vm1, %v22014_v40  ;;  %v26341_v39 = vld [vmem:[#allocation35_spill] sm:$0xff] }
 0x268   :  { %18346 = vmatprep.mubr.msk.f32.mxu1 %vm302_vm1, %v22014_v40  ;;  %v26342_v40 = vld [vmem:[#allocation36_spill] sm:$0xff] }
 0x26a   :  { %18153 = vmatmul.mubr.msk.f32.gmra.mrb[32].mxu0 %vm302_vm1, %v22025_v41 }
 0x26b   :  { %18347 = vmatmul.mubr.msk.f32.gmra.mrb[32].mxu1 %vm302_vm1, %v22025_v41  ;;  %18155 = vmatprep.mubr.msk.f32.mxu0 %vm302_vm1, %v22032_v42  ;;  %v26343_v41 = vld [vmem:[#allocation37_spill] sm:$0xff] }
 0x26c   :  { %18349 = vmatprep.mubr.msk.f32.mxu1 %vm302_vm1, %v22032_v42  ;;  %v26344_v42 = vld [vmem:[#allocation38_spill] sm:$0xff] }
 0x26e   :  { %18156 = vmatmul.mubr.msk.f32.gmra.mrb[34].mxu0 %vm302_vm1, %v22043_v43 }
 0x26f   :  { %18350 = vmatmul.mubr.msk.f32.gmra.mrb[34].mxu1 %vm302_vm1, %v22043_v43  ;;  %18158 = vmatprep.mubr.msk.f32.mxu0 %vm302_vm1, %v22050_v44  ;;  %v26345_v43 = vld [vmem:[#allocation39_spill] sm:$0xff] }
 0x270   :  { %18352 = vmatprep.mubr.msk.f32.mxu1 %vm302_vm1, %v22050_v44  ;;  %v26346_v44 = vld [vmem:[#allocation40_spill] sm:$0xff] }
 0x272   :  { %18159 = vmatmul.mubr.msk.f32.gmra.mrb[36].mxu0 %vm302_vm1, %v22061_v45 }
 0x273   :  { %18353 = vmatmul.mubr.msk.f32.gmra.mrb[36].mxu1 %vm302_vm1, %v22061_v45  ;;  %18161 = vmatprep.mubr.msk.f32.mxu0 %vm302_vm1, %v22068_v46  ;;  %v26347_v45 = vld [vmem:[#allocation41_spill] sm:$0xff] }
 0x274   :  { %18355 = vmatprep.mubr.msk.f32.mxu1 %vm302_vm1, %v22068_v46  ;;  %v26348_v46 = vld [vmem:[#allocation42_spill] sm:$0xff] }
 0x276   :  { %18162 = vmatmul.mubr.msk.f32.gmra.mrb[38].mxu0 %vm302_vm1, %v22079_v47 }
 0x277   :  { %18356 = vmatmul.mubr.msk.f32.gmra.mrb[38].mxu1 %vm302_vm1, %v22079_v47  ;;  %18164 = vmatprep.mubr.msk.f32.mxu0 %vm302_vm1, %v22086_v48  ;;  %v26349_v47 = vld [vmem:[#allocation43_spill] sm:$0xff] }
 0x278   :  { %18358 = vmatprep.mubr.msk.f32.mxu1 %vm302_vm1, %v22086_v48  ;;  %v26350_v48 = vld [vmem:[#allocation44_spill] sm:$0xff] }
 0x27a   :  { %18165 = vmatmul.mubr.msk.f32.gmra.mrb[40].mxu0 %vm302_vm1, %v22097_v49 }
 0x27b   :  { %18359 = vmatmul.mubr.msk.f32.gmra.mrb[40].mxu1 %vm302_vm1, %v22097_v49  ;;  %18167 = vmatprep.mubr.msk.f32.mxu0 %vm302_vm1, %v22104_v50  ;;  %v26351_v49 = vld [vmem:[#allocation45_spill] sm:$0xff] }
 0x27c   :  { %18361 = vmatprep.mubr.msk.f32.mxu1 %vm302_vm1, %v22104_v50  ;;  %v26352_v50 = vld [vmem:[#allocation46_spill] sm:$0xff] }
 0x27e   :  { %18168 = vmatmul.mubr.msk.f32.gmra.mrb[42].mxu0 %vm302_vm1, %v22115_v51 }
 0x27f   :  { %18362 = vmatmul.mubr.msk.f32.gmra.mrb[42].mxu1 %vm302_vm1, %v22115_v51  ;;  %18170 = vmatprep.mubr.msk.f32.mxu0 %vm302_vm1, %v22122_v52  ;;  %v26353_v51 = vld [vmem:[#allocation47_spill] sm:$0xff] }
 0x280   :  { %18364 = vmatprep.mubr.msk.f32.mxu1 %vm302_vm1, %v22122_v52  ;;  %v26354_v52 = vld [vmem:[#allocation48_spill] sm:$0xff] }
 0x282   :  { %18171 = vmatmul.mubr.msk.f32.gmra.mrb[44].mxu0 %vm302_vm1, %v22133_v53 }
 0x283   :  { %18365 = vmatmul.mubr.msk.f32.gmra.mrb[44].mxu1 %vm302_vm1, %v22133_v53  ;;  %18173 = vmatprep.mubr.msk.f32.mxu0 %vm302_vm1, %v22140_v54  ;;  %v26355_v53 = vld [vmem:[#allocation49_spill] sm:$0xff] }
 0x284   :  { %18367 = vmatprep.mubr.msk.f32.mxu1 %vm302_vm1, %v22140_v54  ;;  %v26356_v54 = vld [vmem:[#allocation50_spill] sm:$0xff] }
 0x286   :  { %18174 = vmatmul.mubr.msk.f32.gmra.mrb[46].mxu0 %vm302_vm1, %v22151_v55 }
 0x287   :  { %18368 = vmatmul.mubr.msk.f32.gmra.mrb[46].mxu1 %vm302_vm1, %v22151_v55  ;;  %18176 = vmatprep.mubr.msk.f32.mxu0 %vm302_vm1, %v22158_v56  ;;  %v26357_v55 = vld [vmem:[#allocation51_spill] sm:$0xff] }
 0x288   :  { %18370 = vmatprep.mubr.msk.f32.mxu1 %vm302_vm1, %v22158_v56  ;;  %v26358_v56 = vld [vmem:[#allocation52_spill] sm:$0xff] }
 0x28a   :  { %18177 = vmatmul.mubr.msk.f32.gmra.mrb[48].mxu0 %vm302_vm1, %v22169_v57 }
 0x28b   :  { %18371 = vmatmul.mubr.msk.f32.gmra.mrb[48].mxu1 %vm302_vm1, %v22169_v57  ;;  %18179 = vmatprep.mubr.msk.f32.mxu0 %vm302_vm1, %v22176_v58  ;;  %v26359_v57 = vld [vmem:[#allocation53_spill] sm:$0xff] }
 0x28c   :  { %18373 = vmatprep.mubr.msk.f32.mxu1 %vm302_vm1, %v22176_v58  ;;  %v26360_v58 = vld [vmem:[#allocation54_spill] sm:$0xff] }
 0x28e   :  { %18180 = vmatmul.mubr.msk.f32.gmra.mrb[50].mxu0 %vm302_vm1, %v22187_v59 }
 0x28f   :  { %18374 = vmatmul.mubr.msk.f32.gmra.mrb[50].mxu1 %vm302_vm1, %v22187_v59  ;;  %18182 = vmatprep.mubr.msk.f32.mxu0 %vm302_vm1, %v22194_v60  ;;  %v26361_v59 = vld [vmem:[#allocation55_spill] sm:$0xff] }
 0x290   :  { %18376 = vmatprep.mubr.msk.f32.mxu1 %vm302_vm1, %v22194_v60  ;;  %v26362_v60 = vld [vmem:[#allocation56_spill] sm:$0xff] }
 0x292   :  { %18183 = vmatmul.mubr.msk.f32.gmra.mrb[52].mxu0 %vm302_vm1, %v22205_v61 }
 0x293   :  { %18377 = vmatmul.mubr.msk.f32.gmra.mrb[52].mxu1 %vm302_vm1, %v22205_v61  ;;  %18185 = vmatprep.mubr.msk.f32.mxu0 %vm302_vm1, %v22212_v62  ;;  %v26363_v61 = vld [vmem:[#allocation57_spill] sm:$0xff] }
 0x294   :  { %18379 = vmatprep.mubr.msk.f32.mxu1 %vm302_vm1, %v22212_v62  ;;  %v26364_v62 = vld [vmem:[#allocation58_spill] sm:$0xff] }
 0x296   :  { %18186 = vmatmul.mubr.msk.f32.gmra.mrb[54].mxu0 %vm302_vm1, %v22223_v63 }
 0x297   :  { %18380 = vmatmul.mubr.msk.f32.gmra.mrb[54].mxu1 %vm302_vm1, %v22223_v63  ;;  %18188 = vmatprep.mubr.msk.f32.mxu0 %vm302_vm1, %v22230_v0  ;;  %v26365_v63 = vld [vmem:[#allocation59_spill] sm:$0xff] }
 0x298   :  { %18382 = vmatprep.mubr.msk.f32.mxu1 %vm302_vm1, %v22230_v0  ;;  %v26366_v0 = vld [vmem:[#allocation60_spill] sm:$0xff] }
 0x29a   :  { %18189 = vmatmul.mubr.msk.f32.gmra.mrb[56].mxu0 %vm302_vm1, %v22241_v1 }
 0x29b   :  { %18383 = vmatmul.mubr.msk.f32.gmra.mrb[56].mxu1 %vm302_vm1, %v22241_v1  ;;  %18191 = vmatprep.mubr.msk.f32.mxu0 %vm302_vm1, %v26314_v10  ;;  %v26367_v1 = vld [vmem:[#allocation61_spill] sm:$0xff] }
 0x29c   :  { %18385 = vmatprep.mubr.msk.f32.mxu1 %vm302_vm1, %v26314_v10  ;;  %v26370_v10 = vld [vmem:[#allocation64_spill] sm:$0xff] }
 0x29e   :  { %18192 = vmatmul.mubr.msk.f32.gmra.mrb[58].mxu0 %vm302_vm1, %v26315_v11 }
 0x29f   :  { %18386 = vmatmul.mubr.msk.f32.gmra.mrb[58].mxu1 %vm302_vm1, %v26315_v11  ;;  %18194 = vmatprep.mubr.msk.f32.mxu0 %vm302_vm1, %v26316_v12  ;;  %v26371_v11 = vld [vmem:[#allocation65_spill] sm:$0xff] }
 0x2a0   :  { %18388 = vmatprep.mubr.msk.f32.mxu1 %vm302_vm1, %v26316_v12  ;;  %v26372_v12 = vld [vmem:[#allocation66_spill] sm:$0xff] }
 0x2a2   :  { %18195 = vmatmul.mubr.msk.f32.gmra.mrb[60].mxu0 %vm302_vm1, %v26317_v9 }
 0x2a3   :  { %18389 = vmatmul.mubr.msk.f32.gmra.mrb[60].mxu1 %vm302_vm1, %v26317_v9  ;;  %18197 = vmatprep.mubr.msk.f32.mxu0 %vm302_vm1, %v14286_v8  ;;  %v26374_v9 = vld [vmem:[#allocation68_spill] sm:$0xff] }
 0x2a4   :  { %18391 = vmatprep.mubr.msk.f32.mxu1 %vm302_vm1, %v14286_v8  ;;  %v26373_v8 = vld [vmem:[#allocation67_spill] sm:$0xff] }
 0x2a6   :  { %18198 = vmatmul.mubr.msk.f32.gmra.mrb[62].mxu0 %vm302_vm1, %v14287_v13 }
 0x2a7   :  { %18392 = vmatmul.mubr.msk.f32.gmra.mrb[62].mxu1 %vm302_vm1, %v14287_v13  ;;  %18200 = vmatprep.mubr.msk.f32.mxu0 %vm302_vm1, %v26318_v14  ;;  %v26375_v13 = vld [vmem:[#allocation69_spill] sm:$0xff] }
 0x2a8   :  { %18394 = vmatprep.mubr.msk.f32.mxu1 %vm302_vm1, %v26318_v14  ;;  %v14350_v14 = vld [vmem:[%s26123_s0 + $0x630] sm:$0xff] }
 0x2aa   :  { %18201 = vmatmul.mubr.msk.f32.gmra.mrb[64].mxu0 %vm302_vm1, %v26319_v15 }
 0x2ab   :  { %18395 = vmatmul.mubr.msk.f32.gmra.mrb[64].mxu1 %vm302_vm1, %v26319_v15  ;;  %18203 = vmatprep.mubr.msk.f32.mxu0 %vm302_vm1, %v26320_v16  ;;  %v14615_v15 = vld [vmem:[%s26123_s0 + $0x39] sm:$0xff] }
 0x2ac   :  { %18397 = vmatprep.mubr.msk.f32.mxu1 %vm302_vm1, %v26320_v16  ;;  %v14616_v16 = vld [vmem:[%s26123_s0 + $0x49] sm:$0xff] }
 0x2ae   :  { %18204 = vmatmul.mubr.msk.f32.gmra.mrb[66].mxu0 %vm302_vm1, %v26321_v19 }
 0x2af   :  { %18398 = vmatmul.mubr.msk.f32.gmra.mrb[66].mxu1 %vm302_vm1, %v26321_v19  ;;  %18206 = vmatprep.mubr.msk.f32.mxu0 %vm302_vm1, %v26322_v20  ;;  %v14619_v19 = vld [vmem:[%s26123_s0 + $0x69] sm:$0xff] }
 0x2b0   :  { %18400 = vmatprep.mubr.msk.f32.mxu1 %vm302_vm1, %v26322_v20  ;;  %v14620_v20 = vld [vmem:[%s26123_s0 + $0x79] sm:$0xff] }
 0x2b2   :  { %18207 = vmatmul.mubr.msk.f32.gmra.mrb[68].mxu0 %vm302_vm1, %v26323_v21 }
 0x2b3   :  { %18401 = vmatmul.mubr.msk.f32.gmra.mrb[68].mxu1 %vm302_vm1, %v26323_v21  ;;  %18209 = vmatprep.mubr.msk.f32.mxu0 %vm302_vm1, %v26324_v22  ;;  %v14621_v21 = vld [vmem:[%s26123_s0 + $0x81] sm:$0xff] }
 0x2b4   :  { %18403 = vmatprep.mubr.msk.f32.mxu1 %vm302_vm1, %v26324_v22  ;;  %v14622_v22 = vld [vmem:[%s26123_s0 + $0x91] sm:$0xff] }
 0x2b6   :  { %18210 = vmatmul.mubr.msk.f32.gmra.mrb[70].mxu0 %vm302_vm1, %v26325_v23 }
 0x2b7   :  { %18404 = vmatmul.mubr.msk.f32.gmra.mrb[70].mxu1 %vm302_vm1, %v26325_v23  ;;  %18212 = vmatprep.mubr.msk.f32.mxu0 %vm302_vm1, %v26326_v24  ;;  %v14623_v23 = vld [vmem:[%s26123_s0 + $0x99] sm:$0xff] }
 0x2b8   :  { %18406 = vmatprep.mubr.msk.f32.mxu1 %vm302_vm1, %v26326_v24  ;;  %v14624_v24 = vld [vmem:[%s26123_s0 + $0xa9] sm:$0xff] }
 0x2ba   :  { %18213 = vmatmul.mubr.msk.f32.gmra.mrb[72].mxu0 %vm302_vm1, %v26327_v25 }
 0x2bb   :  { %18407 = vmatmul.mubr.msk.f32.gmra.mrb[72].mxu1 %vm302_vm1, %v26327_v25  ;;  %18215 = vmatprep.mubr.msk.f32.mxu0 %vm302_vm1, %v26328_v26  ;;  %v14625_v25 = vld [vmem:[%s26123_s0 + $0xb1] sm:$0xff] }
 0x2bc   :  { %18409 = vmatprep.mubr.msk.f32.mxu1 %vm302_vm1, %v26328_v26  ;;  %v14626_v26 = vld [vmem:[%s26123_s0 + $0xc1] sm:$0xff] }
 0x2be   :  { %18216 = vmatmul.mubr.msk.f32.gmra.mrb[74].mxu0 %vm302_vm1, %v26329_v27 }
 0x2bf   :  { %18410 = vmatmul.mubr.msk.f32.gmra.mrb[74].mxu1 %vm302_vm1, %v26329_v27  ;;  %18218 = vmatprep.mubr.msk.f32.mxu0 %vm302_vm1, %v26330_v28  ;;  %v14627_v27 = vld [vmem:[%s26123_s0 + $0xc9] sm:$0xff] }
 0x2c0   :  { %18412 = vmatprep.mubr.msk.f32.mxu1 %vm302_vm1, %v26330_v28  ;;  %v14628_v28 = vld [vmem:[%s26123_s0 + $0xd9] sm:$0xff] }
 0x2c2   :  { %18219 = vmatmul.mubr.msk.f32.gmra.mrb[76].mxu0 %vm302_vm1, %v26331_v29 }
 0x2c3   :  { %18413 = vmatmul.mubr.msk.f32.gmra.mrb[76].mxu1 %vm302_vm1, %v26331_v29  ;;  %18221 = vmatprep.mubr.msk.f32.mxu0 %vm302_vm1, %v26332_v30  ;;  %v14629_v29 = vld [vmem:[%s26123_s0 + $0xe1] sm:$0xff] }
 0x2c4   :  { %18415 = vmatprep.mubr.msk.f32.mxu1 %vm302_vm1, %v26332_v30  ;;  %v14630_v30 = vld [vmem:[%s26123_s0 + $0xf1] sm:$0xff] }
 0x2c6   :  { %18222 = vmatmul.mubr.msk.f32.gmra.mrb[78].mxu0 %vm302_vm1, %v26333_v31 }
 0x2c7   :  { %18416 = vmatmul.mubr.msk.f32.gmra.mrb[78].mxu1 %vm302_vm1, %v26333_v31  ;;  %18224 = vmatprep.mubr.msk.f32.mxu0 %vm302_vm1, %v26334_v32  ;;  %v14631_v31 = vld [vmem:[%s26123_s0 + $0xf9] sm:$0xff] }
 0x2c8   :  { %18418 = vmatprep.mubr.msk.f32.mxu1 %vm302_vm1, %v26334_v32  ;;  %v14632_v32 = vld [vmem:[%s26123_s0 + $0x109] sm:$0xff] }
 0x2ca   :  { %18225 = vmatmul.mubr.msk.f32.gmra.mrb[80].mxu0 %vm302_vm1, %v26335_v33 }
 0x2cb   :  { %18419 = vmatmul.mubr.msk.f32.gmra.mrb[80].mxu1 %vm302_vm1, %v26335_v33  ;;  %18227 = vmatprep.mubr.msk.f32.mxu0 %vm302_vm1, %v26336_v34  ;;  %v14633_v33 = vld [vmem:[%s26123_s0 + $0x111] sm:$0xff] }
 0x2cc   :  { %18421 = vmatprep.mubr.msk.f32.mxu1 %vm302_vm1, %v26336_v34  ;;  %v14634_v34 = vld [vmem:[%s26123_s0 + $0x121] sm:$0xff] }
 0x2ce   :  { %18228 = vmatmul.mubr.msk.f32.gmra.mrb[82].mxu0 %vm302_vm1, %v26337_v35 }
 0x2cf   :  { %18422 = vmatmul.mubr.msk.f32.gmra.mrb[82].mxu1 %vm302_vm1, %v26337_v35  ;;  %18230 = vmatprep.mubr.msk.f32.mxu0 %vm302_vm1, %v26338_v36  ;;  %v14635_v35 = vld [vmem:[%s26123_s0 + $0x129] sm:$0xff] }
 0x2d0   :  { %18424 = vmatprep.mubr.msk.f32.mxu1 %vm302_vm1, %v26338_v36  ;;  %v14636_v36 = vld [vmem:[%s26123_s0 + $0x139] sm:$0xff] }
 0x2d2   :  { %18231 = vmatmul.mubr.msk.f32.gmra.mrb[84].mxu0 %vm302_vm1, %v26339_v37 }
 0x2d3   :  { %18425 = vmatmul.mubr.msk.f32.gmra.mrb[84].mxu1 %vm302_vm1, %v26339_v37  ;;  %18233 = vmatprep.mubr.msk.f32.mxu0 %vm302_vm1, %v26340_v38  ;;  %v14637_v37 = vld [vmem:[%s26123_s0 + $0x141] sm:$0xff] }
 0x2d4   :  { %18427 = vmatprep.mubr.msk.f32.mxu1 %vm302_vm1, %v26340_v38  ;;  %v14638_v38 = vld [vmem:[%s26123_s0 + $0x151] sm:$0xff] }
 0x2d6   :  { %18234 = vmatmul.mubr.msk.f32.gmra.mrb[86].mxu0 %vm302_vm1, %v26341_v39 }
 0x2d7   :  { %18428 = vmatmul.mubr.msk.f32.gmra.mrb[86].mxu1 %vm302_vm1, %v26341_v39  ;;  %18236 = vmatprep.mubr.msk.f32.mxu0 %vm302_vm1, %v26342_v40  ;;  %v14639_v39 = vld [vmem:[%s26123_s0 + $0x159] sm:$0xff] }
 0x2d8   :  { %18430 = vmatprep.mubr.msk.f32.mxu1 %vm302_vm1, %v26342_v40  ;;  %v14640_v40 = vld [vmem:[%s26123_s0 + $0x169] sm:$0xff] }
 0x2da   :  { %18237 = vmatmul.mubr.msk.f32.gmra.mrb[88].mxu0 %vm302_vm1, %v26343_v41 }
 0x2db   :  { %18431 = vmatmul.mubr.msk.f32.gmra.mrb[88].mxu1 %vm302_vm1, %v26343_v41  ;;  %18239 = vmatprep.mubr.msk.f32.mxu0 %vm302_vm1, %v26344_v42  ;;  %v14641_v41 = vld [vmem:[%s26123_s0 + $0x171] sm:$0xff] }
 0x2dc   :  { %18433 = vmatprep.mubr.msk.f32.mxu1 %vm302_vm1, %v26344_v42  ;;  %v14642_v42 = vld [vmem:[%s26123_s0 + $0x181] sm:$0xff] }
 0x2de   :  { %18240 = vmatmul.mubr.msk.f32.gmra.mrb[90].mxu0 %vm302_vm1, %v26345_v43 }
 0x2df   :  { %18434 = vmatmul.mubr.msk.f32.gmra.mrb[90].mxu1 %vm302_vm1, %v26345_v43  ;;  %18242 = vmatprep.mubr.msk.f32.mxu0 %vm302_vm1, %v26346_v44  ;;  %v14643_v43 = vld [vmem:[%s26123_s0 + $0x189] sm:$0xff] }
 0x2e0   :  { %18436 = vmatprep.mubr.msk.f32.mxu1 %vm302_vm1, %v26346_v44  ;;  %v14644_v44 = vld [vmem:[%s26123_s0 + $0x199] sm:$0xff] }
 0x2e2   :  { %18243 = vmatmul.mubr.msk.f32.gmra.mrb[92].mxu0 %vm302_vm1, %v26347_v45 }
 0x2e3   :  { %18437 = vmatmul.mubr.msk.f32.gmra.mrb[92].mxu1 %vm302_vm1, %v26347_v45  ;;  %18245 = vmatprep.mubr.msk.f32.mxu0 %vm302_vm1, %v26348_v46  ;;  %v14645_v45 = vld [vmem:[%s26123_s0 + $0x1a1] sm:$0xff] }
 0x2e4   :  { %18439 = vmatprep.mubr.msk.f32.mxu1 %vm302_vm1, %v26348_v46  ;;  %v14646_v46 = vld [vmem:[%s26123_s0 + $0x1b1] sm:$0xff] }
 0x2e6   :  { %18246 = vmatmul.mubr.msk.f32.gmra.mrb[94].mxu0 %vm302_vm1, %v26349_v47 }
 0x2e7   :  { %18440 = vmatmul.mubr.msk.f32.gmra.mrb[94].mxu1 %vm302_vm1, %v26349_v47  ;;  %18248 = vmatprep.mubr.msk.f32.mxu0 %vm302_vm1, %v26350_v48  ;;  %v14647_v47 = vld [vmem:[%s26123_s0 + $0x1b9] sm:$0xff] }
 0x2e8   :  { %18442 = vmatprep.mubr.msk.f32.mxu1 %vm302_vm1, %v26350_v48  ;;  %v14648_v48 = vld [vmem:[%s26123_s0 + $0x1c9] sm:$0xff] }
 0x2ea   :  { %18249 = vmatmul.mubr.msk.f32.gmra.mrb[96].mxu0 %vm302_vm1, %v26351_v49 }
 0x2eb   :  { %18443 = vmatmul.mubr.msk.f32.gmra.mrb[96].mxu1 %vm302_vm1, %v26351_v49  ;;  %18251 = vmatprep.mubr.msk.f32.mxu0 %vm302_vm1, %v26352_v50  ;;  %v14649_v49 = vld [vmem:[%s26123_s0 + $0x1d1] sm:$0xff] }
 0x2ec   :  { %18445 = vmatprep.mubr.msk.f32.mxu1 %vm302_vm1, %v26352_v50  ;;  %v14650_v50 = vld [vmem:[%s26123_s0 + $0x1e1] sm:$0xff] }
 0x2ee   :  { %18252 = vmatmul.mubr.msk.f32.gmra.mrb[98].mxu0 %vm302_vm1, %v26353_v51 }
 0x2ef   :  { %18446 = vmatmul.mubr.msk.f32.gmra.mrb[98].mxu1 %vm302_vm1, %v26353_v51  ;;  %18254 = vmatprep.mubr.msk.f32.mxu0 %vm302_vm1, %v26354_v52  ;;  %v14651_v51 = vld [vmem:[%s26123_s0 + $0x1e9] sm:$0xff] }
 0x2f0   :  { %18448 = vmatprep.mubr.msk.f32.mxu1 %vm302_vm1, %v26354_v52  ;;  %v14652_v52 = vld [vmem:[%s26123_s0 + $0x1f9] sm:$0xff] }
 0x2f2   :  { %18255 = vmatmul.mubr.msk.f32.gmra.mrb[100].mxu0 %vm302_vm1, %v26355_v53 }
 0x2f3   :  { %18449 = vmatmul.mubr.msk.f32.gmra.mrb[100].mxu1 %vm302_vm1, %v26355_v53  ;;  %18257 = vmatprep.mubr.msk.f32.mxu0 %vm302_vm1, %v26356_v54  ;;  %v14653_v53 = vld [vmem:[%s26123_s0 + $0x201] sm:$0xff] }
 0x2f4   :  { %18451 = vmatprep.mubr.msk.f32.mxu1 %vm302_vm1, %v26356_v54  ;;  %v14654_v54 = vld [vmem:[%s26123_s0 + $0x211] sm:$0xff] }
 0x2f6   :  { %18258 = vmatmul.mubr.msk.f32.gmra.mrb[102].mxu0 %vm302_vm1, %v26357_v55 }
 0x2f7   :  { %18452 = vmatmul.mubr.msk.f32.gmra.mrb[102].mxu1 %vm302_vm1, %v26357_v55  ;;  %18260 = vmatprep.mubr.msk.f32.mxu0 %vm302_vm1, %v26358_v56  ;;  %v14655_v55 = vld [vmem:[%s26123_s0 + $0x219] sm:$0xff] }
 0x2f8   :  { %18454 = vmatprep.mubr.msk.f32.mxu1 %vm302_vm1, %v26358_v56  ;;  %v14656_v56 = vld [vmem:[%s26123_s0 + $0x229] sm:$0xff] }
 0x2fa   :  { %18261 = vmatmul.mubr.msk.f32.gmra.mrb[104].mxu0 %vm302_vm1, %v26359_v57 }
 0x2fb   :  { %18455 = vmatmul.mubr.msk.f32.gmra.mrb[104].mxu1 %vm302_vm1, %v26359_v57  ;;  %18263 = vmatprep.mubr.msk.f32.mxu0 %vm302_vm1, %v26360_v58  ;;  %v14657_v57 = vld [vmem:[%s26123_s0 + $0x231] sm:$0xff] }
 0x2fc   :  { %18457 = vmatprep.mubr.msk.f32.mxu1 %vm302_vm1, %v26360_v58  ;;  %v14658_v58 = vld [vmem:[%s26123_s0 + $0x241] sm:$0xff] }
 0x2fe   :  { %18264 = vmatmul.mubr.msk.f32.gmra.mrb[106].mxu0 %vm302_vm1, %v26361_v59 }
 0x2ff   :  { %18458 = vmatmul.mubr.msk.f32.gmra.mrb[106].mxu1 %vm302_vm1, %v26361_v59  ;;  %18266 = vmatprep.mubr.msk.f32.mxu0 %vm302_vm1, %v26362_v60  ;;  %v14659_v59 = vld [vmem:[%s26123_s0 + $0x249] sm:$0xff] }
 0x300   :  { %18460 = vmatprep.mubr.msk.f32.mxu1 %vm302_vm1, %v26362_v60  ;;  %v14660_v60 = vld [vmem:[%s26123_s0 + $0x259] sm:$0xff] }
 0x302   :  { %18267 = vmatmul.mubr.msk.f32.gmra.mrb[108].mxu0 %vm302_vm1, %v26363_v61 }
 0x303   :  { %18461 = vmatmul.mubr.msk.f32.gmra.mrb[108].mxu1 %vm302_vm1, %v26363_v61  ;;  %18269 = vmatprep.mubr.msk.f32.mxu0 %vm302_vm1, %v26364_v62  ;;  %v14661_v61 = vld [vmem:[%s26123_s0 + $0x261] sm:$0xff] }
 0x304   :  { %18463 = vmatprep.mubr.msk.f32.mxu1 %vm302_vm1, %v26364_v62  ;;  %v14662_v62 = vld [vmem:[%s26123_s0 + $0x271] sm:$0xff] }
 0x306   :  { %18270 = vmatmul.mubr.msk.f32.gmra.mrb[110].mxu0 %vm302_vm1, %v26365_v63 }
 0x307   :  { %18464 = vmatmul.mubr.msk.f32.gmra.mrb[110].mxu1 %vm302_vm1, %v26365_v63  ;;  %18272 = vmatprep.mubr.msk.f32.mxu0 %vm302_vm1, %v26366_v0  ;;  %v14663_v63 = vld [vmem:[%s26123_s0 + $0x279] sm:$0xff] }
 0x308   :  { %18466 = vmatprep.mubr.msk.f32.mxu1 %vm302_vm1, %v26366_v0  ;;  %v14664_v0 = vld [vmem:[%s26123_s0 + $0x289] sm:$0xff] }
 0x30a   :  { %18273 = vmatmul.mubr.msk.f32.gmra.mrb[112].mxu0 %vm302_vm1, %v26367_v1 }
 0x30b   :  { %18467 = vmatmul.mubr.msk.f32.gmra.mrb[112].mxu1 %vm302_vm1, %v26367_v1  ;;  %18275 = vmatprep.mubr.msk.f32.mxu0 %vm302_vm1, %v26368_v3  ;;  %v14665_v1 = vld [vmem:[%s26123_s0 + $0x291] sm:$0xff] }
 0x30c   :  { %18469 = vmatprep.mubr.msk.f32.mxu1 %vm302_vm1, %v26368_v3  ;;  %v14666_v3 = vld [vmem:[%s26123_s0 + $0x2a1] sm:$0xff] }
 0x30e   :  { %18276 = vmatmul.mubr.msk.f32.gmra.mrb[114].mxu0 %vm302_vm1, %v26369_v6 }
 0x30f   :  { %18470 = vmatmul.mubr.msk.f32.gmra.mrb[114].mxu1 %vm302_vm1, %v26369_v6  ;;  %18278 = vmatprep.mubr.msk.f32.mxu0 %vm302_vm1, %v26370_v10  ;;  %v14667_v6 = vld [vmem:[%s26123_s0 + $0x2a9] sm:$0xff] }
 0x310   :  { %18472 = vmatprep.mubr.msk.f32.mxu1 %vm302_vm1, %v26370_v10  ;;  %v14668_v10 = vld [vmem:[%s26123_s0 + $0x2b9] sm:$0xff] }
 0x312   :  { %18279 = vmatmul.mubr.msk.f32.gmra.mrb[116].mxu0 %vm302_vm1, %v26371_v11 }
 0x313   :  { %18473 = vmatmul.mubr.msk.f32.gmra.mrb[116].mxu1 %vm302_vm1, %v26371_v11  ;;  %18281 = vmatprep.mubr.msk.f32.mxu0 %vm302_vm1, %v26372_v12  ;;  %v14669_v11 = vld [vmem:[%s26123_s0 + $0x2c1] sm:$0xff] }
 0x314   :  { %18475 = vmatprep.mubr.msk.f32.mxu1 %vm302_vm1, %v26372_v12  ;;  %v14670_v12 = vld [vmem:[%s26123_s0 + $0x2d1] sm:$0xff] }
 0x316   :  { %18282 = vmatmul.mubr.msk.f32.gmra.mrb[118].mxu0 %vm302_vm1, %v26373_v8 }
 0x317   :  { %18476 = vmatmul.mubr.msk.f32.gmra.mrb[118].mxu1 %vm302_vm1, %v26373_v8  ;;  %18284 = vmatprep.mubr.msk.f32.mxu0 %vm302_vm1, %v26374_v9  ;;  %v14671_v8 = vld [vmem:[%s26123_s0 + $0x2d9] sm:$0xff] }
 0x318   :  { %18478 = vmatprep.mubr.msk.f32.mxu1 %vm302_vm1, %v26374_v9  ;;  %v14672_v9 = vld [vmem:[%s26123_s0 + $0x2e9] sm:$0xff] }
 0x31a   :  { %18285 = vmatmul.mubr.msk.f32.gmra.mrb[120].mxu0 %vm302_vm1, %v26375_v13 }
 0x31b   :  { %18479 = vmatmul.mubr.msk.f32.gmra.mrb[120].mxu1 %vm302_vm1, %v26375_v13  ;;  %18287 = vmatprep.mubr.msk.f32.mxu0 %vm302_vm1, %v22830_v7  ;;  %v14673_v13 = vld [vmem:[%s26123_s0 + $0x2f1] sm:$0xff] }
 0x31c   :  { %18481 = vmatprep.mubr.msk.f32.mxu1 %vm302_vm1, %v22830_v7  ;;  %v14614_v7 = vld [vmem:[%s26123_s0 + $0x31] sm:$0xff] }
 0x31e   :  { %18288 = vmatmul.mubr.msk.f32.gmra.mrb[122].mxu0 %vm302_vm1, %v22841_v4 }
 0x31f   :  { %18482 = vmatmul.mubr.msk.f32.gmra.mrb[122].mxu1 %vm302_vm1, %v22841_v4  ;;  %18290 = vmatprep.mubr.msk.f32.mxu0 %vm302_vm1, %v22848_v2  ;;  %v14351_v4 = vld [vmem:[%s26123_s0 + $0x638] sm:$0xff] }
 0x320   :  { %18484 = vmatprep.mubr.msk.f32.mxu1 %vm302_vm1, %v22848_v2  ;;  %v14612_v2 = vld [vmem:[%s26123_s0 + $0x19] sm:$0xff] }
 0x322   :  { %18291 = vmatmul.mubr.msk.f32.gmra.mrb[124].mxu0 %vm302_vm1, %v22859_v5 }
 0x323   :  { %18485 = vmatmul.mubr.msk.f32.gmra.mrb[124].mxu1 %vm302_vm1, %v22859_v5  ;;  %18293 = vmatprep.mubr.msk.f32.mxu0 %vm302_vm1, %v14350_v14  ;;  %v14613_v5 = vld [vmem:[%s26123_s0 + $0x21] sm:$0xff] }
 0x324   :  { %18487 = vmatprep.mubr.msk.f32.mxu1 %vm302_vm1, %v14350_v14  ;;  %v14674_v14 = vld [vmem:[%s26123_s0 + $0x301] sm:$0xff] }
 0x326   :  { %18294 = vmatmul.mubr.msk.f32.gmra.mrb[126].mxu0 %vm302_vm1, %v14351_v4 }
 0x327   :  { %18488 = vmatmul.mubr.msk.f32.gmra.mrb[126].mxu1 %vm302_vm1, %v14351_v4  ;;  %18492 = vmatprep.mubr.msk.f32.mxu0 %vm302_vm1, %v14612_v2  ;;  %v14675_v4 = vld [vmem:[%s26123_s0 + $0x309] sm:$0xff] }
 0x328   :  { %18686 = vmatprep.mubr.msk.f32.mxu1 %vm302_vm1, %v14612_v2  ;;  %v14676_v2 = vld [vmem:[%s26123_s0 + $0x349] sm:$0xff] }
 0x32a   :  { %18493 = vmatmul.mubr.msk.f32.vlgmr.msra.gmra.mrb[0].mxu0 %vm302_vm1, %v14613_v5 }
 0x32b   :  { %18687 = vmatmul.mubr.msk.f32.vlgmr.msra.gmra.mrb[0].mxu1 %vm302_vm1, %v14613_v5  ;;  %18879 = vmatpush3.msk.msra.mxu0 %vm687_vm0, %v23142_v17  ;;  %v14617_v17 = vld [vmem:[%s26123_s0 + $0x51] sm:$0xff] }
 0x32c   :  { %19073 = vmatpush3.msk.msra.mxu1 %vm687_vm0, %v23147_v18  ;;  %18495 = vmatprep.mubr.msk.f32.mxu0 %vm302_vm1, %v14614_v7  ;;  %v14618_v18 = vld [vmem:[%s26123_s0 + $0x61] sm:$0xff]  ;;  %v14677_v5 = vld [vmem:[%s26123_s0 + $0x351] sm:$0xff] }
 0x32d   :  { %18689 = vmatprep.mubr.msk.f32.mxu1 %vm302_vm1, %v14614_v7  ;;  %v14678_v7 = vld [vmem:[%s26123_s0 + $0x361] sm:$0xff] }
 0x32e   :  { %18496 = vmatmul.mubr.msk.f32.gmra.mrb[2].mxu0 %vm302_vm1, %v14615_v15 }
 0x32f   :  { %18690 = vmatmul.mubr.msk.f32.gmra.mrb[2].mxu1 %vm302_vm1, %v14615_v15  ;;  %18498 = vmatprep.mubr.msk.f32.mxu0 %vm302_vm1, %v14616_v16  ;;  %v14679_v15 = vld [vmem:[%s26123_s0 + $0x369] sm:$0xff] }
 0x330   :  { %18692 = vmatprep.mubr.msk.f32.mxu1 %vm302_vm1, %v14616_v16  ;;  %v23745_v16 = vld [vmem:[%s26124_s1 + $0x28] sm:$0x3f] }
 0x331   :  { %19266 = vmatprep.subr.msk.mxu0 %vm687_vm0, %v23745_v16 }
 0x332   :  { %18499 = vmatmul.mubr.msk.f32.gmra.mrb[4].mxu0 %vm302_vm1, %v14617_v17 }
 0x333   :  { %18693 = vmatmul.mubr.msk.f32.gmra.mrb[4].mxu1 %vm302_vm1, %v14617_v17  ;;  %18501 = vmatprep.mubr.msk.f32.mxu0 %vm302_vm1, %v14618_v18  ;;  %v23750_v17 = vld [vmem:[%s26124_s1 + $0x58] sm:$0x3f] }
 0x334   :  { %18695 = vmatprep.mubr.msk.f32.mxu1 %vm302_vm1, %v14618_v18  ;;  %v14680_v18 = vld [vmem:[%s26123_s0 + $0x379] sm:$0xff]  ;;  %19460 = vmatprep.subr.msk.mxu1 %vm687_vm0, %v23750_v17 }
 0x336   :  { %18502 = vmatmul.mubr.msk.f32.gmra.mrb[6].mxu0 %vm302_vm1, %v14619_v19 }
 0x337   :  { %18696 = vmatmul.mubr.msk.f32.gmra.mrb[6].mxu1 %vm302_vm1, %v14619_v19  ;;  %18504 = vmatprep.mubr.msk.f32.mxu0 %vm302_vm1, %v14620_v20  ;;  %v14681_v19 = vld [vmem:[%s26123_s0 + $0x381] sm:$0xff] }
 0x338   :  { %18698 = vmatprep.mubr.msk.f32.mxu1 %vm302_vm1, %v14620_v20  ;;  %v14682_v20 = vld [vmem:[%s26123_s0 + $0x391] sm:$0xff] }
 0x33a   :  { %18505 = vmatmul.mubr.msk.f32.gmra.mrb[8].mxu0 %vm302_vm1, %v14621_v21 }
 0x33b   :  { %18699 = vmatmul.mubr.msk.f32.gmra.mrb[8].mxu1 %vm302_vm1, %v14621_v21  ;;  %18507 = vmatprep.mubr.msk.f32.mxu0 %vm302_vm1, %v14622_v22  ;;  %v14683_v21 = vld [vmem:[%s26123_s0 + $0x399] sm:$0xff] }
 0x33c   :  { %18701 = vmatprep.mubr.msk.f32.mxu1 %vm302_vm1, %v14622_v22  ;;  %v14684_v22 = vld [vmem:[%s26123_s0 + $0x3a9] sm:$0xff] }
 0x33e   :  { %18508 = vmatmul.mubr.msk.f32.gmra.mrb[10].mxu0 %vm302_vm1, %v14623_v23 }
 0x33f   :  { %18702 = vmatmul.mubr.msk.f32.gmra.mrb[10].mxu1 %vm302_vm1, %v14623_v23  ;;  %18510 = vmatprep.mubr.msk.f32.mxu0 %vm302_vm1, %v14624_v24  ;;  %v14685_v23 = vld [vmem:[%s26123_s0 + $0x3b1] sm:$0xff] }
 0x340   :  { %18704 = vmatprep.mubr.msk.f32.mxu1 %vm302_vm1, %v14624_v24  ;;  %v14686_v24 = vld [vmem:[%s26123_s0 + $0x3c1] sm:$0xff] }
 0x342   :  { %18511 = vmatmul.mubr.msk.f32.gmra.mrb[12].mxu0 %vm302_vm1, %v14625_v25 }
 0x343   :  { %18705 = vmatmul.mubr.msk.f32.gmra.mrb[12].mxu1 %vm302_vm1, %v14625_v25  ;;  %18513 = vmatprep.mubr.msk.f32.mxu0 %vm302_vm1, %v14626_v26  ;;  %v14687_v25 = vld [vmem:[%s26123_s0 + $0x3c9] sm:$0xff] }
 0x344   :  { %18707 = vmatprep.mubr.msk.f32.mxu1 %vm302_vm1, %v14626_v26  ;;  %v14688_v26 = vld [vmem:[%s26123_s0 + $0x3d9] sm:$0xff] }
 0x346   :  { %18514 = vmatmul.mubr.msk.f32.gmra.mrb[14].mxu0 %vm302_vm1, %v14627_v27 }
 0x347   :  { %18708 = vmatmul.mubr.msk.f32.gmra.mrb[14].mxu1 %vm302_vm1, %v14627_v27  ;;  %18516 = vmatprep.mubr.msk.f32.mxu0 %vm302_vm1, %v14628_v28  ;;  %v14689_v27 = vld [vmem:[%s26123_s0 + $0x3e1] sm:$0xff] }
 0x348   :  { %18710 = vmatprep.mubr.msk.f32.mxu1 %vm302_vm1, %v14628_v28  ;;  %v14690_v28 = vld [vmem:[%s26123_s0 + $0x3f1] sm:$0xff] }
 0x34a   :  { %18517 = vmatmul.mubr.msk.f32.gmra.mrb[16].mxu0 %vm302_vm1, %v14629_v29 }
 0x34b   :  { %18711 = vmatmul.mubr.msk.f32.gmra.mrb[16].mxu1 %vm302_vm1, %v14629_v29  ;;  %18519 = vmatprep.mubr.msk.f32.mxu0 %vm302_vm1, %v14630_v30  ;;  %v14691_v29 = vld [vmem:[%s26123_s0 + $0x3f9] sm:$0xff] }
 0x34c   :  { %18713 = vmatprep.mubr.msk.f32.mxu1 %vm302_vm1, %v14630_v30  ;;  %v14692_v30 = vld [vmem:[%s26123_s0 + $0x409] sm:$0xff] }
 0x34e   :  { %18520 = vmatmul.mubr.msk.f32.gmra.mrb[18].mxu0 %vm302_vm1, %v14631_v31 }
 0x34f   :  { %18714 = vmatmul.mubr.msk.f32.gmra.mrb[18].mxu1 %vm302_vm1, %v14631_v31  ;;  %18522 = vmatprep.mubr.msk.f32.mxu0 %vm302_vm1, %v14632_v32  ;;  %v14693_v31 = vld [vmem:[%s26123_s0 + $0x411] sm:$0xff] }
 0x350   :  { %18716 = vmatprep.mubr.msk.f32.mxu1 %vm302_vm1, %v14632_v32  ;;  %v14694_v32 = vld [vmem:[%s26123_s0 + $0x421] sm:$0xff] }
 0x352   :  { %18523 = vmatmul.mubr.msk.f32.gmra.mrb[20].mxu0 %vm302_vm1, %v14633_v33 }
 0x353   :  { %18717 = vmatmul.mubr.msk.f32.gmra.mrb[20].mxu1 %vm302_vm1, %v14633_v33  ;;  %18525 = vmatprep.mubr.msk.f32.mxu0 %vm302_vm1, %v14634_v34  ;;  %v14695_v33 = vld [vmem:[%s26123_s0 + $0x429] sm:$0xff] }
 0x354   :  { %18719 = vmatprep.mubr.msk.f32.mxu1 %vm302_vm1, %v14634_v34  ;;  %v14696_v34 = vld [vmem:[%s26123_s0 + $0x439] sm:$0xff] }
 0x356   :  { %18526 = vmatmul.mubr.msk.f32.gmra.mrb[22].mxu0 %vm302_vm1, %v14635_v35 }
 0x357   :  { %18720 = vmatmul.mubr.msk.f32.gmra.mrb[22].mxu1 %vm302_vm1, %v14635_v35  ;;  %18528 = vmatprep.mubr.msk.f32.mxu0 %vm302_vm1, %v14636_v36  ;;  %v14697_v35 = vld [vmem:[%s26123_s0 + $0x441] sm:$0xff] }
 0x358   :  { %18722 = vmatprep.mubr.msk.f32.mxu1 %vm302_vm1, %v14636_v36  ;;  %v14698_v36 = vld [vmem:[%s26123_s0 + $0x451] sm:$0xff] }
 0x35a   :  { %18529 = vmatmul.mubr.msk.f32.gmra.mrb[24].mxu0 %vm302_vm1, %v14637_v37 }
 0x35b   :  { %18723 = vmatmul.mubr.msk.f32.gmra.mrb[24].mxu1 %vm302_vm1, %v14637_v37  ;;  %18531 = vmatprep.mubr.msk.f32.mxu0 %vm302_vm1, %v14638_v38  ;;  %v14699_v37 = vld [vmem:[%s26123_s0 + $0x459] sm:$0xff] }
 0x35c   :  { %18725 = vmatprep.mubr.msk.f32.mxu1 %vm302_vm1, %v14638_v38  ;;  %v14700_v38 = vld [vmem:[%s26123_s0 + $0x469] sm:$0xff] }
 0x35e   :  { %18532 = vmatmul.mubr.msk.f32.gmra.mrb[26].mxu0 %vm302_vm1, %v14639_v39 }
 0x35f   :  { %18726 = vmatmul.mubr.msk.f32.gmra.mrb[26].mxu1 %vm302_vm1, %v14639_v39  ;;  %18534 = vmatprep.mubr.msk.f32.mxu0 %vm302_vm1, %v14640_v40  ;;  %v14701_v39 = vld [vmem:[%s26123_s0 + $0x471] sm:$0xff] }
 0x360   :  { %18728 = vmatprep.mubr.msk.f32.mxu1 %vm302_vm1, %v14640_v40  ;;  %v14702_v40 = vld [vmem:[%s26123_s0 + $0x481] sm:$0xff] }
 0x362   :  { %18535 = vmatmul.mubr.msk.f32.gmra.mrb[28].mxu0 %vm302_vm1, %v14641_v41 }
 0x363   :  { %18729 = vmatmul.mubr.msk.f32.gmra.mrb[28].mxu1 %vm302_vm1, %v14641_v41  ;;  %18537 = vmatprep.mubr.msk.f32.mxu0 %vm302_vm1, %v14642_v42  ;;  %v14703_v41 = vld [vmem:[%s26123_s0 + $0x489] sm:$0xff] }
 0x364   :  { %18731 = vmatprep.mubr.msk.f32.mxu1 %vm302_vm1, %v14642_v42  ;;  %v14704_v42 = vld [vmem:[%s26123_s0 + $0x499] sm:$0xff] }
 0x366   :  { %18538 = vmatmul.mubr.msk.f32.gmra.mrb[30].mxu0 %vm302_vm1, %v14643_v43 }
 0x367   :  { %18732 = vmatmul.mubr.msk.f32.gmra.mrb[30].mxu1 %vm302_vm1, %v14643_v43  ;;  %18540 = vmatprep.mubr.msk.f32.mxu0 %vm302_vm1, %v14644_v44  ;;  %v14705_v43 = vld [vmem:[%s26123_s0 + $0x4a1] sm:$0xff] }
 0x368   :  { %18734 = vmatprep.mubr.msk.f32.mxu1 %vm302_vm1, %v14644_v44  ;;  %v14706_v44 = vld [vmem:[%s26123_s0 + $0x4b1] sm:$0xff] }
 0x36a   :  { %18541 = vmatmul.mubr.msk.f32.gmra.mrb[32].mxu0 %vm302_vm1, %v14645_v45 }
 0x36b   :  { %18735 = vmatmul.mubr.msk.f32.gmra.mrb[32].mxu1 %vm302_vm1, %v14645_v45  ;;  %18543 = vmatprep.mubr.msk.f32.mxu0 %vm302_vm1, %v14646_v46  ;;  %v14707_v45 = vld [vmem:[%s26123_s0 + $0x4b9] sm:$0xff] }
 0x36c   :  { %18737 = vmatprep.mubr.msk.f32.mxu1 %vm302_vm1, %v14646_v46  ;;  %v14708_v46 = vld [vmem:[%s26123_s0 + $0x4c9] sm:$0xff] }
 0x36e   :  { %18544 = vmatmul.mubr.msk.f32.gmra.mrb[34].mxu0 %vm302_vm1, %v14647_v47 }
 0x36f   :  { %18738 = vmatmul.mubr.msk.f32.gmra.mrb[34].mxu1 %vm302_vm1, %v14647_v47  ;;  %18546 = vmatprep.mubr.msk.f32.mxu0 %vm302_vm1, %v14648_v48  ;;  %v14709_v47 = vld [vmem:[%s26123_s0 + $0x4d1] sm:$0xff] }
 0x370   :  { %18740 = vmatprep.mubr.msk.f32.mxu1 %vm302_vm1, %v14648_v48  ;;  %v14710_v48 = vld [vmem:[%s26123_s0 + $0x4e1] sm:$0xff] }
 0x372   :  { %18547 = vmatmul.mubr.msk.f32.gmra.mrb[36].mxu0 %vm302_vm1, %v14649_v49 }
 0x373   :  { %18741 = vmatmul.mubr.msk.f32.gmra.mrb[36].mxu1 %vm302_vm1, %v14649_v49  ;;  %18549 = vmatprep.mubr.msk.f32.mxu0 %vm302_vm1, %v14650_v50  ;;  %v14711_v49 = vld [vmem:[%s26123_s0 + $0x4e9] sm:$0xff] }
 0x374   :  { %18743 = vmatprep.mubr.msk.f32.mxu1 %vm302_vm1, %v14650_v50  ;;  %v14712_v50 = vld [vmem:[%s26123_s0 + $0x4f9] sm:$0xff] }
 0x376   :  { %18550 = vmatmul.mubr.msk.f32.gmra.mrb[38].mxu0 %vm302_vm1, %v14651_v51 }
 0x377   :  { %18744 = vmatmul.mubr.msk.f32.gmra.mrb[38].mxu1 %vm302_vm1, %v14651_v51  ;;  %18552 = vmatprep.mubr.msk.f32.mxu0 %vm302_vm1, %v14652_v52  ;;  %v14713_v51 = vld [vmem:[%s26123_s0 + $0x501] sm:$0xff] }
 0x378   :  { %18746 = vmatprep.mubr.msk.f32.mxu1 %vm302_vm1, %v14652_v52  ;;  %v14714_v52 = vld [vmem:[%s26123_s0 + $0x511] sm:$0xff] }
 0x37a   :  { %18553 = vmatmul.mubr.msk.f32.gmra.mrb[40].mxu0 %vm302_vm1, %v14653_v53 }
 0x37b   :  { %18747 = vmatmul.mubr.msk.f32.gmra.mrb[40].mxu1 %vm302_vm1, %v14653_v53  ;;  %18555 = vmatprep.mubr.msk.f32.mxu0 %vm302_vm1, %v14654_v54  ;;  %v14715_v53 = vld [vmem:[%s26123_s0 + $0x519] sm:$0xff] }
 0x37c   :  { %18749 = vmatprep.mubr.msk.f32.mxu1 %vm302_vm1, %v14654_v54  ;;  %v14716_v54 = vld [vmem:[%s26123_s0 + $0x529] sm:$0xff] }
 0x37e   :  { %18556 = vmatmul.mubr.msk.f32.gmra.mrb[42].mxu0 %vm302_vm1, %v14655_v55 }
 0x37f   :  { %18750 = vmatmul.mubr.msk.f32.gmra.mrb[42].mxu1 %vm302_vm1, %v14655_v55  ;;  %18558 = vmatprep.mubr.msk.f32.mxu0 %vm302_vm1, %v14656_v56  ;;  %v14717_v55 = vld [vmem:[%s26123_s0 + $0x531] sm:$0xff] }
 0x380   :  { %18752 = vmatprep.mubr.msk.f32.mxu1 %vm302_vm1, %v14656_v56  ;;  %v14718_v56 = vld [vmem:[%s26123_s0 + $0x541] sm:$0xff] }
 0x382   :  { %18559 = vmatmul.mubr.msk.f32.gmra.mrb[44].mxu0 %vm302_vm1, %v14657_v57 }
 0x383   :  { %18753 = vmatmul.mubr.msk.f32.gmra.mrb[44].mxu1 %vm302_vm1, %v14657_v57  ;;  %18561 = vmatprep.mubr.msk.f32.mxu0 %vm302_vm1, %v14658_v58  ;;  %v14719_v57 = vld [vmem:[%s26123_s0 + $0x549] sm:$0xff] }
 0x384   :  { %18755 = vmatprep.mubr.msk.f32.mxu1 %vm302_vm1, %v14658_v58  ;;  %v14720_v58 = vld [vmem:[%s26123_s0 + $0x559] sm:$0xff] }
 0x386   :  { %18562 = vmatmul.mubr.msk.f32.gmra.mrb[46].mxu0 %vm302_vm1, %v14659_v59 }
 0x387   :  { %18756 = vmatmul.mubr.msk.f32.gmra.mrb[46].mxu1 %vm302_vm1, %v14659_v59  ;;  %18564 = vmatprep.mubr.msk.f32.mxu0 %vm302_vm1, %v14660_v60  ;;  %v14721_v59 = vld [vmem:[%s26123_s0 + $0x561] sm:$0xff] }
 0x388   :  { %18758 = vmatprep.mubr.msk.f32.mxu1 %vm302_vm1, %v14660_v60  ;;  %v14722_v60 = vld [vmem:[%s26123_s0 + $0x571] sm:$0xff] }
 0x38a   :  { %18565 = vmatmul.mubr.msk.f32.gmra.mrb[48].mxu0 %vm302_vm1, %v14661_v61 }
 0x38b   :  { %18759 = vmatmul.mubr.msk.f32.gmra.mrb[48].mxu1 %vm302_vm1, %v14661_v61  ;;  %18567 = vmatprep.mubr.msk.f32.mxu0 %vm302_vm1, %v14662_v62  ;;  %v14723_v61 = vld [vmem:[%s26123_s0 + $0x579] sm:$0xff] }
 0x38c   :  { %18761 = vmatprep.mubr.msk.f32.mxu1 %vm302_vm1, %v14662_v62  ;;  %v14724_v62 = vld [vmem:[%s26123_s0 + $0x589] sm:$0xff] }
 0x38e   :  { %18568 = vmatmul.mubr.msk.f32.gmra.mrb[50].mxu0 %vm302_vm1, %v14663_v63 }
 0x38f   :  { %18762 = vmatmul.mubr.msk.f32.gmra.mrb[50].mxu1 %vm302_vm1, %v14663_v63  ;;  %18570 = vmatprep.mubr.msk.f32.mxu0 %vm302_vm1, %v14664_v0  ;;  %v14725_v63 = vld [vmem:[%s26123_s0 + $0x591] sm:$0xff] }
 0x390   :  { %18764 = vmatprep.mubr.msk.f32.mxu1 %vm302_vm1, %v14664_v0  ;;  %v14726_v0 = vld [vmem:[%s26123_s0 + $0x5a1] sm:$0xff] }
 0x392   :  { %18571 = vmatmul.mubr.msk.f32.gmra.mrb[52].mxu0 %vm302_vm1, %v14665_v1 }
 0x393   :  { %18765 = vmatmul.mubr.msk.f32.gmra.mrb[52].mxu1 %vm302_vm1, %v14665_v1  ;;  %18573 = vmatprep.mubr.msk.f32.mxu0 %vm302_vm1, %v14666_v3  ;;  %v14727_v1 = vld [vmem:[%s26123_s0 + $0x5a9] sm:$0xff] }
 0x394   :  { %18767 = vmatprep.mubr.msk.f32.mxu1 %vm302_vm1, %v14666_v3  ;;  %v14728_v3 = vld [vmem:[%s26123_s0 + $0x5b9] sm:$0xff] }
 0x396   :  { %18574 = vmatmul.mubr.msk.f32.gmra.mrb[54].mxu0 %vm302_vm1, %v14667_v6 }
 0x397   :  { %18768 = vmatmul.mubr.msk.f32.gmra.mrb[54].mxu1 %vm302_vm1, %v14667_v6  ;;  %18576 = vmatprep.mubr.msk.f32.mxu0 %vm302_vm1, %v14668_v10  ;;  %v14729_v6 = vld [vmem:[%s26123_s0 + $0x5c1] sm:$0xff] }
 0x398   :  { %18770 = vmatprep.mubr.msk.f32.mxu1 %vm302_vm1, %v14668_v10  ;;  %v14730_v10 = vld [vmem:[%s26123_s0 + $0x5d1] sm:$0xff] }
 0x39a   :  { %18577 = vmatmul.mubr.msk.f32.gmra.mrb[56].mxu0 %vm302_vm1, %v14669_v11 }
 0x39b   :  { %18771 = vmatmul.mubr.msk.f32.gmra.mrb[56].mxu1 %vm302_vm1, %v14669_v11  ;;  %18579 = vmatprep.mubr.msk.f32.mxu0 %vm302_vm1, %v14670_v12  ;;  %v14731_v11 = vld [vmem:[%s26123_s0 + $0x5d9] sm:$0xff] }
 0x39c   :  { %18773 = vmatprep.mubr.msk.f32.mxu1 %vm302_vm1, %v14670_v12  ;;  %v14732_v12 = vld [vmem:[%s26123_s0 + $0x5e9] sm:$0xff] }
 0x39e   :  { %18580 = vmatmul.mubr.msk.f32.gmra.mrb[58].mxu0 %vm302_vm1, %v14671_v8 }
 0x39f   :  { %18774 = vmatmul.mubr.msk.f32.gmra.mrb[58].mxu1 %vm302_vm1, %v14671_v8  ;;  %18582 = vmatprep.mubr.msk.f32.mxu0 %vm302_vm1, %v14672_v9  ;;  %v14733_v8 = vld [vmem:[%s26123_s0 + $0x5f1] sm:$0xff] }
 0x3a0   :  { %18776 = vmatprep.mubr.msk.f32.mxu1 %vm302_vm1, %v14672_v9  ;;  %v14734_v9 = vld [vmem:[%s26123_s0 + $0x601] sm:$0xff] }
 0x3a2   :  { %18583 = vmatmul.mubr.msk.f32.gmra.mrb[60].mxu0 %vm302_vm1, %v14673_v13 }
 0x3a3   :  { %18777 = vmatmul.mubr.msk.f32.gmra.mrb[60].mxu1 %vm302_vm1, %v14673_v13  ;;  %18585 = vmatprep.mubr.msk.f32.mxu0 %vm302_vm1, %v14674_v14  ;;  %v14735_v13 = vld [vmem:[%s26123_s0 + $0x609] sm:$0xff] }
 0x3a4   :  { %18779 = vmatprep.mubr.msk.f32.mxu1 %vm302_vm1, %v14674_v14  ;;  %v14736_v14 = vld [vmem:[%s26123_s0 + $0x619] sm:$0xff] }
 0x3a6   :  { %18586 = vmatmul.mubr.msk.f32.gmra.mrb[62].mxu0 %vm302_vm1, %v14675_v4 }
 0x3a7   :  { %18780 = vmatmul.mubr.msk.f32.gmra.mrb[62].mxu1 %vm302_vm1, %v14675_v4  ;;  %18588 = vmatprep.mubr.msk.f32.mxu0 %vm302_vm1, %v14676_v2  ;;  %v14737_v4 = vld [vmem:[%s26123_s0 + $0x621] sm:$0xff] }
 0x3a8   :  { %18782 = vmatprep.mubr.msk.f32.mxu1 %vm302_vm1, %v14676_v2  ;;  %v14738_v2 = vld [vmem:[%s26123_s0 + $0x631] sm:$0xff] }
 0x3aa   :  { %18589 = vmatmul.mubr.msk.f32.gmra.mrb[64].mxu0 %vm302_vm1, %v14677_v5 }
 0x3ab   :  { %18783 = vmatmul.mubr.msk.f32.gmra.mrb[64].mxu1 %vm302_vm1, %v14677_v5  ;;  %18591 = vmatprep.mubr.msk.f32.mxu0 %vm302_vm1, %v14678_v7  ;;  %v14739_v5 = vld [vmem:[%s26123_s0 + $0x639] sm:$0xff] }
 0x3ac   :  { %18785 = vmatprep.mubr.msk.f32.mxu1 %vm302_vm1, %v14678_v7  ;;  %v15000_v7 = vld [vmem:[%s26123_s0 + $0x30] sm:$0xff] }
 0x3ae   :  { %18592 = vmatmul.mubr.msk.f32.gmra.mrb[66].mxu0 %vm302_vm1, %v14679_v15 }
 0x3af   :  { %18786 = vmatmul.mubr.msk.f32.gmra.mrb[66].mxu1 %vm302_vm1, %v14679_v15  ;;  %18594 = vmatprep.mubr.msk.f32.mxu0 %vm302_vm1, %v14680_v18  ;;  %v15001_v15 = vld [vmem:[%s26123_s0 + $0x38] sm:$0xff] }
 0x3b0   :  { %18788 = vmatprep.mubr.msk.f32.mxu1 %vm302_vm1, %v14680_v18  ;;  %v15002_v18 = vld [vmem:[%s26123_s0 + $0x48] sm:$0xff] }
 0x3b2   :  { %18595 = vmatmul.mubr.msk.f32.gmra.mrb[68].mxu0 %vm302_vm1, %v14681_v19 }
 0x3b3   :  { %18789 = vmatmul.mubr.msk.f32.gmra.mrb[68].mxu1 %vm302_vm1, %v14681_v19  ;;  %18597 = vmatprep.mubr.msk.f32.mxu0 %vm302_vm1, %v14682_v20  ;;  %v15003_v19 = vld [vmem:[%s26123_s0 + $0x50] sm:$0xff] }
 0x3b4   :  { %18791 = vmatprep.mubr.msk.f32.mxu1 %vm302_vm1, %v14682_v20  ;;  %v15004_v20 = vld [vmem:[%s26123_s0 + $0x60] sm:$0xff] }
 0x3b6   :  { %18598 = vmatmul.mubr.msk.f32.gmra.mrb[70].mxu0 %vm302_vm1, %v14683_v21 }
 0x3b7   :  { %18792 = vmatmul.mubr.msk.f32.gmra.mrb[70].mxu1 %vm302_vm1, %v14683_v21  ;;  %18600 = vmatprep.mubr.msk.f32.mxu0 %vm302_vm1, %v14684_v22  ;;  %v15007_v21 = vld [vmem:[%s26123_s0 + $0x80] sm:$0xff] }
 0x3b8   :  { %18794 = vmatprep.mubr.msk.f32.mxu1 %vm302_vm1, %v14684_v22  ;;  %v15008_v22 = vld [vmem:[%s26123_s0 + $0x90] sm:$0xff] }
 0x3ba   :  { %18601 = vmatmul.mubr.msk.f32.gmra.mrb[72].mxu0 %vm302_vm1, %v14685_v23 }
 0x3bb   :  { %18795 = vmatmul.mubr.msk.f32.gmra.mrb[72].mxu1 %vm302_vm1, %v14685_v23  ;;  %18603 = vmatprep.mubr.msk.f32.mxu0 %vm302_vm1, %v14686_v24  ;;  %v15009_v23 = vld [vmem:[%s26123_s0 + $0x98] sm:$0xff] }
 0x3bc   :  { %18797 = vmatprep.mubr.msk.f32.mxu1 %vm302_vm1, %v14686_v24  ;;  %v15010_v24 = vld [vmem:[%s26123_s0 + $0xa8] sm:$0xff] }
 0x3be   :  { %18604 = vmatmul.mubr.msk.f32.gmra.mrb[74].mxu0 %vm302_vm1, %v14687_v25 }
 0x3bf   :  { %18798 = vmatmul.mubr.msk.f32.gmra.mrb[74].mxu1 %vm302_vm1, %v14687_v25  ;;  %18606 = vmatprep.mubr.msk.f32.mxu0 %vm302_vm1, %v14688_v26  ;;  %v15011_v25 = vld [vmem:[%s26123_s0 + $0xb0] sm:$0xff] }
 0x3c0   :  { %18800 = vmatprep.mubr.msk.f32.mxu1 %vm302_vm1, %v14688_v26  ;;  %v15012_v26 = vld [vmem:[%s26123_s0 + $0xc0] sm:$0xff] }
 0x3c2   :  { %18607 = vmatmul.mubr.msk.f32.gmra.mrb[76].mxu0 %vm302_vm1, %v14689_v27 }
 0x3c3   :  { %18801 = vmatmul.mubr.msk.f32.gmra.mrb[76].mxu1 %vm302_vm1, %v14689_v27  ;;  %18609 = vmatprep.mubr.msk.f32.mxu0 %vm302_vm1, %v14690_v28  ;;  %v15013_v27 = vld [vmem:[%s26123_s0 + $0xc8] sm:$0xff] }
 0x3c4   :  { %18803 = vmatprep.mubr.msk.f32.mxu1 %vm302_vm1, %v14690_v28  ;;  %v15014_v28 = vld [vmem:[%s26123_s0 + $0xd8] sm:$0xff] }
 0x3c6   :  { %18610 = vmatmul.mubr.msk.f32.gmra.mrb[78].mxu0 %vm302_vm1, %v14691_v29 }
 0x3c7   :  { %18804 = vmatmul.mubr.msk.f32.gmra.mrb[78].mxu1 %vm302_vm1, %v14691_v29  ;;  %18612 = vmatprep.mubr.msk.f32.mxu0 %vm302_vm1, %v14692_v30  ;;  %v15015_v29 = vld [vmem:[%s26123_s0 + $0xe0] sm:$0xff] }
 0x3c8   :  { %18806 = vmatprep.mubr.msk.f32.mxu1 %vm302_vm1, %v14692_v30  ;;  %v15016_v30 = vld [vmem:[%s26123_s0 + $0xf0] sm:$0xff] }
 0x3ca   :  { %18613 = vmatmul.mubr.msk.f32.gmra.mrb[80].mxu0 %vm302_vm1, %v14693_v31 }
 0x3cb   :  { %18807 = vmatmul.mubr.msk.f32.gmra.mrb[80].mxu1 %vm302_vm1, %v14693_v31  ;;  %18615 = vmatprep.mubr.msk.f32.mxu0 %vm302_vm1, %v14694_v32  ;;  %v15017_v31 = vld [vmem:[%s26123_s0 + $0xf8] sm:$0xff] }
 0x3cc   :  { %18809 = vmatprep.mubr.msk.f32.mxu1 %vm302_vm1, %v14694_v32  ;;  %v15018_v32 = vld [vmem:[%s26123_s0 + $0x108] sm:$0xff] }
 0x3ce   :  { %18616 = vmatmul.mubr.msk.f32.gmra.mrb[82].mxu0 %vm302_vm1, %v14695_v33 }
 0x3cf   :  { %18810 = vmatmul.mubr.msk.f32.gmra.mrb[82].mxu1 %vm302_vm1, %v14695_v33  ;;  %18618 = vmatprep.mubr.msk.f32.mxu0 %vm302_vm1, %v14696_v34  ;;  %v15019_v33 = vld [vmem:[%s26123_s0 + $0x110] sm:$0xff] }
 0x3d0   :  { %18812 = vmatprep.mubr.msk.f32.mxu1 %vm302_vm1, %v14696_v34  ;;  %v15020_v34 = vld [vmem:[%s26123_s0 + $0x120] sm:$0xff] }
 0x3d2   :  { %18619 = vmatmul.mubr.msk.f32.gmra.mrb[84].mxu0 %vm302_vm1, %v14697_v35 }
 0x3d3   :  { %18813 = vmatmul.mubr.msk.f32.gmra.mrb[84].mxu1 %vm302_vm1, %v14697_v35  ;;  %18621 = vmatprep.mubr.msk.f32.mxu0 %vm302_vm1, %v14698_v36  ;;  %v15021_v35 = vld [vmem:[%s26123_s0 + $0x128] sm:$0xff] }
 0x3d4   :  { %18815 = vmatprep.mubr.msk.f32.mxu1 %vm302_vm1, %v14698_v36  ;;  %v15022_v36 = vld [vmem:[%s26123_s0 + $0x138] sm:$0xff] }
 0x3d6   :  { %18622 = vmatmul.mubr.msk.f32.gmra.mrb[86].mxu0 %vm302_vm1, %v14699_v37 }
 0x3d7   :  { %18816 = vmatmul.mubr.msk.f32.gmra.mrb[86].mxu1 %vm302_vm1, %v14699_v37  ;;  %18624 = vmatprep.mubr.msk.f32.mxu0 %vm302_vm1, %v14700_v38  ;;  %v15023_v37 = vld [vmem:[%s26123_s0 + $0x140] sm:$0xff] }
 0x3d8   :  { %18818 = vmatprep.mubr.msk.f32.mxu1 %vm302_vm1, %v14700_v38  ;;  %v15024_v38 = vld [vmem:[%s26123_s0 + $0x150] sm:$0xff] }
 0x3da   :  { %18625 = vmatmul.mubr.msk.f32.gmra.mrb[88].mxu0 %vm302_vm1, %v14701_v39 }
 0x3db   :  { %18819 = vmatmul.mubr.msk.f32.gmra.mrb[88].mxu1 %vm302_vm1, %v14701_v39  ;;  %18627 = vmatprep.mubr.msk.f32.mxu0 %vm302_vm1, %v14702_v40  ;;  %v15025_v39 = vld [vmem:[%s26123_s0 + $0x158] sm:$0xff] }
 0x3dc   :  { %18821 = vmatprep.mubr.msk.f32.mxu1 %vm302_vm1, %v14702_v40  ;;  %v15026_v40 = vld [vmem:[%s26123_s0 + $0x168] sm:$0xff] }
 0x3de   :  { %18628 = vmatmul.mubr.msk.f32.gmra.mrb[90].mxu0 %vm302_vm1, %v14703_v41 }
 0x3df   :  { %18822 = vmatmul.mubr.msk.f32.gmra.mrb[90].mxu1 %vm302_vm1, %v14703_v41  ;;  %18630 = vmatprep.mubr.msk.f32.mxu0 %vm302_vm1, %v14704_v42  ;;  %v15027_v41 = vld [vmem:[%s26123_s0 + $0x170] sm:$0xff] }
 0x3e0   :  { %18824 = vmatprep.mubr.msk.f32.mxu1 %vm302_vm1, %v14704_v42  ;;  %v15028_v42 = vld [vmem:[%s26123_s0 + $0x180] sm:$0xff] }
 0x3e2   :  { %18631 = vmatmul.mubr.msk.f32.gmra.mrb[92].mxu0 %vm302_vm1, %v14705_v43 }
 0x3e3   :  { %18825 = vmatmul.mubr.msk.f32.gmra.mrb[92].mxu1 %vm302_vm1, %v14705_v43  ;;  %18633 = vmatprep.mubr.msk.f32.mxu0 %vm302_vm1, %v14706_v44  ;;  %v15029_v43 = vld [vmem:[%s26123_s0 + $0x188] sm:$0xff] }
 0x3e4   :  { %18827 = vmatprep.mubr.msk.f32.mxu1 %vm302_vm1, %v14706_v44  ;;  %v15030_v44 = vld [vmem:[%s26123_s0 + $0x198] sm:$0xff] }
 0x3e6   :  { %18634 = vmatmul.mubr.msk.f32.gmra.mrb[94].mxu0 %vm302_vm1, %v14707_v45 }
 0x3e7   :  { %18828 = vmatmul.mubr.msk.f32.gmra.mrb[94].mxu1 %vm302_vm1, %v14707_v45  ;;  %18636 = vmatprep.mubr.msk.f32.mxu0 %vm302_vm1, %v14708_v46  ;;  %v15031_v45 = vld [vmem:[%s26123_s0 + $0x1a0] sm:$0xff] }
 0x3e8   :  { %18830 = vmatprep.mubr.msk.f32.mxu1 %vm302_vm1, %v14708_v46  ;;  %v15032_v46 = vld [vmem:[%s26123_s0 + $0x1b0] sm:$0xff] }
 0x3ea   :  { %18637 = vmatmul.mubr.msk.f32.gmra.mrb[96].mxu0 %vm302_vm1, %v14709_v47 }
 0x3eb   :  { %18831 = vmatmul.mubr.msk.f32.gmra.mrb[96].mxu1 %vm302_vm1, %v14709_v47  ;;  %18639 = vmatprep.mubr.msk.f32.mxu0 %vm302_vm1, %v14710_v48  ;;  %v15033_v47 = vld [vmem:[%s26123_s0 + $0x1b8] sm:$0xff] }
 0x3ec   :  { %18833 = vmatprep.mubr.msk.f32.mxu1 %vm302_vm1, %v14710_v48  ;;  %v15034_v48 = vld [vmem:[%s26123_s0 + $0x1c8] sm:$0xff] }
 0x3ee   :  { %18640 = vmatmul.mubr.msk.f32.gmra.mrb[98].mxu0 %vm302_vm1, %v14711_v49 }
 0x3ef   :  { %18834 = vmatmul.mubr.msk.f32.gmra.mrb[98].mxu1 %vm302_vm1, %v14711_v49  ;;  %18642 = vmatprep.mubr.msk.f32.mxu0 %vm302_vm1, %v14712_v50  ;;  %v15035_v49 = vld [vmem:[%s26123_s0 + $0x1d0] sm:$0xff] }
 0x3f0   :  { %18836 = vmatprep.mubr.msk.f32.mxu1 %vm302_vm1, %v14712_v50  ;;  %v15036_v50 = vld [vmem:[%s26123_s0 + $0x1e0] sm:$0xff] }
 0x3f2   :  { %18643 = vmatmul.mubr.msk.f32.gmra.mrb[100].mxu0 %vm302_vm1, %v14713_v51 }
 0x3f3   :  { %18837 = vmatmul.mubr.msk.f32.gmra.mrb[100].mxu1 %vm302_vm1, %v14713_v51  ;;  %18645 = vmatprep.mubr.msk.f32.mxu0 %vm302_vm1, %v14714_v52  ;;  %v15037_v51 = vld [vmem:[%s26123_s0 + $0x1e8] sm:$0xff] }
 0x3f4   :  { %18839 = vmatprep.mubr.msk.f32.mxu1 %vm302_vm1, %v14714_v52  ;;  %v15038_v52 = vld [vmem:[%s26123_s0 + $0x1f8] sm:$0xff] }
 0x3f6   :  { %18646 = vmatmul.mubr.msk.f32.gmra.mrb[102].mxu0 %vm302_vm1, %v14715_v53 }
 0x3f7   :  { %18840 = vmatmul.mubr.msk.f32.gmra.mrb[102].mxu1 %vm302_vm1, %v14715_v53  ;;  %18648 = vmatprep.mubr.msk.f32.mxu0 %vm302_vm1, %v14716_v54  ;;  %v15039_v53 = vld [vmem:[%s26123_s0 + $0x200] sm:$0xff] }
 0x3f8   :  { %18842 = vmatprep.mubr.msk.f32.mxu1 %vm302_vm1, %v14716_v54  ;;  %v15040_v54 = vld [vmem:[%s26123_s0 + $0x210] sm:$0xff] }
 0x3fa   :  { %18649 = vmatmul.mubr.msk.f32.gmra.mrb[104].mxu0 %vm302_vm1, %v14717_v55 }
 0x3fb   :  { %18843 = vmatmul.mubr.msk.f32.gmra.mrb[104].mxu1 %vm302_vm1, %v14717_v55  ;;  %18651 = vmatprep.mubr.msk.f32.mxu0 %vm302_vm1, %v14718_v56  ;;  %v15041_v55 = vld [vmem:[%s26123_s0 + $0x218] sm:$0xff] }
 0x3fc   :  { %18845 = vmatprep.mubr.msk.f32.mxu1 %vm302_vm1, %v14718_v56  ;;  %v15042_v56 = vld [vmem:[%s26123_s0 + $0x228] sm:$0xff] }
 0x3fe   :  { %18652 = vmatmul.mubr.msk.f32.gmra.mrb[106].mxu0 %vm302_vm1, %v14719_v57 }
 0x3ff   :  { %18846 = vmatmul.mubr.msk.f32.gmra.mrb[106].mxu1 %vm302_vm1, %v14719_v57  ;;  %18654 = vmatprep.mubr.msk.f32.mxu0 %vm302_vm1, %v14720_v58  ;;  %v15043_v57 = vld [vmem:[%s26123_s0 + $0x230] sm:$0xff] }
 0x400   :  { %18848 = vmatprep.mubr.msk.f32.mxu1 %vm302_vm1, %v14720_v58  ;;  %v15044_v58 = vld [vmem:[%s26123_s0 + $0x240] sm:$0xff] }
 0x402   :  { %18655 = vmatmul.mubr.msk.f32.gmra.mrb[108].mxu0 %vm302_vm1, %v14721_v59 }
 0x403   :  { %18849 = vmatmul.mubr.msk.f32.gmra.mrb[108].mxu1 %vm302_vm1, %v14721_v59  ;;  %18657 = vmatprep.mubr.msk.f32.mxu0 %vm302_vm1, %v14722_v60  ;;  %v15045_v59 = vld [vmem:[%s26123_s0 + $0x248] sm:$0xff] }
 0x404   :  { %18851 = vmatprep.mubr.msk.f32.mxu1 %vm302_vm1, %v14722_v60  ;;  %v15046_v60 = vld [vmem:[%s26123_s0 + $0x258] sm:$0xff] }
 0x406   :  { %18658 = vmatmul.mubr.msk.f32.gmra.mrb[110].mxu0 %vm302_vm1, %v14723_v61 }
 0x407   :  { %18852 = vmatmul.mubr.msk.f32.gmra.mrb[110].mxu1 %vm302_vm1, %v14723_v61  ;;  %18660 = vmatprep.mubr.msk.f32.mxu0 %vm302_vm1, %v14724_v62  ;;  %v15047_v61 = vld [vmem:[%s26123_s0 + $0x260] sm:$0xff] }
 0x408   :  { %18854 = vmatprep.mubr.msk.f32.mxu1 %vm302_vm1, %v14724_v62  ;;  %v15048_v62 = vld [vmem:[%s26123_s0 + $0x270] sm:$0xff] }
 0x40a   :  { %18661 = vmatmul.mubr.msk.f32.gmra.mrb[112].mxu0 %vm302_vm1, %v14725_v63 }
 0x40b   :  { %18855 = vmatmul.mubr.msk.f32.gmra.mrb[112].mxu1 %vm302_vm1, %v14725_v63  ;;  %18663 = vmatprep.mubr.msk.f32.mxu0 %vm302_vm1, %v14726_v0  ;;  %v15049_v63 = vld [vmem:[%s26123_s0 + $0x278] sm:$0xff] }
 0x40c   :  { %18857 = vmatprep.mubr.msk.f32.mxu1 %vm302_vm1, %v14726_v0  ;;  %v15050_v0 = vld [vmem:[%s26123_s0 + $0x288] sm:$0xff] }
 0x40e   :  { %18664 = vmatmul.mubr.msk.f32.gmra.mrb[114].mxu0 %vm302_vm1, %v14727_v1 }
 0x40f   :  { %18858 = vmatmul.mubr.msk.f32.gmra.mrb[114].mxu1 %vm302_vm1, %v14727_v1  ;;  %18666 = vmatprep.mubr.msk.f32.mxu0 %vm302_vm1, %v14728_v3  ;;  %v15051_v1 = vld [vmem:[%s26123_s0 + $0x290] sm:$0xff] }
 0x410   :  { %18860 = vmatprep.mubr.msk.f32.mxu1 %vm302_vm1, %v14728_v3  ;;  %v15052_v3 = vld [vmem:[%s26123_s0 + $0x2a0] sm:$0xff] }
 0x412   :  { %18667 = vmatmul.mubr.msk.f32.gmra.mrb[116].mxu0 %vm302_vm1, %v14729_v6 }
 0x413   :  { %18861 = vmatmul.mubr.msk.f32.gmra.mrb[116].mxu1 %vm302_vm1, %v14729_v6  ;;  %18669 = vmatprep.mubr.msk.f32.mxu0 %vm302_vm1, %v14730_v10  ;;  %v15053_v6 = vld [vmem:[%s26123_s0 + $0x2a8] sm:$0xff] }
 0x414   :  { %18863 = vmatprep.mubr.msk.f32.mxu1 %vm302_vm1, %v14730_v10  ;;  %v15054_v10 = vld [vmem:[%s26123_s0 + $0x2b8] sm:$0xff] }
 0x416   :  { %18670 = vmatmul.mubr.msk.f32.gmra.mrb[118].mxu0 %vm302_vm1, %v14731_v11 }
 0x417   :  { %18864 = vmatmul.mubr.msk.f32.gmra.mrb[118].mxu1 %vm302_vm1, %v14731_v11  ;;  %18672 = vmatprep.mubr.msk.f32.mxu0 %vm302_vm1, %v14732_v12  ;;  %v15055_v11 = vld [vmem:[%s26123_s0 + $0x2c0] sm:$0xff] }
 0x418   :  { %18866 = vmatprep.mubr.msk.f32.mxu1 %vm302_vm1, %v14732_v12  ;;  %v15056_v12 = vld [vmem:[%s26123_s0 + $0x2d0] sm:$0xff] }
 0x41a   :  { %18673 = vmatmul.mubr.msk.f32.gmra.mrb[120].mxu0 %vm302_vm1, %v14733_v8 }
 0x41b   :  { %18867 = vmatmul.mubr.msk.f32.gmra.mrb[120].mxu1 %vm302_vm1, %v14733_v8  ;;  %18675 = vmatprep.mubr.msk.f32.mxu0 %vm302_vm1, %v14734_v9  ;;  %v15057_v8 = vld [vmem:[%s26123_s0 + $0x2d8] sm:$0xff] }
 0x41c   :  { %18869 = vmatprep.mubr.msk.f32.mxu1 %vm302_vm1, %v14734_v9  ;;  %v15058_v9 = vld [vmem:[%s26123_s0 + $0x2e8] sm:$0xff] }
 0x41e   :  { %18676 = vmatmul.mubr.msk.f32.gmra.mrb[122].mxu0 %vm302_vm1, %v14735_v13 }
 0x41f   :  { %18870 = vmatmul.mubr.msk.f32.gmra.mrb[122].mxu1 %vm302_vm1, %v14735_v13  ;;  %18678 = vmatprep.mubr.msk.f32.mxu0 %vm302_vm1, %v14736_v14  ;;  %v15059_v13 = vld [vmem:[%s26123_s0 + $0x2f0] sm:$0xff] }
 0x420   :  { %18872 = vmatprep.mubr.msk.f32.mxu1 %vm302_vm1, %v14736_v14  ;;  %v15060_v14 = vld [vmem:[%s26123_s0 + $0x300] sm:$0xff] }
 0x422   :  { %18679 = vmatmul.mubr.msk.f32.gmra.mrb[124].mxu0 %vm302_vm1, %v14737_v4 }
 0x423   :  { %18873 = vmatmul.mubr.msk.f32.gmra.mrb[124].mxu1 %vm302_vm1, %v14737_v4  ;;  %18681 = vmatprep.mubr.msk.f32.mxu0 %vm302_vm1, %v14738_v2  ;;  %v15061_v4 = vld [vmem:[%s26123_s0 + $0x308] sm:$0xff] }
 0x424   :  { %18875 = vmatprep.mubr.msk.f32.mxu1 %vm302_vm1, %v14738_v2  ;;  %v15062_v2 = vld [vmem:[%s26123_s0 + $0x318] sm:$0xff] }
 0x426   :  { %18682 = vmatmul.mubr.msk.f32.gmra.mrb[126].mxu0 %vm302_vm1, %v14739_v5 }
 0x427   :  { %18876 = vmatmul.mubr.msk.f32.gmra.mrb[126].mxu1 %vm302_vm1, %v14739_v5  ;;  %18880 = vmatprep.mubr.msk.f32.mxu0 %vm302_vm1, %v15000_v7  ;;  %v15063_v5 = vld [vmem:[%s26123_s0 + $0x320] sm:$0xff] }
 0x428   :  { %19074 = vmatprep.mubr.msk.f32.mxu1 %vm302_vm1, %v15000_v7  ;;  %v15064_v7 = vld [vmem:[%s26123_s0 + $0x360] sm:$0xff] }
 0x42a   :  { %18881 = vmatmul.mubr.msk.f32.vlgmr.msra.gmra.mrb[0].mxu0 %vm302_vm1, %v15001_v15 }
 0x42b   :  { %19075 = vmatmul.mubr.msk.f32.vlgmr.msra.gmra.mrb[0].mxu1 %vm302_vm1, %v15001_v15  ;;  %19267 = vmatpush3.msk.msra.mxu0 %vm687_vm0, %v23745_v16  ;;  %v15005_v16 = vld [vmem:[%s26123_s0 + $0x68] sm:$0xff] }
 0x42c   :  { %19461 = vmatpush3.msk.msra.mxu1 %vm687_vm0, %v23750_v17  ;;  %18883 = vmatprep.mubr.msk.f32.mxu0 %vm302_vm1, %v15002_v18  ;;  %v15006_v17 = vld [vmem:[%s26123_s0 + $0x78] sm:$0xff]  ;;  %v15065_v15 = vld [vmem:[%s26123_s0 + $0x368] sm:$0xff] }
 0x42d   :  { %19077 = vmatprep.mubr.msk.f32.mxu1 %vm302_vm1, %v15002_v18  ;;  %v15066_v18 = vld [vmem:[%s26123_s0 + $0x378] sm:$0xff] }
 0x42e   :  { %18884 = vmatmul.mubr.msk.f32.gmra.mrb[2].mxu0 %vm302_vm1, %v15003_v19 }
 0x42f   :  { %19078 = vmatmul.mubr.msk.f32.gmra.mrb[2].mxu1 %vm302_vm1, %v15003_v19  ;;  %18886 = vmatprep.mubr.msk.f32.mxu0 %vm302_vm1, %v15004_v20  ;;  %v15067_v19 = vld [vmem:[%s26123_s0 + $0x380] sm:$0xff] }
 0x430   :  { %19080 = vmatprep.mubr.msk.f32.mxu1 %vm302_vm1, %v15004_v20  ;;  %v15068_v20 = vld [vmem:[%s26123_s0 + $0x390] sm:$0xff] }
 0x432   :  { %18887 = vmatmul.mubr.msk.f32.gmra.mrb[4].mxu0 %vm302_vm1, %v15005_v16 }
 0x433   :  { %19081 = vmatmul.mubr.msk.f32.gmra.mrb[4].mxu1 %vm302_vm1, %v15005_v16  ;;  %18889 = vmatprep.mubr.msk.f32.mxu0 %vm302_vm1, %v15006_v17  ;;  %v15069_v16 = vld [vmem:[%s26123_s0 + $0x398] sm:$0xff] }
 0x434   :  { %19083 = vmatprep.mubr.msk.f32.mxu1 %vm302_vm1, %v15006_v17  ;;  %v15070_v17 = vld [vmem:[%s26123_s0 + $0x3a8] sm:$0xff] }
 0x436   :  { %18890 = vmatmul.mubr.msk.f32.gmra.mrb[6].mxu0 %vm302_vm1, %v15007_v21 }
 0x437   :  { %19084 = vmatmul.mubr.msk.f32.gmra.mrb[6].mxu1 %vm302_vm1, %v15007_v21  ;;  %18892 = vmatprep.mubr.msk.f32.mxu0 %vm302_vm1, %v15008_v22  ;;  %v15071_v21 = vld [vmem:[%s26123_s0 + $0x3b0] sm:$0xff] }
 0x438   :  { %19086 = vmatprep.mubr.msk.f32.mxu1 %vm302_vm1, %v15008_v22  ;;  %v15072_v22 = vld [vmem:[%s26123_s0 + $0x3c0] sm:$0xff] }
 0x43a   :  { %18893 = vmatmul.mubr.msk.f32.gmra.mrb[8].mxu0 %vm302_vm1, %v15009_v23 }
 0x43b   :  { %19087 = vmatmul.mubr.msk.f32.gmra.mrb[8].mxu1 %vm302_vm1, %v15009_v23  ;;  %18895 = vmatprep.mubr.msk.f32.mxu0 %vm302_vm1, %v15010_v24  ;;  %v15073_v23 = vld [vmem:[%s26123_s0 + $0x3c8] sm:$0xff] }
 0x43c   :  { %19089 = vmatprep.mubr.msk.f32.mxu1 %vm302_vm1, %v15010_v24  ;;  %v15074_v24 = vld [vmem:[%s26123_s0 + $0x3d8] sm:$0xff] }
 0x43e   :  { %18896 = vmatmul.mubr.msk.f32.gmra.mrb[10].mxu0 %vm302_vm1, %v15011_v25 }
 0x43f   :  { %19090 = vmatmul.mubr.msk.f32.gmra.mrb[10].mxu1 %vm302_vm1, %v15011_v25  ;;  %18898 = vmatprep.mubr.msk.f32.mxu0 %vm302_vm1, %v15012_v26  ;;  %v15075_v25 = vld [vmem:[%s26123_s0 + $0x3e0] sm:$0xff] }
 0x440   :  { %19092 = vmatprep.mubr.msk.f32.mxu1 %vm302_vm1, %v15012_v26  ;;  %v15076_v26 = vld [vmem:[%s26123_s0 + $0x3f0] sm:$0xff] }
 0x442   :  { %18899 = vmatmul.mubr.msk.f32.gmra.mrb[12].mxu0 %vm302_vm1, %v15013_v27 }
 0x443   :  { %19093 = vmatmul.mubr.msk.f32.gmra.mrb[12].mxu1 %vm302_vm1, %v15013_v27  ;;  %18901 = vmatprep.mubr.msk.f32.mxu0 %vm302_vm1, %v15014_v28  ;;  %v15077_v27 = vld [vmem:[%s26123_s0 + $0x3f8] sm:$0xff] }
 0x444   :  { %19095 = vmatprep.mubr.msk.f32.mxu1 %vm302_vm1, %v15014_v28  ;;  %v15078_v28 = vld [vmem:[%s26123_s0 + $0x408] sm:$0xff] }
 0x446   :  { %18902 = vmatmul.mubr.msk.f32.gmra.mrb[14].mxu0 %vm302_vm1, %v15015_v29 }
 0x447   :  { %19096 = vmatmul.mubr.msk.f32.gmra.mrb[14].mxu1 %vm302_vm1, %v15015_v29  ;;  %18904 = vmatprep.mubr.msk.f32.mxu0 %vm302_vm1, %v15016_v30  ;;  %v15079_v29 = vld [vmem:[%s26123_s0 + $0x410] sm:$0xff] }
 0x448   :  { %19098 = vmatprep.mubr.msk.f32.mxu1 %vm302_vm1, %v15016_v30  ;;  %v15080_v30 = vld [vmem:[%s26123_s0 + $0x420] sm:$0xff] }
 0x44a   :  { %18905 = vmatmul.mubr.msk.f32.gmra.mrb[16].mxu0 %vm302_vm1, %v15017_v31 }
 0x44b   :  { %19099 = vmatmul.mubr.msk.f32.gmra.mrb[16].mxu1 %vm302_vm1, %v15017_v31  ;;  %18907 = vmatprep.mubr.msk.f32.mxu0 %vm302_vm1, %v15018_v32  ;;  %v15081_v31 = vld [vmem:[%s26123_s0 + $0x428] sm:$0xff] }
 0x44c   :  { %19101 = vmatprep.mubr.msk.f32.mxu1 %vm302_vm1, %v15018_v32  ;;  %v15082_v32 = vld [vmem:[%s26123_s0 + $0x438] sm:$0xff] }
 0x44e   :  { %18908 = vmatmul.mubr.msk.f32.gmra.mrb[18].mxu0 %vm302_vm1, %v15019_v33 }
 0x44f   :  { %19102 = vmatmul.mubr.msk.f32.gmra.mrb[18].mxu1 %vm302_vm1, %v15019_v33  ;;  %18910 = vmatprep.mubr.msk.f32.mxu0 %vm302_vm1, %v15020_v34  ;;  %v15083_v33 = vld [vmem:[%s26123_s0 + $0x440] sm:$0xff] }
 0x450   :  { %19104 = vmatprep.mubr.msk.f32.mxu1 %vm302_vm1, %v15020_v34  ;;  %v15084_v34 = vld [vmem:[%s26123_s0 + $0x450] sm:$0xff] }
 0x452   :  { %18911 = vmatmul.mubr.msk.f32.gmra.mrb[20].mxu0 %vm302_vm1, %v15021_v35 }
 0x453   :  { %19105 = vmatmul.mubr.msk.f32.gmra.mrb[20].mxu1 %vm302_vm1, %v15021_v35  ;;  %18913 = vmatprep.mubr.msk.f32.mxu0 %vm302_vm1, %v15022_v36  ;;  %v15085_v35 = vld [vmem:[%s26123_s0 + $0x458] sm:$0xff] }
 0x454   :  { %19107 = vmatprep.mubr.msk.f32.mxu1 %vm302_vm1, %v15022_v36  ;;  %v15086_v36 = vld [vmem:[%s26123_s0 + $0x468] sm:$0xff] }
 0x456   :  { %18914 = vmatmul.mubr.msk.f32.gmra.mrb[22].mxu0 %vm302_vm1, %v15023_v37 }
 0x457   :  { %19108 = vmatmul.mubr.msk.f32.gmra.mrb[22].mxu1 %vm302_vm1, %v15023_v37  ;;  %18916 = vmatprep.mubr.msk.f32.mxu0 %vm302_vm1, %v15024_v38  ;;  %v15087_v37 = vld [vmem:[%s26123_s0 + $0x470] sm:$0xff] }
 0x458   :  { %19110 = vmatprep.mubr.msk.f32.mxu1 %vm302_vm1, %v15024_v38  ;;  %v15088_v38 = vld [vmem:[%s26123_s0 + $0x480] sm:$0xff] }
 0x45a   :  { %18917 = vmatmul.mubr.msk.f32.gmra.mrb[24].mxu0 %vm302_vm1, %v15025_v39 }
 0x45b   :  { %19111 = vmatmul.mubr.msk.f32.gmra.mrb[24].mxu1 %vm302_vm1, %v15025_v39  ;;  %18919 = vmatprep.mubr.msk.f32.mxu0 %vm302_vm1, %v15026_v40  ;;  %v15089_v39 = vld [vmem:[%s26123_s0 + $0x488] sm:$0xff] }
 0x45c   :  { %19113 = vmatprep.mubr.msk.f32.mxu1 %vm302_vm1, %v15026_v40  ;;  %v15090_v40 = vld [vmem:[%s26123_s0 + $0x498] sm:$0xff] }
 0x45e   :  { %18920 = vmatmul.mubr.msk.f32.gmra.mrb[26].mxu0 %vm302_vm1, %v15027_v41 }
 0x45f   :  { %19114 = vmatmul.mubr.msk.f32.gmra.mrb[26].mxu1 %vm302_vm1, %v15027_v41  ;;  %18922 = vmatprep.mubr.msk.f32.mxu0 %vm302_vm1, %v15028_v42  ;;  %v15091_v41 = vld [vmem:[%s26123_s0 + $0x4a0] sm:$0xff] }
 0x460   :  { %19116 = vmatprep.mubr.msk.f32.mxu1 %vm302_vm1, %v15028_v42  ;;  %v15092_v42 = vld [vmem:[%s26123_s0 + $0x4b0] sm:$0xff] }
 0x462   :  { %18923 = vmatmul.mubr.msk.f32.gmra.mrb[28].mxu0 %vm302_vm1, %v15029_v43 }
 0x463   :  { %19117 = vmatmul.mubr.msk.f32.gmra.mrb[28].mxu1 %vm302_vm1, %v15029_v43  ;;  %18925 = vmatprep.mubr.msk.f32.mxu0 %vm302_vm1, %v15030_v44  ;;  %v15093_v43 = vld [vmem:[%s26123_s0 + $0x4b8] sm:$0xff] }
 0x464   :  { %19119 = vmatprep.mubr.msk.f32.mxu1 %vm302_vm1, %v15030_v44  ;;  %v15094_v44 = vld [vmem:[%s26123_s0 + $0x4c8] sm:$0xff] }
 0x466   :  { %18926 = vmatmul.mubr.msk.f32.gmra.mrb[30].mxu0 %vm302_vm1, %v15031_v45 }
 0x467   :  { %19120 = vmatmul.mubr.msk.f32.gmra.mrb[30].mxu1 %vm302_vm1, %v15031_v45  ;;  %18928 = vmatprep.mubr.msk.f32.mxu0 %vm302_vm1, %v15032_v46  ;;  %v15095_v45 = vld [vmem:[%s26123_s0 + $0x4d0] sm:$0xff] }
 0x468   :  { %19122 = vmatprep.mubr.msk.f32.mxu1 %vm302_vm1, %v15032_v46  ;;  %v15096_v46 = vld [vmem:[%s26123_s0 + $0x4e0] sm:$0xff] }
 0x46a   :  { %18929 = vmatmul.mubr.msk.f32.gmra.mrb[32].mxu0 %vm302_vm1, %v15033_v47 }
 0x46b   :  { %19123 = vmatmul.mubr.msk.f32.gmra.mrb[32].mxu1 %vm302_vm1, %v15033_v47  ;;  %18931 = vmatprep.mubr.msk.f32.mxu0 %vm302_vm1, %v15034_v48  ;;  %v15097_v47 = vld [vmem:[%s26123_s0 + $0x4e8] sm:$0xff] }
 0x46c   :  { %19125 = vmatprep.mubr.msk.f32.mxu1 %vm302_vm1, %v15034_v48  ;;  %v15098_v48 = vld [vmem:[%s26123_s0 + $0x4f8] sm:$0xff] }
 0x46e   :  { %18932 = vmatmul.mubr.msk.f32.gmra.mrb[34].mxu0 %vm302_vm1, %v15035_v49 }
 0x46f   :  { %19126 = vmatmul.mubr.msk.f32.gmra.mrb[34].mxu1 %vm302_vm1, %v15035_v49  ;;  %18934 = vmatprep.mubr.msk.f32.mxu0 %vm302_vm1, %v15036_v50  ;;  %v15099_v49 = vld [vmem:[%s26123_s0 + $0x500] sm:$0xff] }
 0x470   :  { %19128 = vmatprep.mubr.msk.f32.mxu1 %vm302_vm1, %v15036_v50  ;;  %v15100_v50 = vld [vmem:[%s26123_s0 + $0x510] sm:$0xff] }
 0x472   :  { %18935 = vmatmul.mubr.msk.f32.gmra.mrb[36].mxu0 %vm302_vm1, %v15037_v51 }
 0x473   :  { %19129 = vmatmul.mubr.msk.f32.gmra.mrb[36].mxu1 %vm302_vm1, %v15037_v51  ;;  %18937 = vmatprep.mubr.msk.f32.mxu0 %vm302_vm1, %v15038_v52  ;;  %v15101_v51 = vld [vmem:[%s26123_s0 + $0x518] sm:$0xff] }
 0x474   :  { %19131 = vmatprep.mubr.msk.f32.mxu1 %vm302_vm1, %v15038_v52  ;;  %v15102_v52 = vld [vmem:[%s26123_s0 + $0x528] sm:$0xff] }
 0x476   :  { %18938 = vmatmul.mubr.msk.f32.gmra.mrb[38].mxu0 %vm302_vm1, %v15039_v53 }
 0x477   :  { %19132 = vmatmul.mubr.msk.f32.gmra.mrb[38].mxu1 %vm302_vm1, %v15039_v53  ;;  %18940 = vmatprep.mubr.msk.f32.mxu0 %vm302_vm1, %v15040_v54  ;;  %v15103_v53 = vld [vmem:[%s26123_s0 + $0x530] sm:$0xff] }
 0x478   :  { %19134 = vmatprep.mubr.msk.f32.mxu1 %vm302_vm1, %v15040_v54  ;;  %v15104_v54 = vld [vmem:[%s26123_s0 + $0x540] sm:$0xff] }
 0x47a   :  { %18941 = vmatmul.mubr.msk.f32.gmra.mrb[40].mxu0 %vm302_vm1, %v15041_v55 }
 0x47b   :  { %19135 = vmatmul.mubr.msk.f32.gmra.mrb[40].mxu1 %vm302_vm1, %v15041_v55  ;;  %18943 = vmatprep.mubr.msk.f32.mxu0 %vm302_vm1, %v15042_v56  ;;  %v15105_v55 = vld [vmem:[%s26123_s0 + $0x548] sm:$0xff] }
 0x47c   :  { %19137 = vmatprep.mubr.msk.f32.mxu1 %vm302_vm1, %v15042_v56  ;;  %v15106_v56 = vld [vmem:[%s26123_s0 + $0x558] sm:$0xff] }
 0x47e   :  { %18944 = vmatmul.mubr.msk.f32.gmra.mrb[42].mxu0 %vm302_vm1, %v15043_v57 }
 0x47f   :  { %19138 = vmatmul.mubr.msk.f32.gmra.mrb[42].mxu1 %vm302_vm1, %v15043_v57  ;;  %18946 = vmatprep.mubr.msk.f32.mxu0 %vm302_vm1, %v15044_v58  ;;  %v15107_v57 = vld [vmem:[%s26123_s0 + $0x560] sm:$0xff] }
 0x480   :  { %19140 = vmatprep.mubr.msk.f32.mxu1 %vm302_vm1, %v15044_v58  ;;  %v15108_v58 = vld [vmem:[%s26123_s0 + $0x570] sm:$0xff] }
 0x482   :  { %18947 = vmatmul.mubr.msk.f32.gmra.mrb[44].mxu0 %vm302_vm1, %v15045_v59 }
 0x483   :  { %19141 = vmatmul.mubr.msk.f32.gmra.mrb[44].mxu1 %vm302_vm1, %v15045_v59  ;;  %18949 = vmatprep.mubr.msk.f32.mxu0 %vm302_vm1, %v15046_v60  ;;  %v15109_v59 = vld [vmem:[%s26123_s0 + $0x578] sm:$0xff] }
 0x484   :  { %19143 = vmatprep.mubr.msk.f32.mxu1 %vm302_vm1, %v15046_v60  ;;  %v15110_v60 = vld [vmem:[%s26123_s0 + $0x588] sm:$0xff] }
 0x486   :  { %18950 = vmatmul.mubr.msk.f32.gmra.mrb[46].mxu0 %vm302_vm1, %v15047_v61 }
 0x487   :  { %19144 = vmatmul.mubr.msk.f32.gmra.mrb[46].mxu1 %vm302_vm1, %v15047_v61  ;;  %18952 = vmatprep.mubr.msk.f32.mxu0 %vm302_vm1, %v15048_v62  ;;  %v15111_v61 = vld [vmem:[%s26123_s0 + $0x590] sm:$0xff] }
 0x488   :  { %19146 = vmatprep.mubr.msk.f32.mxu1 %vm302_vm1, %v15048_v62  ;;  %v15112_v62 = vld [vmem:[%s26123_s0 + $0x5a0] sm:$0xff] }
 0x48a   :  { %18953 = vmatmul.mubr.msk.f32.gmra.mrb[48].mxu0 %vm302_vm1, %v15049_v63 }
 0x48b   :  { %19147 = vmatmul.mubr.msk.f32.gmra.mrb[48].mxu1 %vm302_vm1, %v15049_v63  ;;  %18955 = vmatprep.mubr.msk.f32.mxu0 %vm302_vm1, %v15050_v0  ;;  %v15113_v63 = vld [vmem:[%s26123_s0 + $0x5a8] sm:$0xff] }
 0x48c   :  { %19149 = vmatprep.mubr.msk.f32.mxu1 %vm302_vm1, %v15050_v0  ;;  %v15114_v0 = vld [vmem:[%s26123_s0 + $0x5b8] sm:$0xff] }
 0x48e   :  { %18956 = vmatmul.mubr.msk.f32.gmra.mrb[50].mxu0 %vm302_vm1, %v15051_v1 }
 0x48f   :  { %19150 = vmatmul.mubr.msk.f32.gmra.mrb[50].mxu1 %vm302_vm1, %v15051_v1  ;;  %18958 = vmatprep.mubr.msk.f32.mxu0 %vm302_vm1, %v15052_v3  ;;  %v15115_v1 = vld [vmem:[%s26123_s0 + $0x5c0] sm:$0xff] }
 0x490   :  { %19152 = vmatprep.mubr.msk.f32.mxu1 %vm302_vm1, %v15052_v3  ;;  %v15116_v3 = vld [vmem:[%s26123_s0 + $0x5d0] sm:$0xff] }
 0x492   :  { %18959 = vmatmul.mubr.msk.f32.gmra.mrb[52].mxu0 %vm302_vm1, %v15053_v6 }
 0x493   :  { %19153 = vmatmul.mubr.msk.f32.gmra.mrb[52].mxu1 %vm302_vm1, %v15053_v6  ;;  %18961 = vmatprep.mubr.msk.f32.mxu0 %vm302_vm1, %v15054_v10  ;;  %v15117_v6 = vld [vmem:[%s26123_s0 + $0x5d8] sm:$0xff] }
 0x494   :  { %19155 = vmatprep.mubr.msk.f32.mxu1 %vm302_vm1, %v15054_v10  ;;  %v15118_v10 = vld [vmem:[%s26123_s0 + $0x5e8] sm:$0xff] }
 0x496   :  { %18962 = vmatmul.mubr.msk.f32.gmra.mrb[54].mxu0 %vm302_vm1, %v15055_v11 }
 0x497   :  { %19156 = vmatmul.mubr.msk.f32.gmra.mrb[54].mxu1 %vm302_vm1, %v15055_v11  ;;  %18964 = vmatprep.mubr.msk.f32.mxu0 %vm302_vm1, %v15056_v12  ;;  %v15119_v11 = vld [vmem:[%s26123_s0 + $0x5f0] sm:$0xff] }
 0x498   :  { %19158 = vmatprep.mubr.msk.f32.mxu1 %vm302_vm1, %v15056_v12  ;;  %v15120_v12 = vld [vmem:[%s26123_s0 + $0x600] sm:$0xff] }
 0x49a   :  { %18965 = vmatmul.mubr.msk.f32.gmra.mrb[56].mxu0 %vm302_vm1, %v15057_v8 }
 0x49b   :  { %19159 = vmatmul.mubr.msk.f32.gmra.mrb[56].mxu1 %vm302_vm1, %v15057_v8  ;;  %18967 = vmatprep.mubr.msk.f32.mxu0 %vm302_vm1, %v15058_v9  ;;  %v15121_v8 = vld [vmem:[%s26123_s0 + $0x608] sm:$0xff] }
 0x49c   :  { %19161 = vmatprep.mubr.msk.f32.mxu1 %vm302_vm1, %v15058_v9  ;;  %v15122_v9 = vld [vmem:[%s26123_s0 + $0x618] sm:$0xff] }
 0x49e   :  { %18968 = vmatmul.mubr.msk.f32.gmra.mrb[58].mxu0 %vm302_vm1, %v15059_v13 }
 0x49f   :  { %19162 = vmatmul.mubr.msk.f32.gmra.mrb[58].mxu1 %vm302_vm1, %v15059_v13  ;;  %18970 = vmatprep.mubr.msk.f32.mxu0 %vm302_vm1, %v15060_v14  ;;  %v15123_v13 = vld [vmem:[%s26123_s0 + $0x620] sm:$0xff] }
 0x4a0   :  { %19164 = vmatprep.mubr.msk.f32.mxu1 %vm302_vm1, %v15060_v14  ;;  %v15124_v14 = vld [vmem:[%s26123_s0 + $0x630] sm:$0xff] }
 0x4a2   :  { %18971 = vmatmul.mubr.msk.f32.gmra.mrb[60].mxu0 %vm302_vm1, %v15061_v4 }
 0x4a3   :  { %19165 = vmatmul.mubr.msk.f32.gmra.mrb[60].mxu1 %vm302_vm1, %v15061_v4  ;;  %18973 = vmatprep.mubr.msk.f32.mxu0 %vm302_vm1, %v15062_v2  ;;  %v15125_v4 = vld [vmem:[%s26123_s0 + $0x638] sm:$0xff] }
 0x4a4   :  { %19167 = vmatprep.mubr.msk.f32.mxu1 %vm302_vm1, %v15062_v2  ;;  %v15126_v2 = vld [vmem:[%s26123_s0 + $0x648] sm:$0xff] }
 0x4a6   :  { %18974 = vmatmul.mubr.msk.f32.gmra.mrb[62].mxu0 %vm302_vm1, %v15063_v5 }
 0x4a7   :  { %19168 = vmatmul.mubr.msk.f32.gmra.mrb[62].mxu1 %vm302_vm1, %v15063_v5  ;;  %18976 = vmatprep.mubr.msk.f32.mxu0 %vm302_vm1, %v15064_v7  ;;  %v15127_v5 = vld [vmem:[%s26123_s0 + $0x650] sm:$0xff] }
 0x4a8   :  { %19170 = vmatprep.mubr.msk.f32.mxu1 %vm302_vm1, %v15064_v7  ;;  %v15388_v7 = vld [vmem:[%s26123_s0 + $0x31] sm:$0xff] }
 0x4aa   :  { %18977 = vmatmul.mubr.msk.f32.gmra.mrb[64].mxu0 %vm302_vm1, %v15065_v15 }
 0x4ab   :  { %19171 = vmatmul.mubr.msk.f32.gmra.mrb[64].mxu1 %vm302_vm1, %v15065_v15  ;;  %18979 = vmatprep.mubr.msk.f32.mxu0 %vm302_vm1, %v15066_v18  ;;  %v15389_v15 = vld [vmem:[%s26123_s0 + $0x39] sm:$0xff] }
 0x4ac   :  { %19173 = vmatprep.mubr.msk.f32.mxu1 %vm302_vm1, %v15066_v18  ;;  %v15390_v18 = vld [vmem:[%s26123_s0 + $0x49] sm:$0xff] }
 0x4ae   :  { %18980 = vmatmul.mubr.msk.f32.gmra.mrb[66].mxu0 %vm302_vm1, %v15067_v19 }
 0x4af   :  { %19174 = vmatmul.mubr.msk.f32.gmra.mrb[66].mxu1 %vm302_vm1, %v15067_v19  ;;  %18982 = vmatprep.mubr.msk.f32.mxu0 %vm302_vm1, %v15068_v20  ;;  %v15391_v19 = vld [vmem:[%s26123_s0 + $0x51] sm:$0xff] }
 0x4b0   :  { %19176 = vmatprep.mubr.msk.f32.mxu1 %vm302_vm1, %v15068_v20  ;;  %v15392_v20 = vld [vmem:[%s26123_s0 + $0x61] sm:$0xff] }
 0x4b2   :  { %18983 = vmatmul.mubr.msk.f32.gmra.mrb[68].mxu0 %vm302_vm1, %v15069_v16 }
 0x4b3   :  { %19177 = vmatmul.mubr.msk.f32.gmra.mrb[68].mxu1 %vm302_vm1, %v15069_v16  ;;  %18985 = vmatprep.mubr.msk.f32.mxu0 %vm302_vm1, %v15070_v17  ;;  %v15393_v16 = vld [vmem:[%s26123_s0 + $0x69] sm:$0xff] }
 0x4b4   :  { %19179 = vmatprep.mubr.msk.f32.mxu1 %vm302_vm1, %v15070_v17  ;;  %v15394_v17 = vld [vmem:[%s26123_s0 + $0x79] sm:$0xff] }
 0x4b6   :  { %18986 = vmatmul.mubr.msk.f32.gmra.mrb[70].mxu0 %vm302_vm1, %v15071_v21 }
 0x4b7   :  { %19180 = vmatmul.mubr.msk.f32.gmra.mrb[70].mxu1 %vm302_vm1, %v15071_v21  ;;  %18988 = vmatprep.mubr.msk.f32.mxu0 %vm302_vm1, %v15072_v22  ;;  %v15395_v21 = vld [vmem:[%s26123_s0 + $0x81] sm:$0xff] }
 0x4b8   :  { %19182 = vmatprep.mubr.msk.f32.mxu1 %vm302_vm1, %v15072_v22  ;;  %v15396_v22 = vld [vmem:[%s26123_s0 + $0x91] sm:$0xff] }
 0x4ba   :  { %18989 = vmatmul.mubr.msk.f32.gmra.mrb[72].mxu0 %vm302_vm1, %v15073_v23 }
 0x4bb   :  { %19183 = vmatmul.mubr.msk.f32.gmra.mrb[72].mxu1 %vm302_vm1, %v15073_v23  ;;  %18991 = vmatprep.mubr.msk.f32.mxu0 %vm302_vm1, %v15074_v24  ;;  %v15397_v23 = vld [vmem:[%s26123_s0 + $0x99] sm:$0xff] }
 0x4bc   :  { %19185 = vmatprep.mubr.msk.f32.mxu1 %vm302_vm1, %v15074_v24  ;;  %v15398_v24 = vld [vmem:[%s26123_s0 + $0xa9] sm:$0xff] }
 0x4be   :  { %18992 = vmatmul.mubr.msk.f32.gmra.mrb[74].mxu0 %vm302_vm1, %v15075_v25 }
 0x4bf   :  { %19186 = vmatmul.mubr.msk.f32.gmra.mrb[74].mxu1 %vm302_vm1, %v15075_v25  ;;  %18994 = vmatprep.mubr.msk.f32.mxu0 %vm302_vm1, %v15076_v26  ;;  %v15399_v25 = vld [vmem:[%s26123_s0 + $0xb1] sm:$0xff] }
 0x4c0   :  { %19188 = vmatprep.mubr.msk.f32.mxu1 %vm302_vm1, %v15076_v26  ;;  %v15400_v26 = vld [vmem:[%s26123_s0 + $0xc1] sm:$0xff] }
 0x4c2   :  { %18995 = vmatmul.mubr.msk.f32.gmra.mrb[76].mxu0 %vm302_vm1, %v15077_v27 }
 0x4c3   :  { %19189 = vmatmul.mubr.msk.f32.gmra.mrb[76].mxu1 %vm302_vm1, %v15077_v27  ;;  %18997 = vmatprep.mubr.msk.f32.mxu0 %vm302_vm1, %v15078_v28  ;;  %v15401_v27 = vld [vmem:[%s26123_s0 + $0xc9] sm:$0xff] }
 0x4c4   :  { %19191 = vmatprep.mubr.msk.f32.mxu1 %vm302_vm1, %v15078_v28  ;;  %v15402_v28 = vld [vmem:[%s26123_s0 + $0xd9] sm:$0xff] }
 0x4c6   :  { %18998 = vmatmul.mubr.msk.f32.gmra.mrb[78].mxu0 %vm302_vm1, %v15079_v29 }
 0x4c7   :  { %19192 = vmatmul.mubr.msk.f32.gmra.mrb[78].mxu1 %vm302_vm1, %v15079_v29  ;;  %19000 = vmatprep.mubr.msk.f32.mxu0 %vm302_vm1, %v15080_v30  ;;  %v15403_v29 = vld [vmem:[%s26123_s0 + $0xe1] sm:$0xff] }
 0x4c8   :  { %19194 = vmatprep.mubr.msk.f32.mxu1 %vm302_vm1, %v15080_v30  ;;  %v15404_v30 = vld [vmem:[%s26123_s0 + $0xf1] sm:$0xff] }
 0x4ca   :  { %19001 = vmatmul.mubr.msk.f32.gmra.mrb[80].mxu0 %vm302_vm1, %v15081_v31 }
 0x4cb   :  { %19195 = vmatmul.mubr.msk.f32.gmra.mrb[80].mxu1 %vm302_vm1, %v15081_v31  ;;  %19003 = vmatprep.mubr.msk.f32.mxu0 %vm302_vm1, %v15082_v32  ;;  %v15405_v31 = vld [vmem:[%s26123_s0 + $0xf9] sm:$0xff] }
 0x4cc   :  { %19197 = vmatprep.mubr.msk.f32.mxu1 %vm302_vm1, %v15082_v32  ;;  %v15406_v32 = vld [vmem:[%s26123_s0 + $0x109] sm:$0xff] }
 0x4ce   :  { %19004 = vmatmul.mubr.msk.f32.gmra.mrb[82].mxu0 %vm302_vm1, %v15083_v33 }
 0x4cf   :  { %19198 = vmatmul.mubr.msk.f32.gmra.mrb[82].mxu1 %vm302_vm1, %v15083_v33  ;;  %19006 = vmatprep.mubr.msk.f32.mxu0 %vm302_vm1, %v15084_v34  ;;  %v15407_v33 = vld [vmem:[%s26123_s0 + $0x111] sm:$0xff] }
 0x4d0   :  { %19200 = vmatprep.mubr.msk.f32.mxu1 %vm302_vm1, %v15084_v34  ;;  %v15408_v34 = vld [vmem:[%s26123_s0 + $0x121] sm:$0xff] }
 0x4d2   :  { %19007 = vmatmul.mubr.msk.f32.gmra.mrb[84].mxu0 %vm302_vm1, %v15085_v35 }
 0x4d3   :  { %19201 = vmatmul.mubr.msk.f32.gmra.mrb[84].mxu1 %vm302_vm1, %v15085_v35  ;;  %19009 = vmatprep.mubr.msk.f32.mxu0 %vm302_vm1, %v15086_v36  ;;  %v15409_v35 = vld [vmem:[%s26123_s0 + $0x129] sm:$0xff] }
 0x4d4   :  { %19203 = vmatprep.mubr.msk.f32.mxu1 %vm302_vm1, %v15086_v36  ;;  %v15410_v36 = vld [vmem:[%s26123_s0 + $0x139] sm:$0xff] }
 0x4d6   :  { %19010 = vmatmul.mubr.msk.f32.gmra.mrb[86].mxu0 %vm302_vm1, %v15087_v37 }
 0x4d7   :  { %19204 = vmatmul.mubr.msk.f32.gmra.mrb[86].mxu1 %vm302_vm1, %v15087_v37  ;;  %19012 = vmatprep.mubr.msk.f32.mxu0 %vm302_vm1, %v15088_v38  ;;  %v15411_v37 = vld [vmem:[%s26123_s0 + $0x141] sm:$0xff] }
 0x4d8   :  { %19206 = vmatprep.mubr.msk.f32.mxu1 %vm302_vm1, %v15088_v38  ;;  %v15412_v38 = vld [vmem:[%s26123_s0 + $0x151] sm:$0xff] }
 0x4da   :  { %19013 = vmatmul.mubr.msk.f32.gmra.mrb[88].mxu0 %vm302_vm1, %v15089_v39 }
 0x4db   :  { %19207 = vmatmul.mubr.msk.f32.gmra.mrb[88].mxu1 %vm302_vm1, %v15089_v39  ;;  %19015 = vmatprep.mubr.msk.f32.mxu0 %vm302_vm1, %v15090_v40  ;;  %v15413_v39 = vld [vmem:[%s26123_s0 + $0x159] sm:$0xff] }
 0x4dc   :  { %19209 = vmatprep.mubr.msk.f32.mxu1 %vm302_vm1, %v15090_v40  ;;  %v15414_v40 = vld [vmem:[%s26123_s0 + $0x169] sm:$0xff] }
 0x4de   :  { %19016 = vmatmul.mubr.msk.f32.gmra.mrb[90].mxu0 %vm302_vm1, %v15091_v41 }
 0x4df   :  { %19210 = vmatmul.mubr.msk.f32.gmra.mrb[90].mxu1 %vm302_vm1, %v15091_v41  ;;  %19018 = vmatprep.mubr.msk.f32.mxu0 %vm302_vm1, %v15092_v42  ;;  %v15415_v41 = vld [vmem:[%s26123_s0 + $0x171] sm:$0xff] }
 0x4e0   :  { %19212 = vmatprep.mubr.msk.f32.mxu1 %vm302_vm1, %v15092_v42  ;;  %v15416_v42 = vld [vmem:[%s26123_s0 + $0x181] sm:$0xff] }
 0x4e2   :  { %19019 = vmatmul.mubr.msk.f32.gmra.mrb[92].mxu0 %vm302_vm1, %v15093_v43 }
 0x4e3   :  { %19213 = vmatmul.mubr.msk.f32.gmra.mrb[92].mxu1 %vm302_vm1, %v15093_v43  ;;  %19021 = vmatprep.mubr.msk.f32.mxu0 %vm302_vm1, %v15094_v44  ;;  %v15417_v43 = vld [vmem:[%s26123_s0 + $0x189] sm:$0xff] }
 0x4e4   :  { %19215 = vmatprep.mubr.msk.f32.mxu1 %vm302_vm1, %v15094_v44  ;;  %v15418_v44 = vld [vmem:[%s26123_s0 + $0x199] sm:$0xff] }
 0x4e6   :  { %19022 = vmatmul.mubr.msk.f32.gmra.mrb[94].mxu0 %vm302_vm1, %v15095_v45 }
 0x4e7   :  { %19216 = vmatmul.mubr.msk.f32.gmra.mrb[94].mxu1 %vm302_vm1, %v15095_v45  ;;  %19024 = vmatprep.mubr.msk.f32.mxu0 %vm302_vm1, %v15096_v46  ;;  %v15419_v45 = vld [vmem:[%s26123_s0 + $0x1a1] sm:$0xff] }
 0x4e8   :  { %19218 = vmatprep.mubr.msk.f32.mxu1 %vm302_vm1, %v15096_v46  ;;  %v15420_v46 = vld [vmem:[%s26123_s0 + $0x1b1] sm:$0xff] }
 0x4ea   :  { %19025 = vmatmul.mubr.msk.f32.gmra.mrb[96].mxu0 %vm302_vm1, %v15097_v47 }
 0x4eb   :  { %19219 = vmatmul.mubr.msk.f32.gmra.mrb[96].mxu1 %vm302_vm1, %v15097_v47  ;;  %19027 = vmatprep.mubr.msk.f32.mxu0 %vm302_vm1, %v15098_v48  ;;  %v15421_v47 = vld [vmem:[%s26123_s0 + $0x1b9] sm:$0xff] }
 0x4ec   :  { %19221 = vmatprep.mubr.msk.f32.mxu1 %vm302_vm1, %v15098_v48  ;;  %v15422_v48 = vld [vmem:[%s26123_s0 + $0x1c9] sm:$0xff] }
 0x4ee   :  { %19028 = vmatmul.mubr.msk.f32.gmra.mrb[98].mxu0 %vm302_vm1, %v15099_v49 }
 0x4ef   :  { %19222 = vmatmul.mubr.msk.f32.gmra.mrb[98].mxu1 %vm302_vm1, %v15099_v49  ;;  %19030 = vmatprep.mubr.msk.f32.mxu0 %vm302_vm1, %v15100_v50  ;;  %v15423_v49 = vld [vmem:[%s26123_s0 + $0x1d1] sm:$0xff] }
 0x4f0   :  { %19224 = vmatprep.mubr.msk.f32.mxu1 %vm302_vm1, %v15100_v50  ;;  %v15424_v50 = vld [vmem:[%s26123_s0 + $0x1e1] sm:$0xff] }
 0x4f2   :  { %19031 = vmatmul.mubr.msk.f32.gmra.mrb[100].mxu0 %vm302_vm1, %v15101_v51 }
 0x4f3   :  { %19225 = vmatmul.mubr.msk.f32.gmra.mrb[100].mxu1 %vm302_vm1, %v15101_v51  ;;  %19033 = vmatprep.mubr.msk.f32.mxu0 %vm302_vm1, %v15102_v52  ;;  %v15425_v51 = vld [vmem:[%s26123_s0 + $0x1e9] sm:$0xff] }
 0x4f4   :  { %19227 = vmatprep.mubr.msk.f32.mxu1 %vm302_vm1, %v15102_v52  ;;  %v15426_v52 = vld [vmem:[%s26123_s0 + $0x1f9] sm:$0xff] }
 0x4f6   :  { %19034 = vmatmul.mubr.msk.f32.gmra.mrb[102].mxu0 %vm302_vm1, %v15103_v53 }
 0x4f7   :  { %19228 = vmatmul.mubr.msk.f32.gmra.mrb[102].mxu1 %vm302_vm1, %v15103_v53  ;;  %19036 = vmatprep.mubr.msk.f32.mxu0 %vm302_vm1, %v15104_v54  ;;  %v15427_v53 = vld [vmem:[%s26123_s0 + $0x201] sm:$0xff] }
 0x4f8   :  { %19230 = vmatprep.mubr.msk.f32.mxu1 %vm302_vm1, %v15104_v54  ;;  %v15428_v54 = vld [vmem:[%s26123_s0 + $0x211] sm:$0xff] }
 0x4fa   :  { %19037 = vmatmul.mubr.msk.f32.gmra.mrb[104].mxu0 %vm302_vm1, %v15105_v55 }
 0x4fb   :  { %19231 = vmatmul.mubr.msk.f32.gmra.mrb[104].mxu1 %vm302_vm1, %v15105_v55  ;;  %19039 = vmatprep.mubr.msk.f32.mxu0 %vm302_vm1, %v15106_v56  ;;  %v15429_v55 = vld [vmem:[%s26123_s0 + $0x219] sm:$0xff] }
 0x4fc   :  { %19233 = vmatprep.mubr.msk.f32.mxu1 %vm302_vm1, %v15106_v56  ;;  %v15430_v56 = vld [vmem:[%s26123_s0 + $0x229] sm:$0xff] }
 0x4fe   :  { %19040 = vmatmul.mubr.msk.f32.gmra.mrb[106].mxu0 %vm302_vm1, %v15107_v57 }
 0x4ff   :  { %19234 = vmatmul.mubr.msk.f32.gmra.mrb[106].mxu1 %vm302_vm1, %v15107_v57  ;;  %19042 = vmatprep.mubr.msk.f32.mxu0 %vm302_vm1, %v15108_v58  ;;  %v15431_v57 = vld [vmem:[%s26123_s0 + $0x231] sm:$0xff] }
 0x500   :  { %19236 = vmatprep.mubr.msk.f32.mxu1 %vm302_vm1, %v15108_v58  ;;  %v15432_v58 = vld [vmem:[%s26123_s0 + $0x241] sm:$0xff] }
 0x502   :  { %19043 = vmatmul.mubr.msk.f32.gmra.mrb[108].mxu0 %vm302_vm1, %v15109_v59 }
 0x503   :  { %19237 = vmatmul.mubr.msk.f32.gmra.mrb[108].mxu1 %vm302_vm1, %v15109_v59  ;;  %19045 = vmatprep.mubr.msk.f32.mxu0 %vm302_vm1, %v15110_v60  ;;  %v15433_v59 = vld [vmem:[%s26123_s0 + $0x249] sm:$0xff] }
 0x504   :  { %19239 = vmatprep.mubr.msk.f32.mxu1 %vm302_vm1, %v15110_v60  ;;  %v15434_v60 = vld [vmem:[%s26123_s0 + $0x259] sm:$0xff] }
 0x506   :  { %19046 = vmatmul.mubr.msk.f32.gmra.mrb[110].mxu0 %vm302_vm1, %v15111_v61 }
 0x507   :  { %19240 = vmatmul.mubr.msk.f32.gmra.mrb[110].mxu1 %vm302_vm1, %v15111_v61  ;;  %19048 = vmatprep.mubr.msk.f32.mxu0 %vm302_vm1, %v15112_v62  ;;  %v15435_v61 = vld [vmem:[%s26123_s0 + $0x261] sm:$0xff] }
 0x508   :  { %19242 = vmatprep.mubr.msk.f32.mxu1 %vm302_vm1, %v15112_v62  ;;  %v15436_v62 = vld [vmem:[%s26123_s0 + $0x271] sm:$0xff] }
 0x50a   :  { %19049 = vmatmul.mubr.msk.f32.gmra.mrb[112].mxu0 %vm302_vm1, %v15113_v63 }
 0x50b   :  { %19243 = vmatmul.mubr.msk.f32.gmra.mrb[112].mxu1 %vm302_vm1, %v15113_v63  ;;  %19051 = vmatprep.mubr.msk.f32.mxu0 %vm302_vm1, %v15114_v0  ;;  %v15437_v63 = vld [vmem:[%s26123_s0 + $0x279] sm:$0xff] }
 0x50c   :  { %19245 = vmatprep.mubr.msk.f32.mxu1 %vm302_vm1, %v15114_v0  ;;  %v15438_v0 = vld [vmem:[%s26123_s0 + $0x289] sm:$0xff] }
 0x50e   :  { %19052 = vmatmul.mubr.msk.f32.gmra.mrb[114].mxu0 %vm302_vm1, %v15115_v1 }
 0x50f   :  { %19246 = vmatmul.mubr.msk.f32.gmra.mrb[114].mxu1 %vm302_vm1, %v15115_v1  ;;  %19054 = vmatprep.mubr.msk.f32.mxu0 %vm302_vm1, %v15116_v3  ;;  %v15439_v1 = vld [vmem:[%s26123_s0 + $0x291] sm:$0xff] }
 0x510   :  { %19248 = vmatprep.mubr.msk.f32.mxu1 %vm302_vm1, %v15116_v3  ;;  %v15440_v3 = vld [vmem:[%s26123_s0 + $0x2a1] sm:$0xff] }
 0x512   :  { %19055 = vmatmul.mubr.msk.f32.gmra.mrb[116].mxu0 %vm302_vm1, %v15117_v6 }
 0x513   :  { %19249 = vmatmul.mubr.msk.f32.gmra.mrb[116].mxu1 %vm302_vm1, %v15117_v6  ;;  %19057 = vmatprep.mubr.msk.f32.mxu0 %vm302_vm1, %v15118_v10  ;;  %v15441_v6 = vld [vmem:[%s26123_s0 + $0x2a9] sm:$0xff] }
 0x514   :  { %19251 = vmatprep.mubr.msk.f32.mxu1 %vm302_vm1, %v15118_v10  ;;  %v15442_v10 = vld [vmem:[%s26123_s0 + $0x2b9] sm:$0xff] }
 0x516   :  { %19058 = vmatmul.mubr.msk.f32.gmra.mrb[118].mxu0 %vm302_vm1, %v15119_v11 }
 0x517   :  { %19252 = vmatmul.mubr.msk.f32.gmra.mrb[118].mxu1 %vm302_vm1, %v15119_v11  ;;  %19060 = vmatprep.mubr.msk.f32.mxu0 %vm302_vm1, %v15120_v12  ;;  %v15443_v11 = vld [vmem:[%s26123_s0 + $0x2c1] sm:$0xff] }
 0x518   :  { %19254 = vmatprep.mubr.msk.f32.mxu1 %vm302_vm1, %v15120_v12  ;;  %v15444_v12 = vld [vmem:[%s26123_s0 + $0x2d1] sm:$0xff] }
 0x51a   :  { %19061 = vmatmul.mubr.msk.f32.gmra.mrb[120].mxu0 %vm302_vm1, %v15121_v8 }
 0x51b   :  { %19255 = vmatmul.mubr.msk.f32.gmra.mrb[120].mxu1 %vm302_vm1, %v15121_v8  ;;  %19063 = vmatprep.mubr.msk.f32.mxu0 %vm302_vm1, %v15122_v9  ;;  %v15445_v8 = vld [vmem:[%s26123_s0 + $0x2d9] sm:$0xff] }
 0x51c   :  { %19257 = vmatprep.mubr.msk.f32.mxu1 %vm302_vm1, %v15122_v9  ;;  %v15446_v9 = vld [vmem:[%s26123_s0 + $0x2e9] sm:$0xff] }
 0x51e   :  { %19064 = vmatmul.mubr.msk.f32.gmra.mrb[122].mxu0 %vm302_vm1, %v15123_v13 }
 0x51f   :  { %19258 = vmatmul.mubr.msk.f32.gmra.mrb[122].mxu1 %vm302_vm1, %v15123_v13  ;;  %19066 = vmatprep.mubr.msk.f32.mxu0 %vm302_vm1, %v15124_v14  ;;  %v15447_v13 = vld [vmem:[%s26123_s0 + $0x2f1] sm:$0xff] }
 0x520   :  { %19260 = vmatprep.mubr.msk.f32.mxu1 %vm302_vm1, %v15124_v14  ;;  %v15448_v14 = vld [vmem:[%s26123_s0 + $0x301] sm:$0xff] }
 0x522   :  { %19067 = vmatmul.mubr.msk.f32.gmra.mrb[124].mxu0 %vm302_vm1, %v15125_v4 }
 0x523   :  { %19261 = vmatmul.mubr.msk.f32.gmra.mrb[124].mxu1 %vm302_vm1, %v15125_v4  ;;  %19069 = vmatprep.mubr.msk.f32.mxu0 %vm302_vm1, %v15126_v2  ;;  %v15449_v4 = vld [vmem:[%s26123_s0 + $0x309] sm:$0xff] }
 0x524   :  { %19263 = vmatprep.mubr.msk.f32.mxu1 %vm302_vm1, %v15126_v2  ;;  %v15450_v2 = vld [vmem:[%s26123_s0 + $0x319] sm:$0xff] }
 0x526   :  { %19070 = vmatmul.mubr.msk.f32.gmra.mrb[126].mxu0 %vm302_vm1, %v15127_v5 }
 0x527   :  { %19264 = vmatmul.mubr.msk.f32.gmra.mrb[126].mxu1 %vm302_vm1, %v15127_v5  ;;  %19268 = vmatprep.mubr.msk.f32.mxu0 %vm302_vm1, %v15388_v7  ;;  %v15451_v5 = vld [vmem:[%s26123_s0 + $0x321] sm:$0xff] }
 0x528   :  { %19462 = vmatprep.mubr.msk.f32.mxu1 %vm302_vm1, %v15388_v7  ;;  %v15452_v7 = vld [vmem:[%s26123_s0 + $0x361] sm:$0xff] }
 0x52a   :  { %19269 = vmatmul.mubr.msk.f32.vlgmr.msra.gmra.mrb[0].mxu0 %vm302_vm1, %v15389_v15 }
 0x52b   :  { %19463 = vmatmul.mubr.msk.f32.vlgmr.msra.gmra.mrb[0].mxu1 %vm302_vm1, %v15389_v15  ;;  %19271 = vmatprep.mubr.msk.f32.mxu0 %vm302_vm1, %v15390_v18  ;;  %v15453_v15 = vld [vmem:[%s26123_s0 + $0x369] sm:$0xff] }
 0x52c   :  { %19465 = vmatprep.mubr.msk.f32.mxu1 %vm302_vm1, %v15390_v18  ;;  %v15454_v18 = vld [vmem:[%s26123_s0 + $0x379] sm:$0xff] }
 0x52e   :  { %19272 = vmatmul.mubr.msk.f32.gmra.mrb[2].mxu0 %vm302_vm1, %v15391_v19 }
 0x52f   :  { %19466 = vmatmul.mubr.msk.f32.gmra.mrb[2].mxu1 %vm302_vm1, %v15391_v19  ;;  %19274 = vmatprep.mubr.msk.f32.mxu0 %vm302_vm1, %v15392_v20  ;;  %v15455_v19 = vld [vmem:[%s26123_s0 + $0x381] sm:$0xff] }
 0x530   :  { %19468 = vmatprep.mubr.msk.f32.mxu1 %vm302_vm1, %v15392_v20  ;;  %v15456_v20 = vld [vmem:[%s26123_s0 + $0x391] sm:$0xff] }
 0x532   :  { %19275 = vmatmul.mubr.msk.f32.gmra.mrb[4].mxu0 %vm302_vm1, %v15393_v16 }
 0x533   :  { %19469 = vmatmul.mubr.msk.f32.gmra.mrb[4].mxu1 %vm302_vm1, %v15393_v16  ;;  %19277 = vmatprep.mubr.msk.f32.mxu0 %vm302_vm1, %v15394_v17  ;;  %v15457_v16 = vld [vmem:[%s26123_s0 + $0x399] sm:$0xff] }
 0x534   :  { %19471 = vmatprep.mubr.msk.f32.mxu1 %vm302_vm1, %v15394_v17  ;;  %v15458_v17 = vld [vmem:[%s26123_s0 + $0x3a9] sm:$0xff] }
 0x536   :  { %19278 = vmatmul.mubr.msk.f32.gmra.mrb[6].mxu0 %vm302_vm1, %v15395_v21 }
 0x537   :  { %19472 = vmatmul.mubr.msk.f32.gmra.mrb[6].mxu1 %vm302_vm1, %v15395_v21  ;;  %19280 = vmatprep.mubr.msk.f32.mxu0 %vm302_vm1, %v15396_v22  ;;  %v15459_v21 = vld [vmem:[%s26123_s0 + $0x3b1] sm:$0xff] }
 0x538   :  { %19474 = vmatprep.mubr.msk.f32.mxu1 %vm302_vm1, %v15396_v22  ;;  %v15460_v22 = vld [vmem:[%s26123_s0 + $0x3c1] sm:$0xff] }
 0x53a   :  { %19281 = vmatmul.mubr.msk.f32.gmra.mrb[8].mxu0 %vm302_vm1, %v15397_v23 }
 0x53b   :  { %19475 = vmatmul.mubr.msk.f32.gmra.mrb[8].mxu1 %vm302_vm1, %v15397_v23  ;;  %19283 = vmatprep.mubr.msk.f32.mxu0 %vm302_vm1, %v15398_v24  ;;  %v15461_v23 = vld [vmem:[%s26123_s0 + $0x3c9] sm:$0xff] }
 0x53c   :  { %19477 = vmatprep.mubr.msk.f32.mxu1 %vm302_vm1, %v15398_v24  ;;  %v15462_v24 = vld [vmem:[%s26123_s0 + $0x3d9] sm:$0xff] }
 0x53e   :  { %19284 = vmatmul.mubr.msk.f32.gmra.mrb[10].mxu0 %vm302_vm1, %v15399_v25 }
 0x53f   :  { %19478 = vmatmul.mubr.msk.f32.gmra.mrb[10].mxu1 %vm302_vm1, %v15399_v25  ;;  %19286 = vmatprep.mubr.msk.f32.mxu0 %vm302_vm1, %v15400_v26  ;;  %v15463_v25 = vld [vmem:[%s26123_s0 + $0x3e1] sm:$0xff] }
 0x540   :  { %19480 = vmatprep.mubr.msk.f32.mxu1 %vm302_vm1, %v15400_v26  ;;  %v15464_v26 = vld [vmem:[%s26123_s0 + $0x3f1] sm:$0xff] }
 0x542   :  { %19287 = vmatmul.mubr.msk.f32.gmra.mrb[12].mxu0 %vm302_vm1, %v15401_v27 }
 0x543   :  { %19481 = vmatmul.mubr.msk.f32.gmra.mrb[12].mxu1 %vm302_vm1, %v15401_v27  ;;  %19289 = vmatprep.mubr.msk.f32.mxu0 %vm302_vm1, %v15402_v28  ;;  %v15465_v27 = vld [vmem:[%s26123_s0 + $0x3f9] sm:$0xff] }
 0x544   :  { %19483 = vmatprep.mubr.msk.f32.mxu1 %vm302_vm1, %v15402_v28  ;;  %v15466_v28 = vld [vmem:[%s26123_s0 + $0x409] sm:$0xff] }
 0x546   :  { %19290 = vmatmul.mubr.msk.f32.gmra.mrb[14].mxu0 %vm302_vm1, %v15403_v29 }
 0x547   :  { %19484 = vmatmul.mubr.msk.f32.gmra.mrb[14].mxu1 %vm302_vm1, %v15403_v29  ;;  %19292 = vmatprep.mubr.msk.f32.mxu0 %vm302_vm1, %v15404_v30  ;;  %v15467_v29 = vld [vmem:[%s26123_s0 + $0x411] sm:$0xff] }
 0x548   :  { %19486 = vmatprep.mubr.msk.f32.mxu1 %vm302_vm1, %v15404_v30  ;;  %v15468_v30 = vld [vmem:[%s26123_s0 + $0x421] sm:$0xff] }
 0x54a   :  { %19293 = vmatmul.mubr.msk.f32.gmra.mrb[16].mxu0 %vm302_vm1, %v15405_v31 }
 0x54b   :  { %19487 = vmatmul.mubr.msk.f32.gmra.mrb[16].mxu1 %vm302_vm1, %v15405_v31  ;;  %19295 = vmatprep.mubr.msk.f32.mxu0 %vm302_vm1, %v15406_v32  ;;  %v15469_v31 = vld [vmem:[%s26123_s0 + $0x429] sm:$0xff] }
 0x54c   :  { %19489 = vmatprep.mubr.msk.f32.mxu1 %vm302_vm1, %v15406_v32  ;;  %v15470_v32 = vld [vmem:[%s26123_s0 + $0x439] sm:$0xff] }
 0x54e   :  { %19296 = vmatmul.mubr.msk.f32.gmra.mrb[18].mxu0 %vm302_vm1, %v15407_v33 }
 0x54f   :  { %19490 = vmatmul.mubr.msk.f32.gmra.mrb[18].mxu1 %vm302_vm1, %v15407_v33  ;;  %19298 = vmatprep.mubr.msk.f32.mxu0 %vm302_vm1, %v15408_v34  ;;  %v15471_v33 = vld [vmem:[%s26123_s0 + $0x441] sm:$0xff] }
 0x550   :  { %19492 = vmatprep.mubr.msk.f32.mxu1 %vm302_vm1, %v15408_v34  ;;  %v15472_v34 = vld [vmem:[%s26123_s0 + $0x451] sm:$0xff] }
 0x552   :  { %19299 = vmatmul.mubr.msk.f32.gmra.mrb[20].mxu0 %vm302_vm1, %v15409_v35 }
 0x553   :  { %19493 = vmatmul.mubr.msk.f32.gmra.mrb[20].mxu1 %vm302_vm1, %v15409_v35  ;;  %19301 = vmatprep.mubr.msk.f32.mxu0 %vm302_vm1, %v15410_v36  ;;  %v15473_v35 = vld [vmem:[%s26123_s0 + $0x459] sm:$0xff] }
 0x554   :  { %19495 = vmatprep.mubr.msk.f32.mxu1 %vm302_vm1, %v15410_v36  ;;  %v15474_v36 = vld [vmem:[%s26123_s0 + $0x469] sm:$0xff] }
 0x556   :  { %19302 = vmatmul.mubr.msk.f32.gmra.mrb[22].mxu0 %vm302_vm1, %v15411_v37 }
 0x557   :  { %19496 = vmatmul.mubr.msk.f32.gmra.mrb[22].mxu1 %vm302_vm1, %v15411_v37  ;;  %19304 = vmatprep.mubr.msk.f32.mxu0 %vm302_vm1, %v15412_v38  ;;  %v15475_v37 = vld [vmem:[%s26123_s0 + $0x471] sm:$0xff] }
 0x558   :  { %19498 = vmatprep.mubr.msk.f32.mxu1 %vm302_vm1, %v15412_v38  ;;  %v15476_v38 = vld [vmem:[%s26123_s0 + $0x481] sm:$0xff] }
 0x55a   :  { %19305 = vmatmul.mubr.msk.f32.gmra.mrb[24].mxu0 %vm302_vm1, %v15413_v39 }
 0x55b   :  { %19499 = vmatmul.mubr.msk.f32.gmra.mrb[24].mxu1 %vm302_vm1, %v15413_v39  ;;  %19307 = vmatprep.mubr.msk.f32.mxu0 %vm302_vm1, %v15414_v40  ;;  %v15477_v39 = vld [vmem:[%s26123_s0 + $0x489] sm:$0xff] }
 0x55c   :  { %19501 = vmatprep.mubr.msk.f32.mxu1 %vm302_vm1, %v15414_v40  ;;  %v15478_v40 = vld [vmem:[%s26123_s0 + $0x499] sm:$0xff] }
 0x55e   :  { %19308 = vmatmul.mubr.msk.f32.gmra.mrb[26].mxu0 %vm302_vm1, %v15415_v41 }
 0x55f   :  { %19502 = vmatmul.mubr.msk.f32.gmra.mrb[26].mxu1 %vm302_vm1, %v15415_v41  ;;  %19310 = vmatprep.mubr.msk.f32.mxu0 %vm302_vm1, %v15416_v42  ;;  %v15479_v41 = vld [vmem:[%s26123_s0 + $0x4a1] sm:$0xff] }
 0x560   :  { %19504 = vmatprep.mubr.msk.f32.mxu1 %vm302_vm1, %v15416_v42  ;;  %v15480_v42 = vld [vmem:[%s26123_s0 + $0x4b1] sm:$0xff] }
 0x562   :  { %19311 = vmatmul.mubr.msk.f32.gmra.mrb[28].mxu0 %vm302_vm1, %v15417_v43 }
 0x563   :  { %19505 = vmatmul.mubr.msk.f32.gmra.mrb[28].mxu1 %vm302_vm1, %v15417_v43  ;;  %19313 = vmatprep.mubr.msk.f32.mxu0 %vm302_vm1, %v15418_v44  ;;  %v15481_v43 = vld [vmem:[%s26123_s0 + $0x4b9] sm:$0xff] }
 0x564   :  { %19507 = vmatprep.mubr.msk.f32.mxu1 %vm302_vm1, %v15418_v44  ;;  %v15482_v44 = vld [vmem:[%s26123_s0 + $0x4c9] sm:$0xff] }
 0x566   :  { %19314 = vmatmul.mubr.msk.f32.gmra.mrb[30].mxu0 %vm302_vm1, %v15419_v45 }
 0x567   :  { %19508 = vmatmul.mubr.msk.f32.gmra.mrb[30].mxu1 %vm302_vm1, %v15419_v45  ;;  %19316 = vmatprep.mubr.msk.f32.mxu0 %vm302_vm1, %v15420_v46  ;;  %v15483_v45 = vld [vmem:[%s26123_s0 + $0x4d1] sm:$0xff] }
 0x568   :  { %19510 = vmatprep.mubr.msk.f32.mxu1 %vm302_vm1, %v15420_v46  ;;  %v15484_v46 = vld [vmem:[%s26123_s0 + $0x4e1] sm:$0xff] }
 0x56a   :  { %19317 = vmatmul.mubr.msk.f32.gmra.mrb[32].mxu0 %vm302_vm1, %v15421_v47 }
 0x56b   :  { %19511 = vmatmul.mubr.msk.f32.gmra.mrb[32].mxu1 %vm302_vm1, %v15421_v47  ;;  %19319 = vmatprep.mubr.msk.f32.mxu0 %vm302_vm1, %v15422_v48  ;;  %v15485_v47 = vld [vmem:[%s26123_s0 + $0x4e9] sm:$0xff] }
 0x56c   :  { %19513 = vmatprep.mubr.msk.f32.mxu1 %vm302_vm1, %v15422_v48  ;;  %v15486_v48 = vld [vmem:[%s26123_s0 + $0x4f9] sm:$0xff] }
 0x56e   :  { %19320 = vmatmul.mubr.msk.f32.gmra.mrb[34].mxu0 %vm302_vm1, %v15423_v49 }
 0x56f   :  { %19514 = vmatmul.mubr.msk.f32.gmra.mrb[34].mxu1 %vm302_vm1, %v15423_v49  ;;  %19322 = vmatprep.mubr.msk.f32.mxu0 %vm302_vm1, %v15424_v50  ;;  %v15487_v49 = vld [vmem:[%s26123_s0 + $0x501] sm:$0xff] }
 0x570   :  { %19516 = vmatprep.mubr.msk.f32.mxu1 %vm302_vm1, %v15424_v50  ;;  %v15488_v50 = vld [vmem:[%s26123_s0 + $0x511] sm:$0xff] }
 0x572   :  { %19323 = vmatmul.mubr.msk.f32.gmra.mrb[36].mxu0 %vm302_vm1, %v15425_v51 }
 0x573   :  { %19517 = vmatmul.mubr.msk.f32.gmra.mrb[36].mxu1 %vm302_vm1, %v15425_v51  ;;  %19325 = vmatprep.mubr.msk.f32.mxu0 %vm302_vm1, %v15426_v52  ;;  %v15489_v51 = vld [vmem:[%s26123_s0 + $0x519] sm:$0xff] }
 0x574   :  { %19519 = vmatprep.mubr.msk.f32.mxu1 %vm302_vm1, %v15426_v52  ;;  %v15490_v52 = vld [vmem:[%s26123_s0 + $0x529] sm:$0xff] }
 0x576   :  { %19326 = vmatmul.mubr.msk.f32.gmra.mrb[38].mxu0 %vm302_vm1, %v15427_v53 }
 0x577   :  { %19520 = vmatmul.mubr.msk.f32.gmra.mrb[38].mxu1 %vm302_vm1, %v15427_v53  ;;  %19328 = vmatprep.mubr.msk.f32.mxu0 %vm302_vm1, %v15428_v54  ;;  %v15491_v53 = vld [vmem:[%s26123_s0 + $0x531] sm:$0xff] }
 0x578   :  { %19522 = vmatprep.mubr.msk.f32.mxu1 %vm302_vm1, %v15428_v54  ;;  %v15492_v54 = vld [vmem:[%s26123_s0 + $0x541] sm:$0xff] }
 0x57a   :  { %19329 = vmatmul.mubr.msk.f32.gmra.mrb[40].mxu0 %vm302_vm1, %v15429_v55 }
 0x57b   :  { %19523 = vmatmul.mubr.msk.f32.gmra.mrb[40].mxu1 %vm302_vm1, %v15429_v55  ;;  %19331 = vmatprep.mubr.msk.f32.mxu0 %vm302_vm1, %v15430_v56  ;;  %v15493_v55 = vld [vmem:[%s26123_s0 + $0x549] sm:$0xff] }
 0x57c   :  { %19525 = vmatprep.mubr.msk.f32.mxu1 %vm302_vm1, %v15430_v56  ;;  %v15494_v56 = vld [vmem:[%s26123_s0 + $0x559] sm:$0xff] }
 0x57e   :  { %19332 = vmatmul.mubr.msk.f32.gmra.mrb[42].mxu0 %vm302_vm1, %v15431_v57 }
 0x57f   :  { %19526 = vmatmul.mubr.msk.f32.gmra.mrb[42].mxu1 %vm302_vm1, %v15431_v57  ;;  %19334 = vmatprep.mubr.msk.f32.mxu0 %vm302_vm1, %v15432_v58  ;;  %v25236_v57 = vld [vmem:[#allocation2] ss:$0 sm:$0xff] }
 0x580   :  { %19528 = vmatprep.mubr.msk.f32.mxu1 %vm302_vm1, %v15432_v58  ;;  %v15495_v58 = vld [vmem:[%s26123_s0 + $0x561] sm:$0xff] }
 0x582   :  { %19335 = vmatmul.mubr.msk.f32.gmra.mrb[44].mxu0 %vm302_vm1, %v15433_v59 }
 0x583   :  { %19529 = vmatmul.mubr.msk.f32.gmra.mrb[44].mxu1 %vm302_vm1, %v15433_v59  ;;  %19337 = vmatprep.mubr.msk.f32.mxu0 %vm302_vm1, %v15434_v60  ;;  %v15496_v59 = vld [vmem:[%s26123_s0 + $0x571] sm:$0xff] }
 0x584   :  { %19531 = vmatprep.mubr.msk.f32.mxu1 %vm302_vm1, %v15434_v60 }
 0x586   :  { %19338 = vmatmul.mubr.msk.f32.gmra.mrb[46].mxu0 %vm302_vm1, %v15435_v61 }
 0x587   :  { %19532 = vmatmul.mubr.msk.f32.gmra.mrb[46].mxu1 %vm302_vm1, %v15435_v61  ;;  %19340 = vmatprep.mubr.msk.f32.mxu0 %vm302_vm1, %v15436_v62  ;;  %v25246_v61 = vld [vmem:[#allocation4] ss:$0 sm:$0xff] }
 0x588   :  { %19534 = vmatprep.mubr.msk.f32.mxu1 %vm302_vm1, %v15436_v62 }
 0x58a   :  { %19341 = vmatmul.mubr.msk.f32.gmra.mrb[48].mxu0 %vm302_vm1, %v15437_v63 }
 0x58b   :  { %19535 = vmatmul.mubr.msk.f32.gmra.mrb[48].mxu1 %vm302_vm1, %v15437_v63  ;;  %19343 = vmatprep.mubr.msk.f32.mxu0 %vm302_vm1, %v15438_v0 }
 0x58c   :  { %19537 = vmatprep.mubr.msk.f32.mxu1 %vm302_vm1, %v15438_v0 }
 0x58e   :  { %19344 = vmatmul.mubr.msk.f32.gmra.mrb[50].mxu0 %vm302_vm1, %v15439_v1 }
 0x58f   :  { %19538 = vmatmul.mubr.msk.f32.gmra.mrb[50].mxu1 %vm302_vm1, %v15439_v1  ;;  %19346 = vmatprep.mubr.msk.f32.mxu0 %vm302_vm1, %v15440_v3 }
 0x590   :  { %19540 = vmatprep.mubr.msk.f32.mxu1 %vm302_vm1, %v15440_v3 }
 0x592   :  { %19347 = vmatmul.mubr.msk.f32.gmra.mrb[52].mxu0 %vm302_vm1, %v15441_v6 }
 0x593   :  { %19541 = vmatmul.mubr.msk.f32.gmra.mrb[52].mxu1 %vm302_vm1, %v15441_v6  ;;  %19349 = vmatprep.mubr.msk.f32.mxu0 %vm302_vm1, %v15442_v10 }
 0x594   :  { %19543 = vmatprep.mubr.msk.f32.mxu1 %vm302_vm1, %v15442_v10  ;;  %v15497_v10 = vld [vmem:[%s26123_s0 + $0x579] sm:$0xff] }
 0x596   :  { %19350 = vmatmul.mubr.msk.f32.gmra.mrb[54].mxu0 %vm302_vm1, %v15443_v11 }
 0x597   :  { %19544 = vmatmul.mubr.msk.f32.gmra.mrb[54].mxu1 %vm302_vm1, %v15443_v11  ;;  %19352 = vmatprep.mubr.msk.f32.mxu0 %vm302_vm1, %v15444_v12 }
 0x598   :  { %19546 = vmatprep.mubr.msk.f32.mxu1 %vm302_vm1, %v15444_v12 }
 0x59a   :  { %19353 = vmatmul.mubr.msk.f32.gmra.mrb[56].mxu0 %vm302_vm1, %v15445_v8 }
 0x59b   :  { %19547 = vmatmul.mubr.msk.f32.gmra.mrb[56].mxu1 %vm302_vm1, %v15445_v8  ;;  %19355 = vmatprep.mubr.msk.f32.mxu0 %vm302_vm1, %v15446_v9  ;;  %v15498_v8 = vld [vmem:[%s26123_s0 + $0x589] sm:$0xff] }
 0x59c   :  { %19549 = vmatprep.mubr.msk.f32.mxu1 %vm302_vm1, %v15446_v9 }
 0x59e   :  { %19356 = vmatmul.mubr.msk.f32.gmra.mrb[58].mxu0 %vm302_vm1, %v15447_v13 }
 0x59f   :  { %19550 = vmatmul.mubr.msk.f32.gmra.mrb[58].mxu1 %vm302_vm1, %v15447_v13  ;;  %19358 = vmatprep.mubr.msk.f32.mxu0 %vm302_vm1, %v15448_v14 }
 0x5a0   :  { %19552 = vmatprep.mubr.msk.f32.mxu1 %vm302_vm1, %v15448_v14 }
 0x5a2   :  { %19359 = vmatmul.mubr.msk.f32.gmra.mrb[60].mxu0 %vm302_vm1, %v15449_v4 }
 0x5a3   :  { %19553 = vmatmul.mubr.msk.f32.gmra.mrb[60].mxu1 %vm302_vm1, %v15449_v4  ;;  %19361 = vmatprep.mubr.msk.f32.mxu0 %vm302_vm1, %v15450_v2 }
 0x5a4   :  { %19555 = vmatprep.mubr.msk.f32.mxu1 %vm302_vm1, %v15450_v2 }
 0x5a6   :  { %19362 = vmatmul.mubr.msk.f32.gmra.mrb[62].mxu0 %vm302_vm1, %v15451_v5 }
 0x5a7   :  { %19556 = vmatmul.mubr.msk.f32.gmra.mrb[62].mxu1 %vm302_vm1, %v15451_v5  ;;  %19364 = vmatprep.mubr.msk.f32.mxu0 %vm302_vm1, %v15452_v7 }
 0x5a8   :  { %19558 = vmatprep.mubr.msk.f32.mxu1 %vm302_vm1, %v15452_v7 }
 0x5aa   :  { %19365 = vmatmul.mubr.msk.f32.gmra.mrb[64].mxu0 %vm302_vm1, %v15453_v15 }
 0x5ab   :  { %19559 = vmatmul.mubr.msk.f32.gmra.mrb[64].mxu1 %vm302_vm1, %v15453_v15  ;;  %19367 = vmatprep.mubr.msk.f32.mxu0 %vm302_vm1, %v15454_v18 }
 0x5ac   :  { %19561 = vmatprep.mubr.msk.f32.mxu1 %vm302_vm1, %v15454_v18 }
 0x5ae   :  { %19368 = vmatmul.mubr.msk.f32.gmra.mrb[66].mxu0 %vm302_vm1, %v15455_v19 }
 0x5af   :  { %19562 = vmatmul.mubr.msk.f32.gmra.mrb[66].mxu1 %vm302_vm1, %v15455_v19  ;;  %19370 = vmatprep.mubr.msk.f32.mxu0 %vm302_vm1, %v15456_v20 }
 0x5b0   :  { %19564 = vmatprep.mubr.msk.f32.mxu1 %vm302_vm1, %v15456_v20 }
 0x5b2   :  { %19371 = vmatmul.mubr.msk.f32.gmra.mrb[68].mxu0 %vm302_vm1, %v15457_v16 }
 0x5b3   :  { %19565 = vmatmul.mubr.msk.f32.gmra.mrb[68].mxu1 %vm302_vm1, %v15457_v16  ;;  %19373 = vmatprep.mubr.msk.f32.mxu0 %vm302_vm1, %v15458_v17 }
 0x5b4   :  { %19567 = vmatprep.mubr.msk.f32.mxu1 %vm302_vm1, %v15458_v17 }
 0x5b6   :  { %19374 = vmatmul.mubr.msk.f32.gmra.mrb[70].mxu0 %vm302_vm1, %v15459_v21 }
 0x5b7   :  { %19568 = vmatmul.mubr.msk.f32.gmra.mrb[70].mxu1 %vm302_vm1, %v15459_v21  ;;  %19376 = vmatprep.mubr.msk.f32.mxu0 %vm302_vm1, %v15460_v22  ;;  %v15499_v21 = vld [vmem:[%s26123_s0 + $0x591] sm:$0xff] }
 0x5b8   :  { %19570 = vmatprep.mubr.msk.f32.mxu1 %vm302_vm1, %v15460_v22 }
 0x5ba   :  { %19377 = vmatmul.mubr.msk.f32.gmra.mrb[72].mxu0 %vm302_vm1, %v15461_v23 }
 0x5bb   :  { %19571 = vmatmul.mubr.msk.f32.gmra.mrb[72].mxu1 %vm302_vm1, %v15461_v23  ;;  %19379 = vmatprep.mubr.msk.f32.mxu0 %vm302_vm1, %v15462_v24 }
 0x5bc   :  { %19573 = vmatprep.mubr.msk.f32.mxu1 %vm302_vm1, %v15462_v24 }
 0x5be   :  { %19380 = vmatmul.mubr.msk.f32.gmra.mrb[74].mxu0 %vm302_vm1, %v15463_v25 }
 0x5bf   :  { %19574 = vmatmul.mubr.msk.f32.gmra.mrb[74].mxu1 %vm302_vm1, %v15463_v25  ;;  %19382 = vmatprep.mubr.msk.f32.mxu0 %vm302_vm1, %v15464_v26  ;;  %v15500_v25 = vld [vmem:[%s26123_s0 + $0x5a1] sm:$0xff] }
 0x5c0   :  { %19576 = vmatprep.mubr.msk.f32.mxu1 %vm302_vm1, %v15464_v26 }
 0x5c2   :  { %19383 = vmatmul.mubr.msk.f32.gmra.mrb[76].mxu0 %vm302_vm1, %v15465_v27 }
 0x5c3   :  { %19577 = vmatmul.mubr.msk.f32.gmra.mrb[76].mxu1 %vm302_vm1, %v15465_v27  ;;  %19385 = vmatprep.mubr.msk.f32.mxu0 %vm302_vm1, %v15466_v28 }
 0x5c4   :  { %19579 = vmatprep.mubr.msk.f32.mxu1 %vm302_vm1, %v15466_v28 }
 0x5c6   :  { %19386 = vmatmul.mubr.msk.f32.gmra.mrb[78].mxu0 %vm302_vm1, %v15467_v29 }
 0x5c7   :  { %19580 = vmatmul.mubr.msk.f32.gmra.mrb[78].mxu1 %vm302_vm1, %v15467_v29  ;;  %19388 = vmatprep.mubr.msk.f32.mxu0 %vm302_vm1, %v15468_v30 }
 0x5c8   :  { %19582 = vmatprep.mubr.msk.f32.mxu1 %vm302_vm1, %v15468_v30 }
 0x5ca   :  { %19389 = vmatmul.mubr.msk.f32.gmra.mrb[80].mxu0 %vm302_vm1, %v15469_v31 }
 0x5cb   :  { %19583 = vmatmul.mubr.msk.f32.gmra.mrb[80].mxu1 %vm302_vm1, %v15469_v31  ;;  %19391 = vmatprep.mubr.msk.f32.mxu0 %vm302_vm1, %v15470_v32 }
 0x5cc   :  { %19585 = vmatprep.mubr.msk.f32.mxu1 %vm302_vm1, %v15470_v32 }
 0x5ce   :  { %19392 = vmatmul.mubr.msk.f32.gmra.mrb[82].mxu0 %vm302_vm1, %v15471_v33 }
 0x5cf   :  { %19586 = vmatmul.mubr.msk.f32.gmra.mrb[82].mxu1 %vm302_vm1, %v15471_v33  ;;  %19394 = vmatprep.mubr.msk.f32.mxu0 %vm302_vm1, %v15472_v34 }
 0x5d0   :  { %19588 = vmatprep.mubr.msk.f32.mxu1 %vm302_vm1, %v15472_v34 }
 0x5d2   :  { %19395 = vmatmul.mubr.msk.f32.gmra.mrb[84].mxu0 %vm302_vm1, %v15473_v35 }
 0x5d3   :  { %19589 = vmatmul.mubr.msk.f32.gmra.mrb[84].mxu1 %vm302_vm1, %v15473_v35  ;;  %19397 = vmatprep.mubr.msk.f32.mxu0 %vm302_vm1, %v15474_v36 }
 0x5d4   :  { %19591 = vmatprep.mubr.msk.f32.mxu1 %vm302_vm1, %v15474_v36 }
 0x5d6   :  { %19398 = vmatmul.mubr.msk.f32.gmra.mrb[86].mxu0 %vm302_vm1, %v15475_v37 }
 0x5d7   :  { %19592 = vmatmul.mubr.msk.f32.gmra.mrb[86].mxu1 %vm302_vm1, %v15475_v37  ;;  %19400 = vmatprep.mubr.msk.f32.mxu0 %vm302_vm1, %v15476_v38 }
 0x5d8   :  { %19594 = vmatprep.mubr.msk.f32.mxu1 %vm302_vm1, %v15476_v38 }
 0x5da   :  { %19401 = vmatmul.mubr.msk.f32.gmra.mrb[88].mxu0 %vm302_vm1, %v15477_v39 }
 0x5db   :  { %19595 = vmatmul.mubr.msk.f32.gmra.mrb[88].mxu1 %vm302_vm1, %v15477_v39  ;;  %19403 = vmatprep.mubr.msk.f32.mxu0 %vm302_vm1, %v15478_v40 }
 0x5dc   :  { %19597 = vmatprep.mubr.msk.f32.mxu1 %vm302_vm1, %v15478_v40 }
 0x5de   :  { %19404 = vmatmul.mubr.msk.f32.gmra.mrb[90].mxu0 %vm302_vm1, %v15479_v41 }
 0x5df   :  { %19598 = vmatmul.mubr.msk.f32.gmra.mrb[90].mxu1 %vm302_vm1, %v15479_v41  ;;  %19406 = vmatprep.mubr.msk.f32.mxu0 %vm302_vm1, %v15480_v42  ;;  %v15501_v41 = vld [vmem:[%s26123_s0 + $0x5a9] sm:$0xff] }
 0x5e0   :  { %19600 = vmatprep.mubr.msk.f32.mxu1 %vm302_vm1, %v15480_v42 }
 0x5e2   :  { %19407 = vmatmul.mubr.msk.f32.gmra.mrb[92].mxu0 %vm302_vm1, %v15481_v43 }
 0x5e3   :  { %19601 = vmatmul.mubr.msk.f32.gmra.mrb[92].mxu1 %vm302_vm1, %v15481_v43  ;;  %19409 = vmatprep.mubr.msk.f32.mxu0 %vm302_vm1, %v15482_v44 }
 0x5e4   :  { %19603 = vmatprep.mubr.msk.f32.mxu1 %vm302_vm1, %v15482_v44 }
 0x5e6   :  { %19410 = vmatmul.mubr.msk.f32.gmra.mrb[94].mxu0 %vm302_vm1, %v15483_v45 }
 0x5e7   :  { %19604 = vmatmul.mubr.msk.f32.gmra.mrb[94].mxu1 %vm302_vm1, %v15483_v45  ;;  %19412 = vmatprep.mubr.msk.f32.mxu0 %vm302_vm1, %v15484_v46  ;;  %v15502_v45 = vld [vmem:[%s26123_s0 + $0x5b9] sm:$0xff] }
 0x5e8   :  { %19606 = vmatprep.mubr.msk.f32.mxu1 %vm302_vm1, %v15484_v46 }
 0x5ea   :  { %19413 = vmatmul.mubr.msk.f32.gmra.mrb[96].mxu0 %vm302_vm1, %v15485_v47 }
 0x5eb   :  { %19607 = vmatmul.mubr.msk.f32.gmra.mrb[96].mxu1 %vm302_vm1, %v15485_v47  ;;  %19415 = vmatprep.mubr.msk.f32.mxu0 %vm302_vm1, %v15486_v48 }
 0x5ec   :  { %19609 = vmatprep.mubr.msk.f32.mxu1 %vm302_vm1, %v15486_v48 }
 0x5ee   :  { %19416 = vmatmul.mubr.msk.f32.gmra.mrb[98].mxu0 %vm302_vm1, %v15487_v49 }
 0x5ef   :  { %19610 = vmatmul.mubr.msk.f32.gmra.mrb[98].mxu1 %vm302_vm1, %v15487_v49  ;;  %19418 = vmatprep.mubr.msk.f32.mxu0 %vm302_vm1, %v15488_v50 }
 0x5f0   :  { %19612 = vmatprep.mubr.msk.f32.mxu1 %vm302_vm1, %v15488_v50 }
 0x5f2   :  { %19419 = vmatmul.mubr.msk.f32.gmra.mrb[100].mxu0 %vm302_vm1, %v15489_v51 }
 0x5f3   :  { %19613 = vmatmul.mubr.msk.f32.gmra.mrb[100].mxu1 %vm302_vm1, %v15489_v51  ;;  %19421 = vmatprep.mubr.msk.f32.mxu0 %vm302_vm1, %v15490_v52 }
 0x5f4   :  { %19615 = vmatprep.mubr.msk.f32.mxu1 %vm302_vm1, %v15490_v52 }
 0x5f6   :  { %19422 = vmatmul.mubr.msk.f32.gmra.mrb[102].mxu0 %vm302_vm1, %v15491_v53 }
 0x5f7   :  { %19616 = vmatmul.mubr.msk.f32.gmra.mrb[102].mxu1 %vm302_vm1, %v15491_v53  ;;  %19424 = vmatprep.mubr.msk.f32.mxu0 %vm302_vm1, %v15492_v54 }
 0x5f8   :  { %19618 = vmatprep.mubr.msk.f32.mxu1 %vm302_vm1, %v15492_v54 }
 0x5fa   :  { %19425 = vmatmul.mubr.msk.f32.gmra.mrb[104].mxu0 %vm302_vm1, %v15493_v55 }
 0x5fb   :  { %19619 = vmatmul.mubr.msk.f32.gmra.mrb[104].mxu1 %vm302_vm1, %v15493_v55  ;;  %19427 = vmatprep.mubr.msk.f32.mxu0 %vm302_vm1, %v15494_v56 }
 0x5fc   :  { %19621 = vmatprep.mubr.msk.f32.mxu1 %vm302_vm1, %v15494_v56 }
 0x5fd   :  { %v19270_v60 = vpop.f32.mrb[0].mxu0 }
 0x5fe   :  { %v12669_v62 = vmul.f32 %v19270_v60, %v25236_v57  ;;  %v19464_v63 = vpop.f32.mrb[0].mxu1  ;;  %v11055_v0 = vpop.f32.mrb[1].mxu0  ;;  %19428 = vmatmul.mubr.msk.f32.gmra.mrb[106].mxu0 %vm302_vm1, %v15495_v58 }
 0x5ff   :  { %v13059_v1 = vmul.f32 %v19464_v63, %v25236_v57  ;;  %v12668_v3 = vmul.f32 %v25236_v57, %v11055_v0  ;;  %v11893_v6 = vpop.f32.mrb[1].mxu1  ;;  %19622 = vmatmul.mubr.msk.f32.gmra.mrb[106].mxu1 %vm302_vm1, %v15495_v58  ;;  %19430 = vmatprep.mubr.msk.f32.mxu0 %vm302_vm1, %v15496_v59  ;;  %v15503_v63 = vld [vmem:[%s26123_s0 + $0x5c1] sm:$0xff] }
 0x600   :  { %v12803_v11 = vadd.f32 %v25246_v61, %v12669_v62  ;;  %v13058_v12 = vmul.f32 %v25236_v57, %v11893_v6  ;;  %19624 = vmatprep.mubr.msk.f32.mxu1 %vm302_vm1, %v15496_v59 }
 0x601   :  { %v13187_v9 = vadd.f32 %v25246_v61, %v13059_v1  ;;  %v12802_v13 = vadd.f32 %v25246_v61, %v12668_v3  ;;  %v19273_v14 = vpop.f32.mrb[2].mxu0 }
 0x602   :  { %v12931_v4 = vmax.f32 %v12803_v11, 0.0  ;;  %v13186_v2 = vadd.f32 %v25246_v61, %v13058_v12  ;;  %v12671_v5 = vmul.f32 %v19273_v14, %v25236_v57  ;;  %v19467_v7 = vpop.f32.mrb[2].mxu1  ;;  %v11065_v15 = vpop.f32.mrb[3].mxu0  ;;  %19431 = vmatmul.mubr.msk.f32.gmra.mrb[108].mxu0 %vm302_vm1, %v15497_v10 }
 0x603   :  { %v13315_v18 = vmax.f32 %v13187_v9, 0.0  ;;  %v12930_v19 = vmax.f32 %v12802_v13, 0.0  ;;  %v13061_v20 = vmul.f32 %v19467_v7, %v25236_v57  ;;  %v12670_v16 = vmul.f32 %v25236_v57, %v11065_v15  ;;  %v11903_v17 = vpop.f32.mrb[3].mxu1  ;;  %19625 = vmatmul.mubr.msk.f32.gmra.mrb[108].mxu1 %vm302_vm1, %v15497_v10  ;;  %19433 = vmatprep.mubr.msk.f32.mxu0 %vm302_vm1, %v15498_v8  ;;  %v15504_v10 = vld [vmem:[%s26123_s0 + $0x5d1] sm:$0xff] }
 0x604   :  { %v13314_v22 = vmax.f32 %v13186_v2, 0.0  ;;  %v12805_v23 = vadd.f32 %v25246_v61, %v12671_v5  ;;  %v13060_v24 = vmul.f32 %v25236_v57, %v11903_v17  ;;  %19627 = vmatprep.mubr.msk.f32.mxu1 %vm302_vm1, %v15498_v8  ;;  %v15505_v17 = vld [vmem:[%s26123_s0 + $0x5d9] sm:$0xff] }
 0x605   :  { %v13443_v26 = vmax.f32 %v12931_v4, %v13315_v18  ;;  %v13189_v27 = vadd.f32 %v25246_v61, %v13061_v20  ;;  %v12804_v28 = vadd.f32 %v25246_v61, %v12670_v16  ;;  %v19276_v29 = vpop.f32.mrb[4].mxu0 }
 0x606   :  { %v13442_v30 = vmax.f32 %v12930_v19, %v13314_v22  ;;  %v12933_v31 = vmax.f32 %v12805_v23, 0.0  ;;  %v13188_v32 = vadd.f32 %v25246_v61, %v13060_v24  ;;  %v12673_v33 = vmul.f32 %v19276_v29, %v25236_v57  ;;  %v19470_v34 = vpop.f32.mrb[4].mxu1  ;;  %v11075_v35 = vpop.f32.mrb[5].mxu0  ;;  %19434 = vmatmul.mubr.msk.f32.gmra.mrb[110].mxu0 %vm302_vm1, %v15499_v21  ;;  %v15506_v24 = vld [vmem:[%s26123_s0 + $0x5e9] sm:$0xff] }
 0x607   :  { %v13317_v36 = vmax.f32 %v13189_v27, 0.0  ;;  %v12932_v37 = vmax.f32 %v12804_v28, 0.0  ;;  %v13063_v38 = vmul.f32 %v19470_v34, %v25236_v57  ;;  %v12672_v39 = vmul.f32 %v25236_v57, %v11075_v35  ;;  %v11913_v40 = vpop.f32.mrb[5].mxu1  ;;  %19628 = vmatmul.mubr.msk.f32.gmra.mrb[110].mxu1 %vm302_vm1, %v15499_v21  ;;  %19436 = vmatprep.mubr.msk.f32.mxu0 %vm302_vm1, %v15500_v25 }
 0x608   :  { %v13316_v42 = vmax.f32 %v13188_v32, 0.0  ;;  %v12807_v43 = vadd.f32 %v25246_v61, %v12673_v33  ;;  %v13062_v44 = vmul.f32 %v25236_v57, %v11913_v40  ;;  %19630 = vmatprep.mubr.msk.f32.mxu1 %vm302_vm1, %v15500_v25  ;;  %v15507_v40 = vld [vmem:[%s26123_s0 + $0x5f1] sm:$0xff] }
 0x609   :  { %v13445_v46 = vmax.f32 %v12933_v31, %v13317_v36  ;;  %v13191_v47 = vadd.f32 %v25246_v61, %v13063_v38  ;;  %v12806_v48 = vadd.f32 %v25246_v61, %v12672_v39  ;;  %v19279_v49 = vpop.f32.mrb[6].mxu0 }
 0x60a   :  { %v13444_v50 = vmax.f32 %v12932_v37, %v13316_v42  ;;  %v12935_v51 = vmax.f32 %v12807_v43, 0.0  ;;  %v13190_v52 = vadd.f32 %v25246_v61, %v13062_v44  ;;  %v12675_v53 = vmul.f32 %v19279_v49, %v25236_v57  ;;  %v19473_v54 = vpop.f32.mrb[6].mxu1  ;;  %v11085_v55 = vpop.f32.mrb[7].mxu0  ;;  %19437 = vmatmul.mubr.msk.f32.gmra.mrb[112].mxu0 %vm302_vm1, %v15501_v41  ;;  %v15508_v49 = vld [vmem:[%s26123_s0 + $0x601] sm:$0xff] }
 0x60b   :  { %v13571_v56 = vmax.f32 %v13443_v26, %v13445_v46  ;;  %v13319_v58 = vmax.f32 %v13191_v47, 0.0  ;;  %v12934_v59 = vmax.f32 %v12806_v48, 0.0  ;;  %v13065_v60 = vmul.f32 %v19473_v54, %v25236_v57  ;;  %v11923_v62 = vpop.f32.mrb[7].mxu1  ;;  %19631 = vmatmul.mubr.msk.f32.gmra.mrb[112].mxu1 %vm302_vm1, %v15501_v41  ;;  %19439 = vmatprep.mubr.msk.f32.mxu0 %vm302_vm1, %v15502_v45 }
 0x60c   :  { %v13570_v0 = vmax.f32 %v13442_v30, %v13444_v50  ;;  %v13318_v1 = vmax.f32 %v13190_v52, 0.0  ;;  %v12809_v3 = vadd.f32 %v25246_v61, %v12675_v53  ;;  %v12674_v6 = vmul.f32 %v25236_v57, %v11085_v55  ;;  %19633 = vmatprep.mubr.msk.f32.mxu1 %vm302_vm1, %v15502_v45 }
 0x60d   :  { %13636 = vst.msk [vmem:[%s26127_s4 + $0x8] sm:$0xff] %vm13634_vm2, %v13571_v56  ;;  %v13447_v11 = vmax.f32 %v12935_v51, %v13319_v58  ;;  %v13193_v12 = vadd.f32 %v25246_v61, %v13065_v60  ;;  %v13064_v8 = vmul.f32 %v25236_v57, %v11923_v62  ;;  %v19282_v9 = vpop.f32.mrb[8].mxu0 }
 0x60e   :  { %13635 = vst.msk [vmem:[%s26127_s4] sm:$0xff] %vm13634_vm2, %v13570_v0  ;;  %v13446_v13 = vmax.f32 %v12934_v59, %v13318_v1  ;;  %v12937_v14 = vmax.f32 %v12809_v3, 0.0  ;;  %v12808_v4 = vadd.f32 %v25246_v61, %v12674_v6  ;;  %v12677_v2 = vmul.f32 %v19282_v9, %v25236_v57  ;;  %v19476_v5 = vpop.f32.mrb[8].mxu1  ;;  %v11095_v7 = vpop.f32.mrb[9].mxu0  ;;  %19440 = vmatmul.mubr.msk.f32.gmra.mrb[114].mxu0 %vm302_vm1, %v15503_v63  ;;  %v15510_v6 = vld [vmem:[%s26123_s0 + $0x619] sm:$0xff] }
 0x60f   :  { %v13321_v15 = vmax.f32 %v13193_v12, 0.0  ;;  %v13192_v18 = vadd.f32 %v25246_v61, %v13064_v8  ;;  %v13067_v19 = vmul.f32 %v19476_v5, %v25236_v57  ;;  %v12676_v20 = vmul.f32 %v25236_v57, %v11095_v7  ;;  %v11933_v16 = vpop.f32.mrb[9].mxu1  ;;  %19634 = vmatmul.mubr.msk.f32.gmra.mrb[114].mxu1 %vm302_vm1, %v15503_v63  ;;  %19442 = vmatprep.mubr.msk.f32.mxu0 %vm302_vm1, %v15504_v10  ;;  %v15509_v63 = vld [vmem:[%s26123_s0 + $0x609] sm:$0xff] }
 0x610   :  { %v12936_v21 = vmax.f32 %v12808_v4, 0.0  ;;  %v12811_v22 = vadd.f32 %v25246_v61, %v12677_v2  ;;  %v13066_v23 = vmul.f32 %v25236_v57, %v11933_v16  ;;  %19636 = vmatprep.mubr.msk.f32.mxu1 %vm302_vm1, %v15504_v10  ;;  %v15511_v16 = vld [vmem:[%s26123_s0 + $0x621] sm:$0xff] }
 0x611   :  { %v13449_v25 = vmax.f32 %v12937_v14, %v13321_v15  ;;  %v13320_v26 = vmax.f32 %v13192_v18, 0.0  ;;  %v13195_v27 = vadd.f32 %v25246_v61, %v13067_v19  ;;  %v12810_v28 = vadd.f32 %v25246_v61, %v12676_v20  ;;  %v19285_v29 = vpop.f32.mrb[10].mxu0 }
 0x612   :  { %v12939_v30 = vmax.f32 %v12811_v22, 0.0  ;;  %v13194_v31 = vadd.f32 %v25246_v61, %v13066_v23  ;;  %v12679_v32 = vmul.f32 %v19285_v29, %v25236_v57  ;;  %v19479_v33 = vpop.f32.mrb[10].mxu1  ;;  %v11105_v34 = vpop.f32.mrb[11].mxu0  ;;  %19443 = vmatmul.mubr.msk.f32.gmra.mrb[116].mxu0 %vm302_vm1, %v15505_v17  ;;  %v15512_v29 = vld [vmem:[%s26123_s0 + $0x631] sm:$0xff] }
 0x613   :  { %v13573_v35 = vmax.f32 %v13447_v11, %v13449_v25  ;;  %v13448_v36 = vmax.f32 %v12936_v21, %v13320_v26  ;;  %v13323_v37 = vmax.f32 %v13195_v27, 0.0  ;;  %v12938_v38 = vmax.f32 %v12810_v28, 0.0  ;;  %v11943_v39 = vpop.f32.mrb[11].mxu1  ;;  %19637 = vmatmul.mubr.msk.f32.gmra.mrb[116].mxu1 %vm302_vm1, %v15505_v17  ;;  %19445 = vmatprep.mubr.msk.f32.mxu0 %vm302_vm1, %v15506_v24 }
 0x614   :  { %v13322_v41 = vmax.f32 %v13194_v31, 0.0  ;;  %v12813_v42 = vadd.f32 %v25246_v61, %v12679_v32  ;;  %v13069_v43 = vmul.f32 %v19479_v33, %v25236_v57  ;;  %v12678_v44 = vmul.f32 %v25236_v57, %v11105_v34  ;;  %19639 = vmatprep.mubr.msk.f32.mxu1 %vm302_vm1, %v15506_v24 }
 0x615   :  { %13638 = vst.msk [vmem:[%s26127_s4 + $0x18] sm:$0xff] %vm13634_vm2, %v13573_v35  ;;  %v13572_v45 = vmax.f32 %v13446_v13, %v13448_v36  ;;  %v13451_v46 = vmax.f32 %v12939_v30, %v13323_v37  ;;  %v13068_v47 = vmul.f32 %v25236_v57, %v11943_v39  ;;  %v19288_v48 = vpop.f32.mrb[12].mxu0 }
 0x616   :  { %v13450_v50 = vmax.f32 %v12938_v38, %v13322_v41  ;;  %v12941_v51 = vmax.f32 %v12813_v42, 0.0  ;;  %v13197_v52 = vadd.f32 %v25246_v61, %v13069_v43  ;;  %v12812_v53 = vadd.f32 %v25246_v61, %v12678_v44  ;;  %v19482_v54 = vpop.f32.mrb[12].mxu1  ;;  %v11115_v55 = vpop.f32.mrb[13].mxu0  ;;  %19446 = vmatmul.mubr.msk.f32.gmra.mrb[118].mxu0 %vm302_vm1, %v15507_v40  ;;  %v15513_v41 = vld [vmem:[%s26123_s0 + $0x639] sm:$0xff] }
 0x617   :  { %13637 = vst.msk [vmem:[%s26127_s4 + $0x10] sm:$0xff] %vm13634_vm2, %v13572_v45  ;;  %v13196_v56 = vadd.f32 %v25246_v61, %v13068_v47  ;;  %v12681_v58 = vmul.f32 %v19288_v48, %v25236_v57  ;;  %v13071_v59 = vmul.f32 %v19482_v54, %v25236_v57  ;;  %v12680_v60 = vmul.f32 %v25236_v57, %v11115_v55  ;;  %v11953_v62 = vpop.f32.mrb[13].mxu1  ;;  %v15514_v45 = vld [vmem:[%s26123_s0 + $0x649] sm:$0xff] }
 0x618   :  { %19640 = vmatmul.mubr.msk.f32.gmra.mrb[118].mxu1 %vm302_vm1, %v15507_v40  ;;  %v13325_v0 = vmax.f32 %v13197_v52, 0.0  ;;  %v12940_v1 = vmax.f32 %v12812_v53, 0.0  ;;  %v13070_v3 = vmul.f32 %v25236_v57, %v11953_v62  ;;  %19448 = vmatprep.mubr.msk.f32.mxu0 %vm302_vm1, %v15508_v49 }
 0x619   :  { %19642 = vmatprep.mubr.msk.f32.mxu1 %vm302_vm1, %v15508_v49  ;;  %v13324_v10 = vmax.f32 %v13196_v56, 0.0  ;;  %v12815_v11 = vadd.f32 %v25246_v61, %v12681_v58  ;;  %v13199_v12 = vadd.f32 %v25246_v61, %v13071_v59  ;;  %v12814_v8 = vadd.f32 %v25246_v61, %v12680_v60  ;;  %v19291_v9 = vpop.f32.mrb[14].mxu0 }
 0x61a   :  { %v13453_v13 = vmax.f32 %v12941_v51, %v13325_v0  ;;  %v13198_v14 = vadd.f32 %v25246_v61, %v13070_v3  ;;  %v12683_v4 = vmul.f32 %v19291_v9, %v25236_v57  ;;  %v19485_v2 = vpop.f32.mrb[14].mxu1  ;;  %v11125_v5 = vpop.f32.mrb[15].mxu0  ;;  %19449 = vmatmul.mubr.msk.f32.gmra.mrb[120].mxu0 %vm302_vm1, %v15509_v63  ;;  %v15515_v0 = vld [vmem:[%s26123_s0 + $0x651] sm:$0xff] }
 0x61b   :  { %v13452_v7 = vmax.f32 %v12940_v1, %v13324_v10  ;;  %v12943_v15 = vmax.f32 %v12815_v11, 0.0  ;;  %v13327_v18 = vmax.f32 %v13199_v12, 0.0  ;;  %v12942_v19 = vmax.f32 %v12814_v8, 0.0  ;;  %v11963_v20 = vpop.f32.mrb[15].mxu1  ;;  %19451 = vmatprep.mubr.msk.f32.mxu0 %vm302_vm1, %v15510_v6 }
 0x61c   :  { %19643 = vmatmul.mubr.msk.f32.gmra.mrb[120].mxu1 %vm302_vm1, %v15509_v63  ;;  %v13575_v17 = vmax.f32 %v13451_v46, %v13453_v13  ;;  %v13326_v21 = vmax.f32 %v13198_v14, 0.0  ;;  %v12817_v22 = vadd.f32 %v25246_v61, %v12683_v4  ;;  %v13073_v23 = vmul.f32 %v19485_v2, %v25236_v57 }
 0x61d   :  { %19645 = vmatprep.mubr.msk.f32.mxu1 %vm302_vm1, %v15510_v6  ;;  %v13574_v24 = vmax.f32 %v13450_v50, %v13452_v7  ;;  %v13455_v25 = vmax.f32 %v12943_v15, %v13327_v18  ;;  %v12682_v26 = vmul.f32 %v25236_v57, %v11125_v5  ;;  %v13072_v27 = vmul.f32 %v25236_v57, %v11963_v20  ;;  %v19294_v28 = vpop.f32.mrb[16].mxu0 }
 0x61e   :  { %13640 = vst.msk [vmem:[%s26127_s4 + $0x28] sm:$0xff] %vm13634_vm2, %v13575_v17  ;;  %v13454_v30 = vmax.f32 %v12942_v19, %v13326_v21  ;;  %v12945_v31 = vmax.f32 %v12817_v22, 0.0  ;;  %v13201_v32 = vadd.f32 %v25246_v61, %v13073_v23  ;;  %v12685_v33 = vmul.f32 %v19294_v28, %v25236_v57  ;;  %v19488_v34 = vpop.f32.mrb[16].mxu1  ;;  %v11135_v35 = vpop.f32.mrb[17].mxu0  ;;  %19452 = vmatmul.mubr.msk.f32.gmra.mrb[122].mxu0 %vm302_vm1, %v15511_v16 }
 0x61f   :  { %13639 = vst.msk [vmem:[%s26127_s4 + $0x20] sm:$0xff] %vm13634_vm2, %v13574_v24  ;;  %v12816_v36 = vadd.f32 %v25246_v61, %v12682_v26  ;;  %v13200_v37 = vadd.f32 %v25246_v61, %v13072_v27  ;;  %v13075_v38 = vmul.f32 %v19488_v34, %v25236_v57  ;;  %v12684_v39 = vmul.f32 %v25236_v57, %v11135_v35  ;;  %v11973_v40 = vpop.f32.mrb[17].mxu1 }
 0x620   :  { %19646 = vmatmul.mubr.msk.f32.gmra.mrb[122].mxu1 %vm302_vm1, %v15511_v16  ;;  %v13329_v42 = vmax.f32 %v13201_v32, 0.0  ;;  %v12819_v43 = vadd.f32 %v25246_v61, %v12685_v33  ;;  %v13074_v44 = vmul.f32 %v25236_v57, %v11973_v40  ;;  %19454 = vmatprep.mubr.msk.f32.mxu0 %vm302_vm1, %v15512_v29 }
 0x621   :  { %19648 = vmatprep.mubr.msk.f32.mxu1 %vm302_vm1, %v15512_v29  ;;  %v12944_v46 = vmax.f32 %v12816_v36, 0.0  ;;  %v13328_v47 = vmax.f32 %v13200_v37, 0.0  ;;  %v13203_v48 = vadd.f32 %v25246_v61, %v13075_v38  ;;  %v12818_v49 = vadd.f32 %v25246_v61, %v12684_v39  ;;  %v19297_v50 = vpop.f32.mrb[18].mxu0 }
 0x622   :  { %v13457_v51 = vmax.f32 %v12945_v31, %v13329_v42  ;;  %v12947_v52 = vmax.f32 %v12819_v43, 0.0  ;;  %v13202_v53 = vadd.f32 %v25246_v61, %v13074_v44  ;;  %v12687_v54 = vmul.f32 %v19297_v50, %v25236_v57  ;;  %v19491_v55 = vpop.f32.mrb[18].mxu1  ;;  %v11145_v56 = vpop.f32.mrb[19].mxu0  ;;  %19455 = vmatmul.mubr.msk.f32.gmra.mrb[124].mxu0 %vm302_vm1, %v15513_v41 }
 0x623   :  { %v13456_v58 = vmax.f32 %v12944_v46, %v13328_v47  ;;  %v13331_v59 = vmax.f32 %v13203_v48, 0.0  ;;  %v12946_v60 = vmax.f32 %v12818_v49, 0.0  ;;  %v13077_v62 = vmul.f32 %v19491_v55, %v25236_v57  ;;  %v11983_v63 = vpop.f32.mrb[19].mxu1  ;;  %19457 = vmatprep.mubr.msk.f32.mxu0 %vm302_vm1, %v15514_v45 }
 0x624   :  { %19649 = vmatmul.mubr.msk.f32.gmra.mrb[124].mxu1 %vm302_vm1, %v15513_v41  ;;  %v13577_v1 = vmax.f32 %v13455_v25, %v13457_v51  ;;  %v13330_v3 = vmax.f32 %v13202_v53, 0.0  ;;  %v12821_v6 = vadd.f32 %v25246_v61, %v12687_v54  ;;  %v12686_v10 = vmul.f32 %v25236_v57, %v11145_v56 }
 0x625   :  { %19651 = vmatprep.mubr.msk.f32.mxu1 %vm302_vm1, %v15514_v45  ;;  %v13576_v11 = vmax.f32 %v13454_v30, %v13456_v58  ;;  %v13459_v12 = vmax.f32 %v12947_v52, %v13331_v59  ;;  %v13205_v8 = vadd.f32 %v25246_v61, %v13077_v62  ;;  %v13076_v9 = vmul.f32 %v25236_v57, %v11983_v63  ;;  %v19300_v13 = vpop.f32.mrb[20].mxu0 }
 0x626   :  { %13642 = vst.msk [vmem:[%s26127_s4 + $0x38] sm:$0xff] %vm13634_vm2, %v13577_v1  ;;  %v13458_v14 = vmax.f32 %v12946_v60, %v13330_v3  ;;  %v12949_v4 = vmax.f32 %v12821_v6, 0.0  ;;  %v12820_v2 = vadd.f32 %v25246_v61, %v12686_v10  ;;  %v12689_v5 = vmul.f32 %v19300_v13, %v25236_v57  ;;  %v19494_v7 = vpop.f32.mrb[20].mxu1  ;;  %v11155_v15 = vpop.f32.mrb[21].mxu0  ;;  %19458 = vmatmul.mubr.msk.f32.gmra.mrb[126].mxu0 %vm302_vm1, %v15515_v0 }
 0x627   :  { %13641 = vst.msk [vmem:[%s26127_s4 + $0x30] sm:$0xff] %vm13634_vm2, %v13576_v11  ;;  %v13333_v18 = vmax.f32 %v13205_v8, 0.0  ;;  %v13204_v19 = vadd.f32 %v25246_v61, %v13076_v9  ;;  %v13079_v20 = vmul.f32 %v19494_v7, %v25236_v57  ;;  %v12688_v16 = vmul.f32 %v25236_v57, %v11155_v15  ;;  %v11993_v17 = vpop.f32.mrb[21].mxu1 }
 0x628   :  { %19652 = vmatmul.mubr.msk.f32.gmra.mrb[126].mxu1 %vm302_vm1, %v15515_v0  ;;  %v12948_v21 = vmax.f32 %v12820_v2, 0.0  ;;  %v12823_v22 = vadd.f32 %v25246_v61, %v12689_v5  ;;  %v13078_v23 = vmul.f32 %v25236_v57, %v11993_v17 }
 0x629   :  { %v13461_v24 = vmax.f32 %v12949_v4, %v13333_v18  ;;  %v13332_v25 = vmax.f32 %v13204_v19, 0.0  ;;  %v13207_v26 = vadd.f32 %v25246_v61, %v13079_v20  ;;  %v12822_v27 = vadd.f32 %v25246_v61, %v12688_v16  ;;  %v19303_v28 = vpop.f32.mrb[22].mxu0 }
 0x62a   :  { %v12951_v29 = vmax.f32 %v12823_v22, 0.0  ;;  %v13206_v30 = vadd.f32 %v25246_v61, %v13078_v23  ;;  %v12691_v31 = vmul.f32 %v19303_v28, %v25236_v57  ;;  %v19497_v32 = vpop.f32.mrb[22].mxu1  ;;  %v11165_v33 = vpop.f32.mrb[23].mxu0 }
 0x62b   :  { %v13579_v34 = vmax.f32 %v13459_v12, %v13461_v24  ;;  %v13460_v35 = vmax.f32 %v12948_v21, %v13332_v25  ;;  %v13335_v36 = vmax.f32 %v13207_v26, 0.0  ;;  %v12950_v37 = vmax.f32 %v12822_v27, 0.0  ;;  %v12003_v38 = vpop.f32.mrb[23].mxu1 }
 0x62c   :  { %v13334_v39 = vmax.f32 %v13206_v30, 0.0  ;;  %v12825_v40 = vadd.f32 %v25246_v61, %v12691_v31  ;;  %v13081_v41 = vmul.f32 %v19497_v32, %v25236_v57  ;;  %v12690_v42 = vmul.f32 %v25236_v57, %v11165_v33 }
 0x62d   :  { %13644 = vst.msk [vmem:[%s26127_s4 + $0x48] sm:$0xff] %vm13634_vm2, %v13579_v34  ;;  %v13578_v43 = vmax.f32 %v13458_v14, %v13460_v35  ;;  %v13463_v44 = vmax.f32 %v12951_v29, %v13335_v36  ;;  %v13080_v45 = vmul.f32 %v25236_v57, %v12003_v38  ;;  %v19306_v46 = vpop.f32.mrb[24].mxu0 }
 0x62e   :  { %v13462_v47 = vmax.f32 %v12950_v37, %v13334_v39  ;;  %v12953_v48 = vmax.f32 %v12825_v40, 0.0  ;;  %v13209_v49 = vadd.f32 %v25246_v61, %v13081_v41  ;;  %v12824_v50 = vadd.f32 %v25246_v61, %v12690_v42  ;;  %v19500_v51 = vpop.f32.mrb[24].mxu1  ;;  %v11175_v52 = vpop.f32.mrb[25].mxu0 }
 0x62f   :  { %13643 = vst.msk [vmem:[%s26127_s4 + $0x40] sm:$0xff] %vm13634_vm2, %v13578_v43  ;;  %v13208_v53 = vadd.f32 %v25246_v61, %v13080_v45  ;;  %v12693_v54 = vmul.f32 %v19306_v46, %v25236_v57  ;;  %v13083_v55 = vmul.f32 %v19500_v51, %v25236_v57  ;;  %v12692_v56 = vmul.f32 %v25236_v57, %v11175_v52  ;;  %v12013_v58 = vpop.f32.mrb[25].mxu1 }
 0x630   :  { %v13337_v59 = vmax.f32 %v13209_v49, 0.0  ;;  %v12952_v60 = vmax.f32 %v12824_v50, 0.0  ;;  %v13082_v62 = vmul.f32 %v25236_v57, %v12013_v58 }
 0x631   :  { %v13336_v63 = vmax.f32 %v13208_v53, 0.0  ;;  %v12827_v0 = vadd.f32 %v25246_v61, %v12693_v54  ;;  %v13211_v1 = vadd.f32 %v25246_v61, %v13083_v55  ;;  %v12826_v3 = vadd.f32 %v25246_v61, %v12692_v56  ;;  %v19309_v6 = vpop.f32.mrb[26].mxu0 }
 0x632   :  { %v13465_v10 = vmax.f32 %v12953_v48, %v13337_v59  ;;  %v13210_v11 = vadd.f32 %v25246_v61, %v13082_v62  ;;  %v12695_v12 = vmul.f32 %v19309_v6, %v25236_v57  ;;  %v19503_v8 = vpop.f32.mrb[26].mxu1  ;;  %v11185_v9 = vpop.f32.mrb[27].mxu0 }
 0x633   :  { %v13464_v13 = vmax.f32 %v12952_v60, %v13336_v63  ;;  %v12955_v14 = vmax.f32 %v12827_v0, 0.0  ;;  %v13339_v4 = vmax.f32 %v13211_v1, 0.0  ;;  %v12954_v2 = vmax.f32 %v12826_v3, 0.0  ;;  %v12023_v5 = vpop.f32.mrb[27].mxu1 }
 0x634   :  { %v13581_v7 = vmax.f32 %v13463_v44, %v13465_v10  ;;  %v13338_v15 = vmax.f32 %v13210_v11, 0.0  ;;  %v12829_v18 = vadd.f32 %v25246_v61, %v12695_v12  ;;  %v13085_v19 = vmul.f32 %v19503_v8, %v25236_v57 }
 0x635   :  { %v13580_v20 = vmax.f32 %v13462_v47, %v13464_v13  ;;  %v13467_v16 = vmax.f32 %v12955_v14, %v13339_v4  ;;  %v12694_v17 = vmul.f32 %v25236_v57, %v11185_v9  ;;  %v13084_v21 = vmul.f32 %v25236_v57, %v12023_v5  ;;  %v19312_v22 = vpop.f32.mrb[28].mxu0 }
 0x636   :  { %13646 = vst.msk [vmem:[%s26127_s4 + $0x58] sm:$0xff] %vm13634_vm2, %v13581_v7  ;;  %v13466_v23 = vmax.f32 %v12954_v2, %v13338_v15  ;;  %v12957_v24 = vmax.f32 %v12829_v18, 0.0  ;;  %v13213_v25 = vadd.f32 %v25246_v61, %v13085_v19  ;;  %v12697_v26 = vmul.f32 %v19312_v22, %v25236_v57  ;;  %v19506_v27 = vpop.f32.mrb[28].mxu1  ;;  %v11195_v28 = vpop.f32.mrb[29].mxu0 }
 0x637   :  { %13645 = vst.msk [vmem:[%s26127_s4 + $0x50] sm:$0xff] %vm13634_vm2, %v13580_v20  ;;  %v12828_v29 = vadd.f32 %v25246_v61, %v12694_v17  ;;  %v13212_v30 = vadd.f32 %v25246_v61, %v13084_v21  ;;  %v13087_v31 = vmul.f32 %v19506_v27, %v25236_v57  ;;  %v12696_v32 = vmul.f32 %v25236_v57, %v11195_v28  ;;  %v12033_v33 = vpop.f32.mrb[29].mxu1 }
 0x638   :  { %v13341_v34 = vmax.f32 %v13213_v25, 0.0  ;;  %v12831_v35 = vadd.f32 %v25246_v61, %v12697_v26  ;;  %v13086_v36 = vmul.f32 %v25236_v57, %v12033_v33 }
 0x639   :  { %v12956_v37 = vmax.f32 %v12828_v29, 0.0  ;;  %v13340_v38 = vmax.f32 %v13212_v30, 0.0  ;;  %v13215_v39 = vadd.f32 %v25246_v61, %v13087_v31  ;;  %v12830_v40 = vadd.f32 %v25246_v61, %v12696_v32  ;;  %v19315_v41 = vpop.f32.mrb[30].mxu0 }
 0x63a   :  { %v13469_v42 = vmax.f32 %v12957_v24, %v13341_v34  ;;  %v12959_v43 = vmax.f32 %v12831_v35, 0.0  ;;  %v13214_v44 = vadd.f32 %v25246_v61, %v13086_v36  ;;  %v12699_v45 = vmul.f32 %v19315_v41, %v25236_v57  ;;  %v19509_v46 = vpop.f32.mrb[30].mxu1  ;;  %v11205_v47 = vpop.f32.mrb[31].mxu0 }
 0x63b   :  { %v13468_v48 = vmax.f32 %v12956_v37, %v13340_v38  ;;  %v13343_v49 = vmax.f32 %v13215_v39, 0.0  ;;  %v12958_v50 = vmax.f32 %v12830_v40, 0.0  ;;  %v13089_v51 = vmul.f32 %v19509_v46, %v25236_v57  ;;  %v12043_v52 = vpop.f32.mrb[31].mxu1 }
 0x63c   :  { %v13583_v53 = vmax.f32 %v13467_v16, %v13469_v42  ;;  %v13342_v54 = vmax.f32 %v13214_v44, 0.0  ;;  %v12833_v55 = vadd.f32 %v25246_v61, %v12699_v45  ;;  %v12698_v56 = vmul.f32 %v25236_v57, %v11205_v47 }
 0x63d   :  { %v13582_v58 = vmax.f32 %v13466_v23, %v13468_v48  ;;  %v13471_v59 = vmax.f32 %v12959_v43, %v13343_v49  ;;  %v13217_v60 = vadd.f32 %v25246_v61, %v13089_v51  ;;  %v13088_v62 = vmul.f32 %v25236_v57, %v12043_v52  ;;  %v19318_v63 = vpop.f32.mrb[32].mxu0 }
 0x63e   :  { %13648 = vst.msk [vmem:[%s26127_s4 + $0x68] sm:$0xff] %vm13634_vm2, %v13583_v53  ;;  %v13470_v0 = vmax.f32 %v12958_v50, %v13342_v54  ;;  %v12961_v1 = vmax.f32 %v12833_v55, 0.0  ;;  %v12832_v3 = vadd.f32 %v25246_v61, %v12698_v56  ;;  %v12701_v6 = vmul.f32 %v19318_v63, %v25236_v57  ;;  %v19512_v10 = vpop.f32.mrb[32].mxu1  ;;  %v11215_v11 = vpop.f32.mrb[33].mxu0 }
 0x63f   :  { %13647 = vst.msk [vmem:[%s26127_s4 + $0x60] sm:$0xff] %vm13634_vm2, %v13582_v58  ;;  %v13345_v12 = vmax.f32 %v13217_v60, 0.0  ;;  %v13216_v8 = vadd.f32 %v25246_v61, %v13088_v62  ;;  %v13091_v9 = vmul.f32 %v19512_v10, %v25236_v57  ;;  %v12700_v13 = vmul.f32 %v25236_v57, %v11215_v11  ;;  %v12053_v14 = vpop.f32.mrb[33].mxu1 }
 0x640   :  { %v12960_v4 = vmax.f32 %v12832_v3, 0.0  ;;  %v12835_v2 = vadd.f32 %v25246_v61, %v12701_v6  ;;  %v13090_v5 = vmul.f32 %v25236_v57, %v12053_v14 }
 0x641   :  { %v13473_v7 = vmax.f32 %v12961_v1, %v13345_v12  ;;  %v13344_v15 = vmax.f32 %v13216_v8, 0.0  ;;  %v13219_v18 = vadd.f32 %v25246_v61, %v13091_v9  ;;  %v12834_v19 = vadd.f32 %v25246_v61, %v12700_v13  ;;  %v19321_v20 = vpop.f32.mrb[34].mxu0 }
 0x642   :  { %v12963_v16 = vmax.f32 %v12835_v2, 0.0  ;;  %v13218_v17 = vadd.f32 %v25246_v61, %v13090_v5  ;;  %v12703_v21 = vmul.f32 %v19321_v20, %v25236_v57  ;;  %v19515_v22 = vpop.f32.mrb[34].mxu1  ;;  %v11225_v23 = vpop.f32.mrb[35].mxu0 }
 0x643   :  { %v13585_v24 = vmax.f32 %v13471_v59, %v13473_v7  ;;  %v13472_v25 = vmax.f32 %v12960_v4, %v13344_v15  ;;  %v13347_v26 = vmax.f32 %v13219_v18, 0.0  ;;  %v12962_v27 = vmax.f32 %v12834_v19, 0.0  ;;  %v12063_v28 = vpop.f32.mrb[35].mxu1 }
 0x644   :  { %v13346_v29 = vmax.f32 %v13218_v17, 0.0  ;;  %v12837_v30 = vadd.f32 %v25246_v61, %v12703_v21  ;;  %v13093_v31 = vmul.f32 %v19515_v22, %v25236_v57  ;;  %v12702_v32 = vmul.f32 %v25236_v57, %v11225_v23 }
 0x645   :  { %13650 = vst.msk [vmem:[%s26127_s4 + $0x78] sm:$0xff] %vm13634_vm2, %v13585_v24  ;;  %v13584_v33 = vmax.f32 %v13470_v0, %v13472_v25  ;;  %v13475_v34 = vmax.f32 %v12963_v16, %v13347_v26  ;;  %v13092_v35 = vmul.f32 %v25236_v57, %v12063_v28  ;;  %v19324_v36 = vpop.f32.mrb[36].mxu0 }
 0x646   :  { %v13474_v37 = vmax.f32 %v12962_v27, %v13346_v29  ;;  %v12965_v38 = vmax.f32 %v12837_v30, 0.0  ;;  %v13221_v39 = vadd.f32 %v25246_v61, %v13093_v31  ;;  %v12836_v40 = vadd.f32 %v25246_v61, %v12702_v32  ;;  %v19518_v41 = vpop.f32.mrb[36].mxu1  ;;  %v11235_v42 = vpop.f32.mrb[37].mxu0 }
 0x647   :  { %13649 = vst.msk [vmem:[%s26127_s4 + $0x70] sm:$0xff] %vm13634_vm2, %v13584_v33  ;;  %v13220_v43 = vadd.f32 %v25246_v61, %v13092_v35  ;;  %v12705_v44 = vmul.f32 %v19324_v36, %v25236_v57  ;;  %v13095_v45 = vmul.f32 %v19518_v41, %v25236_v57  ;;  %v12704_v46 = vmul.f32 %v25236_v57, %v11235_v42  ;;  %v12073_v47 = vpop.f32.mrb[37].mxu1 }
 0x648   :  { %v13349_v48 = vmax.f32 %v13221_v39, 0.0  ;;  %v12964_v49 = vmax.f32 %v12836_v40, 0.0  ;;  %v13094_v50 = vmul.f32 %v25236_v57, %v12073_v47 }
 0x649   :  { %v13348_v51 = vmax.f32 %v13220_v43, 0.0  ;;  %v12839_v52 = vadd.f32 %v25246_v61, %v12705_v44  ;;  %v13223_v53 = vadd.f32 %v25246_v61, %v13095_v45  ;;  %v12838_v54 = vadd.f32 %v25246_v61, %v12704_v46  ;;  %v19327_v55 = vpop.f32.mrb[38].mxu0 }
 0x64a   :  { %v13477_v56 = vmax.f32 %v12965_v38, %v13349_v48  ;;  %v13222_v58 = vadd.f32 %v25246_v61, %v13094_v50  ;;  %v12707_v59 = vmul.f32 %v19327_v55, %v25236_v57  ;;  %v19521_v60 = vpop.f32.mrb[38].mxu1  ;;  %v11245_v62 = vpop.f32.mrb[39].mxu0 }
 0x64b   :  { %v13476_v63 = vmax.f32 %v12964_v49, %v13348_v51  ;;  %v12967_v0 = vmax.f32 %v12839_v52, 0.0  ;;  %v13351_v1 = vmax.f32 %v13223_v53, 0.0  ;;  %v12966_v3 = vmax.f32 %v12838_v54, 0.0  ;;  %v12083_v6 = vpop.f32.mrb[39].mxu1 }
 0x64c   :  { %v13587_v10 = vmax.f32 %v13475_v34, %v13477_v56  ;;  %v13350_v11 = vmax.f32 %v13222_v58, 0.0  ;;  %v12841_v12 = vadd.f32 %v25246_v61, %v12707_v59  ;;  %v13097_v8 = vmul.f32 %v19521_v60, %v25236_v57 }
 0x64d   :  { %v13586_v9 = vmax.f32 %v13474_v37, %v13476_v63  ;;  %v13479_v13 = vmax.f32 %v12967_v0, %v13351_v1  ;;  %v12706_v14 = vmul.f32 %v25236_v57, %v11245_v62  ;;  %v13096_v4 = vmul.f32 %v25236_v57, %v12083_v6  ;;  %v19330_v2 = vpop.f32.mrb[40].mxu0 }
 0x64e   :  { %13652 = vst.msk [vmem:[%s26127_s4 + $0x88] sm:$0xff] %vm13634_vm2, %v13587_v10  ;;  %v13478_v5 = vmax.f32 %v12966_v3, %v13350_v11  ;;  %v12969_v7 = vmax.f32 %v12841_v12, 0.0  ;;  %v13225_v15 = vadd.f32 %v25246_v61, %v13097_v8  ;;  %v12709_v18 = vmul.f32 %v19330_v2, %v25236_v57  ;;  %v19524_v19 = vpop.f32.mrb[40].mxu1  ;;  %v11255_v20 = vpop.f32.mrb[41].mxu0 }
 0x64f   :  { %13651 = vst.msk [vmem:[%s26127_s4 + $0x80] sm:$0xff] %vm13634_vm2, %v13586_v9  ;;  %v12840_v16 = vadd.f32 %v25246_v61, %v12706_v14  ;;  %v13224_v17 = vadd.f32 %v25246_v61, %v13096_v4  ;;  %v13099_v21 = vmul.f32 %v19524_v19, %v25236_v57  ;;  %v12708_v22 = vmul.f32 %v25236_v57, %v11255_v20  ;;  %v12093_v23 = vpop.f32.mrb[41].mxu1  ;;  %v25611_v4 = vld [vmem:[#allocation2] ss:$0 sm:$0xff] }
 0x650   :  { %v13353_v24 = vmax.f32 %v13225_v15, 0.0  ;;  %v12843_v25 = vadd.f32 %v25246_v61, %v12709_v18  ;;  %v13098_v26 = vmul.f32 %v25236_v57, %v12093_v23 }
 0x651   :  { %v12968_v27 = vmax.f32 %v12840_v16, 0.0  ;;  %v13352_v28 = vmax.f32 %v13224_v17, 0.0  ;;  %v13227_v29 = vadd.f32 %v25246_v61, %v13099_v21  ;;  %v12842_v30 = vadd.f32 %v25246_v61, %v12708_v22  ;;  %v19333_v31 = vpop.f32.mrb[42].mxu0  ;;  %v25614_v17 = vld [vmem:[#allocation4] ss:$0 sm:$0xff] }
 0x652   :  { %v13481_v32 = vmax.f32 %v12969_v7, %v13353_v24  ;;  %v12971_v33 = vmax.f32 %v12843_v25, 0.0  ;;  %v13226_v34 = vadd.f32 %v25246_v61, %v13098_v26  ;;  %v12711_v35 = vmul.f32 %v19333_v31, %v25236_v57  ;;  %v19527_v36 = vpop.f32.mrb[42].mxu1  ;;  %v11265_v37 = vpop.f32.mrb[43].mxu0 }
 0x653   :  { %v13480_v38 = vmax.f32 %v12968_v27, %v13352_v28  ;;  %v13355_v39 = vmax.f32 %v13227_v29, 0.0  ;;  %v12970_v40 = vmax.f32 %v12842_v30, 0.0  ;;  %v13101_v41 = vmul.f32 %v19527_v36, %v25236_v57  ;;  %v12103_v42 = vpop.f32.mrb[43].mxu1 }
 0x654   :  { %v13589_v43 = vmax.f32 %v13479_v13, %v13481_v32  ;;  %v13354_v44 = vmax.f32 %v13226_v34, 0.0  ;;  %v12845_v45 = vadd.f32 %v25246_v61, %v12711_v35  ;;  %v12710_v46 = vmul.f32 %v25236_v57, %v11265_v37 }
 0x655   :  { %v13588_v47 = vmax.f32 %v13478_v5, %v13480_v38  ;;  %v13483_v48 = vmax.f32 %v12971_v33, %v13355_v39  ;;  %v13229_v49 = vadd.f32 %v25246_v61, %v13101_v41  ;;  %v13100_v50 = vmul.f32 %v25236_v57, %v12103_v42  ;;  %v19336_v51 = vpop.f32.mrb[44].mxu0 }
 0x656   :  { %13654 = vst.msk [vmem:[%s26127_s4 + $0x98] sm:$0xff] %vm13634_vm2, %v13589_v43  ;;  %v13482_v52 = vmax.f32 %v12970_v40, %v13354_v44  ;;  %v12973_v53 = vmax.f32 %v12845_v45, 0.0  ;;  %v12844_v54 = vadd.f32 %v25246_v61, %v12710_v46  ;;  %v12713_v55 = vmul.f32 %v19336_v51, %v25236_v57  ;;  %v19530_v56 = vpop.f32.mrb[44].mxu1  ;;  %v11275_v58 = vpop.f32.mrb[45].mxu0 }
 0x657   :  { %13653 = vst.msk [vmem:[%s26127_s4 + $0x90] sm:$0xff] %vm13634_vm2, %v13588_v47  ;;  %v13357_v59 = vmax.f32 %v13229_v49, 0.0  ;;  %v13228_v60 = vadd.f32 %v25246_v61, %v13100_v50  ;;  %v13103_v62 = vmul.f32 %v19530_v56, %v25236_v57  ;;  %v12712_v63 = vmul.f32 %v25236_v57, %v11275_v58  ;;  %v12113_v0 = vpop.f32.mrb[45].mxu1 }
 0x658   :  { %v12972_v1 = vmax.f32 %v12844_v54, 0.0  ;;  %v12847_v3 = vadd.f32 %v25246_v61, %v12713_v55  ;;  %v13102_v6 = vmul.f32 %v25236_v57, %v12113_v0 }
 0x659   :  { %v13485_v10 = vmax.f32 %v12973_v53, %v13357_v59  ;;  %v13356_v11 = vmax.f32 %v13228_v60, 0.0  ;;  %v13231_v12 = vadd.f32 %v25246_v61, %v13103_v62  ;;  %v12846_v8 = vadd.f32 %v25246_v61, %v12712_v63  ;;  %v19339_v9 = vpop.f32.mrb[46].mxu0 }
 0x65a   :  { %v12975_v13 = vmax.f32 %v12847_v3, 0.0  ;;  %v13230_v14 = vadd.f32 %v25246_v61, %v13102_v6  ;;  %v12715_v2 = vmul.f32 %v25611_v4, %v19339_v9  ;;  %v19533_v5 = vpop.f32.mrb[46].mxu1  ;;  %v11285_v7 = vpop.f32.mrb[47].mxu0 }
 0x65b   :  { %v13591_v15 = vmax.f32 %v13483_v48, %v13485_v10  ;;  %v13484_v18 = vmax.f32 %v12972_v1, %v13356_v11  ;;  %v13359_v19 = vmax.f32 %v13231_v12, 0.0  ;;  %v12974_v57 = vmax.f32 %v12846_v8, 0.0  ;;  %v12123_v20 = vpop.f32.mrb[47].mxu1 }
 0x65c   :  { %v13358_v16 = vmax.f32 %v13230_v14, 0.0  ;;  %v12849_v21 = vadd.f32 %v25614_v17, %v12715_v2  ;;  %v13105_v22 = vmul.f32 %v25611_v4, %v19533_v5  ;;  %v12714_v61 = vmul.f32 %v25611_v4, %v11285_v7 }
 0x65d   :  { %13656 = vst.msk [vmem:[%s26127_s4 + $0xa8] sm:$0xff] %vm13634_vm2, %v13591_v15  ;;  %v13590_v23 = vmax.f32 %v13482_v52, %v13484_v18  ;;  %v13487_v24 = vmax.f32 %v12975_v13, %v13359_v19  ;;  %v13104_v25 = vmul.f32 %v25611_v4, %v12123_v20  ;;  %v19342_v26 = vpop.f32.mrb[48].mxu0 }
 0x65e   :  { %v13486_v27 = vmax.f32 %v12974_v57, %v13358_v16  ;;  %v12977_v28 = vmax.f32 %v12849_v21, 0.0  ;;  %v13233_v29 = vadd.f32 %v25614_v17, %v13105_v22  ;;  %v12848_v30 = vadd.f32 %v25614_v17, %v12714_v61  ;;  %v19536_v31 = vpop.f32.mrb[48].mxu1  ;;  %v11295_v32 = vpop.f32.mrb[49].mxu0 }
 0x65f   :  { %13655 = vst.msk [vmem:[%s26127_s4 + $0xa0] sm:$0xff] %vm13634_vm2, %v13590_v23  ;;  %v13232_v33 = vadd.f32 %v25614_v17, %v13104_v25  ;;  %v12717_v34 = vmul.f32 %v25611_v4, %v19342_v26  ;;  %v13107_v35 = vmul.f32 %v25611_v4, %v19536_v31  ;;  %v12716_v36 = vmul.f32 %v25611_v4, %v11295_v32  ;;  %v12133_v37 = vpop.f32.mrb[49].mxu1 }
 0x660   :  { %v13361_v38 = vmax.f32 %v13233_v29, 0.0  ;;  %v12976_v39 = vmax.f32 %v12848_v30, 0.0  ;;  %v13106_v40 = vmul.f32 %v25611_v4, %v12133_v37 }
 0x661   :  { %v13360_v41 = vmax.f32 %v13232_v33, 0.0  ;;  %v12851_v42 = vadd.f32 %v25614_v17, %v12717_v34  ;;  %v13235_v43 = vadd.f32 %v25614_v17, %v13107_v35  ;;  %v12850_v44 = vadd.f32 %v25614_v17, %v12716_v36  ;;  %v19345_v45 = vpop.f32.mrb[50].mxu0 }
 0x662   :  { %v13489_v46 = vmax.f32 %v12977_v28, %v13361_v38  ;;  %v13234_v47 = vadd.f32 %v25614_v17, %v13106_v40  ;;  %v12719_v48 = vmul.f32 %v25611_v4, %v19345_v45  ;;  %v19539_v49 = vpop.f32.mrb[50].mxu1  ;;  %v11305_v50 = vpop.f32.mrb[51].mxu0 }
 0x663   :  { %v13488_v51 = vmax.f32 %v12976_v39, %v13360_v41  ;;  %v12979_v52 = vmax.f32 %v12851_v42, 0.0  ;;  %v13363_v53 = vmax.f32 %v13235_v43, 0.0  ;;  %v12978_v54 = vmax.f32 %v12850_v44, 0.0  ;;  %v12143_v55 = vpop.f32.mrb[51].mxu1 }
 0x664   :  { %v13593_v56 = vmax.f32 %v13487_v24, %v13489_v46  ;;  %v13362_v58 = vmax.f32 %v13234_v47, 0.0  ;;  %v12853_v59 = vadd.f32 %v25614_v17, %v12719_v48  ;;  %v13109_v60 = vmul.f32 %v25611_v4, %v19539_v49 }
 0x665   :  { %v13592_v62 = vmax.f32 %v13486_v27, %v13488_v51  ;;  %v13491_v63 = vmax.f32 %v12979_v52, %v13363_v53  ;;  %v12718_v0 = vmul.f32 %v25611_v4, %v11305_v50  ;;  %v13108_v1 = vmul.f32 %v25611_v4, %v12143_v55  ;;  %v19348_v3 = vpop.f32.mrb[52].mxu0 }
 0x666   :  { %13658 = vst.msk [vmem:[%s26127_s4 + $0xb8] sm:$0xff] %vm13634_vm2, %v13593_v56  ;;  %v13490_v6 = vmax.f32 %v12978_v54, %v13362_v58  ;;  %v12981_v10 = vmax.f32 %v12853_v59, 0.0  ;;  %v13237_v11 = vadd.f32 %v25614_v17, %v13109_v60  ;;  %v12721_v12 = vmul.f32 %v25611_v4, %v19348_v3  ;;  %v19542_v8 = vpop.f32.mrb[52].mxu1  ;;  %v11315_v9 = vpop.f32.mrb[53].mxu0 }
 0x667   :  { %13657 = vst.msk [vmem:[%s26127_s4 + $0xb0] sm:$0xff] %vm13634_vm2, %v13592_v62  ;;  %v12852_v13 = vadd.f32 %v25614_v17, %v12718_v0  ;;  %v13236_v14 = vadd.f32 %v25614_v17, %v13108_v1  ;;  %v13111_v2 = vmul.f32 %v25611_v4, %v19542_v8  ;;  %v12720_v5 = vmul.f32 %v25611_v4, %v11315_v9  ;;  %v12153_v7 = vpop.f32.mrb[53].mxu1 }
 0x668   :  { %v13365_v15 = vmax.f32 %v13237_v11, 0.0  ;;  %v12855_v18 = vadd.f32 %v25614_v17, %v12721_v12  ;;  %v13110_v19 = vmul.f32 %v25611_v4, %v12153_v7 }
 0x669   :  { %v12980_v57 = vmax.f32 %v12852_v13, 0.0  ;;  %v13364_v20 = vmax.f32 %v13236_v14, 0.0  ;;  %v13239_v16 = vadd.f32 %v25614_v17, %v13111_v2  ;;  %v12854_v21 = vadd.f32 %v25614_v17, %v12720_v5  ;;  %v19351_v22 = vpop.f32.mrb[54].mxu0 }
 0x66a   :  { %v13493_v61 = vmax.f32 %v12981_v10, %v13365_v15  ;;  %v12983_v23 = vmax.f32 %v12855_v18, 0.0  ;;  %v13238_v24 = vadd.f32 %v25614_v17, %v13110_v19  ;;  %v12723_v25 = vmul.f32 %v25611_v4, %v19351_v22  ;;  %v19545_v26 = vpop.f32.mrb[54].mxu1  ;;  %v11325_v27 = vpop.f32.mrb[55].mxu0 }
 0x66b   :  { %v13492_v28 = vmax.f32 %v12980_v57, %v13364_v20  ;;  %v13367_v29 = vmax.f32 %v13239_v16, 0.0  ;;  %v12982_v30 = vmax.f32 %v12854_v21, 0.0  ;;  %v13113_v31 = vmul.f32 %v25611_v4, %v19545_v26  ;;  %v12163_v32 = vpop.f32.mrb[55].mxu1 }
 0x66c   :  { %v13595_v33 = vmax.f32 %v13491_v63, %v13493_v61  ;;  %v13366_v34 = vmax.f32 %v13238_v24, 0.0  ;;  %v12857_v35 = vadd.f32 %v25614_v17, %v12723_v25  ;;  %v12722_v36 = vmul.f32 %v25611_v4, %v11325_v27 }
 0x66d   :  { %v13594_v37 = vmax.f32 %v13490_v6, %v13492_v28  ;;  %v13495_v38 = vmax.f32 %v12983_v23, %v13367_v29  ;;  %v13241_v39 = vadd.f32 %v25614_v17, %v13113_v31  ;;  %v13112_v40 = vmul.f32 %v25611_v4, %v12163_v32  ;;  %v19354_v41 = vpop.f32.mrb[56].mxu0 }
 0x66e   :  { %13660 = vst.msk [vmem:[%s26127_s4 + $0xc8] sm:$0xff] %vm13634_vm2, %v13595_v33  ;;  %v13494_v42 = vmax.f32 %v12982_v30, %v13366_v34  ;;  %v12985_v43 = vmax.f32 %v12857_v35, 0.0  ;;  %v12856_v44 = vadd.f32 %v25614_v17, %v12722_v36  ;;  %v12725_v45 = vmul.f32 %v25611_v4, %v19354_v41  ;;  %v19548_v46 = vpop.f32.mrb[56].mxu1  ;;  %v11335_v47 = vpop.f32.mrb[57].mxu0 }
 0x66f   :  { %13659 = vst.msk [vmem:[%s26127_s4 + $0xc0] sm:$0xff] %vm13634_vm2, %v13594_v37  ;;  %v13369_v48 = vmax.f32 %v13241_v39, 0.0  ;;  %v13240_v49 = vadd.f32 %v25614_v17, %v13112_v40  ;;  %v13115_v50 = vmul.f32 %v25611_v4, %v19548_v46  ;;  %v12724_v51 = vmul.f32 %v25611_v4, %v11335_v47  ;;  %v12173_v52 = vpop.f32.mrb[57].mxu1 }
 0x670   :  { %v12984_v53 = vmax.f32 %v12856_v44, 0.0  ;;  %v12859_v54 = vadd.f32 %v25614_v17, %v12725_v45  ;;  %v13114_v55 = vmul.f32 %v25611_v4, %v12173_v52 }
 0x671   :  { %v13497_v56 = vmax.f32 %v12985_v43, %v13369_v48  ;;  %v13368_v58 = vmax.f32 %v13240_v49, 0.0  ;;  %v13243_v59 = vadd.f32 %v25614_v17, %v13115_v50  ;;  %v12858_v60 = vadd.f32 %v25614_v17, %v12724_v51  ;;  %v19357_v62 = vpop.f32.mrb[58].mxu0 }
 0x672   :  { %v12987_v63 = vmax.f32 %v12859_v54, 0.0  ;;  %v13242_v0 = vadd.f32 %v25614_v17, %v13114_v55  ;;  %v12727_v1 = vmul.f32 %v25611_v4, %v19357_v62  ;;  %v19551_v3 = vpop.f32.mrb[58].mxu1  ;;  %v11345_v6 = vpop.f32.mrb[59].mxu0 }
 0x673   :  { %v13597_v10 = vmax.f32 %v13495_v38, %v13497_v56  ;;  %v13496_v11 = vmax.f32 %v12984_v53, %v13368_v58  ;;  %v13371_v12 = vmax.f32 %v13243_v59, 0.0  ;;  %v12986_v8 = vmax.f32 %v12858_v60, 0.0  ;;  %v12183_v9 = vpop.f32.mrb[59].mxu1 }
 0x674   :  { %v13370_v13 = vmax.f32 %v13242_v0, 0.0  ;;  %v12861_v14 = vadd.f32 %v25614_v17, %v12727_v1  ;;  %v13117_v2 = vmul.f32 %v25611_v4, %v19551_v3  ;;  %v12726_v5 = vmul.f32 %v25611_v4, %v11345_v6 }
 0x675   :  { %13662 = vst.msk [vmem:[%s26127_s4 + $0xd8] sm:$0xff] %vm13634_vm2, %v13597_v10  ;;  %v13596_v7 = vmax.f32 %v13494_v42, %v13496_v11  ;;  %v13499_v15 = vmax.f32 %v12987_v63, %v13371_v12  ;;  %v13116_v18 = vmul.f32 %v25611_v4, %v12183_v9  ;;  %v19360_v19 = vpop.f32.mrb[60].mxu0 }
 0x676   :  { %v13498_v57 = vmax.f32 %v12986_v8, %v13370_v13  ;;  %v12989_v20 = vmax.f32 %v12861_v14, 0.0  ;;  %v13245_v16 = vadd.f32 %v25614_v17, %v13117_v2  ;;  %v12860_v21 = vadd.f32 %v25614_v17, %v12726_v5  ;;  %v19554_v22 = vpop.f32.mrb[60].mxu1  ;;  %v11355_v61 = vpop.f32.mrb[61].mxu0 }
 0x677   :  { %13661 = vst.msk [vmem:[%s26127_s4 + $0xd0] sm:$0xff] %vm13634_vm2, %v13596_v7  ;;  %v13244_v23 = vadd.f32 %v25614_v17, %v13116_v18  ;;  %v12729_v24 = vmul.f32 %v25611_v4, %v19360_v19  ;;  %v13119_v25 = vmul.f32 %v25611_v4, %v19554_v22  ;;  %v12728_v26 = vmul.f32 %v25611_v4, %v11355_v61  ;;  %v12193_v27 = vpop.f32.mrb[61].mxu1 }
 0x678   :  { %v13373_v28 = vmax.f32 %v13245_v16, 0.0  ;;  %v12988_v29 = vmax.f32 %v12860_v21, 0.0  ;;  %v13118_v30 = vmul.f32 %v25611_v4, %v12193_v27 }
 0x679   :  { %v13372_v31 = vmax.f32 %v13244_v23, 0.0  ;;  %v12863_v32 = vadd.f32 %v25614_v17, %v12729_v24  ;;  %v13247_v33 = vadd.f32 %v25614_v17, %v13119_v25  ;;  %v12862_v34 = vadd.f32 %v25614_v17, %v12728_v26  ;;  %v19363_v35 = vpop.f32.mrb[62].mxu0 }
 0x67a   :  { %v13501_v36 = vmax.f32 %v12989_v20, %v13373_v28  ;;  %v13246_v37 = vadd.f32 %v25614_v17, %v13118_v30  ;;  %v12731_v38 = vmul.f32 %v25611_v4, %v19363_v35  ;;  %v19557_v39 = vpop.f32.mrb[62].mxu1  ;;  %v11365_v40 = vpop.f32.mrb[63].mxu0 }
 0x67b   :  { %v13500_v41 = vmax.f32 %v12988_v29, %v13372_v31  ;;  %v12991_v42 = vmax.f32 %v12863_v32, 0.0  ;;  %v13375_v43 = vmax.f32 %v13247_v33, 0.0  ;;  %v12990_v44 = vmax.f32 %v12862_v34, 0.0  ;;  %v12203_v45 = vpop.f32.mrb[63].mxu1 }
 0x67c   :  { %v13599_v46 = vmax.f32 %v13499_v15, %v13501_v36  ;;  %v13374_v47 = vmax.f32 %v13246_v37, 0.0  ;;  %v12865_v48 = vadd.f32 %v25614_v17, %v12731_v38  ;;  %v13121_v49 = vmul.f32 %v25611_v4, %v19557_v39 }
 0x67d   :  { %v13598_v50 = vmax.f32 %v13498_v57, %v13500_v41  ;;  %v13503_v51 = vmax.f32 %v12991_v42, %v13375_v43  ;;  %v12730_v52 = vmul.f32 %v25611_v4, %v11365_v40  ;;  %v13120_v53 = vmul.f32 %v25611_v4, %v12203_v45  ;;  %v19366_v54 = vpop.f32.mrb[64].mxu0 }
 0x67e   :  { %13664 = vst.msk [vmem:[%s26127_s4 + $0xe8] sm:$0xff] %vm13634_vm2, %v13599_v46  ;;  %v13502_v55 = vmax.f32 %v12990_v44, %v13374_v47  ;;  %v12993_v56 = vmax.f32 %v12865_v48, 0.0  ;;  %v13249_v58 = vadd.f32 %v25614_v17, %v13121_v49  ;;  %v12733_v59 = vmul.f32 %v25611_v4, %v19366_v54  ;;  %v19560_v60 = vpop.f32.mrb[64].mxu1  ;;  %v11375_v62 = vpop.f32.mrb[65].mxu0 }
 0x67f   :  { %13663 = vst.msk [vmem:[%s26127_s4 + $0xe0] sm:$0xff] %vm13634_vm2, %v13598_v50  ;;  %v12864_v63 = vadd.f32 %v25614_v17, %v12730_v52  ;;  %v13248_v0 = vadd.f32 %v25614_v17, %v13120_v53  ;;  %v13123_v1 = vmul.f32 %v25611_v4, %v19560_v60  ;;  %v12732_v3 = vmul.f32 %v25611_v4, %v11375_v62  ;;  %v12213_v6 = vpop.f32.mrb[65].mxu1 }
 0x680   :  { %v13377_v10 = vmax.f32 %v13249_v58, 0.0  ;;  %v12867_v11 = vadd.f32 %v25614_v17, %v12733_v59  ;;  %v13122_v12 = vmul.f32 %v25611_v4, %v12213_v6 }
 0x681   :  { %v12992_v8 = vmax.f32 %v12864_v63, 0.0  ;;  %v13376_v9 = vmax.f32 %v13248_v0, 0.0  ;;  %v13251_v13 = vadd.f32 %v25614_v17, %v13123_v1  ;;  %v12866_v14 = vadd.f32 %v25614_v17, %v12732_v3  ;;  %v19369_v2 = vpop.f32.mrb[66].mxu0 }
 0x682   :  { %v13505_v5 = vmax.f32 %v12993_v56, %v13377_v10  ;;  %v12995_v7 = vmax.f32 %v12867_v11, 0.0  ;;  %v13250_v15 = vadd.f32 %v25614_v17, %v13122_v12  ;;  %v12735_v18 = vmul.f32 %v25611_v4, %v19369_v2  ;;  %v19563_v19 = vpop.f32.mrb[66].mxu1  ;;  %v11385_v57 = vpop.f32.mrb[67].mxu0 }
 0x683   :  { %v13504_v20 = vmax.f32 %v12992_v8, %v13376_v9  ;;  %v13379_v16 = vmax.f32 %v13251_v13, 0.0  ;;  %v12994_v21 = vmax.f32 %v12866_v14, 0.0  ;;  %v13125_v22 = vmul.f32 %v25611_v4, %v19563_v19  ;;  %v12223_v61 = vpop.f32.mrb[67].mxu1 }
 0x684   :  { %v13601_v23 = vmax.f32 %v13503_v51, %v13505_v5  ;;  %v13378_v24 = vmax.f32 %v13250_v15, 0.0  ;;  %v12869_v25 = vadd.f32 %v25614_v17, %v12735_v18  ;;  %v12734_v26 = vmul.f32 %v25611_v4, %v11385_v57 }
 0x685   :  { %v13600_v27 = vmax.f32 %v13502_v55, %v13504_v20  ;;  %v13507_v28 = vmax.f32 %v12995_v7, %v13379_v16  ;;  %v13253_v29 = vadd.f32 %v25614_v17, %v13125_v22  ;;  %v13124_v30 = vmul.f32 %v25611_v4, %v12223_v61  ;;  %v19372_v31 = vpop.f32.mrb[68].mxu0 }
 0x686   :  { %13666 = vst.msk [vmem:[%s26127_s4 + $0xf8] sm:$0xff] %vm13634_vm2, %v13601_v23  ;;  %v13506_v32 = vmax.f32 %v12994_v21, %v13378_v24  ;;  %v12997_v33 = vmax.f32 %v12869_v25, 0.0  ;;  %v12868_v34 = vadd.f32 %v25614_v17, %v12734_v26  ;;  %v12737_v35 = vmul.f32 %v25611_v4, %v19372_v31  ;;  %v19566_v36 = vpop.f32.mrb[68].mxu1  ;;  %v11395_v37 = vpop.f32.mrb[69].mxu0 }
 0x687   :  { %13665 = vst.msk [vmem:[%s26127_s4 + $0xf0] sm:$0xff] %vm13634_vm2, %v13600_v27  ;;  %v13381_v38 = vmax.f32 %v13253_v29, 0.0  ;;  %v13252_v39 = vadd.f32 %v25614_v17, %v13124_v30  ;;  %v13127_v40 = vmul.f32 %v25611_v4, %v19566_v36  ;;  %v12736_v41 = vmul.f32 %v25611_v4, %v11395_v37  ;;  %v12233_v42 = vpop.f32.mrb[69].mxu1 }
 0x688   :  { %v12996_v43 = vmax.f32 %v12868_v34, 0.0  ;;  %v12871_v44 = vadd.f32 %v25614_v17, %v12737_v35  ;;  %v13126_v45 = vmul.f32 %v25611_v4, %v12233_v42 }
 0x689   :  { %v13509_v46 = vmax.f32 %v12997_v33, %v13381_v38  ;;  %v13380_v47 = vmax.f32 %v13252_v39, 0.0  ;;  %v13255_v48 = vadd.f32 %v25614_v17, %v13127_v40  ;;  %v12870_v49 = vadd.f32 %v25614_v17, %v12736_v41  ;;  %v19375_v50 = vpop.f32.mrb[70].mxu0 }
 0x68a   :  { %v12999_v51 = vmax.f32 %v12871_v44, 0.0  ;;  %v13254_v52 = vadd.f32 %v25614_v17, %v13126_v45  ;;  %v12739_v53 = vmul.f32 %v25611_v4, %v19375_v50  ;;  %v19569_v54 = vpop.f32.mrb[70].mxu1  ;;  %v11405_v55 = vpop.f32.mrb[71].mxu0 }
 0x68b   :  { %v13603_v56 = vmax.f32 %v13507_v28, %v13509_v46  ;;  %v13508_v58 = vmax.f32 %v12996_v43, %v13380_v47  ;;  %v13383_v59 = vmax.f32 %v13255_v48, 0.0  ;;  %v12998_v60 = vmax.f32 %v12870_v49, 0.0  ;;  %v12243_v62 = vpop.f32.mrb[71].mxu1 }
 0x68c   :  { %v13382_v63 = vmax.f32 %v13254_v52, 0.0  ;;  %v12873_v0 = vadd.f32 %v25614_v17, %v12739_v53  ;;  %v13129_v1 = vmul.f32 %v25611_v4, %v19569_v54  ;;  %v12738_v3 = vmul.f32 %v25611_v4, %v11405_v55 }
 0x68d   :  { %13668 = vst.msk [vmem:[%s26127_s4 + $0x108] sm:$0xff] %vm13634_vm2, %v13603_v56  ;;  %v13602_v6 = vmax.f32 %v13506_v32, %v13508_v58  ;;  %v13511_v10 = vmax.f32 %v12999_v51, %v13383_v59  ;;  %v13128_v11 = vmul.f32 %v25611_v4, %v12243_v62  ;;  %v19378_v12 = vpop.f32.mrb[72].mxu0 }
 0x68e   :  { %v13510_v8 = vmax.f32 %v12998_v60, %v13382_v63  ;;  %v13001_v9 = vmax.f32 %v12873_v0, 0.0  ;;  %v13257_v13 = vadd.f32 %v25614_v17, %v13129_v1  ;;  %v12872_v14 = vadd.f32 %v25614_v17, %v12738_v3  ;;  %v19572_v2 = vpop.f32.mrb[72].mxu1  ;;  %v11415_v5 = vpop.f32.mrb[73].mxu0 }
 0x68f   :  { %13667 = vst.msk [vmem:[%s26127_s4 + $0x100] sm:$0xff] %vm13634_vm2, %v13602_v6  ;;  %v13256_v7 = vadd.f32 %v25614_v17, %v13128_v11  ;;  %v12741_v15 = vmul.f32 %v25611_v4, %v19378_v12  ;;  %v13131_v18 = vmul.f32 %v25611_v4, %v19572_v2  ;;  %v12740_v19 = vmul.f32 %v25611_v4, %v11415_v5  ;;  %v12253_v57 = vpop.f32.mrb[73].mxu1 }
 0x690   :  { %v13385_v20 = vmax.f32 %v13257_v13, 0.0  ;;  %v13000_v16 = vmax.f32 %v12872_v14, 0.0  ;;  %v13130_v21 = vmul.f32 %v25611_v4, %v12253_v57 }
 0x691   :  { %v13384_v22 = vmax.f32 %v13256_v7, 0.0  ;;  %v12875_v61 = vadd.f32 %v25614_v17, %v12741_v15  ;;  %v13259_v23 = vadd.f32 %v25614_v17, %v13131_v18  ;;  %v12874_v24 = vadd.f32 %v25614_v17, %v12740_v19  ;;  %v19381_v25 = vpop.f32.mrb[74].mxu0 }
 0x692   :  { %v13513_v26 = vmax.f32 %v13001_v9, %v13385_v20  ;;  %v13258_v27 = vadd.f32 %v25614_v17, %v13130_v21  ;;  %v12743_v28 = vmul.f32 %v25611_v4, %v19381_v25  ;;  %v19575_v29 = vpop.f32.mrb[74].mxu1  ;;  %v11425_v30 = vpop.f32.mrb[75].mxu0 }
 0x693   :  { %v13512_v31 = vmax.f32 %v13000_v16, %v13384_v22  ;;  %v13003_v32 = vmax.f32 %v12875_v61, 0.0  ;;  %v13387_v33 = vmax.f32 %v13259_v23, 0.0  ;;  %v13002_v34 = vmax.f32 %v12874_v24, 0.0  ;;  %v12263_v35 = vpop.f32.mrb[75].mxu1 }
 0x694   :  { %v13605_v36 = vmax.f32 %v13511_v10, %v13513_v26  ;;  %v13386_v37 = vmax.f32 %v13258_v27, 0.0  ;;  %v12877_v38 = vadd.f32 %v25614_v17, %v12743_v28  ;;  %v13133_v39 = vmul.f32 %v25611_v4, %v19575_v29 }
 0x695   :  { %v13604_v40 = vmax.f32 %v13510_v8, %v13512_v31  ;;  %v13515_v41 = vmax.f32 %v13003_v32, %v13387_v33  ;;  %v12742_v42 = vmul.f32 %v25611_v4, %v11425_v30  ;;  %v13132_v43 = vmul.f32 %v25611_v4, %v12263_v35  ;;  %v19384_v44 = vpop.f32.mrb[76].mxu0 }
 0x696   :  { %13670 = vst.msk [vmem:[%s26127_s4 + $0x118] sm:$0xff] %vm13634_vm2, %v13605_v36  ;;  %v13514_v45 = vmax.f32 %v13002_v34, %v13386_v37  ;;  %v13005_v46 = vmax.f32 %v12877_v38, 0.0  ;;  %v13261_v47 = vadd.f32 %v25614_v17, %v13133_v39  ;;  %v12745_v48 = vmul.f32 %v25611_v4, %v19384_v44  ;;  %v19578_v49 = vpop.f32.mrb[76].mxu1  ;;  %v11435_v50 = vpop.f32.mrb[77].mxu0 }
 0x697   :  { %13669 = vst.msk [vmem:[%s26127_s4 + $0x110] sm:$0xff] %vm13634_vm2, %v13604_v40  ;;  %v12876_v51 = vadd.f32 %v25614_v17, %v12742_v42  ;;  %v13260_v52 = vadd.f32 %v25614_v17, %v13132_v43  ;;  %v13135_v53 = vmul.f32 %v25611_v4, %v19578_v49  ;;  %v12744_v54 = vmul.f32 %v25611_v4, %v11435_v50  ;;  %v12273_v55 = vpop.f32.mrb[77].mxu1 }
 0x698   :  { %v13389_v56 = vmax.f32 %v13261_v47, 0.0  ;;  %v12879_v58 = vadd.f32 %v25614_v17, %v12745_v48  ;;  %v13134_v59 = vmul.f32 %v25611_v4, %v12273_v55 }
 0x699   :  { %v13004_v60 = vmax.f32 %v12876_v51, 0.0  ;;  %v13388_v62 = vmax.f32 %v13260_v52, 0.0  ;;  %v13263_v63 = vadd.f32 %v25614_v17, %v13135_v53  ;;  %v12878_v0 = vadd.f32 %v25614_v17, %v12744_v54  ;;  %v19387_v1 = vpop.f32.mrb[78].mxu0 }
 0x69a   :  { %v13517_v3 = vmax.f32 %v13005_v46, %v13389_v56  ;;  %v13007_v6 = vmax.f32 %v12879_v58, 0.0  ;;  %v13262_v10 = vadd.f32 %v25614_v17, %v13134_v59  ;;  %v12747_v11 = vmul.f32 %v25611_v4, %v19387_v1  ;;  %v19581_v12 = vpop.f32.mrb[78].mxu1  ;;  %v11445_v8 = vpop.f32.mrb[79].mxu0 }
 0x69b   :  { %v13516_v9 = vmax.f32 %v13004_v60, %v13388_v62  ;;  %v13391_v13 = vmax.f32 %v13263_v63, 0.0  ;;  %v13006_v14 = vmax.f32 %v12878_v0, 0.0  ;;  %v13137_v2 = vmul.f32 %v25611_v4, %v19581_v12  ;;  %v12283_v5 = vpop.f32.mrb[79].mxu1 }
 0x69c   :  { %v13607_v7 = vmax.f32 %v13515_v41, %v13517_v3  ;;  %v13390_v15 = vmax.f32 %v13262_v10, 0.0  ;;  %v12881_v18 = vadd.f32 %v25614_v17, %v12747_v11  ;;  %v12746_v19 = vmul.f32 %v25611_v4, %v11445_v8 }
 0x69d   :  { %v13606_v57 = vmax.f32 %v13514_v45, %v13516_v9  ;;  %v13519_v20 = vmax.f32 %v13007_v6, %v13391_v13  ;;  %v13265_v16 = vadd.f32 %v25614_v17, %v13137_v2  ;;  %v13136_v21 = vmul.f32 %v25611_v4, %v12283_v5  ;;  %v19390_v22 = vpop.f32.mrb[80].mxu0 }
 0x69e   :  { %13672 = vst.msk [vmem:[%s26127_s4 + $0x128] sm:$0xff] %vm13634_vm2, %v13607_v7  ;;  %v13518_v61 = vmax.f32 %v13006_v14, %v13390_v15  ;;  %v13009_v23 = vmax.f32 %v12881_v18, 0.0  ;;  %v12880_v24 = vadd.f32 %v25614_v17, %v12746_v19  ;;  %v12749_v25 = vmul.f32 %v25611_v4, %v19390_v22  ;;  %v19584_v26 = vpop.f32.mrb[80].mxu1  ;;  %v11455_v27 = vpop.f32.mrb[81].mxu0 }
 0x69f   :  { %13671 = vst.msk [vmem:[%s26127_s4 + $0x120] sm:$0xff] %vm13634_vm2, %v13606_v57  ;;  %v13393_v28 = vmax.f32 %v13265_v16, 0.0  ;;  %v13264_v29 = vadd.f32 %v25614_v17, %v13136_v21  ;;  %v13139_v30 = vmul.f32 %v25611_v4, %v19584_v26  ;;  %v12748_v31 = vmul.f32 %v25611_v4, %v11455_v27  ;;  %v12293_v32 = vpop.f32.mrb[81].mxu1 }
 0x6a0   :  { %v13008_v33 = vmax.f32 %v12880_v24, 0.0  ;;  %v12883_v34 = vadd.f32 %v25614_v17, %v12749_v25  ;;  %v13138_v35 = vmul.f32 %v25611_v4, %v12293_v32 }
 0x6a1   :  { %v13521_v36 = vmax.f32 %v13009_v23, %v13393_v28  ;;  %v13392_v37 = vmax.f32 %v13264_v29, 0.0  ;;  %v13267_v38 = vadd.f32 %v25614_v17, %v13139_v30  ;;  %v12882_v39 = vadd.f32 %v25614_v17, %v12748_v31  ;;  %v19393_v40 = vpop.f32.mrb[82].mxu0 }
 0x6a2   :  { %v13011_v41 = vmax.f32 %v12883_v34, 0.0  ;;  %v13266_v42 = vadd.f32 %v25614_v17, %v13138_v35  ;;  %v12751_v43 = vmul.f32 %v25611_v4, %v19393_v40  ;;  %v19587_v44 = vpop.f32.mrb[82].mxu1  ;;  %v11465_v45 = vpop.f32.mrb[83].mxu0 }
 0x6a3   :  { %v13609_v46 = vmax.f32 %v13519_v20, %v13521_v36  ;;  %v13520_v47 = vmax.f32 %v13008_v33, %v13392_v37  ;;  %v13395_v48 = vmax.f32 %v13267_v38, 0.0  ;;  %v13010_v49 = vmax.f32 %v12882_v39, 0.0  ;;  %v12303_v50 = vpop.f32.mrb[83].mxu1 }
 0x6a4   :  { %v13394_v51 = vmax.f32 %v13266_v42, 0.0  ;;  %v12885_v52 = vadd.f32 %v25614_v17, %v12751_v43  ;;  %v13141_v53 = vmul.f32 %v25611_v4, %v19587_v44  ;;  %v12750_v54 = vmul.f32 %v25611_v4, %v11465_v45 }
 0x6a5   :  { %13674 = vst.msk [vmem:[%s26127_s4 + $0x138] sm:$0xff] %vm13634_vm2, %v13609_v46  ;;  %v13608_v55 = vmax.f32 %v13518_v61, %v13520_v47  ;;  %v13523_v56 = vmax.f32 %v13011_v41, %v13395_v48  ;;  %v13140_v58 = vmul.f32 %v25611_v4, %v12303_v50  ;;  %v19396_v59 = vpop.f32.mrb[84].mxu0 }
 0x6a6   :  { %v13522_v60 = vmax.f32 %v13010_v49, %v13394_v51  ;;  %v13013_v62 = vmax.f32 %v12885_v52, 0.0  ;;  %v13269_v63 = vadd.f32 %v25614_v17, %v13141_v53  ;;  %v12884_v0 = vadd.f32 %v25614_v17, %v12750_v54  ;;  %v19590_v1 = vpop.f32.mrb[84].mxu1  ;;  %v11475_v3 = vpop.f32.mrb[85].mxu0 }
 0x6a7   :  { %13673 = vst.msk [vmem:[%s26127_s4 + $0x130] sm:$0xff] %vm13634_vm2, %v13608_v55  ;;  %v13268_v6 = vadd.f32 %v25614_v17, %v13140_v58  ;;  %v12753_v10 = vmul.f32 %v25611_v4, %v19396_v59  ;;  %v13143_v11 = vmul.f32 %v25611_v4, %v19590_v1  ;;  %v12752_v12 = vmul.f32 %v25611_v4, %v11475_v3  ;;  %v12313_v8 = vpop.f32.mrb[85].mxu1 }
 0x6a8   :  { %v13397_v9 = vmax.f32 %v13269_v63, 0.0  ;;  %v13012_v13 = vmax.f32 %v12884_v0, 0.0  ;;  %v13142_v14 = vmul.f32 %v25611_v4, %v12313_v8 }
 0x6a9   :  { %v13396_v2 = vmax.f32 %v13268_v6, 0.0  ;;  %v12887_v5 = vadd.f32 %v25614_v17, %v12753_v10  ;;  %v13271_v7 = vadd.f32 %v25614_v17, %v13143_v11  ;;  %v12886_v15 = vadd.f32 %v25614_v17, %v12752_v12  ;;  %v19399_v18 = vpop.f32.mrb[86].mxu0 }
 0x6aa   :  { %v13525_v19 = vmax.f32 %v13013_v62, %v13397_v9  ;;  %v13270_v57 = vadd.f32 %v25614_v17, %v13142_v14  ;;  %v12755_v20 = vmul.f32 %v25611_v4, %v19399_v18  ;;  %v19593_v16 = vpop.f32.mrb[86].mxu1  ;;  %v11485_v21 = vpop.f32.mrb[87].mxu0 }
 0x6ab   :  { %v13524_v22 = vmax.f32 %v13012_v13, %v13396_v2  ;;  %v13015_v61 = vmax.f32 %v12887_v5, 0.0  ;;  %v13399_v23 = vmax.f32 %v13271_v7, 0.0  ;;  %v13014_v24 = vmax.f32 %v12886_v15, 0.0  ;;  %v12323_v25 = vpop.f32.mrb[87].mxu1 }
 0x6ac   :  { %v13611_v26 = vmax.f32 %v13523_v56, %v13525_v19  ;;  %v13398_v27 = vmax.f32 %v13270_v57, 0.0  ;;  %v12889_v28 = vadd.f32 %v25614_v17, %v12755_v20  ;;  %v13145_v29 = vmul.f32 %v25611_v4, %v19593_v16 }
 0x6ad   :  { %v13610_v30 = vmax.f32 %v13522_v60, %v13524_v22  ;;  %v13527_v31 = vmax.f32 %v13015_v61, %v13399_v23  ;;  %v12754_v32 = vmul.f32 %v25611_v4, %v11485_v21  ;;  %v13144_v33 = vmul.f32 %v25611_v4, %v12323_v25  ;;  %v19402_v34 = vpop.f32.mrb[88].mxu0 }
 0x6ae   :  { %13676 = vst.msk [vmem:[%s26127_s4 + $0x148] sm:$0xff] %vm13634_vm2, %v13611_v26  ;;  %v13526_v35 = vmax.f32 %v13014_v24, %v13398_v27  ;;  %v13017_v36 = vmax.f32 %v12889_v28, 0.0  ;;  %v13273_v37 = vadd.f32 %v25614_v17, %v13145_v29  ;;  %v12757_v38 = vmul.f32 %v25611_v4, %v19402_v34  ;;  %v19596_v39 = vpop.f32.mrb[88].mxu1  ;;  %v11495_v40 = vpop.f32.mrb[89].mxu0 }
 0x6af   :  { %13675 = vst.msk [vmem:[%s26127_s4 + $0x140] sm:$0xff] %vm13634_vm2, %v13610_v30  ;;  %v12888_v41 = vadd.f32 %v25614_v17, %v12754_v32  ;;  %v13272_v42 = vadd.f32 %v25614_v17, %v13144_v33  ;;  %v13147_v43 = vmul.f32 %v25611_v4, %v19596_v39  ;;  %v12756_v44 = vmul.f32 %v25611_v4, %v11495_v40  ;;  %v12333_v45 = vpop.f32.mrb[89].mxu1 }
 0x6b0   :  { %v13401_v46 = vmax.f32 %v13273_v37, 0.0  ;;  %v12891_v47 = vadd.f32 %v25614_v17, %v12757_v38  ;;  %v13146_v48 = vmul.f32 %v25611_v4, %v12333_v45 }
 0x6b1   :  { %v13016_v49 = vmax.f32 %v12888_v41, 0.0  ;;  %v13400_v50 = vmax.f32 %v13272_v42, 0.0  ;;  %v13275_v51 = vadd.f32 %v25614_v17, %v13147_v43  ;;  %v12890_v52 = vadd.f32 %v25614_v17, %v12756_v44  ;;  %v19405_v53 = vpop.f32.mrb[90].mxu0 }
 0x6b2   :  { %v13529_v54 = vmax.f32 %v13017_v36, %v13401_v46  ;;  %v13019_v55 = vmax.f32 %v12891_v47, 0.0  ;;  %v13274_v56 = vadd.f32 %v25614_v17, %v13146_v48  ;;  %v12759_v58 = vmul.f32 %v25611_v4, %v19405_v53  ;;  %v19599_v59 = vpop.f32.mrb[90].mxu1  ;;  %v11505_v60 = vpop.f32.mrb[91].mxu0 }
 0x6b3   :  { %v13528_v62 = vmax.f32 %v13016_v49, %v13400_v50  ;;  %v13403_v63 = vmax.f32 %v13275_v51, 0.0  ;;  %v13018_v0 = vmax.f32 %v12890_v52, 0.0  ;;  %v13149_v1 = vmul.f32 %v25611_v4, %v19599_v59  ;;  %v12343_v3 = vpop.f32.mrb[91].mxu1 }
 0x6b4   :  { %v13613_v6 = vmax.f32 %v13527_v31, %v13529_v54  ;;  %v13402_v10 = vmax.f32 %v13274_v56, 0.0  ;;  %v12893_v11 = vadd.f32 %v25614_v17, %v12759_v58  ;;  %v12758_v12 = vmul.f32 %v25611_v4, %v11505_v60 }
 0x6b5   :  { %v13612_v8 = vmax.f32 %v13526_v35, %v13528_v62  ;;  %v13531_v9 = vmax.f32 %v13019_v55, %v13403_v63  ;;  %v13277_v13 = vadd.f32 %v25614_v17, %v13149_v1  ;;  %v13148_v14 = vmul.f32 %v25611_v4, %v12343_v3  ;;  %v19408_v2 = vpop.f32.mrb[92].mxu0 }
 0x6b6   :  { %13678 = vst.msk [vmem:[%s26127_s4 + $0x158] sm:$0xff] %vm13634_vm2, %v13613_v6  ;;  %v13530_v5 = vmax.f32 %v13018_v0, %v13402_v10  ;;  %v13021_v7 = vmax.f32 %v12893_v11, 0.0  ;;  %v12892_v15 = vadd.f32 %v25614_v17, %v12758_v12  ;;  %v12761_v18 = vmul.f32 %v25611_v4, %v19408_v2  ;;  %v19602_v19 = vpop.f32.mrb[92].mxu1  ;;  %v11515_v57 = vpop.f32.mrb[93].mxu0 }
 0x6b7   :  { %13677 = vst.msk [vmem:[%s26127_s4 + $0x150] sm:$0xff] %vm13634_vm2, %v13612_v8  ;;  %v13405_v20 = vmax.f32 %v13277_v13, 0.0  ;;  %v13276_v16 = vadd.f32 %v25614_v17, %v13148_v14  ;;  %v13151_v21 = vmul.f32 %v25611_v4, %v19602_v19  ;;  %v12760_v22 = vmul.f32 %v25611_v4, %v11515_v57  ;;  %v12353_v61 = vpop.f32.mrb[93].mxu1 }
 0x6b8   :  { %v13020_v23 = vmax.f32 %v12892_v15, 0.0  ;;  %v12895_v24 = vadd.f32 %v25614_v17, %v12761_v18  ;;  %v13150_v25 = vmul.f32 %v25611_v4, %v12353_v61 }
 0x6b9   :  { %v13533_v26 = vmax.f32 %v13021_v7, %v13405_v20  ;;  %v13404_v27 = vmax.f32 %v13276_v16, 0.0  ;;  %v13279_v28 = vadd.f32 %v25614_v17, %v13151_v21  ;;  %v12894_v29 = vadd.f32 %v25614_v17, %v12760_v22  ;;  %v19411_v30 = vpop.f32.mrb[94].mxu0  ;;  %v25930_v20 = vld [vmem:[#allocation4] ss:$0 sm:$0xff] }
 0x6ba   :  { %v13023_v31 = vmax.f32 %v12895_v24, 0.0  ;;  %v13278_v32 = vadd.f32 %v25614_v17, %v13150_v25  ;;  %v12763_v33 = vmul.f32 %v25611_v4, %v19411_v30  ;;  %v19605_v34 = vpop.f32.mrb[94].mxu1  ;;  %v11525_v35 = vpop.f32.mrb[95].mxu0 }
 0x6bb   :  { %v13615_v36 = vmax.f32 %v13531_v9, %v13533_v26  ;;  %v13532_v37 = vmax.f32 %v13020_v23, %v13404_v27  ;;  %v13407_v38 = vmax.f32 %v13279_v28, 0.0  ;;  %v13022_v39 = vmax.f32 %v12894_v29, 0.0  ;;  %v12363_v40 = vpop.f32.mrb[95].mxu1  ;;  %v25927_v9 = vld [vmem:[#allocation2] ss:$0 sm:$0xff] }
 0x6bc   :  { %v13406_v41 = vmax.f32 %v13278_v32, 0.0  ;;  %v12897_v42 = vadd.f32 %v25614_v17, %v12763_v33  ;;  %v13153_v43 = vmul.f32 %v25611_v4, %v19605_v34  ;;  %v12762_v44 = vmul.f32 %v25611_v4, %v11525_v35 }
 0x6bd   :  { %13680 = vst.msk [vmem:[%s26127_s4 + $0x168] sm:$0xff] %vm13634_vm2, %v13615_v36  ;;  %v13614_v45 = vmax.f32 %v13530_v5, %v13532_v37  ;;  %v13535_v46 = vmax.f32 %v13023_v31, %v13407_v38  ;;  %v13152_v47 = vmul.f32 %v25611_v4, %v12363_v40  ;;  %v19414_v48 = vpop.f32.mrb[96].mxu0 }
 0x6be   :  { %v13534_v49 = vmax.f32 %v13022_v39, %v13406_v41  ;;  %v13025_v50 = vmax.f32 %v12897_v42, 0.0  ;;  %v13281_v51 = vadd.f32 %v25614_v17, %v13153_v43  ;;  %v12896_v52 = vadd.f32 %v25614_v17, %v12762_v44  ;;  %v19608_v53 = vpop.f32.mrb[96].mxu1  ;;  %v11535_v54 = vpop.f32.mrb[97].mxu0 }
 0x6bf   :  { %13679 = vst.msk [vmem:[%s26127_s4 + $0x160] sm:$0xff] %vm13634_vm2, %v13614_v45  ;;  %v13280_v55 = vadd.f32 %v25614_v17, %v13152_v47  ;;  %v12765_v56 = vmul.f32 %v25611_v4, %v19414_v48  ;;  %v13155_v58 = vmul.f32 %v25611_v4, %v19608_v53  ;;  %v12764_v59 = vmul.f32 %v25611_v4, %v11535_v54  ;;  %v12373_v60 = vpop.f32.mrb[97].mxu1 }
 0x6c0   :  { %v13409_v62 = vmax.f32 %v13281_v51, 0.0  ;;  %v13024_v63 = vmax.f32 %v12896_v52, 0.0  ;;  %v13154_v0 = vmul.f32 %v25611_v4, %v12373_v60 }
 0x6c1   :  { %v13408_v1 = vmax.f32 %v13280_v55, 0.0  ;;  %v12899_v3 = vadd.f32 %v25614_v17, %v12765_v56  ;;  %v13283_v6 = vadd.f32 %v25614_v17, %v13155_v58  ;;  %v12898_v10 = vadd.f32 %v25614_v17, %v12764_v59  ;;  %v19417_v11 = vpop.f32.mrb[98].mxu0 }
 0x6c2   :  { %v13537_v12 = vmax.f32 %v13025_v50, %v13409_v62  ;;  %v13282_v8 = vadd.f32 %v25614_v17, %v13154_v0  ;;  %v12767_v13 = vmul.f32 %v25927_v9, %v19417_v11  ;;  %v19611_v14 = vpop.f32.mrb[98].mxu1  ;;  %v11545_v2 = vpop.f32.mrb[99].mxu0 }
 0x6c3   :  { %v13536_v5 = vmax.f32 %v13024_v63, %v13408_v1  ;;  %v13027_v7 = vmax.f32 %v12899_v3, 0.0  ;;  %v13411_v4 = vmax.f32 %v13283_v6, 0.0  ;;  %v13026_v15 = vmax.f32 %v12898_v10, 0.0  ;;  %v12383_v18 = vpop.f32.mrb[99].mxu1 }
 0x6c4   :  { %v13617_v19 = vmax.f32 %v13535_v46, %v13537_v12  ;;  %v13410_v57 = vmax.f32 %v13282_v8, 0.0  ;;  %v12901_v16 = vadd.f32 %v25930_v20, %v12767_v13  ;;  %v13157_v21 = vmul.f32 %v25927_v9, %v19611_v14 }
 0x6c5   :  { %v13616_v17 = vmax.f32 %v13534_v49, %v13536_v5  ;;  %v13539_v22 = vmax.f32 %v13027_v7, %v13411_v4  ;;  %v12766_v61 = vmul.f32 %v25927_v9, %v11545_v2  ;;  %v13156_v23 = vmul.f32 %v25927_v9, %v12383_v18  ;;  %v19420_v24 = vpop.f32.mrb[100].mxu0 }
 0x6c6   :  { %13682 = vst.msk [vmem:[%s26127_s4 + $0x178] sm:$0xff] %vm13634_vm2, %v13617_v19  ;;  %v13538_v25 = vmax.f32 %v13026_v15, %v13410_v57  ;;  %v13029_v26 = vmax.f32 %v12901_v16, 0.0  ;;  %v13285_v27 = vadd.f32 %v25930_v20, %v13157_v21  ;;  %v12769_v28 = vmul.f32 %v25927_v9, %v19420_v24  ;;  %v19614_v29 = vpop.f32.mrb[100].mxu1  ;;  %v11555_v30 = vpop.f32.mrb[101].mxu0 }
 0x6c7   :  { %13681 = vst.msk [vmem:[%s26127_s4 + $0x170] sm:$0xff] %vm13634_vm2, %v13616_v17  ;;  %v12900_v31 = vadd.f32 %v25930_v20, %v12766_v61  ;;  %v13284_v32 = vadd.f32 %v25930_v20, %v13156_v23  ;;  %v13159_v33 = vmul.f32 %v25927_v9, %v19614_v29  ;;  %v12768_v34 = vmul.f32 %v25927_v9, %v11555_v30  ;;  %v12393_v35 = vpop.f32.mrb[101].mxu1 }
 0x6c8   :  { %v13413_v36 = vmax.f32 %v13285_v27, 0.0  ;;  %v12903_v37 = vadd.f32 %v25930_v20, %v12769_v28  ;;  %v13158_v38 = vmul.f32 %v25927_v9, %v12393_v35 }
 0x6c9   :  { %v13028_v39 = vmax.f32 %v12900_v31, 0.0  ;;  %v13412_v40 = vmax.f32 %v13284_v32, 0.0  ;;  %v13287_v41 = vadd.f32 %v25930_v20, %v13159_v33  ;;  %v12902_v42 = vadd.f32 %v25930_v20, %v12768_v34  ;;  %v19423_v43 = vpop.f32.mrb[102].mxu0 }
 0x6ca   :  { %v13541_v44 = vmax.f32 %v13029_v26, %v13413_v36  ;;  %v13031_v45 = vmax.f32 %v12903_v37, 0.0  ;;  %v13286_v46 = vadd.f32 %v25930_v20, %v13158_v38  ;;  %v12771_v47 = vmul.f32 %v25927_v9, %v19423_v43  ;;  %v19617_v48 = vpop.f32.mrb[102].mxu1  ;;  %v11565_v49 = vpop.f32.mrb[103].mxu0 }
 0x6cb   :  { %v13540_v50 = vmax.f32 %v13028_v39, %v13412_v40  ;;  %v13415_v51 = vmax.f32 %v13287_v41, 0.0  ;;  %v13030_v52 = vmax.f32 %v12902_v42, 0.0  ;;  %v13161_v53 = vmul.f32 %v25927_v9, %v19617_v48  ;;  %v12403_v54 = vpop.f32.mrb[103].mxu1 }
 0x6cc   :  { %v13619_v55 = vmax.f32 %v13539_v22, %v13541_v44  ;;  %v13414_v56 = vmax.f32 %v13286_v46, 0.0  ;;  %v12905_v58 = vadd.f32 %v25930_v20, %v12771_v47  ;;  %v12770_v59 = vmul.f32 %v25927_v9, %v11565_v49 }
 0x6cd   :  { %v13618_v60 = vmax.f32 %v13538_v25, %v13540_v50  ;;  %v13543_v62 = vmax.f32 %v13031_v45, %v13415_v51  ;;  %v13289_v63 = vadd.f32 %v25930_v20, %v13161_v53  ;;  %v13160_v0 = vmul.f32 %v25927_v9, %v12403_v54  ;;  %v19426_v1 = vpop.f32.mrb[104].mxu0 }
 0x6ce   :  { %13684 = vst.msk [vmem:[%s26127_s4 + $0x188] sm:$0xff] %vm13634_vm2, %v13619_v55  ;;  %v13542_v3 = vmax.f32 %v13030_v52, %v13414_v56  ;;  %v13033_v6 = vmax.f32 %v12905_v58, 0.0  ;;  %v12904_v10 = vadd.f32 %v25930_v20, %v12770_v59  ;;  %v12773_v11 = vmul.f32 %v25927_v9, %v19426_v1  ;;  %v19620_v12 = vpop.f32.mrb[104].mxu1  ;;  %v11575_v8 = vpop.f32.mrb[105].mxu0 }
 0x6cf   :  { %13683 = vst.msk [vmem:[%s26127_s4 + $0x180] sm:$0xff] %vm13634_vm2, %v13618_v60  ;;  %v13417_v13 = vmax.f32 %v13289_v63, 0.0  ;;  %v13288_v14 = vadd.f32 %v25930_v20, %v13160_v0  ;;  %v13163_v2 = vmul.f32 %v25927_v9, %v19620_v12  ;;  %v12772_v5 = vmul.f32 %v25927_v9, %v11575_v8  ;;  %v12413_v7 = vpop.f32.mrb[105].mxu1 }
 0x6d0   :  { %v13032_v4 = vmax.f32 %v12904_v10, 0.0  ;;  %v12907_v15 = vadd.f32 %v25930_v20, %v12773_v11  ;;  %v13162_v18 = vmul.f32 %v25927_v9, %v12413_v7 }
 0x6d1   :  { %v13545_v19 = vmax.f32 %v13033_v6, %v13417_v13  ;;  %v13416_v57 = vmax.f32 %v13288_v14, 0.0  ;;  %v13291_v16 = vadd.f32 %v25930_v20, %v13163_v2  ;;  %v12906_v21 = vadd.f32 %v25930_v20, %v12772_v5  ;;  %v19429_v17 = vpop.f32.mrb[106].mxu0 }
 0x6d2   :  { %v13035_v22 = vmax.f32 %v12907_v15, 0.0  ;;  %v13290_v61 = vadd.f32 %v25930_v20, %v13162_v18  ;;  %v12775_v23 = vmul.f32 %v25927_v9, %v19429_v17  ;;  %v19623_v24 = vpop.f32.mrb[106].mxu1  ;;  %v11585_v25 = vpop.f32.mrb[107].mxu0 }
 0x6d3   :  { %v13621_v26 = vmax.f32 %v13543_v62, %v13545_v19  ;;  %v13544_v27 = vmax.f32 %v13032_v4, %v13416_v57  ;;  %v13419_v28 = vmax.f32 %v13291_v16, 0.0  ;;  %v13034_v29 = vmax.f32 %v12906_v21, 0.0  ;;  %v12423_v30 = vpop.f32.mrb[107].mxu1 }
 0x6d4   :  { %v13418_v31 = vmax.f32 %v13290_v61, 0.0  ;;  %v12909_v32 = vadd.f32 %v25930_v20, %v12775_v23  ;;  %v13165_v33 = vmul.f32 %v25927_v9, %v19623_v24  ;;  %v12774_v34 = vmul.f32 %v25927_v9, %v11585_v25 }
 0x6d5   :  { %13686 = vst.msk [vmem:[%s26127_s4 + $0x198] sm:$0xff] %vm13634_vm2, %v13621_v26  ;;  %v13620_v35 = vmax.f32 %v13542_v3, %v13544_v27  ;;  %v13547_v36 = vmax.f32 %v13035_v22, %v13419_v28  ;;  %v13164_v37 = vmul.f32 %v25927_v9, %v12423_v30  ;;  %v19432_v38 = vpop.f32.mrb[108].mxu0 }
 0x6d6   :  { %v13546_v39 = vmax.f32 %v13034_v29, %v13418_v31  ;;  %v13037_v40 = vmax.f32 %v12909_v32, 0.0  ;;  %v13293_v41 = vadd.f32 %v25930_v20, %v13165_v33  ;;  %v12908_v42 = vadd.f32 %v25930_v20, %v12774_v34  ;;  %v19626_v43 = vpop.f32.mrb[108].mxu1  ;;  %v11595_v44 = vpop.f32.mrb[109].mxu0 }
 0x6d7   :  { %13685 = vst.msk [vmem:[%s26127_s4 + $0x190] sm:$0xff] %vm13634_vm2, %v13620_v35  ;;  %v13292_v45 = vadd.f32 %v25930_v20, %v13164_v37  ;;  %v12777_v46 = vmul.f32 %v25927_v9, %v19432_v38  ;;  %v13167_v47 = vmul.f32 %v25927_v9, %v19626_v43  ;;  %v12776_v48 = vmul.f32 %v25927_v9, %v11595_v44  ;;  %v12433_v49 = vpop.f32.mrb[109].mxu1 }
 0x6d8   :  { %v13421_v50 = vmax.f32 %v13293_v41, 0.0  ;;  %v13036_v51 = vmax.f32 %v12908_v42, 0.0  ;;  %v13166_v52 = vmul.f32 %v25927_v9, %v12433_v49 }
 0x6d9   :  { %v13420_v53 = vmax.f32 %v13292_v45, 0.0  ;;  %v12911_v54 = vadd.f32 %v25930_v20, %v12777_v46  ;;  %v13295_v55 = vadd.f32 %v25930_v20, %v13167_v47  ;;  %v12910_v56 = vadd.f32 %v25930_v20, %v12776_v48  ;;  %v19435_v58 = vpop.f32.mrb[110].mxu0 }
 0x6da   :  { %v13549_v59 = vmax.f32 %v13037_v40, %v13421_v50  ;;  %v13294_v60 = vadd.f32 %v25930_v20, %v13166_v52  ;;  %v12779_v62 = vmul.f32 %v25927_v9, %v19435_v58  ;;  %v19629_v63 = vpop.f32.mrb[110].mxu1  ;;  %v11605_v0 = vpop.f32.mrb[111].mxu0 }
 0x6db   :  { %v13548_v1 = vmax.f32 %v13036_v51, %v13420_v53  ;;  %v13039_v3 = vmax.f32 %v12911_v54, 0.0  ;;  %v13423_v6 = vmax.f32 %v13295_v55, 0.0  ;;  %v13038_v10 = vmax.f32 %v12910_v56, 0.0  ;;  %v12443_v11 = vpop.f32.mrb[111].mxu1 }
 0x6dc   :  { %v13623_v12 = vmax.f32 %v13547_v36, %v13549_v59  ;;  %v13422_v8 = vmax.f32 %v13294_v60, 0.0  ;;  %v12913_v13 = vadd.f32 %v25930_v20, %v12779_v62  ;;  %v13169_v14 = vmul.f32 %v25927_v9, %v19629_v63 }
 0x6dd   :  { %v13622_v2 = vmax.f32 %v13546_v39, %v13548_v1  ;;  %v13551_v5 = vmax.f32 %v13039_v3, %v13423_v6  ;;  %v12778_v7 = vmul.f32 %v25927_v9, %v11605_v0  ;;  %v13168_v4 = vmul.f32 %v25927_v9, %v12443_v11  ;;  %v19438_v15 = vpop.f32.mrb[112].mxu0 }
 0x6de   :  { %13688 = vst.msk [vmem:[%s26127_s4 + $0x1a8] sm:$0xff] %vm13634_vm2, %v13623_v12  ;;  %v13550_v18 = vmax.f32 %v13038_v10, %v13422_v8  ;;  %v13041_v19 = vmax.f32 %v12913_v13, 0.0  ;;  %v13297_v57 = vadd.f32 %v25930_v20, %v13169_v14  ;;  %v12781_v16 = vmul.f32 %v25927_v9, %v19438_v15  ;;  %v19632_v21 = vpop.f32.mrb[112].mxu1  ;;  %v11615_v17 = vpop.f32.mrb[113].mxu0 }
 0x6df   :  { %13687 = vst.msk [vmem:[%s26127_s4 + $0x1a0] sm:$0xff] %vm13634_vm2, %v13622_v2  ;;  %v12912_v22 = vadd.f32 %v25930_v20, %v12778_v7  ;;  %v13296_v61 = vadd.f32 %v25930_v20, %v13168_v4  ;;  %v13171_v23 = vmul.f32 %v25927_v9, %v19632_v21  ;;  %v12780_v24 = vmul.f32 %v25927_v9, %v11615_v17  ;;  %v12453_v25 = vpop.f32.mrb[113].mxu1 }
 0x6e0   :  { %v13425_v26 = vmax.f32 %v13297_v57, 0.0  ;;  %v12915_v27 = vadd.f32 %v25930_v20, %v12781_v16  ;;  %v13170_v28 = vmul.f32 %v25927_v9, %v12453_v25 }
 0x6e1   :  { %v13040_v29 = vmax.f32 %v12912_v22, 0.0  ;;  %v13424_v30 = vmax.f32 %v13296_v61, 0.0  ;;  %v13299_v31 = vadd.f32 %v25930_v20, %v13171_v23  ;;  %v12914_v32 = vadd.f32 %v25930_v20, %v12780_v24  ;;  %v19441_v33 = vpop.f32.mrb[114].mxu0 }
 0x6e2   :  { %v13553_v34 = vmax.f32 %v13041_v19, %v13425_v26  ;;  %v13043_v35 = vmax.f32 %v12915_v27, 0.0  ;;  %v13298_v36 = vadd.f32 %v25930_v20, %v13170_v28  ;;  %v12783_v37 = vmul.f32 %v25927_v9, %v19441_v33  ;;  %v19635_v38 = vpop.f32.mrb[114].mxu1  ;;  %v11625_v39 = vpop.f32.mrb[115].mxu0 }
 0x6e3   :  { %v13552_v40 = vmax.f32 %v13040_v29, %v13424_v30  ;;  %v13427_v41 = vmax.f32 %v13299_v31, 0.0  ;;  %v13042_v42 = vmax.f32 %v12914_v32, 0.0  ;;  %v13173_v43 = vmul.f32 %v25927_v9, %v19635_v38  ;;  %v12463_v44 = vpop.f32.mrb[115].mxu1 }
 0x6e4   :  { %v13625_v45 = vmax.f32 %v13551_v5, %v13553_v34  ;;  %v13426_v46 = vmax.f32 %v13298_v36, 0.0  ;;  %v12917_v47 = vadd.f32 %v25930_v20, %v12783_v37  ;;  %v12782_v48 = vmul.f32 %v25927_v9, %v11625_v39 }
 0x6e5   :  { %v13624_v49 = vmax.f32 %v13550_v18, %v13552_v40  ;;  %v13555_v50 = vmax.f32 %v13043_v35, %v13427_v41  ;;  %v13301_v51 = vadd.f32 %v25930_v20, %v13173_v43  ;;  %v13172_v52 = vmul.f32 %v25927_v9, %v12463_v44  ;;  %v19444_v53 = vpop.f32.mrb[116].mxu0 }
 0x6e6   :  { %13690 = vst.msk [vmem:[%s26127_s4 + $0x1b8] sm:$0xff] %vm13634_vm2, %v13625_v45  ;;  %v13554_v54 = vmax.f32 %v13042_v42, %v13426_v46  ;;  %v13045_v55 = vmax.f32 %v12917_v47, 0.0  ;;  %v12916_v56 = vadd.f32 %v25930_v20, %v12782_v48  ;;  %v12785_v58 = vmul.f32 %v25927_v9, %v19444_v53  ;;  %v19638_v59 = vpop.f32.mrb[116].mxu1  ;;  %v11635_v60 = vpop.f32.mrb[117].mxu0 }
 0x6e7   :  { %13689 = vst.msk [vmem:[%s26127_s4 + $0x1b0] sm:$0xff] %vm13634_vm2, %v13624_v49  ;;  %v13429_v62 = vmax.f32 %v13301_v51, 0.0  ;;  %v13300_v63 = vadd.f32 %v25930_v20, %v13172_v52  ;;  %v13175_v0 = vmul.f32 %v25927_v9, %v19638_v59  ;;  %v12784_v1 = vmul.f32 %v25927_v9, %v11635_v60  ;;  %v12473_v3 = vpop.f32.mrb[117].mxu1 }
 0x6e8   :  { %v13044_v6 = vmax.f32 %v12916_v56, 0.0  ;;  %v12919_v10 = vadd.f32 %v25930_v20, %v12785_v58  ;;  %v13174_v11 = vmul.f32 %v25927_v9, %v12473_v3 }
 0x6e9   :  { %v13557_v12 = vmax.f32 %v13045_v55, %v13429_v62  ;;  %v13428_v8 = vmax.f32 %v13300_v63, 0.0  ;;  %v13303_v13 = vadd.f32 %v25930_v20, %v13175_v0  ;;  %v12918_v14 = vadd.f32 %v25930_v20, %v12784_v1  ;;  %v19447_v2 = vpop.f32.mrb[118].mxu0 }
 0x6ea   :  { %v13047_v5 = vmax.f32 %v12919_v10, 0.0  ;;  %v13302_v7 = vadd.f32 %v25930_v20, %v13174_v11  ;;  %v12787_v4 = vmul.f32 %v25927_v9, %v19447_v2  ;;  %v11645_v18 = vpop.f32.mrb[119].mxu0 }
 0x6eb   :  { %v19641_v15 = vpop.f32.mrb[118].mxu1  ;;  %v13627_v19 = vmax.f32 %v13555_v50, %v13557_v12  ;;  %v13556_v57 = vmax.f32 %v13044_v6, %v13428_v8  ;;  %v13431_v16 = vmax.f32 %v13303_v13, 0.0  ;;  %v13046_v21 = vmax.f32 %v12918_v14, 0.0 }
 0x6ec   :  { %v12483_v17 = vpop.f32.mrb[119].mxu1  ;;  %v13430_v22 = vmax.f32 %v13302_v7, 0.0  ;;  %v12921_v61 = vadd.f32 %v25930_v20, %v12787_v4  ;;  %v13177_v23 = vmul.f32 %v25927_v9, %v19641_v15  ;;  %v12786_v24 = vmul.f32 %v25927_v9, %v11645_v18 }
 0x6ed   :  { %13692 = vst.msk [vmem:[%s26127_s4 + $0x1c8] sm:$0xff] %vm13634_vm2, %v13627_v19  ;;  %v13626_v25 = vmax.f32 %v13554_v54, %v13556_v57  ;;  %v13559_v26 = vmax.f32 %v13047_v5, %v13431_v16  ;;  %v13176_v27 = vmul.f32 %v25927_v9, %v12483_v17  ;;  %v19450_v28 = vpop.f32.mrb[120].mxu0 }
 0x6ee   :  { %v13558_v29 = vmax.f32 %v13046_v21, %v13430_v22  ;;  %v13049_v30 = vmax.f32 %v12921_v61, 0.0  ;;  %v13305_v31 = vadd.f32 %v25930_v20, %v13177_v23  ;;  %v12920_v32 = vadd.f32 %v25930_v20, %v12786_v24  ;;  %v11655_v34 = vpop.f32.mrb[121].mxu0 }
 0x6ef   :  { %v19644_v33 = vpop.f32.mrb[120].mxu1  ;;  %13691 = vst.msk [vmem:[%s26127_s4 + $0x1c0] sm:$0xff] %vm13634_vm2, %v13626_v25  ;;  %v13304_v35 = vadd.f32 %v25930_v20, %v13176_v27  ;;  %v12789_v36 = vmul.f32 %v25927_v9, %v19450_v28  ;;  %v12788_v38 = vmul.f32 %v25927_v9, %v11655_v34 }
 0x6f0   :  { %v13179_v37 = vmul.f32 %v25927_v9, %v19644_v33  ;;  %v12493_v39 = vpop.f32.mrb[121].mxu1  ;;  %v13433_v40 = vmax.f32 %v13305_v31, 0.0  ;;  %v13048_v41 = vmax.f32 %v12920_v32, 0.0 }
 0x6f1   :  { %v13178_v42 = vmul.f32 %v25927_v9, %v12493_v39  ;;  %v13432_v43 = vmax.f32 %v13304_v35, 0.0  ;;  %v12923_v44 = vadd.f32 %v25930_v20, %v12789_v36  ;;  %v12922_v46 = vadd.f32 %v25930_v20, %v12788_v38  ;;  %v19453_v47 = vpop.f32.mrb[122].mxu0 }
 0x6f2   :  { %v13307_v45 = vadd.f32 %v25930_v20, %v13179_v37  ;;  %v13561_v48 = vmax.f32 %v13049_v30, %v13433_v40  ;;  %v12791_v50 = vmul.f32 %v25927_v9, %v19453_v47  ;;  %v11665_v52 = vpop.f32.mrb[123].mxu0 }
 0x6f3   :  { %v13306_v49 = vadd.f32 %v25930_v20, %v13178_v42  ;;  %v19647_v51 = vpop.f32.mrb[122].mxu1  ;;  %v13560_v53 = vmax.f32 %v13048_v41, %v13432_v43  ;;  %v13051_v54 = vmax.f32 %v12923_v44, 0.0  ;;  %v13050_v56 = vmax.f32 %v12922_v46, 0.0 }
 0x6f4   :  { %v13435_v55 = vmax.f32 %v13307_v45, 0.0  ;;  %v12503_v58 = vpop.f32.mrb[123].mxu1  ;;  %v13629_v59 = vmax.f32 %v13559_v26, %v13561_v48  ;;  %v12925_v62 = vadd.f32 %v25930_v20, %v12791_v50  ;;  %v13181_v63 = vmul.f32 %v25927_v9, %v19647_v51 }
 0x6f5   :  { %v13434_v60 = vmax.f32 %v13306_v49, 0.0  ;;  %v13628_v0 = vmax.f32 %v13558_v29, %v13560_v53  ;;  %v12790_v3 = vmul.f32 %v25927_v9, %v11665_v52  ;;  %v13180_v6 = vmul.f32 %v25927_v9, %v12503_v58  ;;  %v19456_v10 = vpop.f32.mrb[124].mxu0 }
 0x6f6   :  { %v13563_v1 = vmax.f32 %v13051_v54, %v13435_v55  ;;  %13694 = vst.msk [vmem:[%s26127_s4 + $0x1d8] sm:$0xff] %vm13634_vm2, %v13629_v59  ;;  %v13053_v12 = vmax.f32 %v12925_v62, 0.0  ;;  %v13309_v8 = vadd.f32 %v25930_v20, %v13181_v63  ;;  %v12793_v13 = vmul.f32 %v25927_v9, %v19456_v10  ;;  %v11675_v2 = vpop.f32.mrb[125].mxu0 }
 0x6f7   :  { %v13562_v11 = vmax.f32 %v13050_v56, %v13434_v60  ;;  %v19650_v14 = vpop.f32.mrb[124].mxu1  ;;  %13693 = vst.msk [vmem:[%s26127_s4 + $0x1d0] sm:$0xff] %vm13634_vm2, %v13628_v0  ;;  %v12924_v5 = vadd.f32 %v25930_v20, %v12790_v3  ;;  %v13308_v7 = vadd.f32 %v25930_v20, %v13180_v6  ;;  %v12792_v15 = vmul.f32 %v25927_v9, %v11675_v2 }
 0x6f8   :  { %v13183_v4 = vmul.f32 %v25927_v9, %v19650_v14  ;;  %v12513_v18 = vpop.f32.mrb[125].mxu1  ;;  %v13437_v19 = vmax.f32 %v13309_v8, 0.0  ;;  %v12927_v57 = vadd.f32 %v25930_v20, %v12793_v13 }
 0x6f9   :  { %v13182_v16 = vmul.f32 %v25927_v9, %v12513_v18  ;;  %v13052_v21 = vmax.f32 %v12924_v5, 0.0  ;;  %v13436_v17 = vmax.f32 %v13308_v7, 0.0  ;;  %v12926_v61 = vadd.f32 %v25930_v20, %v12792_v15  ;;  %v19459_v23 = vpop.f32.mrb[126].mxu0 }
 0x6fa   :  { %v13311_v22 = vadd.f32 %v25930_v20, %v13183_v4  ;;  %v13565_v24 = vmax.f32 %v13053_v12, %v13437_v19  ;;  %v13055_v25 = vmax.f32 %v12927_v57, 0.0  ;;  %v12795_v27 = vmul.f32 %v25927_v9, %v19459_v23  ;;  %v11685_v29 = vpop.f32.mrb[127].mxu0 }
 0x6fb   :  { %v13310_v26 = vadd.f32 %v25930_v20, %v13182_v16  ;;  %v19653_v28 = vpop.f32.mrb[126].mxu1  ;;  %v13564_v30 = vmax.f32 %v13052_v21, %v13436_v17  ;;  %v13054_v32 = vmax.f32 %v12926_v61, 0.0  ;;  %v12794_v38 = vmul.f32 %v25927_v9, %v11685_v29 }
 0x6fc   :  { %v13439_v31 = vmax.f32 %v13311_v22, 0.0  ;;  %v13185_v33 = vmul.f32 %v25927_v9, %v19653_v28  ;;  %v12523_v34 = vpop.f32.mrb[127].mxu1  ;;  %v13631_v35 = vmax.f32 %v13563_v1, %v13565_v24  ;;  %v12929_v37 = vadd.f32 %v25930_v20, %v12795_v27 }
 0x6fd   :  { %v13438_v36 = vmax.f32 %v13310_v26, 0.0  ;;  %v13630_v39 = vmax.f32 %v13562_v11, %v13564_v30  ;;  %v13184_v42 = vmul.f32 %v25927_v9, %v12523_v34  ;;  %v12928_v45 = vadd.f32 %v25930_v20, %v12794_v38 }
 0x6fe   :  { %v13567_v40 = vmax.f32 %v13055_v25, %v13439_v31  ;;  %v13313_v41 = vadd.f32 %v25930_v20, %v13185_v33  ;;  %13696 = vst.msk [vmem:[%s26127_s4 + $0x1e8] sm:$0xff] %vm13634_vm2, %v13631_v35  ;;  %v13057_v44 = vmax.f32 %v12929_v37, 0.0 }
 0x6ff   :  { %v13566_v43 = vmax.f32 %v13054_v32, %v13438_v36  ;;  %13695 = vst.msk [vmem:[%s26127_s4 + $0x1e0] sm:$0xff] %vm13634_vm2, %v13630_v39  ;;  %v13312_v47 = vadd.f32 %v25930_v20, %v13184_v42  ;;  %v13056_v48 = vmax.f32 %v12928_v45, 0.0 }
 0x700   :  { %v13441_v46 = vmax.f32 %v13313_v41, 0.0 }
 0x701   :  { %v13440_v9 = vmax.f32 %v13312_v47, 0.0 }
 0x702   :  { %v13569_v49 = vmax.f32 %v13057_v44, %v13441_v46 }
 0x703   :  { %v13568_v51 = vmax.f32 %v13056_v48, %v13440_v9 }
 0x704   :  { %v13633_v50 = vmax.f32 %v13567_v40, %v13569_v49 }
 0x705   :  { %v13632_v52 = vmax.f32 %v13566_v43, %v13568_v51 }
 0x706   :  { %13698 = vst.msk [vmem:[%s26127_s4 + $0x1f8] sm:$0xff] %vm13634_vm2, %v13633_v50 }
 0x707   :  { %13697 = vst.msk [vmem:[%s26127_s4 + $0x1f0] sm:$0xff] %vm13634_vm2, %v13632_v52 }
 0x708   :  { %13703 = vsyncpa [#allocation3], 1 }
 0x709   :  { %13704 = vsyncpa [#allocation5], 1 }

</bundles_post_ra>
